<compile_context>
chip_gen: v6e
topology: v6e:2x2x1
jax: 0.10.0
libtpu: 0.0.40
codegen_flags: <defaults>
</compile_context>

<pallas_src>
import jax
import jax.numpy as jnp
from jax.experimental import pallas as pl
from jax.experimental.pallas import tpu as pltpu


def _ceil_to(x, m):
    return (x + m - 1) // m * m


class _KeyGen:
    def __init__(self, key):
        self.key = key

    def __call__(self):
        self.key, sub = jax.random.split(self.key)
        return sub


class _View:
    """Activation slab: rows [t0, t0+length) x cols [0, channels) of a VMEM ref."""

    __slots__ = ("ref", "t0", "length", "channels")

    def __init__(self, ref, t0, length, channels):
        self.ref = ref
        self.t0 = t0
        self.length = length
        self.channels = channels

    def center_crop(self, target_len):
        diff = self.length - target_len
        assert diff >= 0 and diff % 2 == 0
        return _View(self.ref, self.t0 + diff // 2, target_len, self.channels)


# ----------------------------------------------------------------------------
# Conv layer (Conv1d / ConvTranspose1d + GroupNorm + ReLU), applied in-kernel
# ----------------------------------------------------------------------------
class ConvLayerJ:
    NORM_CHANNELS = 8

    def __init__(self, kg, n_inputs, n_outputs, kernel_size, stride,
                 transpose=False, activation="gn_relu", mxu_dtype=jnp.bfloat16):
        self.n_inputs = n_inputs
        self.n_outputs = n_outputs
        self.kernel_size = kernel_size
        self.stride = stride
        self.transpose = transpose
        self.activation = activation          # "gn_relu" | "clamp" | "none"
        self.mxu_dtype = mxu_dtype
        if activation == "gn_relu":
            assert n_outputs % self.NORM_CHANNELS == 0
        if transpose:
            # polyphase packing below assumes every output phase has >= 1 tap
            assert stride <= kernel_size
            w_shape = (n_inputs, n_outputs, kernel_size)   # torch ConvTranspose1d
        else:
            w_shape = (n_outputs, n_inputs, kernel_size)   # torch Conv1d
        self.w = 0.1 * jax.random.normal(kg(), w_shape, jnp.float32)
        self.b = 0.1 * jax.random.normal(kg(), (n_outputs,), jnp.float32)
        self.gamma = 1.0 + 0.1 * jax.random.normal(kg(), (n_outputs,), jnp.float32)
        self.beta = 0.1 * jax.random.normal(kg(), (n_outputs,), jnp.float32)
        self.index = None                      # assigned by WaveunetJ
        self._pack()

    # one-time weight repack (construction time, not per forward)
    def _pack(self):
        K, S = self.kernel_size, self.stride
        C_in, C_out = self.n_inputs, self.n_outputs
        if self.transpose:
            # flipped taps of the zero-insert formulation: wf[k] = w[:, :, K-1-k]
            wf = jnp.flip(jnp.transpose(self.w, (2, 0, 1)), axis=0)   # (K, C_in, C_out)
            self.phase_taps, self.phase_delta, self.weight_arrays = [], [], []
            for ph in range(S):
                k0 = (S - ph) % S
                taps = list(range(k0, K, S))
                assert taps
                self.phase_taps.append(taps)
                self.phase_delta.append(0 if ph == 0 else 1)
                wp = jnp.concatenate([wf[k] for k in taps], axis=0)   # (L*C_in, C_out)
                self.weight_arrays.append(wp.astype(self.mxu_dtype))
        else:
            # row (k*C_in + c) <-> torch w[c_out, c, k]; matches im2col column order
            wp = jnp.transpose(self.w, (2, 1, 0)).reshape(K * C_in, C_out)
            self.weight_arrays = [wp.astype(self.mxu_dtype)]
        self.p_packed = jnp.stack([self.b, self.gamma, self.beta], axis=0)  # (3, C_out)

    # ---- traced inside the fused Pallas kernel --------------------------------
    def apply(self, dst_ref, srcs, w_refs, p_ref, mask_ref, col_ref):
        K, S = self.kernel_size, self.stride
        C_in, C_out = self.n_inputs, self.n_outputs
        T_in = srcs[0].length
        assert all(v.length == T_in for v in srcs)
        assert sum(v.channels for v in srcs) == C_in
        cdt = col_ref.dtype
        f32 = jnp.float32

        if not self.transpose:
            assert (T_in - K) % S == 0
            T_out = (T_in - K) // S + 1
            # im2col: one lane-block per (tap, source); columns match packed weight rows
            for k in range(K):
                col = k * C_in
                for v in srcs:
                    if S == 1:
                        sl = v.ref[pl.ds(v.t0 + k, T_out), pl.ds(0, v.channels)]
                    else:
                        # strided down-conv: sublane-strided read of the T_out rows
                        # that are actually needed (no one-hot subsample matmul).
                        sl = v.ref[pl.ds(v.t0 + k, T_out, stride=S),
                                   pl.ds(0, v.channels)]
                    col_ref[pl.ds(0, T_out), pl.ds(col, v.channels)] = sl.astype(cdt)
                    col += v.channels
            lhs = col_ref[pl.ds(0, T_out), pl.ds(0, K * C_in)]
            y = jnp.dot(lhs, w_refs[0][...], preferred_element_type=f32)
            y = self._epilogue(y, p_ref, mask_ref, T_out)
            dst_ref[pl.ds(0, T_out), pl.ds(0, C_out)] = y
        else:
            assert len(srcs) == 1
            src = srcs[0]
            T_out = (T_in - 1) * S - K + 2
            for ph in range(S):
                if T_out - 1 - ph < 0:
                    continue
                taps = self.phase_taps[ph]
                delta = self.phase_delta[ph]
                n_p = (T_out - 1 - ph) // S + 1
                for t in range(len(taps)):
                    sl = src.ref[pl.ds(src.t0 + delta + t, n_p), pl.ds(0, C_in)]
                    col_ref[pl.ds(0, n_p), pl.ds(t * C_in, C_in)] = sl.astype(cdt)
                lhs = col_ref[pl.ds(0, n_p), pl.ds(0, len(taps) * C_in)]
                z = jnp.dot(lhs, w_refs[ph][...], preferred_element_type=f32)
                # interleave phases with a strided sublane store (no scatter matmul)
                dst_ref[pl.ds(ph, n_p, stride=S), pl.ds(0, C_out)] = z
            y = dst_ref[pl.ds(0, T_out), pl.ds(0, C_out)]
            y = self._epilogue(y, p_ref, mask_ref, T_out)
            dst_ref[pl.ds(0, T_out), pl.ds(0, C_out)] = y
        return _View(dst_ref, 0, T_out, C_out)

    def _epilogue(self, y, p_ref, mask_ref, T_out):
        f32 = jnp.float32
        prm = p_ref[...]                                   # (3, C_out)
        y = y + prm[0:1, :]                                # bias
        if self.activation == "gn_relu":
            gmask = mask_ref[...]                          # (C_out, C_out) 0/1, precomputed
            inv_n = 1.0 / float(self.NORM_CHANNELS * T_out)
            s1 = jnp.sum(y, axis=0, keepdims=True)
            mean = jnp.dot(s1, gmask, preferred_element_type=f32) * inv_n
            d = y - mean
            s2 = jnp.sum(d * d, axis=0, keepdims=True)
            var = jnp.dot(s2, gmask, preferred_element_type=f32) * inv_n
            inv_std = jax.lax.rsqrt(jnp.maximum(var, 0.0) + 1e-5)
            y = jnp.maximum(d * inv_std * prm[1:2, :] + prm[2:3, :], 0.0)
        elif self.activation == "clamp":
            y = jnp.clip(y, -1.0, 1.0)
        return y

    # ---- size bookkeeping (identical to the PyTorch reference) ----------------
    def get_input_size(self, output_size):
        if not self.transpose:
            curr_size = (output_size - 1) * self.stride + 1
        else:
            curr_size = output_size
        curr_size = curr_size + self.kernel_size - 1
        if self.transpose:
            assert (curr_size - 1) % self.stride == 0
            curr_size = (curr_size - 1) // self.stride + 1
        assert curr_size > 0
        return curr_size

    def get_output_size(self, input_size):
        if self.transpose:
            assert input_size > 1
            curr_size = (input_size - 1) * self.stride + 1
        else:
            curr_size = input_size
        curr_size = curr_size - self.kernel_size + 1
        assert curr_size > 0
        if not self.transpose:
            assert (curr_size - 1) % self.stride == 0
            curr_size = (curr_size - 1) // self.stride + 1
        return curr_size


# ----------------------------------------------------------------------------
# Blocks (structure only; computation happens inside the fused kernel)
# ----------------------------------------------------------------------------
class DownsamplingBlockJ:
    def __init__(self, kg, n_inputs, n_shortcut, n_outputs, kernel_size, stride,
                 depth, mxu_dtype):
        assert stride > 1
        mk = lambda ci, co, s=1: ConvLayerJ(kg, ci, co, kernel_size, s,
                                            mxu_dtype=mxu_dtype)
        self.pre_shortcut_convs = ([mk(n_inputs, n_shortcut)]
                                   + [mk(n_shortcut, n_shortcut) for _ in range(depth - 1)])
        self.post_shortcut_convs = ([mk(n_shortcut, n_outputs)]
                                    + [mk(n_outputs, n_outputs) for _ in range(depth - 1)])
        self.downconv = mk(n_outputs, n_outputs, stride)

    def get_input_size(self, output_size):
        curr_size = self.downconv.get_input_size(output_size)
        for conv in reversed(self.post_shortcut_convs):
            curr_size = conv.get_input_size(curr_size)
        for conv in reversed(self.pre_shortcut_convs):
            curr_size = conv.get_input_size(curr_size)
        return curr_size


class UpsamplingBlockJ:
    def __init__(self, kg, n_inputs, n_shortcut, n_outputs, kernel_size, stride,
                 depth, mxu_dtype):
        assert stride > 1
        self.upconv = ConvLayerJ(kg, n_inputs, n_inputs, kernel_size, stride,
                                 transpose=True, mxu_dtype=mxu_dtype)
        mk = lambda ci, co: ConvLayerJ(kg, ci, co, kernel_size, 1, mxu_dtype=mxu_dtype)
        self.pre_shortcut_convs = ([mk(n_inputs, n_outputs)]
                                   + [mk(n_outputs, n_outputs) for _ in range(depth - 1)])
        self.post_shortcut_convs = ([mk(n_outputs + n_shortcut, n_outputs)]
                                    + [mk(n_outputs, n_outputs) for _ in range(depth - 1)])

    def get_output_size(self, input_size):
        curr_size = self.upconv.get_output_size(input_size)
        for conv in self.pre_shortcut_convs:
            curr_size = conv.get_output_size(curr_size)
        for conv in self.post_shortcut_convs:
            curr_size = conv.get_output_size(curr_size)
        return curr_size


# ----------------------------------------------------------------------------
# Fused Wave-U-Net
# ----------------------------------------------------------------------------
class WaveunetJ:
    def __init__(self, key, num_inputs, num_channels, num_outputs, kernel_size,
                 target_output_size, depth=1, strides=2, training=False,
                 mxu_dtype=jnp.bfloat16):
        kg = _KeyGen(key)
        self.num_levels = len(num_channels)
        self.num_inputs = num_inputs
        self.num_outputs = num_outputs
        self.training = training
        self.mxu_dtype = mxu_dtype

        self.downsampling_blocks = []
        for i in range(self.num_levels - 1):
            in_ch = num_inputs if i == 0 else num_channels[i]
            self.downsampling_blocks.append(
                DownsamplingBlockJ(kg, in_ch, num_channels[i], num_channels[i + 1],
                                   kernel_size, strides, depth, mxu_dtype))

        self.bottlenecks = [
            ConvLayerJ(kg, num_channels[-1], num_channels[-1], kernel_size, 1,
                       mxu_dtype=mxu_dtype)
            for _ in range(depth)]

        self.upsampling_blocks = []
        for i in range(self.num_levels - 1):
            self.upsampling_blocks.append(
                UpsamplingBlockJ(kg, num_channels[-1 - i], num_channels[-2 - i],
                                 num_channels[-2 - i], kernel_size, strides, depth,
                                 mxu_dtype))

        # output_conv = nn.Conv1d(num_channels[0], num_outputs, 1)  (+ eval clamp)
        self.output_conv = ConvLayerJ(
            kg, num_channels[0], num_outputs, 1, 1,
            activation=("none" if training else "clamp"), mxu_dtype=mxu_dtype)

        self.set_output_size(target_output_size)

        # flat layer list (defines the kernel-argument order)
        self.all_layers = []
        for block in self.downsampling_blocks:
            self.all_layers += (block.pre_shortcut_convs + block.post_shortcut_convs
                                + [block.downconv])
        self.all_layers += self.bottlenecks
        for block in self.upsampling_blocks:
            self.all_layers += ([block.upconv] + block.pre_shortcut_convs
                                + block.post_shortcut_convs)
        self.all_layers.append(self.output_conv)
        for i, layer in enumerate(self.all_layers):
            layer.index = i

        # GroupNorm group-combine masks: built once, passed in as constant inputs
        self.gn_mask_channels = sorted({l.n_outputs for l in self.all_layers
                                        if l.activation == "gn_relu"})
        self.gn_masks = {}
        for c in self.gn_mask_channels:
            g = jnp.arange(c) // ConvLayerJ.NORM_CHANNELS
            self.gn_masks[c] = (g[:, None] == g[None, :]).astype(jnp.float32)

        self._forward = jax.jit(self._build_forward())

    # ---- padding / size search (same as PyTorch) -------------------------------
    def set_output_size(self, target_output_size):
        self.target_output_size = target_output_size
        self.input_size, self.output_size = self.check_padding(target_output_size)
        assert (self.input_size - self.output_size) % 2 == 0

    def check_padding(self, target_output_size):
        bottleneck = 1
        while True:
            out = self.check_padding_for_bottleneck(bottleneck, target_output_size)
            if out is not False:
                return out
            bottleneck += 1

    def check_padding_for_bottleneck(self, bottleneck, target_output_size):
        try:
            curr_size = bottleneck
            for block in self.upsampling_blocks:
                curr_size = block.get_output_size(curr_size)
            output_size = curr_size
            curr_size = bottleneck
            for block in reversed(self.bottlenecks):
                curr_size = block.get_input_size(curr_size)
            for block in reversed(self.downsampling_blocks):
                curr_size = block.get_input_size(curr_size)
            assert output_size >= target_output_size
            return curr_size, output_size
        except AssertionError:
            return False

    # ---- static sizing of the skip-shortcut VMEM scratch ------------------------
    def _shortcut_lengths(self):
        lens = []
        t = self.input_size
        for block in self.downsampling_blocks:
            for conv in block.pre_shortcut_convs:
                t = conv.get_output_size(t)
            lens.append(t)
            for conv in block.post_shortcut_convs:
                t = conv.get_output_size(t)
            t = block.downconv.get_output_size(t)
        return lens

    # ---- fused forward ----------------------------------------------------------
    def _build_forward(self):
        layers = self.all_layers
        downs = self.downsampling_blocks
        ups = self.upsampling_blocks
        bottlenecks = self.bottlenecks
        out_layer = self.output_conv
        in_T, in_C = self.input_size, self.num_inputs
        out_T, out_C = self.output_size, self.num_outputs
        n_down = len(downs)
        mask_channels = self.gn_mask_channels
        w_counts = [len(l.weight_arrays) for l in layers]

        # ---- static VMEM scratch plan ------------------------------------------
        T_main = _ceil_to(in_T, 8)                 # activations never exceed in_T rows
        C_main = _ceil_to(max(l.n_outputs for l in layers), 8)
        short_lens = self._shortcut_lengths()
        short_chs = [blk.pre_shortcut_convs[-1].n_outputs for blk in downs]
        col_C = max(l.kernel_size * l.n_inputs for l in layers)
        scratch_plan = ([((T_main, C_main), jnp.float32)] * 3          # rotating act bufs
                        + [((_ceil_to(tl, 8), ch), jnp.float32)        # skip shortcuts
                           for tl, ch in zip(short_lens, short_chs)]
                        + [((T_main, col_C), self.mxu_dtype)])         # im2col staging
        scratch_shapes = [pltpu.VMEM(s, d) for s, d in scratch_plan]

        def kernel(*refs):
            pos = [0]

            def take():
                r = refs[pos[0]]
                pos[0] += 1
                return r

            x_ref = take()
            layer_w, layer_p = [], []
            for n in w_counts:
                layer_w.append([take() for _ in range(n)])
                layer_p.append(take())
            mask_refs = {c: take() for c in mask_channels}
            o_ref = take()
            mains = [take() for _ in range(3)]
            short_refs = [take() for _ in range(n_down)]
            col_ref = take()
            assert pos[0] == len(refs)

            def pick(avoid):
                for r in mains:
                    if not any(r is a for a in avoid):
                        return r
                raise AssertionError("no free activation buffer")

            def run(layer, srcs, dst_ref):
                srcs = srcs if isinstance(srcs, list) else [srcs]
                mask = (mask_refs[layer.n_outputs]
                        if layer.activation == "gn_relu" else None)
                return layer.apply(dst_ref, srcs, layer_w[layer.index],
                                   layer_p[layer.index], mask, col_ref)

            out = _View(x_ref, 0, in_T, in_C)
            shortcuts = []
            for bi, block in enumerate(downs):
                for li, conv in enumerate(block.pre_shortcut_convs):
                    last = li == len(block.pre_shortcut_convs) - 1
                    dst = short_refs[bi] if last else pick([out.ref])
                    out = run(conv, out, dst)
                short = out                              # lives in its own scratch
                shortcuts.append(short)
                for conv in block.post_shortcut_convs:
                    out = run(conv, out, pick([out.ref]))
                out = run(block.downconv, out, pick([out.ref]))
            for conv in bottlenecks:
                out = run(conv, out, pick([out.ref]))
            for ui, block in enumerate(ups):
                short = shortcuts[-1 - ui]
                up = run(block.upconv, out, pick([out.ref]))
                for conv in block.pre_shortcut_convs:
                    up = run(conv, up, pick([up.ref]))
                combined = short.center_crop(up.length)
                for conv in block.post_shortcut_convs:
                    # channel-concat skip == both sources folded into one im2col matmul
                    dst = pick([combined.ref, up.ref])
                    combined = run(conv, [combined, up.center_crop(combined.length)],
                                   dst)
                out = combined
            final = run(out_layer, out, o_ref)          # 1x1 conv (+ eval clamp)
            assert final.length == out_T and final.channels == out_C

        # ---- BlockSpecs ---------------------------------------------------------
        def const_spec(arr):
            nd = arr.ndim
            # constant block index -> fetched once; see TODO(synk) re pl.Buffered(1)
            return pl.BlockSpec(arr.shape, lambda b, nd=nd: (0,) * nd)

        const_args, in_specs = [], []
        in_specs.append(pl.BlockSpec((None, in_T, in_C), lambda b: (b, 0, 0)))
        for layer in layers:
            for arr in layer.weight_arrays:
                const_args.append(arr)
                in_specs.append(const_spec(arr))
            const_args.append(layer.p_packed)
            in_specs.append(const_spec(layer.p_packed))
        for c in mask_channels:
            const_args.append(self.gn_masks[c])
            in_specs.append(const_spec(self.gn_masks[c]))

        # ---- explicit VMEM budget (lane/sublane padded), valid on v5e/v6e/v7x ---
        def padded_bytes(shape, dtype):
            item = jnp.dtype(dtype).itemsize
            dims = list(shape)
            dims[-1] = _ceil_to(dims[-1], 128)
            if len(dims) >= 2:
                dims[-2] = _ceil_to(dims[-2], 8 * (4 // item))
            n = 1
            for d in dims:
                n *= d
            return n * item

        est = sum(padded_bytes(s, d) for s, d in scratch_plan)
        est += 2 * padded_bytes((in_T, in_C), jnp.float32)
        est += 2 * padded_bytes((out_T, out_C), jnp.float32)
        est += 2 * sum(padded_bytes(a.shape, a.dtype) for a in const_args)
        vmem_limit = int(min(64 * 2 ** 20, max(32 * 2 ** 20, 4 * est)))

        def forward(x):
            B = x.shape[0]
            return pl.pallas_call(
                kernel,
                out_shape=jax.ShapeDtypeStruct((B, out_T, out_C), jnp.float32),
                grid=(B,),
                in_specs=in_specs,
                out_specs=pl.BlockSpec((None, out_T, out_C), lambda b: (b, 0, 0)),
                scratch_shapes=scratch_shapes,
                compiler_params=pltpu.CompilerParams(
                    dimension_semantics=("parallel",),
                    vmem_limit_bytes=vmem_limit),
            )(x.astype(jnp.float32), *const_args)

        return forward

    def __call__(self, x):
        assert x.shape[1] == self.input_size
        return self._forward(x)


# ----------------------------------------------------------------------------
# plain-JAX reference (mirrors the PyTorch semantics, with the same bf16 MXU
# operand quantisation as the kernel so the check isolates structural errors)
# ----------------------------------------------------------------------------
def reference_forward(net, x):
    HI = jax.lax.Precision.HIGHEST
    q = lambda a: a.astype(net.mxu_dtype)

    def conv_ref(layer, h):
        K, S = layer.kernel_size, layer.stride
        if layer.transpose:
            B, T, C = h.shape
            Td = (T - 1) * S + 1
            hd = jnp.zeros((B, Td, C), h.dtype).at[:, ::S, :].set(h)
            wf = jnp.flip(jnp.transpose(layer.w, (2, 0, 1)), axis=0)   # (K,Cin,Cout)
            T_out = Td - K + 1
            y = sum(jnp.einsum("btc,co->bto", q(hd[:, k:k + T_out, :]), q(wf[k]),
                               precision=HI, preferred_element_type=jnp.float32)
                    for k in range(K))
        else:
            w_k = jnp.transpose(layer.w, (2, 1, 0))                    # (K,Cin,Cout)
            T = h.shape[1]
            T_full = T - K + 1
            y = sum(jnp.einsum("btc,co->bto", q(h[:, k:k + T_full, :]), q(w_k[k]),
                               precision=HI, preferred_element_type=jnp.float32)
                    for k in range(K))
            if S > 1:
                y = y[:, ::S, :]
        y = y + layer.b[None, None, :]
        if layer.activation == "gn_relu":
            B, T, C = y.shape
            G = C // ConvLayerJ.NORM_CHANNELS
            yg = y.reshape(B, T, G, ConvLayerJ.NORM_CHANNELS)
            mean = yg.mean(axis=(1, 3), keepdims=True)
            var = jnp.mean((yg - mean) ** 2, axis=(1, 3), keepdims=True)
            yg = (yg - mean) * jax.lax.rsqrt(var + 1e-5)
            y = yg.reshape(B, T, C) * layer.gamma[None, None, :] + layer.beta[None, None, :]
            y = jnp.maximum(y, 0.0)
        elif layer.activation == "clamp":
            y = jnp.clip(y, -1.0, 1.0)
        return y

    def crop(a, tgt):
        d = a.shape[1] - tgt.shape[1]
        c = d // 2
        return a if c == 0 else a[:, c:-c, :]

    out = x
    shortcuts = []
    for block in net.downsampling_blocks:
        short = out
        for conv in block.pre_shortcut_convs:
            short = conv_ref(conv, short)
        out = short
        for conv in block.post_shortcut_convs:
            out = conv_ref(conv, out)
        out = conv_ref(block.downconv, out)
        shortcuts.append(short)
    for conv in net.bottlenecks:
        out = conv_ref(conv, out)
    for idx, block in enumerate(net.upsampling_blocks):
        shortcut = shortcuts[-1 - idx]
        upsampled = conv_ref(block.upconv, out)
        for conv in block.pre_shortcut_convs:
            upsampled = conv_ref(conv, upsampled)
        combined = crop(shortcut, upsampled)
        for conv in block.post_shortcut_convs:
            combined = conv_ref(conv, jnp.concatenate(
                [combined, crop(upsampled, combined)], axis=2))
        out = combined
    return conv_ref(net.output_conv, out)


# ----------------------------------------------------------------------------
if __name__ == "__main__":
    key = jax.random.PRNGKey(0)
    k_params, k_x = jax.random.split(key)

    net = WaveunetJ(
        k_params,
        num_inputs=2,
        num_channels=[8, 16, 24],
        num_outputs=2,
        kernel_size=5,
        target_output_size=16,
        depth=1,
        strides=2,
        training=False,          # eval mode => output clamped to [-1, 1]
    )

    B = 2
    # (B, T, C) layout; the torch-equivalent input would be (B, C, T)
    x = jax.random.normal(k_x, (B, net.input_size, net.num_inputs), jnp.float32)

    out = jax.block_until_ready(net(x))
    assert out.shape == (B, net.output_size, net.num_outputs), out.shape
    assert bool(jnp.all(jnp.isfinite(out)))
    assert bool(jnp.all(out <= 1.0)) and bool(jnp.all(out >= -1.0))

    # validate against a plain-JAX reference of the PyTorch forward
    ref = jax.block_until_ready(reference_forward(net, x))
    max_err = float(jnp.max(jnp.abs(out - ref)))
    assert max_err < 5e-2, f"mismatch vs reference: {max_err}"

    print("KERNEL_OK")
</pallas_src>

<mosaic_0001>
module attributes {stable_mosaic.version = 11 : i64} {
  func.func @kernel(%arg0: i32, %arg1: memref<1x105x2xf32, #tpu.memory_space<vmem>>, %arg2: memref<10x8xbf16, #tpu.memory_space<vmem>>, %arg3: memref<3x8xf32, #tpu.memory_space<vmem>>, %arg4: memref<40x16xbf16, #tpu.memory_space<vmem>>, %arg5: memref<3x16xf32, #tpu.memory_space<vmem>>, %arg6: memref<80x16xbf16, #tpu.memory_space<vmem>>, %arg7: memref<3x16xf32, #tpu.memory_space<vmem>>, %arg8: memref<80x16xbf16, #tpu.memory_space<vmem>>, %arg9: memref<3x16xf32, #tpu.memory_space<vmem>>, %arg10: memref<80x24xbf16, #tpu.memory_space<vmem>>, %arg11: memref<3x24xf32, #tpu.memory_space<vmem>>, %arg12: memref<120x24xbf16, #tpu.memory_space<vmem>>, %arg13: memref<3x24xf32, #tpu.memory_space<vmem>>, %arg14: memref<120x24xbf16, #tpu.memory_space<vmem>>, %arg15: memref<3x24xf32, #tpu.memory_space<vmem>>, %arg16: memref<72x24xbf16, #tpu.memory_space<vmem>>, %arg17: memref<48x24xbf16, #tpu.memory_space<vmem>>, %arg18: memref<3x24xf32, #tpu.memory_space<vmem>>, %arg19: memref<120x16xbf16, #tpu.memory_space<vmem>>, %arg20: memref<3x16xf32, #tpu.memory_space<vmem>>, %arg21: memref<160x16xbf16, #tpu.memory_space<vmem>>, %arg22: memref<3x16xf32, #tpu.memory_space<vmem>>, %arg23: memref<48x16xbf16, #tpu.memory_space<vmem>>, %arg24: memref<32x16xbf16, #tpu.memory_space<vmem>>, %arg25: memref<3x16xf32, #tpu.memory_space<vmem>>, %arg26: memref<80x8xbf16, #tpu.memory_space<vmem>>, %arg27: memref<3x8xf32, #tpu.memory_space<vmem>>, %arg28: memref<80x8xbf16, #tpu.memory_space<vmem>>, %arg29: memref<3x8xf32, #tpu.memory_space<vmem>>, %arg30: memref<8x2xbf16, #tpu.memory_space<vmem>>, %arg31: memref<3x2xf32, #tpu.memory_space<vmem>>, %arg32: memref<8x8xf32, #tpu.memory_space<vmem>>, %arg33: memref<16x16xf32, #tpu.memory_space<vmem>>, %arg34: memref<24x24xf32, #tpu.memory_space<vmem>>, %arg35: memref<1x17x2xf32, #tpu.memory_space<vmem>>, %arg36: memref<112x24xf32, #tpu.memory_space<vmem>>, %arg37: memref<112x24xf32, #tpu.memory_space<vmem>>, %arg38: memref<112x24xf32, #tpu.memory_space<vmem>>, %arg39: memref<104x8xf32, #tpu.memory_space<vmem>>, %arg40: memref<48x16xf32, #tpu.memory_space<vmem>>, %arg41: memref<112x160xbf16, #tpu.memory_space<vmem>>) attributes {dimension_semantics = [#tpu.dimension_semantics<parallel>], iteration_bounds = array<i64: 2>, scalar_prefetch = 0 : i64, scratch_operands = 6 : i64, tpu.core_type = #tpu.core_type<tc>, window_params = [{transform_indices = @transform_0, window_bounds = array<i64: 1, 105, 2>}, {pipeline_mode = #tpu.pipeline_mode<synchronous>, transform_indices = @transform_1, window_bounds = array<i64: 10, 8>}, {pipeline_mode = #tpu.pipeline_mode<synchronous>, transform_indices = @transform_2, window_bounds = array<i64: 3, 8>}, {pipeline_mode = #tpu.pipeline_mode<synchronous>, transform_indices = @transform_3, window_bounds = array<i64: 40, 16>}, {pipeline_mode = #tpu.pipeline_mode<synchronous>, transform_indices = @transform_4, window_bounds = array<i64: 3, 16>}, {pipeline_mode = #tpu.pipeline_mode<synchronous>, transform_indices = @transform_5, window_bounds = array<i64: 80, 16>}, {pipeline_mode = #tpu.pipeline_mode<synchronous>, transform_indices = @transform_6, window_bounds = array<i64: 3, 16>}, {pipeline_mode = #tpu.pipeline_mode<synchronous>, transform_indices = @transform_7, window_bounds = array<i64: 80, 16>}, {pipeline_mode = #tpu.pipeline_mode<synchronous>, transform_indices = @transform_8, window_bounds = array<i64: 3, 16>}, {pipeline_mode = #tpu.pipeline_mode<synchronous>, transform_indices = @transform_9, window_bounds = array<i64: 80, 24>}, {pipeline_mode = #tpu.pipeline_mode<synchronous>, transform_indices = @transform_10, window_bounds = array<i64: 3, 24>}, {pipeline_mode = #tpu.pipeline_mode<synchronous>, transform_indices = @transform_11, window_bounds = array<i64: 120, 24>}, {pipeline_mode = #tpu.pipeline_mode<synchronous>, transform_indices = @transform_12, window_bounds = array<i64: 3, 24>}, {pipeline_mode = #tpu.pipeline_mode<synchronous>, transform_indices = @transform_13, window_bounds = array<i64: 120, 24>}, {pipeline_mode = #tpu.pipeline_mode<synchronous>, transform_indices = @transform_14, window_bounds = array<i64: 3, 24>}, {pipeline_mode = #tpu.pipeline_mode<synchronous>, transform_indices = @transform_15, window_bounds = array<i64: 72, 24>}, {pipeline_mode = #tpu.pipeline_mode<synchronous>, transform_indices = @transform_16, window_bounds = array<i64: 48, 24>}, {pipeline_mode = #tpu.pipeline_mode<synchronous>, transform_indices = @transform_17, window_bounds = array<i64: 3, 24>}, {pipeline_mode = #tpu.pipeline_mode<synchronous>, transform_indices = @transform_18, window_bounds = array<i64: 120, 16>}, {pipeline_mode = #tpu.pipeline_mode<synchronous>, transform_indices = @transform_19, window_bounds = array<i64: 3, 16>}, {pipeline_mode = #tpu.pipeline_mode<synchronous>, transform_indices = @transform_20, window_bounds = array<i64: 160, 16>}, {pipeline_mode = #tpu.pipeline_mode<synchronous>, transform_indices = @transform_21, window_bounds = array<i64: 3, 16>}, {pipeline_mode = #tpu.pipeline_mode<synchronous>, transform_indices = @transform_22, window_bounds = array<i64: 48, 16>}, {pipeline_mode = #tpu.pipeline_mode<synchronous>, transform_indices = @transform_23, window_bounds = array<i64: 32, 16>}, {pipeline_mode = #tpu.pipeline_mode<synchronous>, transform_indices = @transform_24, window_bounds = array<i64: 3, 16>}, {pipeline_mode = #tpu.pipeline_mode<synchronous>, transform_indices = @transform_25, window_bounds = array<i64: 80, 8>}, {pipeline_mode = #tpu.pipeline_mode<synchronous>, transform_indices = @transform_26, window_bounds = array<i64: 3, 8>}, {pipeline_mode = #tpu.pipeline_mode<synchronous>, transform_indices = @transform_27, window_bounds = array<i64: 80, 8>}, {pipeline_mode = #tpu.pipeline_mode<synchronous>, transform_indices = @transform_28, window_bounds = array<i64: 3, 8>}, {pipeline_mode = #tpu.pipeline_mode<synchronous>, transform_indices = @transform_29, window_bounds = array<i64: 8, 2>}, {pipeline_mode = #tpu.pipeline_mode<synchronous>, transform_indices = @transform_30, window_bounds = array<i64: 3, 2>}, {pipeline_mode = #tpu.pipeline_mode<synchronous>, transform_indices = @transform_31, window_bounds = array<i64: 8, 8>}, {pipeline_mode = #tpu.pipeline_mode<synchronous>, transform_indices = @transform_32, window_bounds = array<i64: 16, 16>}, {pipeline_mode = #tpu.pipeline_mode<synchronous>, transform_indices = @transform_33, window_bounds = array<i64: 24, 24>}, {transform_indices = @transform_34, window_bounds = array<i64: 1, 17, 2>}]} {
    %c0 = arith.constant 0 : index
    %c0_0 = arith.constant 0 : index
    %c0_1 = arith.constant 0 : index
    %0 = vector.load %arg1[%c0, %c0_0, %c0_1] : memref<1x105x2xf32, #tpu.memory_space<vmem>>, vector<1x101x2xf32>
    %1 = vector.shape_cast %0 : vector<1x101x2xf32> to vector<101x2xf32>
    %2 = arith.truncf %1 : vector<101x2xf32> to vector<101x2xbf16>
    %c0_2 = arith.constant 0 : index
    %c0_3 = arith.constant 0 : index
    %3 = vector.load %arg41[%c0_2, %c0_3] : memref<112x160xbf16, #tpu.memory_space<vmem>>, vector<101x2xbf16>
    tpu.vector_store %arg41[%c0_2, %c0_3], %2 {strides = array<i32>} : memref<112x160xbf16, #tpu.memory_space<vmem>>, vector<101x2xbf16>,
    %c0_4 = arith.constant 0 : index
    %c1 = arith.constant 1 : index
    %c0_5 = arith.constant 0 : index
    %4 = vector.load %arg1[%c0_4, %c1, %c0_5] : memref<1x105x2xf32, #tpu.memory_space<vmem>>, vector<1x101x2xf32>
    %5 = vector.shape_cast %4 : vector<1x101x2xf32> to vector<101x2xf32>
    %6 = arith.truncf %5 : vector<101x2xf32> to vector<101x2xbf16>
    %c0_6 = arith.constant 0 : index
    %c2 = arith.constant 2 : index
    %7 = vector.load %arg41[%c0_6, %c2] : memref<112x160xbf16, #tpu.memory_space<vmem>>, vector<101x2xbf16>
    tpu.vector_store %arg41[%c0_6, %c2], %6 {strides = array<i32>} : memref<112x160xbf16, #tpu.memory_space<vmem>>, vector<101x2xbf16>,
    %c0_7 = arith.constant 0 : index
    %c2_8 = arith.constant 2 : index
    %c0_9 = arith.constant 0 : index
    %8 = vector.load %arg1[%c0_7, %c2_8, %c0_9] : memref<1x105x2xf32, #tpu.memory_space<vmem>>, vector<1x101x2xf32>
    %9 = vector.shape_cast %8 : vector<1x101x2xf32> to vector<101x2xf32>
    %10 = arith.truncf %9 : vector<101x2xf32> to vector<101x2xbf16>
    %c0_10 = arith.constant 0 : index
    %c4 = arith.constant 4 : index
    %11 = vector.load %arg41[%c0_10, %c4] : memref<112x160xbf16, #tpu.memory_space<vmem>>, vector<101x2xbf16>
    tpu.vector_store %arg41[%c0_10, %c4], %10 {strides = array<i32>} : memref<112x160xbf16, #tpu.memory_space<vmem>>, vector<101x2xbf16>,
    %c0_11 = arith.constant 0 : index
    %c3 = arith.constant 3 : index
    %c0_12 = arith.constant 0 : index
    %12 = vector.load %arg1[%c0_11, %c3, %c0_12] : memref<1x105x2xf32, #tpu.memory_space<vmem>>, vector<1x101x2xf32>
    %13 = vector.shape_cast %12 : vector<1x101x2xf32> to vector<101x2xf32>
    %14 = arith.truncf %13 : vector<101x2xf32> to vector<101x2xbf16>
    %c0_13 = arith.constant 0 : index
    %c6 = arith.constant 6 : index
    %15 = vector.load %arg41[%c0_13, %c6] : memref<112x160xbf16, #tpu.memory_space<vmem>>, vector<101x2xbf16>
    tpu.vector_store %arg41[%c0_13, %c6], %14 {strides = array<i32>} : memref<112x160xbf16, #tpu.memory_space<vmem>>, vector<101x2xbf16>,
    %c0_14 = arith.constant 0 : index
    %c4_15 = arith.constant 4 : index
    %c0_16 = arith.constant 0 : index
    %16 = vector.load %arg1[%c0_14, %c4_15, %c0_16] : memref<1x105x2xf32, #tpu.memory_space<vmem>>, vector<1x101x2xf32>
    %17 = vector.shape_cast %16 : vector<1x101x2xf32> to vector<101x2xf32>
    %18 = arith.truncf %17 : vector<101x2xf32> to vector<101x2xbf16>
    %c0_17 = arith.constant 0 : index
    %c8 = arith.constant 8 : index
    %19 = vector.load %arg41[%c0_17, %c8] : memref<112x160xbf16, #tpu.memory_space<vmem>>, vector<101x2xbf16>
    tpu.vector_store %arg41[%c0_17, %c8], %18 {strides = array<i32>} : memref<112x160xbf16, #tpu.memory_space<vmem>>, vector<101x2xbf16>,
    %c0_18 = arith.constant 0 : index
    %c0_19 = arith.constant 0 : index
    %20 = vector.load %arg41[%c0_18, %c0_19] : memref<112x160xbf16, #tpu.memory_space<vmem>>, vector<101x10xbf16>
    %c0_20 = arith.constant 0 : index
    %c0_21 = arith.constant 0 : index
    %21 = vector.load %arg2[%c0_20, %c0_21] : memref<10x8xbf16, #tpu.memory_space<vmem>>, vector<10x8xbf16>
    %cst = arith.constant dense<0.000000e+00> : vector<101x8xf32>
    %22 = tpu.matmul %20, %21, %cst {dimension_numbers = #tpu.dot_dimension_numbers<[1], [0], [0], [1], [0, 0, 1, 1], [], []>} : vector<101x10xbf16>, vector<10x8xbf16>, vector<101x8xf32> -> vector<101x8xf32>
    %c0_22 = arith.constant 0 : index
    %c0_23 = arith.constant 0 : index
    %23 = vector.load %arg3[%c0_22, %c0_23] : memref<3x8xf32, #tpu.memory_space<vmem>>, vector<3x8xf32>
    %24 = vector.extract_strided_slice %23 {offsets = [0, 0], sizes = [1, 8], strides = [1, 1]} : vector<3x8xf32> to vector<1x8xf32>
    %25 = vector.broadcast %24 : vector<1x8xf32> to vector<101x8xf32>
    %26 = arith.addf %22, %25 : vector<101x8xf32>
    %c0_24 = arith.constant 0 : index
    %c0_25 = arith.constant 0 : index
    %27 = vector.load %arg32[%c0_24, %c0_25] : memref<8x8xf32, #tpu.memory_space<vmem>>, vector<8x8xf32>
    %cst_26 = arith.constant dense<0.000000e+00> : vector<8xf32>
    %28 = vector.multi_reduction <add>, %26, %cst_26 [0] : vector<101x8xf32> to vector<8xf32>
    %29 = vector.shape_cast %28 : vector<8xf32> to vector<1x8xf32>
    %cst_27 = arith.constant dense<0.000000e+00> : vector<1x8xf32>
    %30 = tpu.matmul %29, %27, %cst_27 {dimension_numbers = #tpu.dot_dimension_numbers<[1], [0], [0], [1], [0, 0, 1, 1], [], []>} : vector<1x8xf32>, vector<8x8xf32>, vector<1x8xf32> -> vector<1x8xf32>
    %cst_28 = arith.constant 0.00123762374 : f32
    %31 = vector.broadcast %cst_28 : f32 to vector<1x8xf32>
    %32 = arith.mulf %30, %31 : vector<1x8xf32>
    %33 = vector.broadcast %32 : vector<1x8xf32> to vector<101x8xf32>
    %34 = arith.subf %26, %33 : vector<101x8xf32>
    %35 = arith.mulf %34, %34 : vector<101x8xf32>
    %cst_29 = arith.constant dense<0.000000e+00> : vector<8xf32>
    %36 = vector.multi_reduction <add>, %35, %cst_29 [0] : vector<101x8xf32> to vector<8xf32>
    %37 = vector.shape_cast %36 : vector<8xf32> to vector<1x8xf32>
    %cst_30 = arith.constant dense<0.000000e+00> : vector<1x8xf32>
    %38 = tpu.matmul %37, %27, %cst_30 {dimension_numbers = #tpu.dot_dimension_numbers<[1], [0], [0], [1], [0, 0, 1, 1], [], []>} : vector<1x8xf32>, vector<8x8xf32>, vector<1x8xf32> -> vector<1x8xf32>
    %cst_31 = arith.constant 0.00123762374 : f32
    %39 = vector.broadcast %cst_31 : f32 to vector<1x8xf32>
    %40 = arith.mulf %38, %39 : vector<1x8xf32>
    %cst_32 = arith.constant 0.000000e+00 : f32
    %41 = vector.broadcast %cst_32 : f32 to vector<1x8xf32>
    %42 = arith.maximumf %40, %41 : vector<1x8xf32>
    %cst_33 = arith.constant 9.99999974E-6 : f32
    %43 = vector.broadcast %cst_33 : f32 to vector<1x8xf32>
    %44 = arith.addf %42, %43 : vector<1x8xf32>
    %45 = math.rsqrt %44 : vector<1x8xf32>
    %46 = vector.broadcast %45 : vector<1x8xf32> to vector<101x8xf32>
    %47 = arith.mulf %34, %46 : vector<101x8xf32>
    %48 = vector.extract_strided_slice %23 {offsets = [1, 0], sizes = [1, 8], strides = [1, 1]} : vector<3x8xf32> to vector<1x8xf32>
    %49 = vector.broadcast %48 : vector<1x8xf32> to vector<101x8xf32>
    %50 = arith.mulf %47, %49 : vector<101x8xf32>
    %51 = vector.extract_strided_slice %23 {offsets = [2, 0], sizes = [1, 8], strides = [1, 1]} : vector<3x8xf32> to vector<1x8xf32>
    %52 = vector.broadcast %51 : vector<1x8xf32> to vector<101x8xf32>
    %53 = arith.addf %50, %52 : vector<101x8xf32>
    %cst_34 = arith.constant 0.000000e+00 : f32
    %54 = vector.broadcast %cst_34 : f32 to vector<101x8xf32>
    %55 = arith.maximumf %53, %54 : vector<101x8xf32>
    %c0_35 = arith.constant 0 : index
    %c0_36 = arith.constant 0 : index
    %56 = vector.load %arg39[%c0_35, %c0_36] : memref<104x8xf32, #tpu.memory_space<vmem>>, vector<101x8xf32>
    tpu.vector_store %arg39[%c0_35, %c0_36], %55 {strides = array<i32>} : memref<104x8xf32, #tpu.memory_space<vmem>>, vector<101x8xf32>,
    %c0_37 = arith.constant 0 : index
    %c0_38 = arith.constant 0 : index
    %57 = vector.load %arg39[%c0_37, %c0_38] : memref<104x8xf32, #tpu.memory_space<vmem>>, vector<97x8xf32>
    %58 = arith.truncf %57 : vector<97x8xf32> to vector<97x8xbf16>
    %c0_39 = arith.constant 0 : index
    %c0_40 = arith.constant 0 : index
    %59 = vector.load %arg41[%c0_39, %c0_40] : memref<112x160xbf16, #tpu.memory_space<vmem>>, vector<97x8xbf16>
    tpu.vector_store %arg41[%c0_39, %c0_40], %58 {strides = array<i32>} : memref<112x160xbf16, #tpu.memory_space<vmem>>, vector<97x8xbf16>,
    %c1_41 = arith.constant 1 : index
    %c0_42 = arith.constant 0 : index
    %60 = vector.load %arg39[%c1_41, %c0_42] : memref<104x8xf32, #tpu.memory_space<vmem>>, vector<97x8xf32>
    %61 = arith.truncf %60 : vector<97x8xf32> to vector<97x8xbf16>
    %c0_43 = arith.constant 0 : index
    %c8_44 = arith.constant 8 : index
    %62 = vector.load %arg41[%c0_43, %c8_44] : memref<112x160xbf16, #tpu.memory_space<vmem>>, vector<97x8xbf16>
    tpu.vector_store %arg41[%c0_43, %c8_44], %61 {strides = array<i32>} : memref<112x160xbf16, #tpu.memory_space<vmem>>, vector<97x8xbf16>,
    %c2_45 = arith.constant 2 : index
    %c0_46 = arith.constant 0 : index
    %63 = vector.load %arg39[%c2_45, %c0_46] : memref<104x8xf32, #tpu.memory_space<vmem>>, vector<97x8xf32>
    %64 = arith.truncf %63 : vector<97x8xf32> to vector<97x8xbf16>
    %c0_47 = arith.constant 0 : index
    %c16 = arith.constant 16 : index
    %65 = vector.load %arg41[%c0_47, %c16] : memref<112x160xbf16, #tpu.memory_space<vmem>>, vector<97x8xbf16>
    tpu.vector_store %arg41[%c0_47, %c16], %64 {strides = array<i32>} : memref<112x160xbf16, #tpu.memory_space<vmem>>, vector<97x8xbf16>,
    %c3_48 = arith.constant 3 : index
    %c0_49 = arith.constant 0 : index
    %66 = vector.load %arg39[%c3_48, %c0_49] : memref<104x8xf32, #tpu.memory_space<vmem>>, vector<97x8xf32>
    %67 = arith.truncf %66 : vector<97x8xf32> to vector<97x8xbf16>
    %c0_50 = arith.constant 0 : index
    %c24 = arith.constant 24 : index
    %68 = vector.load %arg41[%c0_50, %c24] : memref<112x160xbf16, #tpu.memory_space<vmem>>, vector<97x8xbf16>
    tpu.vector_store %arg41[%c0_50, %c24], %67 {strides = array<i32>} : memref<112x160xbf16, #tpu.memory_space<vmem>>, vector<97x8xbf16>,
    %c4_51 = arith.constant 4 : index
    %c0_52 = arith.constant 0 : index
    %69 = vector.load %arg39[%c4_51, %c0_52] : memref<104x8xf32, #tpu.memory_space<vmem>>, vector<97x8xf32>
    %70 = arith.truncf %69 : vector<97x8xf32> to vector<97x8xbf16>
    %c0_53 = arith.constant 0 : index
    %c32 = arith.constant 32 : index
    %71 = vector.load %arg41[%c0_53, %c32] : memref<112x160xbf16, #tpu.memory_space<vmem>>, vector<97x8xbf16>
    tpu.vector_store %arg41[%c0_53, %c32], %70 {strides = array<i32>} : memref<112x160xbf16, #tpu.memory_space<vmem>>, vector<97x8xbf16>,
    %c0_54 = arith.constant 0 : index
    %c0_55 = arith.constant 0 : index
    %72 = vector.load %arg41[%c0_54, %c0_55] : memref<112x160xbf16, #tpu.memory_space<vmem>>, vector<97x40xbf16>
    %c0_56 = arith.constant 0 : index
    %c0_57 = arith.constant 0 : index
    %73 = vector.load %arg4[%c0_56, %c0_57] : memref<40x16xbf16, #tpu.memory_space<vmem>>, vector<40x16xbf16>
    %cst_58 = arith.constant dense<0.000000e+00> : vector<97x16xf32>
    %74 = tpu.matmul %72, %73, %cst_58 {dimension_numbers = #tpu.dot_dimension_numbers<[1], [0], [0], [1], [0, 0, 1, 1], [], []>} : vector<97x40xbf16>, vector<40x16xbf16>, vector<97x16xf32> -> vector<97x16xf32>
    %c0_59 = arith.constant 0 : index
    %c0_60 = arith.constant 0 : index
    %75 = vector.load %arg5[%c0_59, %c0_60] : memref<3x16xf32, #tpu.memory_space<vmem>>, vector<3x16xf32>
    %76 = vector.extract_strided_slice %75 {offsets = [0, 0], sizes = [1, 16], strides = [1, 1]} : vector<3x16xf32> to vector<1x16xf32>
    %77 = vector.broadcast %76 : vector<1x16xf32> to vector<97x16xf32>
    %78 = arith.addf %74, %77 : vector<97x16xf32>
    %c0_61 = arith.constant 0 : index
    %c0_62 = arith.constant 0 : index
    %79 = vector.load %arg33[%c0_61, %c0_62] : memref<16x16xf32, #tpu.memory_space<vmem>>, vector<16x16xf32>
    %cst_63 = arith.constant dense<0.000000e+00> : vector<16xf32>
    %80 = vector.multi_reduction <add>, %78, %cst_63 [0] : vector<97x16xf32> to vector<16xf32>
    %81 = vector.shape_cast %80 : vector<16xf32> to vector<1x16xf32>
    %cst_64 = arith.constant dense<0.000000e+00> : vector<1x16xf32>
    %82 = tpu.matmul %81, %79, %cst_64 {dimension_numbers = #tpu.dot_dimension_numbers<[1], [0], [0], [1], [0, 0, 1, 1], [], []>} : vector<1x16xf32>, vector<16x16xf32>, vector<1x16xf32> -> vector<1x16xf32>
    %cst_65 = arith.constant 0.00128865975 : f32
    %83 = vector.broadcast %cst_65 : f32 to vector<1x16xf32>
    %84 = arith.mulf %82, %83 : vector<1x16xf32>
    %85 = vector.broadcast %84 : vector<1x16xf32> to vector<97x16xf32>
    %86 = arith.subf %78, %85 : vector<97x16xf32>
    %87 = arith.mulf %86, %86 : vector<97x16xf32>
    %cst_66 = arith.constant dense<0.000000e+00> : vector<16xf32>
    %88 = vector.multi_reduction <add>, %87, %cst_66 [0] : vector<97x16xf32> to vector<16xf32>
    %89 = vector.shape_cast %88 : vector<16xf32> to vector<1x16xf32>
    %cst_67 = arith.constant dense<0.000000e+00> : vector<1x16xf32>
    %90 = tpu.matmul %89, %79, %cst_67 {dimension_numbers = #tpu.dot_dimension_numbers<[1], [0], [0], [1], [0, 0, 1, 1], [], []>} : vector<1x16xf32>, vector<16x16xf32>, vector<1x16xf32> -> vector<1x16xf32>
    %cst_68 = arith.constant 0.00128865975 : f32
    %91 = vector.broadcast %cst_68 : f32 to vector<1x16xf32>
    %92 = arith.mulf %90, %91 : vector<1x16xf32>
    %cst_69 = arith.constant 0.000000e+00 : f32
    %93 = vector.broadcast %cst_69 : f32 to vector<1x16xf32>
    %94 = arith.maximumf %92, %93 : vector<1x16xf32>
    %cst_70 = arith.constant 9.99999974E-6 : f32
    %95 = vector.broadcast %cst_70 : f32 to vector<1x16xf32>
    %96 = arith.addf %94, %95 : vector<1x16xf32>
    %97 = math.rsqrt %96 : vector<1x16xf32>
    %98 = vector.broadcast %97 : vector<1x16xf32> to vector<97x16xf32>
    %99 = arith.mulf %86, %98 : vector<97x16xf32>
    %100 = vector.extract_strided_slice %75 {offsets = [1, 0], sizes = [1, 16], strides = [1, 1]} : vector<3x16xf32> to vector<1x16xf32>
    %101 = vector.broadcast %100 : vector<1x16xf32> to vector<97x16xf32>
    %102 = arith.mulf %99, %101 : vector<97x16xf32>
    %103 = vector.extract_strided_slice %75 {offsets = [2, 0], sizes = [1, 16], strides = [1, 1]} : vector<3x16xf32> to vector<1x16xf32>
    %104 = vector.broadcast %103 : vector<1x16xf32> to vector<97x16xf32>
    %105 = arith.addf %102, %104 : vector<97x16xf32>
    %cst_71 = arith.constant 0.000000e+00 : f32
    %106 = vector.broadcast %cst_71 : f32 to vector<97x16xf32>
    %107 = arith.maximumf %105, %106 : vector<97x16xf32>
    %c0_72 = arith.constant 0 : index
    %c0_73 = arith.constant 0 : index
    %108 = vector.load %arg36[%c0_72, %c0_73] : memref<112x24xf32, #tpu.memory_space<vmem>>, vector<97x16xf32>
    tpu.vector_store %arg36[%c0_72, %c0_73], %107 {strides = array<i32>} : memref<112x24xf32, #tpu.memory_space<vmem>>, vector<97x16xf32>,
    %c0_74 = arith.constant 0 : index
    %c0_75 = arith.constant 0 : index
    %109 = tpu.strided_load %arg36[%c0_74, %c0_75] {strides = array<i32: 2, 1>} : memref<112x24xf32, #tpu.memory_space<vmem>>, vector<47x16xf32>
    %110 = arith.truncf %109 : vector<47x16xf32> to vector<47x16xbf16>
    %c0_76 = arith.constant 0 : index
    %c0_77 = arith.constant 0 : index
    %111 = vector.load %arg41[%c0_76, %c0_77] : memref<112x160xbf16, #tpu.memory_space<vmem>>, vector<47x16xbf16>
    tpu.vector_store %arg41[%c0_76, %c0_77], %110 {strides = array<i32>} : memref<112x160xbf16, #tpu.memory_space<vmem>>, vector<47x16xbf16>,
    %c1_78 = arith.constant 1 : index
    %c0_79 = arith.constant 0 : index
    %112 = tpu.strided_load %arg36[%c1_78, %c0_79] {strides = array<i32: 2, 1>} : memref<112x24xf32, #tpu.memory_space<vmem>>, vector<47x16xf32>
    %113 = arith.truncf %112 : vector<47x16xf32> to vector<47x16xbf16>
    %c0_80 = arith.constant 0 : index
    %c16_81 = arith.constant 16 : index
    %114 = vector.load %arg41[%c0_80, %c16_81] : memref<112x160xbf16, #tpu.memory_space<vmem>>, vector<47x16xbf16>
    tpu.vector_store %arg41[%c0_80, %c16_81], %113 {strides = array<i32>} : memref<112x160xbf16, #tpu.memory_space<vmem>>, vector<47x16xbf16>,
    %c2_82 = arith.constant 2 : index
    %c0_83 = arith.constant 0 : index
    %115 = tpu.strided_load %arg36[%c2_82, %c0_83] {strides = array<i32: 2, 1>} : memref<112x24xf32, #tpu.memory_space<vmem>>, vector<47x16xf32>
    %116 = arith.truncf %115 : vector<47x16xf32> to vector<47x16xbf16>
    %c0_84 = arith.constant 0 : index
    %c32_85 = arith.constant 32 : index
    %117 = vector.load %arg41[%c0_84, %c32_85] : memref<112x160xbf16, #tpu.memory_space<vmem>>, vector<47x16xbf16>
    tpu.vector_store %arg41[%c0_84, %c32_85], %116 {strides = array<i32>} : memref<112x160xbf16, #tpu.memory_space<vmem>>, vector<47x16xbf16>,
    %c3_86 = arith.constant 3 : index
    %c0_87 = arith.constant 0 : index
    %118 = tpu.strided_load %arg36[%c3_86, %c0_87] {strides = array<i32: 2, 1>} : memref<112x24xf32, #tpu.memory_space<vmem>>, vector<47x16xf32>
    %119 = arith.truncf %118 : vector<47x16xf32> to vector<47x16xbf16>
    %c0_88 = arith.constant 0 : index
    %c48 = arith.constant 48 : index
    %120 = vector.load %arg41[%c0_88, %c48] : memref<112x160xbf16, #tpu.memory_space<vmem>>, vector<47x16xbf16>
    tpu.vector_store %arg41[%c0_88, %c48], %119 {strides = array<i32>} : memref<112x160xbf16, #tpu.memory_space<vmem>>, vector<47x16xbf16>,
    %c4_89 = arith.constant 4 : index
    %c0_90 = arith.constant 0 : index
    %121 = tpu.strided_load %arg36[%c4_89, %c0_90] {strides = array<i32: 2, 1>} : memref<112x24xf32, #tpu.memory_space<vmem>>, vector<47x16xf32>
    %122 = arith.truncf %121 : vector<47x16xf32> to vector<47x16xbf16>
    %c0_91 = arith.constant 0 : index
    %c64 = arith.constant 64 : index
    %123 = vector.load %arg41[%c0_91, %c64] : memref<112x160xbf16, #tpu.memory_space<vmem>>, vector<47x16xbf16>
    tpu.vector_store %arg41[%c0_91, %c64], %122 {strides = array<i32>} : memref<112x160xbf16, #tpu.memory_space<vmem>>, vector<47x16xbf16>,
    %c0_92 = arith.constant 0 : index
    %c0_93 = arith.constant 0 : index
    %124 = vector.load %arg41[%c0_92, %c0_93] : memref<112x160xbf16, #tpu.memory_space<vmem>>, vector<47x80xbf16>
    %c0_94 = arith.constant 0 : index
    %c0_95 = arith.constant 0 : index
    %125 = vector.load %arg6[%c0_94, %c0_95] : memref<80x16xbf16, #tpu.memory_space<vmem>>, vector<80x16xbf16>
    %cst_96 = arith.constant dense<0.000000e+00> : vector<47x16xf32>
    %126 = tpu.matmul %124, %125, %cst_96 {dimension_numbers = #tpu.dot_dimension_numbers<[1], [0], [0], [1], [0, 0, 1, 1], [], []>} : vector<47x80xbf16>, vector<80x16xbf16>, vector<47x16xf32> -> vector<47x16xf32>
    %c0_97 = arith.constant 0 : index
    %c0_98 = arith.constant 0 : index
    %127 = vector.load %arg7[%c0_97, %c0_98] : memref<3x16xf32, #tpu.memory_space<vmem>>, vector<3x16xf32>
    %128 = vector.extract_strided_slice %127 {offsets = [0, 0], sizes = [1, 16], strides = [1, 1]} : vector<3x16xf32> to vector<1x16xf32>
    %129 = vector.broadcast %128 : vector<1x16xf32> to vector<47x16xf32>
    %130 = arith.addf %126, %129 : vector<47x16xf32>
    %c0_99 = arith.constant 0 : index
    %c0_100 = arith.constant 0 : index
    %131 = vector.load %arg33[%c0_99, %c0_100] : memref<16x16xf32, #tpu.memory_space<vmem>>, vector<16x16xf32>
    %cst_101 = arith.constant dense<0.000000e+00> : vector<16xf32>
    %132 = vector.multi_reduction <add>, %130, %cst_101 [0] : vector<47x16xf32> to vector<16xf32>
    %133 = vector.shape_cast %132 : vector<16xf32> to vector<1x16xf32>
    %cst_102 = arith.constant dense<0.000000e+00> : vector<1x16xf32>
    %134 = tpu.matmul %133, %131, %cst_102 {dimension_numbers = #tpu.dot_dimension_numbers<[1], [0], [0], [1], [0, 0, 1, 1], [], []>} : vector<1x16xf32>, vector<16x16xf32>, vector<1x16xf32> -> vector<1x16xf32>
    %cst_103 = arith.constant 0.00265957438 : f32
    %135 = vector.broadcast %cst_103 : f32 to vector<1x16xf32>
    %136 = arith.mulf %134, %135 : vector<1x16xf32>
    %137 = vector.broadcast %136 : vector<1x16xf32> to vector<47x16xf32>
    %138 = arith.subf %130, %137 : vector<47x16xf32>
    %139 = arith.mulf %138, %138 : vector<47x16xf32>
    %cst_104 = arith.constant dense<0.000000e+00> : vector<16xf32>
    %140 = vector.multi_reduction <add>, %139, %cst_104 [0] : vector<47x16xf32> to vector<16xf32>
    %141 = vector.shape_cast %140 : vector<16xf32> to vector<1x16xf32>
    %cst_105 = arith.constant dense<0.000000e+00> : vector<1x16xf32>
    %142 = tpu.matmul %141, %131, %cst_105 {dimension_numbers = #tpu.dot_dimension_numbers<[1], [0], [0], [1], [0, 0, 1, 1], [], []>} : vector<1x16xf32>, vector<16x16xf32>, vector<1x16xf32> -> vector<1x16xf32>
    %cst_106 = arith.constant 0.00265957438 : f32
    %143 = vector.broadcast %cst_106 : f32 to vector<1x16xf32>
    %144 = arith.mulf %142, %143 : vector<1x16xf32>
    %cst_107 = arith.constant 0.000000e+00 : f32
    %145 = vector.broadcast %cst_107 : f32 to vector<1x16xf32>
    %146 = arith.maximumf %144, %145 : vector<1x16xf32>
    %cst_108 = arith.constant 9.99999974E-6 : f32
    %147 = vector.broadcast %cst_108 : f32 to vector<1x16xf32>
    %148 = arith.addf %146, %147 : vector<1x16xf32>
    %149 = math.rsqrt %148 : vector<1x16xf32>
    %150 = vector.broadcast %149 : vector<1x16xf32> to vector<47x16xf32>
    %151 = arith.mulf %138, %150 : vector<47x16xf32>
    %152 = vector.extract_strided_slice %127 {offsets = [1, 0], sizes = [1, 16], strides = [1, 1]} : vector<3x16xf32> to vector<1x16xf32>
    %153 = vector.broadcast %152 : vector<1x16xf32> to vector<47x16xf32>
    %154 = arith.mulf %151, %153 : vector<47x16xf32>
    %155 = vector.extract_strided_slice %127 {offsets = [2, 0], sizes = [1, 16], strides = [1, 1]} : vector<3x16xf32> to vector<1x16xf32>
    %156 = vector.broadcast %155 : vector<1x16xf32> to vector<47x16xf32>
    %157 = arith.addf %154, %156 : vector<47x16xf32>
    %cst_109 = arith.constant 0.000000e+00 : f32
    %158 = vector.broadcast %cst_109 : f32 to vector<47x16xf32>
    %159 = arith.maximumf %157, %158 : vector<47x16xf32>
    %c0_110 = arith.constant 0 : index
    %c0_111 = arith.constant 0 : index
    %160 = vector.load %arg37[%c0_110, %c0_111] : memref<112x24xf32, #tpu.memory_space<vmem>>, vector<47x16xf32>
    tpu.vector_store %arg37[%c0_110, %c0_111], %159 {strides = array<i32>} : memref<112x24xf32, #tpu.memory_space<vmem>>, vector<47x16xf32>,
    %c0_112 = arith.constant 0 : index
    %c0_113 = arith.constant 0 : index
    %161 = vector.load %arg37[%c0_112, %c0_113] : memref<112x24xf32, #tpu.memory_space<vmem>>, vector<43x16xf32>
    %162 = arith.truncf %161 : vector<43x16xf32> to vector<43x16xbf16>
    %c0_114 = arith.constant 0 : index
    %c0_115 = arith.constant 0 : index
    %163 = vector.load %arg41[%c0_114, %c0_115] : memref<112x160xbf16, #tpu.memory_space<vmem>>, vector<43x16xbf16>
    tpu.vector_store %arg41[%c0_114, %c0_115], %162 {strides = array<i32>} : memref<112x160xbf16, #tpu.memory_space<vmem>>, vector<43x16xbf16>,
    %c1_116 = arith.constant 1 : index
    %c0_117 = arith.constant 0 : index
    %164 = vector.load %arg37[%c1_116, %c0_117] : memref<112x24xf32, #tpu.memory_space<vmem>>, vector<43x16xf32>
    %165 = arith.truncf %164 : vector<43x16xf32> to vector<43x16xbf16>
    %c0_118 = arith.constant 0 : index
    %c16_119 = arith.constant 16 : index
    %166 = vector.load %arg41[%c0_118, %c16_119] : memref<112x160xbf16, #tpu.memory_space<vmem>>, vector<43x16xbf16>
    tpu.vector_store %arg41[%c0_118, %c16_119], %165 {strides = array<i32>} : memref<112x160xbf16, #tpu.memory_space<vmem>>, vector<43x16xbf16>,
    %c2_120 = arith.constant 2 : index
    %c0_121 = arith.constant 0 : index
    %167 = vector.load %arg37[%c2_120, %c0_121] : memref<112x24xf32, #tpu.memory_space<vmem>>, vector<43x16xf32>
    %168 = arith.truncf %167 : vector<43x16xf32> to vector<43x16xbf16>
    %c0_122 = arith.constant 0 : index
    %c32_123 = arith.constant 32 : index
    %169 = vector.load %arg41[%c0_122, %c32_123] : memref<112x160xbf16, #tpu.memory_space<vmem>>, vector<43x16xbf16>
    tpu.vector_store %arg41[%c0_122, %c32_123], %168 {strides = array<i32>} : memref<112x160xbf16, #tpu.memory_space<vmem>>, vector<43x16xbf16>,
    %c3_124 = arith.constant 3 : index
    %c0_125 = arith.constant 0 : index
    %170 = vector.load %arg37[%c3_124, %c0_125] : memref<112x24xf32, #tpu.memory_space<vmem>>, vector<43x16xf32>
    %171 = arith.truncf %170 : vector<43x16xf32> to vector<43x16xbf16>
    %c0_126 = arith.constant 0 : index
    %c48_127 = arith.constant 48 : index
    %172 = vector.load %arg41[%c0_126, %c48_127] : memref<112x160xbf16, #tpu.memory_space<vmem>>, vector<43x16xbf16>
    tpu.vector_store %arg41[%c0_126, %c48_127], %171 {strides = array<i32>} : memref<112x160xbf16, #tpu.memory_space<vmem>>, vector<43x16xbf16>,
    %c4_128 = arith.constant 4 : index
    %c0_129 = arith.constant 0 : index
    %173 = vector.load %arg37[%c4_128, %c0_129] : memref<112x24xf32, #tpu.memory_space<vmem>>, vector<43x16xf32>
    %174 = arith.truncf %173 : vector<43x16xf32> to vector<43x16xbf16>
    %c0_130 = arith.constant 0 : index
    %c64_131 = arith.constant 64 : index
    %175 = vector.load %arg41[%c0_130, %c64_131] : memref<112x160xbf16, #tpu.memory_space<vmem>>, vector<43x16xbf16>
    tpu.vector_store %arg41[%c0_130, %c64_131], %174 {strides = array<i32>} : memref<112x160xbf16, #tpu.memory_space<vmem>>, vector<43x16xbf16>,
    %c0_132 = arith.constant 0 : index
    %c0_133 = arith.constant 0 : index
    %176 = vector.load %arg41[%c0_132, %c0_133] : memref<112x160xbf16, #tpu.memory_space<vmem>>, vector<43x80xbf16>
    %c0_134 = arith.constant 0 : index
    %c0_135 = arith.constant 0 : index
    %177 = vector.load %arg8[%c0_134, %c0_135] : memref<80x16xbf16, #tpu.memory_space<vmem>>, vector<80x16xbf16>
    %cst_136 = arith.constant dense<0.000000e+00> : vector<43x16xf32>
    %178 = tpu.matmul %176, %177, %cst_136 {dimension_numbers = #tpu.dot_dimension_numbers<[1], [0], [0], [1], [0, 0, 1, 1], [], []>} : vector<43x80xbf16>, vector<80x16xbf16>, vector<43x16xf32> -> vector<43x16xf32>
    %c0_137 = arith.constant 0 : index
    %c0_138 = arith.constant 0 : index
    %179 = vector.load %arg9[%c0_137, %c0_138] : memref<3x16xf32, #tpu.memory_space<vmem>>, vector<3x16xf32>
    %180 = vector.extract_strided_slice %179 {offsets = [0, 0], sizes = [1, 16], strides = [1, 1]} : vector<3x16xf32> to vector<1x16xf32>
    %181 = vector.broadcast %180 : vector<1x16xf32> to vector<43x16xf32>
    %182 = arith.addf %178, %181 : vector<43x16xf32>
    %c0_139 = arith.constant 0 : index
    %c0_140 = arith.constant 0 : index
    %183 = vector.load %arg33[%c0_139, %c0_140] : memref<16x16xf32, #tpu.memory_space<vmem>>, vector<16x16xf32>
    %cst_141 = arith.constant dense<0.000000e+00> : vector<16xf32>
    %184 = vector.multi_reduction <add>, %182, %cst_141 [0] : vector<43x16xf32> to vector<16xf32>
    %185 = vector.shape_cast %184 : vector<16xf32> to vector<1x16xf32>
    %cst_142 = arith.constant dense<0.000000e+00> : vector<1x16xf32>
    %186 = tpu.matmul %185, %183, %cst_142 {dimension_numbers = #tpu.dot_dimension_numbers<[1], [0], [0], [1], [0, 0, 1, 1], [], []>} : vector<1x16xf32>, vector<16x16xf32>, vector<1x16xf32> -> vector<1x16xf32>
    %cst_143 = arith.constant 0.00290697673 : f32
    %187 = vector.broadcast %cst_143 : f32 to vector<1x16xf32>
    %188 = arith.mulf %186, %187 : vector<1x16xf32>
    %189 = vector.broadcast %188 : vector<1x16xf32> to vector<43x16xf32>
    %190 = arith.subf %182, %189 : vector<43x16xf32>
    %191 = arith.mulf %190, %190 : vector<43x16xf32>
    %cst_144 = arith.constant dense<0.000000e+00> : vector<16xf32>
    %192 = vector.multi_reduction <add>, %191, %cst_144 [0] : vector<43x16xf32> to vector<16xf32>
    %193 = vector.shape_cast %192 : vector<16xf32> to vector<1x16xf32>
    %cst_145 = arith.constant dense<0.000000e+00> : vector<1x16xf32>
    %194 = tpu.matmul %193, %183, %cst_145 {dimension_numbers = #tpu.dot_dimension_numbers<[1], [0], [0], [1], [0, 0, 1, 1], [], []>} : vector<1x16xf32>, vector<16x16xf32>, vector<1x16xf32> -> vector<1x16xf32>
    %cst_146 = arith.constant 0.00290697673 : f32
    %195 = vector.broadcast %cst_146 : f32 to vector<1x16xf32>
    %196 = arith.mulf %194, %195 : vector<1x16xf32>
    %cst_147 = arith.constant 0.000000e+00 : f32
    %197 = vector.broadcast %cst_147 : f32 to vector<1x16xf32>
    %198 = arith.maximumf %196, %197 : vector<1x16xf32>
    %cst_148 = arith.constant 9.99999974E-6 : f32
    %199 = vector.broadcast %cst_148 : f32 to vector<1x16xf32>
    %200 = arith.addf %198, %199 : vector<1x16xf32>
    %201 = math.rsqrt %200 : vector<1x16xf32>
    %202 = vector.broadcast %201 : vector<1x16xf32> to vector<43x16xf32>
    %203 = arith.mulf %190, %202 : vector<43x16xf32>
    %204 = vector.extract_strided_slice %179 {offsets = [1, 0], sizes = [1, 16], strides = [1, 1]} : vector<3x16xf32> to vector<1x16xf32>
    %205 = vector.broadcast %204 : vector<1x16xf32> to vector<43x16xf32>
    %206 = arith.mulf %203, %205 : vector<43x16xf32>
    %207 = vector.extract_strided_slice %179 {offsets = [2, 0], sizes = [1, 16], strides = [1, 1]} : vector<3x16xf32> to vector<1x16xf32>
    %208 = vector.broadcast %207 : vector<1x16xf32> to vector<43x16xf32>
    %209 = arith.addf %206, %208 : vector<43x16xf32>
    %cst_149 = arith.constant 0.000000e+00 : f32
    %210 = vector.broadcast %cst_149 : f32 to vector<43x16xf32>
    %211 = arith.maximumf %209, %210 : vector<43x16xf32>
    %c0_150 = arith.constant 0 : index
    %c0_151 = arith.constant 0 : index
    %212 = vector.load %arg40[%c0_150, %c0_151] : memref<48x16xf32, #tpu.memory_space<vmem>>, vector<43x16xf32>
    tpu.vector_store %arg40[%c0_150, %c0_151], %211 {strides = array<i32>} : memref<48x16xf32, #tpu.memory_space<vmem>>, vector<43x16xf32>,
    %c0_152 = arith.constant 0 : index
    %c0_153 = arith.constant 0 : index
    %213 = vector.load %arg40[%c0_152, %c0_153] : memref<48x16xf32, #tpu.memory_space<vmem>>, vector<39x16xf32>
    %214 = arith.truncf %213 : vector<39x16xf32> to vector<39x16xbf16>
    %c0_154 = arith.constant 0 : index
    %c0_155 = arith.constant 0 : index
    %215 = vector.load %arg41[%c0_154, %c0_155] : memref<112x160xbf16, #tpu.memory_space<vmem>>, vector<39x16xbf16>
    tpu.vector_store %arg41[%c0_154, %c0_155], %214 {strides = array<i32>} : memref<112x160xbf16, #tpu.memory_space<vmem>>, vector<39x16xbf16>,
    %c1_156 = arith.constant 1 : index
    %c0_157 = arith.constant 0 : index
    %216 = vector.load %arg40[%c1_156, %c0_157] : memref<48x16xf32, #tpu.memory_space<vmem>>, vector<39x16xf32>
    %217 = arith.truncf %216 : vector<39x16xf32> to vector<39x16xbf16>
    %c0_158 = arith.constant 0 : index
    %c16_159 = arith.constant 16 : index
    %218 = vector.load %arg41[%c0_158, %c16_159] : memref<112x160xbf16, #tpu.memory_space<vmem>>, vector<39x16xbf16>
    tpu.vector_store %arg41[%c0_158, %c16_159], %217 {strides = array<i32>} : memref<112x160xbf16, #tpu.memory_space<vmem>>, vector<39x16xbf16>,
    %c2_160 = arith.constant 2 : index
    %c0_161 = arith.constant 0 : index
    %219 = vector.load %arg40[%c2_160, %c0_161] : memref<48x16xf32, #tpu.memory_space<vmem>>, vector<39x16xf32>
    %220 = arith.truncf %219 : vector<39x16xf32> to vector<39x16xbf16>
    %c0_162 = arith.constant 0 : index
    %c32_163 = arith.constant 32 : index
    %221 = vector.load %arg41[%c0_162, %c32_163] : memref<112x160xbf16, #tpu.memory_space<vmem>>, vector<39x16xbf16>
    tpu.vector_store %arg41[%c0_162, %c32_163], %220 {strides = array<i32>} : memref<112x160xbf16, #tpu.memory_space<vmem>>, vector<39x16xbf16>,
    %c3_164 = arith.constant 3 : index
    %c0_165 = arith.constant 0 : index
    %222 = vector.load %arg40[%c3_164, %c0_165] : memref<48x16xf32, #tpu.memory_space<vmem>>, vector<39x16xf32>
    %223 = arith.truncf %222 : vector<39x16xf32> to vector<39x16xbf16>
    %c0_166 = arith.constant 0 : index
    %c48_167 = arith.constant 48 : index
    %224 = vector.load %arg41[%c0_166, %c48_167] : memref<112x160xbf16, #tpu.memory_space<vmem>>, vector<39x16xbf16>
    tpu.vector_store %arg41[%c0_166, %c48_167], %223 {strides = array<i32>} : memref<112x160xbf16, #tpu.memory_space<vmem>>, vector<39x16xbf16>,
    %c4_168 = arith.constant 4 : index
    %c0_169 = arith.constant 0 : index
    %225 = vector.load %arg40[%c4_168, %c0_169] : memref<48x16xf32, #tpu.memory_space<vmem>>, vector<39x16xf32>
    %226 = arith.truncf %225 : vector<39x16xf32> to vector<39x16xbf16>
    %c0_170 = arith.constant 0 : index
    %c64_171 = arith.constant 64 : index
    %227 = vector.load %arg41[%c0_170, %c64_171] : memref<112x160xbf16, #tpu.memory_space<vmem>>, vector<39x16xbf16>
    tpu.vector_store %arg41[%c0_170, %c64_171], %226 {strides = array<i32>} : memref<112x160xbf16, #tpu.memory_space<vmem>>, vector<39x16xbf16>,
    %c0_172 = arith.constant 0 : index
    %c0_173 = arith.constant 0 : index
    %228 = vector.load %arg41[%c0_172, %c0_173] : memref<112x160xbf16, #tpu.memory_space<vmem>>, vector<39x80xbf16>
    %c0_174 = arith.constant 0 : index
    %c0_175 = arith.constant 0 : index
    %229 = vector.load %arg10[%c0_174, %c0_175] : memref<80x24xbf16, #tpu.memory_space<vmem>>, vector<80x24xbf16>
    %cst_176 = arith.constant dense<0.000000e+00> : vector<39x24xf32>
    %230 = tpu.matmul %228, %229, %cst_176 {dimension_numbers = #tpu.dot_dimension_numbers<[1], [0], [0], [1], [0, 0, 1, 1], [], []>} : vector<39x80xbf16>, vector<80x24xbf16>, vector<39x24xf32> -> vector<39x24xf32>
    %c0_177 = arith.constant 0 : index
    %c0_178 = arith.constant 0 : index
    %231 = vector.load %arg11[%c0_177, %c0_178] : memref<3x24xf32, #tpu.memory_space<vmem>>, vector<3x24xf32>
    %232 = vector.extract_strided_slice %231 {offsets = [0, 0], sizes = [1, 24], strides = [1, 1]} : vector<3x24xf32> to vector<1x24xf32>
    %233 = vector.broadcast %232 : vector<1x24xf32> to vector<39x24xf32>
    %234 = arith.addf %230, %233 : vector<39x24xf32>
    %c0_179 = arith.constant 0 : index
    %c0_180 = arith.constant 0 : index
    %235 = vector.load %arg34[%c0_179, %c0_180] : memref<24x24xf32, #tpu.memory_space<vmem>>, vector<24x24xf32>
    %cst_181 = arith.constant dense<0.000000e+00> : vector<24xf32>
    %236 = vector.multi_reduction <add>, %234, %cst_181 [0] : vector<39x24xf32> to vector<24xf32>
    %237 = vector.shape_cast %236 : vector<24xf32> to vector<1x24xf32>
    %cst_182 = arith.constant dense<0.000000e+00> : vector<1x24xf32>
    %238 = tpu.matmul %237, %235, %cst_182 {dimension_numbers = #tpu.dot_dimension_numbers<[1], [0], [0], [1], [0, 0, 1, 1], [], []>} : vector<1x24xf32>, vector<24x24xf32>, vector<1x24xf32> -> vector<1x24xf32>
    %cst_183 = arith.constant 0.00320512825 : f32
    %239 = vector.broadcast %cst_183 : f32 to vector<1x24xf32>
    %240 = arith.mulf %238, %239 : vector<1x24xf32>
    %241 = vector.broadcast %240 : vector<1x24xf32> to vector<39x24xf32>
    %242 = arith.subf %234, %241 : vector<39x24xf32>
    %243 = arith.mulf %242, %242 : vector<39x24xf32>
    %cst_184 = arith.constant dense<0.000000e+00> : vector<24xf32>
    %244 = vector.multi_reduction <add>, %243, %cst_184 [0] : vector<39x24xf32> to vector<24xf32>
    %245 = vector.shape_cast %244 : vector<24xf32> to vector<1x24xf32>
    %cst_185 = arith.constant dense<0.000000e+00> : vector<1x24xf32>
    %246 = tpu.matmul %245, %235, %cst_185 {dimension_numbers = #tpu.dot_dimension_numbers<[1], [0], [0], [1], [0, 0, 1, 1], [], []>} : vector<1x24xf32>, vector<24x24xf32>, vector<1x24xf32> -> vector<1x24xf32>
    %cst_186 = arith.constant 0.00320512825 : f32
    %247 = vector.broadcast %cst_186 : f32 to vector<1x24xf32>
    %248 = arith.mulf %246, %247 : vector<1x24xf32>
    %cst_187 = arith.constant 0.000000e+00 : f32
    %249 = vector.broadcast %cst_187 : f32 to vector<1x24xf32>
    %250 = arith.maximumf %248, %249 : vector<1x24xf32>
    %cst_188 = arith.constant 9.99999974E-6 : f32
    %251 = vector.broadcast %cst_188 : f32 to vector<1x24xf32>
    %252 = arith.addf %250, %251 : vector<1x24xf32>
    %253 = math.rsqrt %252 : vector<1x24xf32>
    %254 = vector.broadcast %253 : vector<1x24xf32> to vector<39x24xf32>
    %255 = arith.mulf %242, %254 : vector<39x24xf32>
    %256 = vector.extract_strided_slice %231 {offsets = [1, 0], sizes = [1, 24], strides = [1, 1]} : vector<3x24xf32> to vector<1x24xf32>
    %257 = vector.broadcast %256 : vector<1x24xf32> to vector<39x24xf32>
    %258 = arith.mulf %255, %257 : vector<39x24xf32>
    %259 = vector.extract_strided_slice %231 {offsets = [2, 0], sizes = [1, 24], strides = [1, 1]} : vector<3x24xf32> to vector<1x24xf32>
    %260 = vector.broadcast %259 : vector<1x24xf32> to vector<39x24xf32>
    %261 = arith.addf %258, %260 : vector<39x24xf32>
    %cst_189 = arith.constant 0.000000e+00 : f32
    %262 = vector.broadcast %cst_189 : f32 to vector<39x24xf32>
    %263 = arith.maximumf %261, %262 : vector<39x24xf32>
    %c0_190 = arith.constant 0 : index
    %c0_191 = arith.constant 0 : index
    %264 = vector.load %arg36[%c0_190, %c0_191] : memref<112x24xf32, #tpu.memory_space<vmem>>, vector<39x24xf32>
    tpu.vector_store %arg36[%c0_190, %c0_191], %263 {strides = array<i32>} : memref<112x24xf32, #tpu.memory_space<vmem>>, vector<39x24xf32>,
    %c0_192 = arith.constant 0 : index
    %c0_193 = arith.constant 0 : index
    %265 = tpu.strided_load %arg36[%c0_192, %c0_193] {strides = array<i32: 2, 1>} : memref<112x24xf32, #tpu.memory_space<vmem>>, vector<18x24xf32>
    %266 = arith.truncf %265 : vector<18x24xf32> to vector<18x24xbf16>
    %c0_194 = arith.constant 0 : index
    %c0_195 = arith.constant 0 : index
    %267 = vector.load %arg41[%c0_194, %c0_195] : memref<112x160xbf16, #tpu.memory_space<vmem>>, vector<18x24xbf16>
    tpu.vector_store %arg41[%c0_194, %c0_195], %266 {strides = array<i32>} : memref<112x160xbf16, #tpu.memory_space<vmem>>, vector<18x24xbf16>,
    %c1_196 = arith.constant 1 : index
    %c0_197 = arith.constant 0 : index
    %268 = tpu.strided_load %arg36[%c1_196, %c0_197] {strides = array<i32: 2, 1>} : memref<112x24xf32, #tpu.memory_space<vmem>>, vector<18x24xf32>
    %269 = arith.truncf %268 : vector<18x24xf32> to vector<18x24xbf16>
    %c0_198 = arith.constant 0 : index
    %c24_199 = arith.constant 24 : index
    %270 = vector.load %arg41[%c0_198, %c24_199] : memref<112x160xbf16, #tpu.memory_space<vmem>>, vector<18x24xbf16>
    tpu.vector_store %arg41[%c0_198, %c24_199], %269 {strides = array<i32>} : memref<112x160xbf16, #tpu.memory_space<vmem>>, vector<18x24xbf16>,
    %c2_200 = arith.constant 2 : index
    %c0_201 = arith.constant 0 : index
    %271 = tpu.strided_load %arg36[%c2_200, %c0_201] {strides = array<i32: 2, 1>} : memref<112x24xf32, #tpu.memory_space<vmem>>, vector<18x24xf32>
    %272 = arith.truncf %271 : vector<18x24xf32> to vector<18x24xbf16>
    %c0_202 = arith.constant 0 : index
    %c48_203 = arith.constant 48 : index
    %273 = vector.load %arg41[%c0_202, %c48_203] : memref<112x160xbf16, #tpu.memory_space<vmem>>, vector<18x24xbf16>
    tpu.vector_store %arg41[%c0_202, %c48_203], %272 {strides = array<i32>} : memref<112x160xbf16, #tpu.memory_space<vmem>>, vector<18x24xbf16>,
    %c3_204 = arith.constant 3 : index
    %c0_205 = arith.constant 0 : index
    %274 = tpu.strided_load %arg36[%c3_204, %c0_205] {strides = array<i32: 2, 1>} : memref<112x24xf32, #tpu.memory_space<vmem>>, vector<18x24xf32>
    %275 = arith.truncf %274 : vector<18x24xf32> to vector<18x24xbf16>
    %c0_206 = arith.constant 0 : index
    %c72 = arith.constant 72 : index
    %276 = vector.load %arg41[%c0_206, %c72] : memref<112x160xbf16, #tpu.memory_space<vmem>>, vector<18x24xbf16>
    tpu.vector_store %arg41[%c0_206, %c72], %275 {strides = array<i32>} : memref<112x160xbf16, #tpu.memory_space<vmem>>, vector<18x24xbf16>,
    %c4_207 = arith.constant 4 : index
    %c0_208 = arith.constant 0 : index
    %277 = tpu.strided_load %arg36[%c4_207, %c0_208] {strides = array<i32: 2, 1>} : memref<112x24xf32, #tpu.memory_space<vmem>>, vector<18x24xf32>
    %278 = arith.truncf %277 : vector<18x24xf32> to vector<18x24xbf16>
    %c0_209 = arith.constant 0 : index
    %c96 = arith.constant 96 : index
    %279 = vector.load %arg41[%c0_209, %c96] : memref<112x160xbf16, #tpu.memory_space<vmem>>, vector<18x24xbf16>
    tpu.vector_store %arg41[%c0_209, %c96], %278 {strides = array<i32>} : memref<112x160xbf16, #tpu.memory_space<vmem>>, vector<18x24xbf16>,
    %c0_210 = arith.constant 0 : index
    %c0_211 = arith.constant 0 : index
    %280 = vector.load %arg41[%c0_210, %c0_211] : memref<112x160xbf16, #tpu.memory_space<vmem>>, vector<18x120xbf16>
    %c0_212 = arith.constant 0 : index
    %c0_213 = arith.constant 0 : index
    %281 = vector.load %arg12[%c0_212, %c0_213] : memref<120x24xbf16, #tpu.memory_space<vmem>>, vector<120x24xbf16>
    %cst_214 = arith.constant dense<0.000000e+00> : vector<18x24xf32>
    %282 = tpu.matmul %280, %281, %cst_214 {dimension_numbers = #tpu.dot_dimension_numbers<[1], [0], [0], [1], [0, 0, 1, 1], [], []>} : vector<18x120xbf16>, vector<120x24xbf16>, vector<18x24xf32> -> vector<18x24xf32>
    %c0_215 = arith.constant 0 : index
    %c0_216 = arith.constant 0 : index
    %283 = vector.load %arg13[%c0_215, %c0_216] : memref<3x24xf32, #tpu.memory_space<vmem>>, vector<3x24xf32>
    %284 = vector.extract_strided_slice %283 {offsets = [0, 0], sizes = [1, 24], strides = [1, 1]} : vector<3x24xf32> to vector<1x24xf32>
    %285 = vector.broadcast %284 : vector<1x24xf32> to vector<18x24xf32>
    %286 = arith.addf %282, %285 : vector<18x24xf32>
    %c0_217 = arith.constant 0 : index
    %c0_218 = arith.constant 0 : index
    %287 = vector.load %arg34[%c0_217, %c0_218] : memref<24x24xf32, #tpu.memory_space<vmem>>, vector<24x24xf32>
    %cst_219 = arith.constant dense<0.000000e+00> : vector<24xf32>
    %288 = vector.multi_reduction <add>, %286, %cst_219 [0] : vector<18x24xf32> to vector<24xf32>
    %289 = vector.shape_cast %288 : vector<24xf32> to vector<1x24xf32>
    %cst_220 = arith.constant dense<0.000000e+00> : vector<1x24xf32>
    %290 = tpu.matmul %289, %287, %cst_220 {dimension_numbers = #tpu.dot_dimension_numbers<[1], [0], [0], [1], [0, 0, 1, 1], [], []>} : vector<1x24xf32>, vector<24x24xf32>, vector<1x24xf32> -> vector<1x24xf32>
    %cst_221 = arith.constant 0.0069444445 : f32
    %291 = vector.broadcast %cst_221 : f32 to vector<1x24xf32>
    %292 = arith.mulf %290, %291 : vector<1x24xf32>
    %293 = vector.broadcast %292 : vector<1x24xf32> to vector<18x24xf32>
    %294 = arith.subf %286, %293 : vector<18x24xf32>
    %295 = arith.mulf %294, %294 : vector<18x24xf32>
    %cst_222 = arith.constant dense<0.000000e+00> : vector<24xf32>
    %296 = vector.multi_reduction <add>, %295, %cst_222 [0] : vector<18x24xf32> to vector<24xf32>
    %297 = vector.shape_cast %296 : vector<24xf32> to vector<1x24xf32>
    %cst_223 = arith.constant dense<0.000000e+00> : vector<1x24xf32>
    %298 = tpu.matmul %297, %287, %cst_223 {dimension_numbers = #tpu.dot_dimension_numbers<[1], [0], [0], [1], [0, 0, 1, 1], [], []>} : vector<1x24xf32>, vector<24x24xf32>, vector<1x24xf32> -> vector<1x24xf32>
    %cst_224 = arith.constant 0.0069444445 : f32
    %299 = vector.broadcast %cst_224 : f32 to vector<1x24xf32>
    %300 = arith.mulf %298, %299 : vector<1x24xf32>
    %cst_225 = arith.constant 0.000000e+00 : f32
    %301 = vector.broadcast %cst_225 : f32 to vector<1x24xf32>
    %302 = arith.maximumf %300, %301 : vector<1x24xf32>
    %cst_226 = arith.constant 9.99999974E-6 : f32
    %303 = vector.broadcast %cst_226 : f32 to vector<1x24xf32>
    %304 = arith.addf %302, %303 : vector<1x24xf32>
    %305 = math.rsqrt %304 : vector<1x24xf32>
    %306 = vector.broadcast %305 : vector<1x24xf32> to vector<18x24xf32>
    %307 = arith.mulf %294, %306 : vector<18x24xf32>
    %308 = vector.extract_strided_slice %283 {offsets = [1, 0], sizes = [1, 24], strides = [1, 1]} : vector<3x24xf32> to vector<1x24xf32>
    %309 = vector.broadcast %308 : vector<1x24xf32> to vector<18x24xf32>
    %310 = arith.mulf %307, %309 : vector<18x24xf32>
    %311 = vector.extract_strided_slice %283 {offsets = [2, 0], sizes = [1, 24], strides = [1, 1]} : vector<3x24xf32> to vector<1x24xf32>
    %312 = vector.broadcast %311 : vector<1x24xf32> to vector<18x24xf32>
    %313 = arith.addf %310, %312 : vector<18x24xf32>
    %cst_227 = arith.constant 0.000000e+00 : f32
    %314 = vector.broadcast %cst_227 : f32 to vector<18x24xf32>
    %315 = arith.maximumf %313, %314 : vector<18x24xf32>
    %c0_228 = arith.constant 0 : index
    %c0_229 = arith.constant 0 : index
    %316 = vector.load %arg37[%c0_228, %c0_229] : memref<112x24xf32, #tpu.memory_space<vmem>>, vector<18x24xf32>
    tpu.vector_store %arg37[%c0_228, %c0_229], %315 {strides = array<i32>} : memref<112x24xf32, #tpu.memory_space<vmem>>, vector<18x24xf32>,
    %c0_230 = arith.constant 0 : index
    %c0_231 = arith.constant 0 : index
    %317 = vector.load %arg37[%c0_230, %c0_231] : memref<112x24xf32, #tpu.memory_space<vmem>>, vector<14x24xf32>
    %318 = arith.truncf %317 : vector<14x24xf32> to vector<14x24xbf16>
    %c0_232 = arith.constant 0 : index
    %c0_233 = arith.constant 0 : index
    %319 = vector.load %arg41[%c0_232, %c0_233] : memref<112x160xbf16, #tpu.memory_space<vmem>>, vector<14x24xbf16>
    tpu.vector_store %arg41[%c0_232, %c0_233], %318 {strides = array<i32>} : memref<112x160xbf16, #tpu.memory_space<vmem>>, vector<14x24xbf16>,
    %c1_234 = arith.constant 1 : index
    %c0_235 = arith.constant 0 : index
    %320 = vector.load %arg37[%c1_234, %c0_235] : memref<112x24xf32, #tpu.memory_space<vmem>>, vector<14x24xf32>
    %321 = arith.truncf %320 : vector<14x24xf32> to vector<14x24xbf16>
    %c0_236 = arith.constant 0 : index
    %c24_237 = arith.constant 24 : index
    %322 = vector.load %arg41[%c0_236, %c24_237] : memref<112x160xbf16, #tpu.memory_space<vmem>>, vector<14x24xbf16>
    tpu.vector_store %arg41[%c0_236, %c24_237], %321 {strides = array<i32>} : memref<112x160xbf16, #tpu.memory_space<vmem>>, vector<14x24xbf16>,
    %c2_238 = arith.constant 2 : index
    %c0_239 = arith.constant 0 : index
    %323 = vector.load %arg37[%c2_238, %c0_239] : memref<112x24xf32, #tpu.memory_space<vmem>>, vector<14x24xf32>
    %324 = arith.truncf %323 : vector<14x24xf32> to vector<14x24xbf16>
    %c0_240 = arith.constant 0 : index
    %c48_241 = arith.constant 48 : index
    %325 = vector.load %arg41[%c0_240, %c48_241] : memref<112x160xbf16, #tpu.memory_space<vmem>>, vector<14x24xbf16>
    tpu.vector_store %arg41[%c0_240, %c48_241], %324 {strides = array<i32>} : memref<112x160xbf16, #tpu.memory_space<vmem>>, vector<14x24xbf16>,
    %c3_242 = arith.constant 3 : index
    %c0_243 = arith.constant 0 : index
    %326 = vector.load %arg37[%c3_242, %c0_243] : memref<112x24xf32, #tpu.memory_space<vmem>>, vector<14x24xf32>
    %327 = arith.truncf %326 : vector<14x24xf32> to vector<14x24xbf16>
    %c0_244 = arith.constant 0 : index
    %c72_245 = arith.constant 72 : index
    %328 = vector.load %arg41[%c0_244, %c72_245] : memref<112x160xbf16, #tpu.memory_space<vmem>>, vector<14x24xbf16>
    tpu.vector_store %arg41[%c0_244, %c72_245], %327 {strides = array<i32>} : memref<112x160xbf16, #tpu.memory_space<vmem>>, vector<14x24xbf16>,
    %c4_246 = arith.constant 4 : index
    %c0_247 = arith.constant 0 : index
    %329 = vector.load %arg37[%c4_246, %c0_247] : memref<112x24xf32, #tpu.memory_space<vmem>>, vector<14x24xf32>
    %330 = arith.truncf %329 : vector<14x24xf32> to vector<14x24xbf16>
    %c0_248 = arith.constant 0 : index
    %c96_249 = arith.constant 96 : index
    %331 = vector.load %arg41[%c0_248, %c96_249] : memref<112x160xbf16, #tpu.memory_space<vmem>>, vector<14x24xbf16>
    tpu.vector_store %arg41[%c0_248, %c96_249], %330 {strides = array<i32>} : memref<112x160xbf16, #tpu.memory_space<vmem>>, vector<14x24xbf16>,
    %c0_250 = arith.constant 0 : index
    %c0_251 = arith.constant 0 : index
    %332 = vector.load %arg41[%c0_250, %c0_251] : memref<112x160xbf16, #tpu.memory_space<vmem>>, vector<14x120xbf16>
    %c0_252 = arith.constant 0 : index
    %c0_253 = arith.constant 0 : index
    %333 = vector.load %arg14[%c0_252, %c0_253] : memref<120x24xbf16, #tpu.memory_space<vmem>>, vector<120x24xbf16>
    %cst_254 = arith.constant dense<0.000000e+00> : vector<14x24xf32>
    %334 = tpu.matmul %332, %333, %cst_254 {dimension_numbers = #tpu.dot_dimension_numbers<[1], [0], [0], [1], [0, 0, 1, 1], [], []>} : vector<14x120xbf16>, vector<120x24xbf16>, vector<14x24xf32> -> vector<14x24xf32>
    %c0_255 = arith.constant 0 : index
    %c0_256 = arith.constant 0 : index
    %335 = vector.load %arg15[%c0_255, %c0_256] : memref<3x24xf32, #tpu.memory_space<vmem>>, vector<3x24xf32>
    %336 = vector.extract_strided_slice %335 {offsets = [0, 0], sizes = [1, 24], strides = [1, 1]} : vector<3x24xf32> to vector<1x24xf32>
    %337 = vector.broadcast %336 : vector<1x24xf32> to vector<14x24xf32>
    %338 = arith.addf %334, %337 : vector<14x24xf32>
    %c0_257 = arith.constant 0 : index
    %c0_258 = arith.constant 0 : index
    %339 = vector.load %arg34[%c0_257, %c0_258] : memref<24x24xf32, #tpu.memory_space<vmem>>, vector<24x24xf32>
    %cst_259 = arith.constant dense<0.000000e+00> : vector<24xf32>
    %340 = vector.multi_reduction <add>, %338, %cst_259 [0] : vector<14x24xf32> to vector<24xf32>
    %341 = vector.shape_cast %340 : vector<24xf32> to vector<1x24xf32>
    %cst_260 = arith.constant dense<0.000000e+00> : vector<1x24xf32>
    %342 = tpu.matmul %341, %339, %cst_260 {dimension_numbers = #tpu.dot_dimension_numbers<[1], [0], [0], [1], [0, 0, 1, 1], [], []>} : vector<1x24xf32>, vector<24x24xf32>, vector<1x24xf32> -> vector<1x24xf32>
    %cst_261 = arith.constant 0.00892857183 : f32
    %343 = vector.broadcast %cst_261 : f32 to vector<1x24xf32>
    %344 = arith.mulf %342, %343 : vector<1x24xf32>
    %345 = vector.broadcast %344 : vector<1x24xf32> to vector<14x24xf32>
    %346 = arith.subf %338, %345 : vector<14x24xf32>
    %347 = arith.mulf %346, %346 : vector<14x24xf32>
    %cst_262 = arith.constant dense<0.000000e+00> : vector<24xf32>
    %348 = vector.multi_reduction <add>, %347, %cst_262 [0] : vector<14x24xf32> to vector<24xf32>
    %349 = vector.shape_cast %348 : vector<24xf32> to vector<1x24xf32>
    %cst_263 = arith.constant dense<0.000000e+00> : vector<1x24xf32>
    %350 = tpu.matmul %349, %339, %cst_263 {dimension_numbers = #tpu.dot_dimension_numbers<[1], [0], [0], [1], [0, 0, 1, 1], [], []>} : vector<1x24xf32>, vector<24x24xf32>, vector<1x24xf32> -> vector<1x24xf32>
    %cst_264 = arith.constant 0.00892857183 : f32
    %351 = vector.broadcast %cst_264 : f32 to vector<1x24xf32>
    %352 = arith.mulf %350, %351 : vector<1x24xf32>
    %cst_265 = arith.constant 0.000000e+00 : f32
    %353 = vector.broadcast %cst_265 : f32 to vector<1x24xf32>
    %354 = arith.maximumf %352, %353 : vector<1x24xf32>
    %cst_266 = arith.constant 9.99999974E-6 : f32
    %355 = vector.broadcast %cst_266 : f32 to vector<1x24xf32>
    %356 = arith.addf %354, %355 : vector<1x24xf32>
    %357 = math.rsqrt %356 : vector<1x24xf32>
    %358 = vector.broadcast %357 : vector<1x24xf32> to vector<14x24xf32>
    %359 = arith.mulf %346, %358 : vector<14x24xf32>
    %360 = vector.extract_strided_slice %335 {offsets = [1, 0], sizes = [1, 24], strides = [1, 1]} : vector<3x24xf32> to vector<1x24xf32>
    %361 = vector.broadcast %360 : vector<1x24xf32> to vector<14x24xf32>
    %362 = arith.mulf %359, %361 : vector<14x24xf32>
    %363 = vector.extract_strided_slice %335 {offsets = [2, 0], sizes = [1, 24], strides = [1, 1]} : vector<3x24xf32> to vector<1x24xf32>
    %364 = vector.broadcast %363 : vector<1x24xf32> to vector<14x24xf32>
    %365 = arith.addf %362, %364 : vector<14x24xf32>
    %cst_267 = arith.constant 0.000000e+00 : f32
    %366 = vector.broadcast %cst_267 : f32 to vector<14x24xf32>
    %367 = arith.maximumf %365, %366 : vector<14x24xf32>
    %c0_268 = arith.constant 0 : index
    %c0_269 = arith.constant 0 : index
    %368 = vector.load %arg36[%c0_268, %c0_269] : memref<112x24xf32, #tpu.memory_space<vmem>>, vector<14x24xf32>
    tpu.vector_store %arg36[%c0_268, %c0_269], %367 {strides = array<i32>} : memref<112x24xf32, #tpu.memory_space<vmem>>, vector<14x24xf32>,
    %c0_270 = arith.constant 0 : index
    %c0_271 = arith.constant 0 : index
    %369 = vector.load %arg36[%c0_270, %c0_271] : memref<112x24xf32, #tpu.memory_space<vmem>>, vector<12x24xf32>
    %370 = arith.truncf %369 : vector<12x24xf32> to vector<12x24xbf16>
    %c0_272 = arith.constant 0 : index
    %c0_273 = arith.constant 0 : index
    %371 = vector.load %arg41[%c0_272, %c0_273] : memref<112x160xbf16, #tpu.memory_space<vmem>>, vector<12x24xbf16>
    tpu.vector_store %arg41[%c0_272, %c0_273], %370 {strides = array<i32>} : memref<112x160xbf16, #tpu.memory_space<vmem>>, vector<12x24xbf16>,
    %c1_274 = arith.constant 1 : index
    %c0_275 = arith.constant 0 : index
    %372 = vector.load %arg36[%c1_274, %c0_275] : memref<112x24xf32, #tpu.memory_space<vmem>>, vector<12x24xf32>
    %373 = arith.truncf %372 : vector<12x24xf32> to vector<12x24xbf16>
    %c0_276 = arith.constant 0 : index
    %c24_277 = arith.constant 24 : index
    %374 = vector.load %arg41[%c0_276, %c24_277] : memref<112x160xbf16, #tpu.memory_space<vmem>>, vector<12x24xbf16>
    tpu.vector_store %arg41[%c0_276, %c24_277], %373 {strides = array<i32>} : memref<112x160xbf16, #tpu.memory_space<vmem>>, vector<12x24xbf16>,
    %c2_278 = arith.constant 2 : index
    %c0_279 = arith.constant 0 : index
    %375 = vector.load %arg36[%c2_278, %c0_279] : memref<112x24xf32, #tpu.memory_space<vmem>>, vector<12x24xf32>
    %376 = arith.truncf %375 : vector<12x24xf32> to vector<12x24xbf16>
    %c0_280 = arith.constant 0 : index
    %c48_281 = arith.constant 48 : index
    %377 = vector.load %arg41[%c0_280, %c48_281] : memref<112x160xbf16, #tpu.memory_space<vmem>>, vector<12x24xbf16>
    tpu.vector_store %arg41[%c0_280, %c48_281], %376 {strides = array<i32>} : memref<112x160xbf16, #tpu.memory_space<vmem>>, vector<12x24xbf16>,
    %c0_282 = arith.constant 0 : index
    %c0_283 = arith.constant 0 : index
    %378 = vector.load %arg41[%c0_282, %c0_283] : memref<112x160xbf16, #tpu.memory_space<vmem>>, vector<12x72xbf16>
    %c0_284 = arith.constant 0 : index
    %c0_285 = arith.constant 0 : index
    %379 = vector.load %arg16[%c0_284, %c0_285] : memref<72x24xbf16, #tpu.memory_space<vmem>>, vector<72x24xbf16>
    %cst_286 = arith.constant dense<0.000000e+00> : vector<12x24xf32>
    %380 = tpu.matmul %378, %379, %cst_286 {dimension_numbers = #tpu.dot_dimension_numbers<[1], [0], [0], [1], [0, 0, 1, 1], [], []>} : vector<12x72xbf16>, vector<72x24xbf16>, vector<12x24xf32> -> vector<12x24xf32>
    %c0_287 = arith.constant 0 : index
    %c0_288 = arith.constant 0 : index
    %381 = tpu.strided_load %arg37[%c0_287, %c0_288] {strides = array<i32: 2, 1>} : memref<112x24xf32, #tpu.memory_space<vmem>>, vector<12x24xf32>
    tpu.strided_store %arg37[%c0_287, %c0_288], %380 {strides = array<i32: 2, 1>} : memref<112x24xf32, #tpu.memory_space<vmem>>, vector<12x24xf32>
    %c1_289 = arith.constant 1 : index
    %c0_290 = arith.constant 0 : index
    %382 = vector.load %arg36[%c1_289, %c0_290] : memref<112x24xf32, #tpu.memory_space<vmem>>, vector<11x24xf32>
    %383 = arith.truncf %382 : vector<11x24xf32> to vector<11x24xbf16>
    %c0_291 = arith.constant 0 : index
    %c0_292 = arith.constant 0 : index
    %384 = vector.load %arg41[%c0_291, %c0_292] : memref<112x160xbf16, #tpu.memory_space<vmem>>, vector<11x24xbf16>
    tpu.vector_store %arg41[%c0_291, %c0_292], %383 {strides = array<i32>} : memref<112x160xbf16, #tpu.memory_space<vmem>>, vector<11x24xbf16>,
    %c2_293 = arith.constant 2 : index
    %c0_294 = arith.constant 0 : index
    %385 = vector.load %arg36[%c2_293, %c0_294] : memref<112x24xf32, #tpu.memory_space<vmem>>, vector<11x24xf32>
    %386 = arith.truncf %385 : vector<11x24xf32> to vector<11x24xbf16>
    %c0_295 = arith.constant 0 : index
    %c24_296 = arith.constant 24 : index
    %387 = vector.load %arg41[%c0_295, %c24_296] : memref<112x160xbf16, #tpu.memory_space<vmem>>, vector<11x24xbf16>
    tpu.vector_store %arg41[%c0_295, %c24_296], %386 {strides = array<i32>} : memref<112x160xbf16, #tpu.memory_space<vmem>>, vector<11x24xbf16>,
    %c0_297 = arith.constant 0 : index
    %c0_298 = arith.constant 0 : index
    %388 = vector.load %arg41[%c0_297, %c0_298] : memref<112x160xbf16, #tpu.memory_space<vmem>>, vector<11x48xbf16>
    %c0_299 = arith.constant 0 : index
    %c0_300 = arith.constant 0 : index
    %389 = vector.load %arg17[%c0_299, %c0_300] : memref<48x24xbf16, #tpu.memory_space<vmem>>, vector<48x24xbf16>
    %cst_301 = arith.constant dense<0.000000e+00> : vector<11x24xf32>
    %390 = tpu.matmul %388, %389, %cst_301 {dimension_numbers = #tpu.dot_dimension_numbers<[1], [0], [0], [1], [0, 0, 1, 1], [], []>} : vector<11x48xbf16>, vector<48x24xbf16>, vector<11x24xf32> -> vector<11x24xf32>
    %c1_302 = arith.constant 1 : index
    %c0_303 = arith.constant 0 : index
    %391 = tpu.strided_load %arg37[%c1_302, %c0_303] {strides = array<i32: 2, 1>} : memref<112x24xf32, #tpu.memory_space<vmem>>, vector<11x24xf32>
    tpu.strided_store %arg37[%c1_302, %c0_303], %390 {strides = array<i32: 2, 1>} : memref<112x24xf32, #tpu.memory_space<vmem>>, vector<11x24xf32>
    %c0_304 = arith.constant 0 : index
    %c0_305 = arith.constant 0 : index
    %392 = vector.load %arg37[%c0_304, %c0_305] : memref<112x24xf32, #tpu.memory_space<vmem>>, vector<23x24xf32>
    %c0_306 = arith.constant 0 : index
    %c0_307 = arith.constant 0 : index
    %393 = vector.load %arg18[%c0_306, %c0_307] : memref<3x24xf32, #tpu.memory_space<vmem>>, vector<3x24xf32>
    %394 = vector.extract_strided_slice %393 {offsets = [0, 0], sizes = [1, 24], strides = [1, 1]} : vector<3x24xf32> to vector<1x24xf32>
    %395 = vector.broadcast %394 : vector<1x24xf32> to vector<23x24xf32>
    %396 = arith.addf %392, %395 : vector<23x24xf32>
    %c0_308 = arith.constant 0 : index
    %c0_309 = arith.constant 0 : index
    %397 = vector.load %arg34[%c0_308, %c0_309] : memref<24x24xf32, #tpu.memory_space<vmem>>, vector<24x24xf32>
    %cst_310 = arith.constant dense<0.000000e+00> : vector<24xf32>
    %398 = vector.multi_reduction <add>, %396, %cst_310 [0] : vector<23x24xf32> to vector<24xf32>
    %399 = vector.shape_cast %398 : vector<24xf32> to vector<1x24xf32>
    %cst_311 = arith.constant dense<0.000000e+00> : vector<1x24xf32>
    %400 = tpu.matmul %399, %397, %cst_311 {dimension_numbers = #tpu.dot_dimension_numbers<[1], [0], [0], [1], [0, 0, 1, 1], [], []>} : vector<1x24xf32>, vector<24x24xf32>, vector<1x24xf32> -> vector<1x24xf32>
    %cst_312 = arith.constant 0.00543478271 : f32
    %401 = vector.broadcast %cst_312 : f32 to vector<1x24xf32>
    %402 = arith.mulf %400, %401 : vector<1x24xf32>
    %403 = vector.broadcast %402 : vector<1x24xf32> to vector<23x24xf32>
    %404 = arith.subf %396, %403 : vector<23x24xf32>
    %405 = arith.mulf %404, %404 : vector<23x24xf32>
    %cst_313 = arith.constant dense<0.000000e+00> : vector<24xf32>
    %406 = vector.multi_reduction <add>, %405, %cst_313 [0] : vector<23x24xf32> to vector<24xf32>
    %407 = vector.shape_cast %406 : vector<24xf32> to vector<1x24xf32>
    %cst_314 = arith.constant dense<0.000000e+00> : vector<1x24xf32>
    %408 = tpu.matmul %407, %397, %cst_314 {dimension_numbers = #tpu.dot_dimension_numbers<[1], [0], [0], [1], [0, 0, 1, 1], [], []>} : vector<1x24xf32>, vector<24x24xf32>, vector<1x24xf32> -> vector<1x24xf32>
    %cst_315 = arith.constant 0.00543478271 : f32
    %409 = vector.broadcast %cst_315 : f32 to vector<1x24xf32>
    %410 = arith.mulf %408, %409 : vector<1x24xf32>
    %cst_316 = arith.constant 0.000000e+00 : f32
    %411 = vector.broadcast %cst_316 : f32 to vector<1x24xf32>
    %412 = arith.maximumf %410, %411 : vector<1x24xf32>
    %cst_317 = arith.constant 9.99999974E-6 : f32
    %413 = vector.broadcast %cst_317 : f32 to vector<1x24xf32>
    %414 = arith.addf %412, %413 : vector<1x24xf32>
    %415 = math.rsqrt %414 : vector<1x24xf32>
    %416 = vector.broadcast %415 : vector<1x24xf32> to vector<23x24xf32>
    %417 = arith.mulf %404, %416 : vector<23x24xf32>
    %418 = vector.extract_strided_slice %393 {offsets = [1, 0], sizes = [1, 24], strides = [1, 1]} : vector<3x24xf32> to vector<1x24xf32>
    %419 = vector.broadcast %418 : vector<1x24xf32> to vector<23x24xf32>
    %420 = arith.mulf %417, %419 : vector<23x24xf32>
    %421 = vector.extract_strided_slice %393 {offsets = [2, 0], sizes = [1, 24], strides = [1, 1]} : vector<3x24xf32> to vector<1x24xf32>
    %422 = vector.broadcast %421 : vector<1x24xf32> to vector<23x24xf32>
    %423 = arith.addf %420, %422 : vector<23x24xf32>
    %cst_318 = arith.constant 0.000000e+00 : f32
    %424 = vector.broadcast %cst_318 : f32 to vector<23x24xf32>
    %425 = arith.maximumf %423, %424 : vector<23x24xf32>
    %c0_319 = arith.constant 0 : index
    %c0_320 = arith.constant 0 : index
    %426 = vector.load %arg37[%c0_319, %c0_320] : memref<112x24xf32, #tpu.memory_space<vmem>>, vector<23x24xf32>
    tpu.vector_store %arg37[%c0_319, %c0_320], %425 {strides = array<i32>} : memref<112x24xf32, #tpu.memory_space<vmem>>, vector<23x24xf32>,
    %c0_321 = arith.constant 0 : index
    %c0_322 = arith.constant 0 : index
    %427 = vector.load %arg37[%c0_321, %c0_322] : memref<112x24xf32, #tpu.memory_space<vmem>>, vector<19x24xf32>
    %428 = arith.truncf %427 : vector<19x24xf32> to vector<19x24xbf16>
    %c0_323 = arith.constant 0 : index
    %c0_324 = arith.constant 0 : index
    %429 = vector.load %arg41[%c0_323, %c0_324] : memref<112x160xbf16, #tpu.memory_space<vmem>>, vector<19x24xbf16>
    tpu.vector_store %arg41[%c0_323, %c0_324], %428 {strides = array<i32>} : memref<112x160xbf16, #tpu.memory_space<vmem>>, vector<19x24xbf16>,
    %c1_325 = arith.constant 1 : index
    %c0_326 = arith.constant 0 : index
    %430 = vector.load %arg37[%c1_325, %c0_326] : memref<112x24xf32, #tpu.memory_space<vmem>>, vector<19x24xf32>
    %431 = arith.truncf %430 : vector<19x24xf32> to vector<19x24xbf16>
    %c0_327 = arith.constant 0 : index
    %c24_328 = arith.constant 24 : index
    %432 = vector.load %arg41[%c0_327, %c24_328] : memref<112x160xbf16, #tpu.memory_space<vmem>>, vector<19x24xbf16>
    tpu.vector_store %arg41[%c0_327, %c24_328], %431 {strides = array<i32>} : memref<112x160xbf16, #tpu.memory_space<vmem>>, vector<19x24xbf16>,
    %c2_329 = arith.constant 2 : index
    %c0_330 = arith.constant 0 : index
    %433 = vector.load %arg37[%c2_329, %c0_330] : memref<112x24xf32, #tpu.memory_space<vmem>>, vector<19x24xf32>
    %434 = arith.truncf %433 : vector<19x24xf32> to vector<19x24xbf16>
    %c0_331 = arith.constant 0 : index
    %c48_332 = arith.constant 48 : index
    %435 = vector.load %arg41[%c0_331, %c48_332] : memref<112x160xbf16, #tpu.memory_space<vmem>>, vector<19x24xbf16>
    tpu.vector_store %arg41[%c0_331, %c48_332], %434 {strides = array<i32>} : memref<112x160xbf16, #tpu.memory_space<vmem>>, vector<19x24xbf16>,
    %c3_333 = arith.constant 3 : index
    %c0_334 = arith.constant 0 : index
    %436 = vector.load %arg37[%c3_333, %c0_334] : memref<112x24xf32, #tpu.memory_space<vmem>>, vector<19x24xf32>
    %437 = arith.truncf %436 : vector<19x24xf32> to vector<19x24xbf16>
    %c0_335 = arith.constant 0 : index
    %c72_336 = arith.constant 72 : index
    %438 = vector.load %arg41[%c0_335, %c72_336] : memref<112x160xbf16, #tpu.memory_space<vmem>>, vector<19x24xbf16>
    tpu.vector_store %arg41[%c0_335, %c72_336], %437 {strides = array<i32>} : memref<112x160xbf16, #tpu.memory_space<vmem>>, vector<19x24xbf16>,
    %c4_337 = arith.constant 4 : index
    %c0_338 = arith.constant 0 : index
    %439 = vector.load %arg37[%c4_337, %c0_338] : memref<112x24xf32, #tpu.memory_space<vmem>>, vector<19x24xf32>
    %440 = arith.truncf %439 : vector<19x24xf32> to vector<19x24xbf16>
    %c0_339 = arith.constant 0 : index
    %c96_340 = arith.constant 96 : index
    %441 = vector.load %arg41[%c0_339, %c96_340] : memref<112x160xbf16, #tpu.memory_space<vmem>>, vector<19x24xbf16>
    tpu.vector_store %arg41[%c0_339, %c96_340], %440 {strides = array<i32>} : memref<112x160xbf16, #tpu.memory_space<vmem>>, vector<19x24xbf16>,
    %c0_341 = arith.constant 0 : index
    %c0_342 = arith.constant 0 : index
    %442 = vector.load %arg41[%c0_341, %c0_342] : memref<112x160xbf16, #tpu.memory_space<vmem>>, vector<19x120xbf16>
    %c0_343 = arith.constant 0 : index
    %c0_344 = arith.constant 0 : index
    %443 = vector.load %arg19[%c0_343, %c0_344] : memref<120x16xbf16, #tpu.memory_space<vmem>>, vector<120x16xbf16>
    %cst_345 = arith.constant dense<0.000000e+00> : vector<19x16xf32>
    %444 = tpu.matmul %442, %443, %cst_345 {dimension_numbers = #tpu.dot_dimension_numbers<[1], [0], [0], [1], [0, 0, 1, 1], [], []>} : vector<19x120xbf16>, vector<120x16xbf16>, vector<19x16xf32> -> vector<19x16xf32>
    %c0_346 = arith.constant 0 : index
    %c0_347 = arith.constant 0 : index
    %445 = vector.load %arg20[%c0_346, %c0_347] : memref<3x16xf32, #tpu.memory_space<vmem>>, vector<3x16xf32>
    %446 = vector.extract_strided_slice %445 {offsets = [0, 0], sizes = [1, 16], strides = [1, 1]} : vector<3x16xf32> to vector<1x16xf32>
    %447 = vector.broadcast %446 : vector<1x16xf32> to vector<19x16xf32>
    %448 = arith.addf %444, %447 : vector<19x16xf32>
    %c0_348 = arith.constant 0 : index
    %c0_349 = arith.constant 0 : index
    %449 = vector.load %arg33[%c0_348, %c0_349] : memref<16x16xf32, #tpu.memory_space<vmem>>, vector<16x16xf32>
    %cst_350 = arith.constant dense<0.000000e+00> : vector<16xf32>
    %450 = vector.multi_reduction <add>, %448, %cst_350 [0] : vector<19x16xf32> to vector<16xf32>
    %451 = vector.shape_cast %450 : vector<16xf32> to vector<1x16xf32>
    %cst_351 = arith.constant dense<0.000000e+00> : vector<1x16xf32>
    %452 = tpu.matmul %451, %449, %cst_351 {dimension_numbers = #tpu.dot_dimension_numbers<[1], [0], [0], [1], [0, 0, 1, 1], [], []>} : vector<1x16xf32>, vector<16x16xf32>, vector<1x16xf32> -> vector<1x16xf32>
    %cst_352 = arith.constant 0.00657894742 : f32
    %453 = vector.broadcast %cst_352 : f32 to vector<1x16xf32>
    %454 = arith.mulf %452, %453 : vector<1x16xf32>
    %455 = vector.broadcast %454 : vector<1x16xf32> to vector<19x16xf32>
    %456 = arith.subf %448, %455 : vector<19x16xf32>
    %457 = arith.mulf %456, %456 : vector<19x16xf32>
    %cst_353 = arith.constant dense<0.000000e+00> : vector<16xf32>
    %458 = vector.multi_reduction <add>, %457, %cst_353 [0] : vector<19x16xf32> to vector<16xf32>
    %459 = vector.shape_cast %458 : vector<16xf32> to vector<1x16xf32>
    %cst_354 = arith.constant dense<0.000000e+00> : vector<1x16xf32>
    %460 = tpu.matmul %459, %449, %cst_354 {dimension_numbers = #tpu.dot_dimension_numbers<[1], [0], [0], [1], [0, 0, 1, 1], [], []>} : vector<1x16xf32>, vector<16x16xf32>, vector<1x16xf32> -> vector<1x16xf32>
    %cst_355 = arith.constant 0.00657894742 : f32
    %461 = vector.broadcast %cst_355 : f32 to vector<1x16xf32>
    %462 = arith.mulf %460, %461 : vector<1x16xf32>
    %cst_356 = arith.constant 0.000000e+00 : f32
    %463 = vector.broadcast %cst_356 : f32 to vector<1x16xf32>
    %464 = arith.maximumf %462, %463 : vector<1x16xf32>
    %cst_357 = arith.constant 9.99999974E-6 : f32
    %465 = vector.broadcast %cst_357 : f32 to vector<1x16xf32>
    %466 = arith.addf %464, %465 : vector<1x16xf32>
    %467 = math.rsqrt %466 : vector<1x16xf32>
    %468 = vector.broadcast %467 : vector<1x16xf32> to vector<19x16xf32>
    %469 = arith.mulf %456, %468 : vector<19x16xf32>
    %470 = vector.extract_strided_slice %445 {offsets = [1, 0], sizes = [1, 16], strides = [1, 1]} : vector<3x16xf32> to vector<1x16xf32>
    %471 = vector.broadcast %470 : vector<1x16xf32> to vector<19x16xf32>
    %472 = arith.mulf %469, %471 : vector<19x16xf32>
    %473 = vector.extract_strided_slice %445 {offsets = [2, 0], sizes = [1, 16], strides = [1, 1]} : vector<3x16xf32> to vector<1x16xf32>
    %474 = vector.broadcast %473 : vector<1x16xf32> to vector<19x16xf32>
    %475 = arith.addf %472, %474 : vector<19x16xf32>
    %cst_358 = arith.constant 0.000000e+00 : f32
    %476 = vector.broadcast %cst_358 : f32 to vector<19x16xf32>
    %477 = arith.maximumf %475, %476 : vector<19x16xf32>
    %c0_359 = arith.constant 0 : index
    %c0_360 = arith.constant 0 : index
    %478 = vector.load %arg36[%c0_359, %c0_360] : memref<112x24xf32, #tpu.memory_space<vmem>>, vector<19x16xf32>
    tpu.vector_store %arg36[%c0_359, %c0_360], %477 {strides = array<i32>} : memref<112x24xf32, #tpu.memory_space<vmem>>, vector<19x16xf32>,
    %c12 = arith.constant 12 : index
    %c0_361 = arith.constant 0 : index
    %479 = vector.load %arg40[%c12, %c0_361] : memref<48x16xf32, #tpu.memory_space<vmem>>, vector<15x16xf32>
    %480 = arith.truncf %479 : vector<15x16xf32> to vector<15x16xbf16>
    %c0_362 = arith.constant 0 : index
    %c0_363 = arith.constant 0 : index
    %481 = vector.load %arg41[%c0_362, %c0_363] : memref<112x160xbf16, #tpu.memory_space<vmem>>, vector<15x16xbf16>
    tpu.vector_store %arg41[%c0_362, %c0_363], %480 {strides = array<i32>} : memref<112x160xbf16, #tpu.memory_space<vmem>>, vector<15x16xbf16>,
    %c0_364 = arith.constant 0 : index
    %c0_365 = arith.constant 0 : index
    %482 = vector.load %arg36[%c0_364, %c0_365] : memref<112x24xf32, #tpu.memory_space<vmem>>, vector<15x16xf32>
    %483 = arith.truncf %482 : vector<15x16xf32> to vector<15x16xbf16>
    %c0_366 = arith.constant 0 : index
    %c16_367 = arith.constant 16 : index
    %484 = vector.load %arg41[%c0_366, %c16_367] : memref<112x160xbf16, #tpu.memory_space<vmem>>, vector<15x16xbf16>
    tpu.vector_store %arg41[%c0_366, %c16_367], %483 {strides = array<i32>} : memref<112x160xbf16, #tpu.memory_space<vmem>>, vector<15x16xbf16>,
    %c13 = arith.constant 13 : index
    %c0_368 = arith.constant 0 : index
    %485 = vector.load %arg40[%c13, %c0_368] : memref<48x16xf32, #tpu.memory_space<vmem>>, vector<15x16xf32>
    %486 = arith.truncf %485 : vector<15x16xf32> to vector<15x16xbf16>
    %c0_369 = arith.constant 0 : index
    %c32_370 = arith.constant 32 : index
    %487 = vector.load %arg41[%c0_369, %c32_370] : memref<112x160xbf16, #tpu.memory_space<vmem>>, vector<15x16xbf16>
    tpu.vector_store %arg41[%c0_369, %c32_370], %486 {strides = array<i32>} : memref<112x160xbf16, #tpu.memory_space<vmem>>, vector<15x16xbf16>,
    %c1_371 = arith.constant 1 : index
    %c0_372 = arith.constant 0 : index
    %488 = vector.load %arg36[%c1_371, %c0_372] : memref<112x24xf32, #tpu.memory_space<vmem>>, vector<15x16xf32>
    %489 = arith.truncf %488 : vector<15x16xf32> to vector<15x16xbf16>
    %c0_373 = arith.constant 0 : index
    %c48_374 = arith.constant 48 : index
    %490 = vector.load %arg41[%c0_373, %c48_374] : memref<112x160xbf16, #tpu.memory_space<vmem>>, vector<15x16xbf16>
    tpu.vector_store %arg41[%c0_373, %c48_374], %489 {strides = array<i32>} : memref<112x160xbf16, #tpu.memory_space<vmem>>, vector<15x16xbf16>,
    %c14 = arith.constant 14 : index
    %c0_375 = arith.constant 0 : index
    %491 = vector.load %arg40[%c14, %c0_375] : memref<48x16xf32, #tpu.memory_space<vmem>>, vector<15x16xf32>
    %492 = arith.truncf %491 : vector<15x16xf32> to vector<15x16xbf16>
    %c0_376 = arith.constant 0 : index
    %c64_377 = arith.constant 64 : index
    %493 = vector.load %arg41[%c0_376, %c64_377] : memref<112x160xbf16, #tpu.memory_space<vmem>>, vector<15x16xbf16>
    tpu.vector_store %arg41[%c0_376, %c64_377], %492 {strides = array<i32>} : memref<112x160xbf16, #tpu.memory_space<vmem>>, vector<15x16xbf16>,
    %c2_378 = arith.constant 2 : index
    %c0_379 = arith.constant 0 : index
    %494 = vector.load %arg36[%c2_378, %c0_379] : memref<112x24xf32, #tpu.memory_space<vmem>>, vector<15x16xf32>
    %495 = arith.truncf %494 : vector<15x16xf32> to vector<15x16xbf16>
    %c0_380 = arith.constant 0 : index
    %c80 = arith.constant 80 : index
    %496 = vector.load %arg41[%c0_380, %c80] : memref<112x160xbf16, #tpu.memory_space<vmem>>, vector<15x16xbf16>
    tpu.vector_store %arg41[%c0_380, %c80], %495 {strides = array<i32>} : memref<112x160xbf16, #tpu.memory_space<vmem>>, vector<15x16xbf16>,
    %c15 = arith.constant 15 : index
    %c0_381 = arith.constant 0 : index
    %497 = vector.load %arg40[%c15, %c0_381] : memref<48x16xf32, #tpu.memory_space<vmem>>, vector<15x16xf32>
    %498 = arith.truncf %497 : vector<15x16xf32> to vector<15x16xbf16>
    %c0_382 = arith.constant 0 : index
    %c96_383 = arith.constant 96 : index
    %499 = vector.load %arg41[%c0_382, %c96_383] : memref<112x160xbf16, #tpu.memory_space<vmem>>, vector<15x16xbf16>
    tpu.vector_store %arg41[%c0_382, %c96_383], %498 {strides = array<i32>} : memref<112x160xbf16, #tpu.memory_space<vmem>>, vector<15x16xbf16>,
    %c3_384 = arith.constant 3 : index
    %c0_385 = arith.constant 0 : index
    %500 = vector.load %arg36[%c3_384, %c0_385] : memref<112x24xf32, #tpu.memory_space<vmem>>, vector<15x16xf32>
    %501 = arith.truncf %500 : vector<15x16xf32> to vector<15x16xbf16>
    %c0_386 = arith.constant 0 : index
    %c112 = arith.constant 112 : index
    %502 = vector.load %arg41[%c0_386, %c112] : memref<112x160xbf16, #tpu.memory_space<vmem>>, vector<15x16xbf16>
    tpu.vector_store %arg41[%c0_386, %c112], %501 {strides = array<i32>} : memref<112x160xbf16, #tpu.memory_space<vmem>>, vector<15x16xbf16>,
    %c16_387 = arith.constant 16 : index
    %c0_388 = arith.constant 0 : index
    %503 = vector.load %arg40[%c16_387, %c0_388] : memref<48x16xf32, #tpu.memory_space<vmem>>, vector<15x16xf32>
    %504 = arith.truncf %503 : vector<15x16xf32> to vector<15x16xbf16>
    %c0_389 = arith.constant 0 : index
    %c128 = arith.constant 128 : index
    %505 = vector.load %arg41[%c0_389, %c128] : memref<112x160xbf16, #tpu.memory_space<vmem>>, vector<15x16xbf16>
    tpu.vector_store %arg41[%c0_389, %c128], %504 {strides = array<i32>} : memref<112x160xbf16, #tpu.memory_space<vmem>>, vector<15x16xbf16>,
    %c4_390 = arith.constant 4 : index
    %c0_391 = arith.constant 0 : index
    %506 = vector.load %arg36[%c4_390, %c0_391] : memref<112x24xf32, #tpu.memory_space<vmem>>, vector<15x16xf32>
    %507 = arith.truncf %506 : vector<15x16xf32> to vector<15x16xbf16>
    %c0_392 = arith.constant 0 : index
    %c144 = arith.constant 144 : index
    %508 = vector.load %arg41[%c0_392, %c144] : memref<112x160xbf16, #tpu.memory_space<vmem>>, vector<15x16xbf16>
    tpu.vector_store %arg41[%c0_392, %c144], %507 {strides = array<i32>} : memref<112x160xbf16, #tpu.memory_space<vmem>>, vector<15x16xbf16>,
    %c0_393 = arith.constant 0 : index
    %c0_394 = arith.constant 0 : index
    %509 = vector.load %arg41[%c0_393, %c0_394] : memref<112x160xbf16, #tpu.memory_space<vmem>>, vector<15x160xbf16>
    %c0_395 = arith.constant 0 : index
    %c0_396 = arith.constant 0 : index
    %510 = vector.load %arg21[%c0_395, %c0_396] : memref<160x16xbf16, #tpu.memory_space<vmem>>, vector<160x16xbf16>
    %cst_397 = arith.constant dense<0.000000e+00> : vector<15x16xf32>
    %511 = tpu.matmul %509, %510, %cst_397 {dimension_numbers = #tpu.dot_dimension_numbers<[1], [0], [0], [1], [0, 0, 1, 1], [], []>} : vector<15x160xbf16>, vector<160x16xbf16>, vector<15x16xf32> -> vector<15x16xf32>
    %c0_398 = arith.constant 0 : index
    %c0_399 = arith.constant 0 : index
    %512 = vector.load %arg22[%c0_398, %c0_399] : memref<3x16xf32, #tpu.memory_space<vmem>>, vector<3x16xf32>
    %513 = vector.extract_strided_slice %512 {offsets = [0, 0], sizes = [1, 16], strides = [1, 1]} : vector<3x16xf32> to vector<1x16xf32>
    %514 = vector.broadcast %513 : vector<1x16xf32> to vector<15x16xf32>
    %515 = arith.addf %511, %514 : vector<15x16xf32>
    %c0_400 = arith.constant 0 : index
    %c0_401 = arith.constant 0 : index
    %516 = vector.load %arg33[%c0_400, %c0_401] : memref<16x16xf32, #tpu.memory_space<vmem>>, vector<16x16xf32>
    %cst_402 = arith.constant dense<0.000000e+00> : vector<16xf32>
    %517 = vector.multi_reduction <add>, %515, %cst_402 [0] : vector<15x16xf32> to vector<16xf32>
    %518 = vector.shape_cast %517 : vector<16xf32> to vector<1x16xf32>
    %cst_403 = arith.constant dense<0.000000e+00> : vector<1x16xf32>
    %519 = tpu.matmul %518, %516, %cst_403 {dimension_numbers = #tpu.dot_dimension_numbers<[1], [0], [0], [1], [0, 0, 1, 1], [], []>} : vector<1x16xf32>, vector<16x16xf32>, vector<1x16xf32> -> vector<1x16xf32>
    %cst_404 = arith.constant 0.00833333377 : f32
    %520 = vector.broadcast %cst_404 : f32 to vector<1x16xf32>
    %521 = arith.mulf %519, %520 : vector<1x16xf32>
    %522 = vector.broadcast %521 : vector<1x16xf32> to vector<15x16xf32>
    %523 = arith.subf %515, %522 : vector<15x16xf32>
    %524 = arith.mulf %523, %523 : vector<15x16xf32>
    %cst_405 = arith.constant dense<0.000000e+00> : vector<16xf32>
    %525 = vector.multi_reduction <add>, %524, %cst_405 [0] : vector<15x16xf32> to vector<16xf32>
    %526 = vector.shape_cast %525 : vector<16xf32> to vector<1x16xf32>
    %cst_406 = arith.constant dense<0.000000e+00> : vector<1x16xf32>
    %527 = tpu.matmul %526, %516, %cst_406 {dimension_numbers = #tpu.dot_dimension_numbers<[1], [0], [0], [1], [0, 0, 1, 1], [], []>} : vector<1x16xf32>, vector<16x16xf32>, vector<1x16xf32> -> vector<1x16xf32>
    %cst_407 = arith.constant 0.00833333377 : f32
    %528 = vector.broadcast %cst_407 : f32 to vector<1x16xf32>
    %529 = arith.mulf %527, %528 : vector<1x16xf32>
    %cst_408 = arith.constant 0.000000e+00 : f32
    %530 = vector.broadcast %cst_408 : f32 to vector<1x16xf32>
    %531 = arith.maximumf %529, %530 : vector<1x16xf32>
    %cst_409 = arith.constant 9.99999974E-6 : f32
    %532 = vector.broadcast %cst_409 : f32 to vector<1x16xf32>
    %533 = arith.addf %531, %532 : vector<1x16xf32>
    %534 = math.rsqrt %533 : vector<1x16xf32>
    %535 = vector.broadcast %534 : vector<1x16xf32> to vector<15x16xf32>
    %536 = arith.mulf %523, %535 : vector<15x16xf32>
    %537 = vector.extract_strided_slice %512 {offsets = [1, 0], sizes = [1, 16], strides = [1, 1]} : vector<3x16xf32> to vector<1x16xf32>
    %538 = vector.broadcast %537 : vector<1x16xf32> to vector<15x16xf32>
    %539 = arith.mulf %536, %538 : vector<15x16xf32>
    %540 = vector.extract_strided_slice %512 {offsets = [2, 0], sizes = [1, 16], strides = [1, 1]} : vector<3x16xf32> to vector<1x16xf32>
    %541 = vector.broadcast %540 : vector<1x16xf32> to vector<15x16xf32>
    %542 = arith.addf %539, %541 : vector<15x16xf32>
    %cst_410 = arith.constant 0.000000e+00 : f32
    %543 = vector.broadcast %cst_410 : f32 to vector<15x16xf32>
    %544 = arith.maximumf %542, %543 : vector<15x16xf32>
    %c0_411 = arith.constant 0 : index
    %c0_412 = arith.constant 0 : index
    %545 = vector.load %arg37[%c0_411, %c0_412] : memref<112x24xf32, #tpu.memory_space<vmem>>, vector<15x16xf32>
    tpu.vector_store %arg37[%c0_411, %c0_412], %544 {strides = array<i32>} : memref<112x24xf32, #tpu.memory_space<vmem>>, vector<15x16xf32>,
    %c0_413 = arith.constant 0 : index
    %c0_414 = arith.constant 0 : index
    %546 = vector.load %arg37[%c0_413, %c0_414] : memref<112x24xf32, #tpu.memory_space<vmem>>, vector<13x16xf32>
    %547 = arith.truncf %546 : vector<13x16xf32> to vector<13x16xbf16>
    %c0_415 = arith.constant 0 : index
    %c0_416 = arith.constant 0 : index
    %548 = vector.load %arg41[%c0_415, %c0_416] : memref<112x160xbf16, #tpu.memory_space<vmem>>, vector<13x16xbf16>
    tpu.vector_store %arg41[%c0_415, %c0_416], %547 {strides = array<i32>} : memref<112x160xbf16, #tpu.memory_space<vmem>>, vector<13x16xbf16>,
    %c1_417 = arith.constant 1 : index
    %c0_418 = arith.constant 0 : index
    %549 = vector.load %arg37[%c1_417, %c0_418] : memref<112x24xf32, #tpu.memory_space<vmem>>, vector<13x16xf32>
    %550 = arith.truncf %549 : vector<13x16xf32> to vector<13x16xbf16>
    %c0_419 = arith.constant 0 : index
    %c16_420 = arith.constant 16 : index
    %551 = vector.load %arg41[%c0_419, %c16_420] : memref<112x160xbf16, #tpu.memory_space<vmem>>, vector<13x16xbf16>
    tpu.vector_store %arg41[%c0_419, %c16_420], %550 {strides = array<i32>} : memref<112x160xbf16, #tpu.memory_space<vmem>>, vector<13x16xbf16>,
    %c2_421 = arith.constant 2 : index
    %c0_422 = arith.constant 0 : index
    %552 = vector.load %arg37[%c2_421, %c0_422] : memref<112x24xf32, #tpu.memory_space<vmem>>, vector<13x16xf32>
    %553 = arith.truncf %552 : vector<13x16xf32> to vector<13x16xbf16>
    %c0_423 = arith.constant 0 : index
    %c32_424 = arith.constant 32 : index
    %554 = vector.load %arg41[%c0_423, %c32_424] : memref<112x160xbf16, #tpu.memory_space<vmem>>, vector<13x16xbf16>
    tpu.vector_store %arg41[%c0_423, %c32_424], %553 {strides = array<i32>} : memref<112x160xbf16, #tpu.memory_space<vmem>>, vector<13x16xbf16>,
    %c0_425 = arith.constant 0 : index
    %c0_426 = arith.constant 0 : index
    %555 = vector.load %arg41[%c0_425, %c0_426] : memref<112x160xbf16, #tpu.memory_space<vmem>>, vector<13x48xbf16>
    %c0_427 = arith.constant 0 : index
    %c0_428 = arith.constant 0 : index
    %556 = vector.load %arg23[%c0_427, %c0_428] : memref<48x16xbf16, #tpu.memory_space<vmem>>, vector<48x16xbf16>
    %cst_429 = arith.constant dense<0.000000e+00> : vector<13x16xf32>
    %557 = tpu.matmul %555, %556, %cst_429 {dimension_numbers = #tpu.dot_dimension_numbers<[1], [0], [0], [1], [0, 0, 1, 1], [], []>} : vector<13x48xbf16>, vector<48x16xbf16>, vector<13x16xf32> -> vector<13x16xf32>
    %c0_430 = arith.constant 0 : index
    %c0_431 = arith.constant 0 : index
    %558 = tpu.strided_load %arg36[%c0_430, %c0_431] {strides = array<i32: 2, 1>} : memref<112x24xf32, #tpu.memory_space<vmem>>, vector<13x16xf32>
    tpu.strided_store %arg36[%c0_430, %c0_431], %557 {strides = array<i32: 2, 1>} : memref<112x24xf32, #tpu.memory_space<vmem>>, vector<13x16xf32>
    %c1_432 = arith.constant 1 : index
    %c0_433 = arith.constant 0 : index
    %559 = vector.load %arg37[%c1_432, %c0_433] : memref<112x24xf32, #tpu.memory_space<vmem>>, vector<12x16xf32>
    %560 = arith.truncf %559 : vector<12x16xf32> to vector<12x16xbf16>
    %c0_434 = arith.constant 0 : index
    %c0_435 = arith.constant 0 : index
    %561 = vector.load %arg41[%c0_434, %c0_435] : memref<112x160xbf16, #tpu.memory_space<vmem>>, vector<12x16xbf16>
    tpu.vector_store %arg41[%c0_434, %c0_435], %560 {strides = array<i32>} : memref<112x160xbf16, #tpu.memory_space<vmem>>, vector<12x16xbf16>,
    %c2_436 = arith.constant 2 : index
    %c0_437 = arith.constant 0 : index
    %562 = vector.load %arg37[%c2_436, %c0_437] : memref<112x24xf32, #tpu.memory_space<vmem>>, vector<12x16xf32>
    %563 = arith.truncf %562 : vector<12x16xf32> to vector<12x16xbf16>
    %c0_438 = arith.constant 0 : index
    %c16_439 = arith.constant 16 : index
    %564 = vector.load %arg41[%c0_438, %c16_439] : memref<112x160xbf16, #tpu.memory_space<vmem>>, vector<12x16xbf16>
    tpu.vector_store %arg41[%c0_438, %c16_439], %563 {strides = array<i32>} : memref<112x160xbf16, #tpu.memory_space<vmem>>, vector<12x16xbf16>,
    %c0_440 = arith.constant 0 : index
    %c0_441 = arith.constant 0 : index
    %565 = vector.load %arg41[%c0_440, %c0_441] : memref<112x160xbf16, #tpu.memory_space<vmem>>, vector<12x32xbf16>
    %c0_442 = arith.constant 0 : index
    %c0_443 = arith.constant 0 : index
    %566 = vector.load %arg24[%c0_442, %c0_443] : memref<32x16xbf16, #tpu.memory_space<vmem>>, vector<32x16xbf16>
    %cst_444 = arith.constant dense<0.000000e+00> : vector<12x16xf32>
    %567 = tpu.matmul %565, %566, %cst_444 {dimension_numbers = #tpu.dot_dimension_numbers<[1], [0], [0], [1], [0, 0, 1, 1], [], []>} : vector<12x32xbf16>, vector<32x16xbf16>, vector<12x16xf32> -> vector<12x16xf32>
    %c1_445 = arith.constant 1 : index
    %c0_446 = arith.constant 0 : index
    %568 = tpu.strided_load %arg36[%c1_445, %c0_446] {strides = array<i32: 2, 1>} : memref<112x24xf32, #tpu.memory_space<vmem>>, vector<12x16xf32>
    tpu.strided_store %arg36[%c1_445, %c0_446], %567 {strides = array<i32: 2, 1>} : memref<112x24xf32, #tpu.memory_space<vmem>>, vector<12x16xf32>
    %c0_447 = arith.constant 0 : index
    %c0_448 = arith.constant 0 : index
    %569 = vector.load %arg36[%c0_447, %c0_448] : memref<112x24xf32, #tpu.memory_space<vmem>>, vector<25x16xf32>
    %c0_449 = arith.constant 0 : index
    %c0_450 = arith.constant 0 : index
    %570 = vector.load %arg25[%c0_449, %c0_450] : memref<3x16xf32, #tpu.memory_space<vmem>>, vector<3x16xf32>
    %571 = vector.extract_strided_slice %570 {offsets = [0, 0], sizes = [1, 16], strides = [1, 1]} : vector<3x16xf32> to vector<1x16xf32>
    %572 = vector.broadcast %571 : vector<1x16xf32> to vector<25x16xf32>
    %573 = arith.addf %569, %572 : vector<25x16xf32>
    %c0_451 = arith.constant 0 : index
    %c0_452 = arith.constant 0 : index
    %574 = vector.load %arg33[%c0_451, %c0_452] : memref<16x16xf32, #tpu.memory_space<vmem>>, vector<16x16xf32>
    %cst_453 = arith.constant dense<0.000000e+00> : vector<16xf32>
    %575 = vector.multi_reduction <add>, %573, %cst_453 [0] : vector<25x16xf32> to vector<16xf32>
    %576 = vector.shape_cast %575 : vector<16xf32> to vector<1x16xf32>
    %cst_454 = arith.constant dense<0.000000e+00> : vector<1x16xf32>
    %577 = tpu.matmul %576, %574, %cst_454 {dimension_numbers = #tpu.dot_dimension_numbers<[1], [0], [0], [1], [0, 0, 1, 1], [], []>} : vector<1x16xf32>, vector<16x16xf32>, vector<1x16xf32> -> vector<1x16xf32>
    %cst_455 = arith.constant 5.000000e-03 : f32
    %578 = vector.broadcast %cst_455 : f32 to vector<1x16xf32>
    %579 = arith.mulf %577, %578 : vector<1x16xf32>
    %580 = vector.broadcast %579 : vector<1x16xf32> to vector<25x16xf32>
    %581 = arith.subf %573, %580 : vector<25x16xf32>
    %582 = arith.mulf %581, %581 : vector<25x16xf32>
    %cst_456 = arith.constant dense<0.000000e+00> : vector<16xf32>
    %583 = vector.multi_reduction <add>, %582, %cst_456 [0] : vector<25x16xf32> to vector<16xf32>
    %584 = vector.shape_cast %583 : vector<16xf32> to vector<1x16xf32>
    %cst_457 = arith.constant dense<0.000000e+00> : vector<1x16xf32>
    %585 = tpu.matmul %584, %574, %cst_457 {dimension_numbers = #tpu.dot_dimension_numbers<[1], [0], [0], [1], [0, 0, 1, 1], [], []>} : vector<1x16xf32>, vector<16x16xf32>, vector<1x16xf32> -> vector<1x16xf32>
    %cst_458 = arith.constant 5.000000e-03 : f32
    %586 = vector.broadcast %cst_458 : f32 to vector<1x16xf32>
    %587 = arith.mulf %585, %586 : vector<1x16xf32>
    %cst_459 = arith.constant 0.000000e+00 : f32
    %588 = vector.broadcast %cst_459 : f32 to vector<1x16xf32>
    %589 = arith.maximumf %587, %588 : vector<1x16xf32>
    %cst_460 = arith.constant 9.99999974E-6 : f32
    %590 = vector.broadcast %cst_460 : f32 to vector<1x16xf32>
    %591 = arith.addf %589, %590 : vector<1x16xf32>
    %592 = math.rsqrt %591 : vector<1x16xf32>
    %593 = vector.broadcast %592 : vector<1x16xf32> to vector<25x16xf32>
    %594 = arith.mulf %581, %593 : vector<25x16xf32>
    %595 = vector.extract_strided_slice %570 {offsets = [1, 0], sizes = [1, 16], strides = [1, 1]} : vector<3x16xf32> to vector<1x16xf32>
    %596 = vector.broadcast %595 : vector<1x16xf32> to vector<25x16xf32>
    %597 = arith.mulf %594, %596 : vector<25x16xf32>
    %598 = vector.extract_strided_slice %570 {offsets = [2, 0], sizes = [1, 16], strides = [1, 1]} : vector<3x16xf32> to vector<1x16xf32>
    %599 = vector.broadcast %598 : vector<1x16xf32> to vector<25x16xf32>
    %600 = arith.addf %597, %599 : vector<25x16xf32>
    %cst_461 = arith.constant 0.000000e+00 : f32
    %601 = vector.broadcast %cst_461 : f32 to vector<25x16xf32>
    %602 = arith.maximumf %600, %601 : vector<25x16xf32>
    %c0_462 = arith.constant 0 : index
    %c0_463 = arith.constant 0 : index
    %603 = vector.load %arg36[%c0_462, %c0_463] : memref<112x24xf32, #tpu.memory_space<vmem>>, vector<25x16xf32>
    tpu.vector_store %arg36[%c0_462, %c0_463], %602 {strides = array<i32>} : memref<112x24xf32, #tpu.memory_space<vmem>>, vector<25x16xf32>,
    %c0_464 = arith.constant 0 : index
    %c0_465 = arith.constant 0 : index
    %604 = vector.load %arg36[%c0_464, %c0_465] : memref<112x24xf32, #tpu.memory_space<vmem>>, vector<21x16xf32>
    %605 = arith.truncf %604 : vector<21x16xf32> to vector<21x16xbf16>
    %c0_466 = arith.constant 0 : index
    %c0_467 = arith.constant 0 : index
    %606 = vector.load %arg41[%c0_466, %c0_467] : memref<112x160xbf16, #tpu.memory_space<vmem>>, vector<21x16xbf16>
    tpu.vector_store %arg41[%c0_466, %c0_467], %605 {strides = array<i32>} : memref<112x160xbf16, #tpu.memory_space<vmem>>, vector<21x16xbf16>,
    %c1_468 = arith.constant 1 : index
    %c0_469 = arith.constant 0 : index
    %607 = vector.load %arg36[%c1_468, %c0_469] : memref<112x24xf32, #tpu.memory_space<vmem>>, vector<21x16xf32>
    %608 = arith.truncf %607 : vector<21x16xf32> to vector<21x16xbf16>
    %c0_470 = arith.constant 0 : index
    %c16_471 = arith.constant 16 : index
    %609 = vector.load %arg41[%c0_470, %c16_471] : memref<112x160xbf16, #tpu.memory_space<vmem>>, vector<21x16xbf16>
    tpu.vector_store %arg41[%c0_470, %c16_471], %608 {strides = array<i32>} : memref<112x160xbf16, #tpu.memory_space<vmem>>, vector<21x16xbf16>,
    %c2_472 = arith.constant 2 : index
    %c0_473 = arith.constant 0 : index
    %610 = vector.load %arg36[%c2_472, %c0_473] : memref<112x24xf32, #tpu.memory_space<vmem>>, vector<21x16xf32>
    %611 = arith.truncf %610 : vector<21x16xf32> to vector<21x16xbf16>
    %c0_474 = arith.constant 0 : index
    %c32_475 = arith.constant 32 : index
    %612 = vector.load %arg41[%c0_474, %c32_475] : memref<112x160xbf16, #tpu.memory_space<vmem>>, vector<21x16xbf16>
    tpu.vector_store %arg41[%c0_474, %c32_475], %611 {strides = array<i32>} : memref<112x160xbf16, #tpu.memory_space<vmem>>, vector<21x16xbf16>,
    %c3_476 = arith.constant 3 : index
    %c0_477 = arith.constant 0 : index
    %613 = vector.load %arg36[%c3_476, %c0_477] : memref<112x24xf32, #tpu.memory_space<vmem>>, vector<21x16xf32>
    %614 = arith.truncf %613 : vector<21x16xf32> to vector<21x16xbf16>
    %c0_478 = arith.constant 0 : index
    %c48_479 = arith.constant 48 : index
    %615 = vector.load %arg41[%c0_478, %c48_479] : memref<112x160xbf16, #tpu.memory_space<vmem>>, vector<21x16xbf16>
    tpu.vector_store %arg41[%c0_478, %c48_479], %614 {strides = array<i32>} : memref<112x160xbf16, #tpu.memory_space<vmem>>, vector<21x16xbf16>,
    %c4_480 = arith.constant 4 : index
    %c0_481 = arith.constant 0 : index
    %616 = vector.load %arg36[%c4_480, %c0_481] : memref<112x24xf32, #tpu.memory_space<vmem>>, vector<21x16xf32>
    %617 = arith.truncf %616 : vector<21x16xf32> to vector<21x16xbf16>
    %c0_482 = arith.constant 0 : index
    %c64_483 = arith.constant 64 : index
    %618 = vector.load %arg41[%c0_482, %c64_483] : memref<112x160xbf16, #tpu.memory_space<vmem>>, vector<21x16xbf16>
    tpu.vector_store %arg41[%c0_482, %c64_483], %617 {strides = array<i32>} : memref<112x160xbf16, #tpu.memory_space<vmem>>, vector<21x16xbf16>,
    %c0_484 = arith.constant 0 : index
    %c0_485 = arith.constant 0 : index
    %619 = vector.load %arg41[%c0_484, %c0_485] : memref<112x160xbf16, #tpu.memory_space<vmem>>, vector<21x80xbf16>
    %c0_486 = arith.constant 0 : index
    %c0_487 = arith.constant 0 : index
    %620 = vector.load %arg26[%c0_486, %c0_487] : memref<80x8xbf16, #tpu.memory_space<vmem>>, vector<80x8xbf16>
    %cst_488 = arith.constant dense<0.000000e+00> : vector<21x8xf32>
    %621 = tpu.matmul %619, %620, %cst_488 {dimension_numbers = #tpu.dot_dimension_numbers<[1], [0], [0], [1], [0, 0, 1, 1], [], []>} : vector<21x80xbf16>, vector<80x8xbf16>, vector<21x8xf32> -> vector<21x8xf32>
    %c0_489 = arith.constant 0 : index
    %c0_490 = arith.constant 0 : index
    %622 = vector.load %arg27[%c0_489, %c0_490] : memref<3x8xf32, #tpu.memory_space<vmem>>, vector<3x8xf32>
    %623 = vector.extract_strided_slice %622 {offsets = [0, 0], sizes = [1, 8], strides = [1, 1]} : vector<3x8xf32> to vector<1x8xf32>
    %624 = vector.broadcast %623 : vector<1x8xf32> to vector<21x8xf32>
    %625 = arith.addf %621, %624 : vector<21x8xf32>
    %c0_491 = arith.constant 0 : index
    %c0_492 = arith.constant 0 : index
    %626 = vector.load %arg32[%c0_491, %c0_492] : memref<8x8xf32, #tpu.memory_space<vmem>>, vector<8x8xf32>
    %cst_493 = arith.constant dense<0.000000e+00> : vector<8xf32>
    %627 = vector.multi_reduction <add>, %625, %cst_493 [0] : vector<21x8xf32> to vector<8xf32>
    %628 = vector.shape_cast %627 : vector<8xf32> to vector<1x8xf32>
    %cst_494 = arith.constant dense<0.000000e+00> : vector<1x8xf32>
    %629 = tpu.matmul %628, %626, %cst_494 {dimension_numbers = #tpu.dot_dimension_numbers<[1], [0], [0], [1], [0, 0, 1, 1], [], []>} : vector<1x8xf32>, vector<8x8xf32>, vector<1x8xf32> -> vector<1x8xf32>
    %cst_495 = arith.constant 0.00595238106 : f32
    %630 = vector.broadcast %cst_495 : f32 to vector<1x8xf32>
    %631 = arith.mulf %629, %630 : vector<1x8xf32>
    %632 = vector.broadcast %631 : vector<1x8xf32> to vector<21x8xf32>
    %633 = arith.subf %625, %632 : vector<21x8xf32>
    %634 = arith.mulf %633, %633 : vector<21x8xf32>
    %cst_496 = arith.constant dense<0.000000e+00> : vector<8xf32>
    %635 = vector.multi_reduction <add>, %634, %cst_496 [0] : vector<21x8xf32> to vector<8xf32>
    %636 = vector.shape_cast %635 : vector<8xf32> to vector<1x8xf32>
    %cst_497 = arith.constant dense<0.000000e+00> : vector<1x8xf32>
    %637 = tpu.matmul %636, %626, %cst_497 {dimension_numbers = #tpu.dot_dimension_numbers<[1], [0], [0], [1], [0, 0, 1, 1], [], []>} : vector<1x8xf32>, vector<8x8xf32>, vector<1x8xf32> -> vector<1x8xf32>
    %cst_498 = arith.constant 0.00595238106 : f32
    %638 = vector.broadcast %cst_498 : f32 to vector<1x8xf32>
    %639 = arith.mulf %637, %638 : vector<1x8xf32>
    %cst_499 = arith.constant 0.000000e+00 : f32
    %640 = vector.broadcast %cst_499 : f32 to vector<1x8xf32>
    %641 = arith.maximumf %639, %640 : vector<1x8xf32>
    %cst_500 = arith.constant 9.99999974E-6 : f32
    %642 = vector.broadcast %cst_500 : f32 to vector<1x8xf32>
    %643 = arith.addf %641, %642 : vector<1x8xf32>
    %644 = math.rsqrt %643 : vector<1x8xf32>
    %645 = vector.broadcast %644 : vector<1x8xf32> to vector<21x8xf32>
    %646 = arith.mulf %633, %645 : vector<21x8xf32>
    %647 = vector.extract_strided_slice %622 {offsets = [1, 0], sizes = [1, 8], strides = [1, 1]} : vector<3x8xf32> to vector<1x8xf32>
    %648 = vector.broadcast %647 : vector<1x8xf32> to vector<21x8xf32>
    %649 = arith.mulf %646, %648 : vector<21x8xf32>
    %650 = vector.extract_strided_slice %622 {offsets = [2, 0], sizes = [1, 8], strides = [1, 1]} : vector<3x8xf32> to vector<1x8xf32>
    %651 = vector.broadcast %650 : vector<1x8xf32> to vector<21x8xf32>
    %652 = arith.addf %649, %651 : vector<21x8xf32>
    %cst_501 = arith.constant 0.000000e+00 : f32
    %653 = vector.broadcast %cst_501 : f32 to vector<21x8xf32>
    %654 = arith.maximumf %652, %653 : vector<21x8xf32>
    %c0_502 = arith.constant 0 : index
    %c0_503 = arith.constant 0 : index
    %655 = vector.load %arg37[%c0_502, %c0_503] : memref<112x24xf32, #tpu.memory_space<vmem>>, vector<21x8xf32>
    tpu.vector_store %arg37[%c0_502, %c0_503], %654 {strides = array<i32>} : memref<112x24xf32, #tpu.memory_space<vmem>>, vector<21x8xf32>,
    %c40 = arith.constant 40 : index
    %c0_504 = arith.constant 0 : index
    %656 = vector.load %arg39[%c40, %c0_504] : memref<104x8xf32, #tpu.memory_space<vmem>>, vector<17x8xf32>
    %657 = arith.truncf %656 : vector<17x8xf32> to vector<17x8xbf16>
    %c0_505 = arith.constant 0 : index
    %c0_506 = arith.constant 0 : index
    %658 = vector.load %arg41[%c0_505, %c0_506] : memref<112x160xbf16, #tpu.memory_space<vmem>>, vector<17x8xbf16>
    tpu.vector_store %arg41[%c0_505, %c0_506], %657 {strides = array<i32>} : memref<112x160xbf16, #tpu.memory_space<vmem>>, vector<17x8xbf16>,
    %c0_507 = arith.constant 0 : index
    %c0_508 = arith.constant 0 : index
    %659 = vector.load %arg37[%c0_507, %c0_508] : memref<112x24xf32, #tpu.memory_space<vmem>>, vector<17x8xf32>
    %660 = arith.truncf %659 : vector<17x8xf32> to vector<17x8xbf16>
    %c0_509 = arith.constant 0 : index
    %c8_510 = arith.constant 8 : index
    %661 = vector.load %arg41[%c0_509, %c8_510] : memref<112x160xbf16, #tpu.memory_space<vmem>>, vector<17x8xbf16>
    tpu.vector_store %arg41[%c0_509, %c8_510], %660 {strides = array<i32>} : memref<112x160xbf16, #tpu.memory_space<vmem>>, vector<17x8xbf16>,
    %c41 = arith.constant 41 : index
    %c0_511 = arith.constant 0 : index
    %662 = vector.load %arg39[%c41, %c0_511] : memref<104x8xf32, #tpu.memory_space<vmem>>, vector<17x8xf32>
    %663 = arith.truncf %662 : vector<17x8xf32> to vector<17x8xbf16>
    %c0_512 = arith.constant 0 : index
    %c16_513 = arith.constant 16 : index
    %664 = vector.load %arg41[%c0_512, %c16_513] : memref<112x160xbf16, #tpu.memory_space<vmem>>, vector<17x8xbf16>
    tpu.vector_store %arg41[%c0_512, %c16_513], %663 {strides = array<i32>} : memref<112x160xbf16, #tpu.memory_space<vmem>>, vector<17x8xbf16>,
    %c1_514 = arith.constant 1 : index
    %c0_515 = arith.constant 0 : index
    %665 = vector.load %arg37[%c1_514, %c0_515] : memref<112x24xf32, #tpu.memory_space<vmem>>, vector<17x8xf32>
    %666 = arith.truncf %665 : vector<17x8xf32> to vector<17x8xbf16>
    %c0_516 = arith.constant 0 : index
    %c24_517 = arith.constant 24 : index
    %667 = vector.load %arg41[%c0_516, %c24_517] : memref<112x160xbf16, #tpu.memory_space<vmem>>, vector<17x8xbf16>
    tpu.vector_store %arg41[%c0_516, %c24_517], %666 {strides = array<i32>} : memref<112x160xbf16, #tpu.memory_space<vmem>>, vector<17x8xbf16>,
    %c42 = arith.constant 42 : index
    %c0_518 = arith.constant 0 : index
    %668 = vector.load %arg39[%c42, %c0_518] : memref<104x8xf32, #tpu.memory_space<vmem>>, vector<17x8xf32>
    %669 = arith.truncf %668 : vector<17x8xf32> to vector<17x8xbf16>
    %c0_519 = arith.constant 0 : index
    %c32_520 = arith.constant 32 : index
    %670 = vector.load %arg41[%c0_519, %c32_520] : memref<112x160xbf16, #tpu.memory_space<vmem>>, vector<17x8xbf16>
    tpu.vector_store %arg41[%c0_519, %c32_520], %669 {strides = array<i32>} : memref<112x160xbf16, #tpu.memory_space<vmem>>, vector<17x8xbf16>,
    %c2_521 = arith.constant 2 : index
    %c0_522 = arith.constant 0 : index
    %671 = vector.load %arg37[%c2_521, %c0_522] : memref<112x24xf32, #tpu.memory_space<vmem>>, vector<17x8xf32>
    %672 = arith.truncf %671 : vector<17x8xf32> to vector<17x8xbf16>
    %c0_523 = arith.constant 0 : index
    %c40_524 = arith.constant 40 : index
    %673 = vector.load %arg41[%c0_523, %c40_524] : memref<112x160xbf16, #tpu.memory_space<vmem>>, vector<17x8xbf16>
    tpu.vector_store %arg41[%c0_523, %c40_524], %672 {strides = array<i32>} : memref<112x160xbf16, #tpu.memory_space<vmem>>, vector<17x8xbf16>,
    %c43 = arith.constant 43 : index
    %c0_525 = arith.constant 0 : index
    %674 = vector.load %arg39[%c43, %c0_525] : memref<104x8xf32, #tpu.memory_space<vmem>>, vector<17x8xf32>
    %675 = arith.truncf %674 : vector<17x8xf32> to vector<17x8xbf16>
    %c0_526 = arith.constant 0 : index
    %c48_527 = arith.constant 48 : index
    %676 = vector.load %arg41[%c0_526, %c48_527] : memref<112x160xbf16, #tpu.memory_space<vmem>>, vector<17x8xbf16>
    tpu.vector_store %arg41[%c0_526, %c48_527], %675 {strides = array<i32>} : memref<112x160xbf16, #tpu.memory_space<vmem>>, vector<17x8xbf16>,
    %c3_528 = arith.constant 3 : index
    %c0_529 = arith.constant 0 : index
    %677 = vector.load %arg37[%c3_528, %c0_529] : memref<112x24xf32, #tpu.memory_space<vmem>>, vector<17x8xf32>
    %678 = arith.truncf %677 : vector<17x8xf32> to vector<17x8xbf16>
    %c0_530 = arith.constant 0 : index
    %c56 = arith.constant 56 : index
    %679 = vector.load %arg41[%c0_530, %c56] : memref<112x160xbf16, #tpu.memory_space<vmem>>, vector<17x8xbf16>
    tpu.vector_store %arg41[%c0_530, %c56], %678 {strides = array<i32>} : memref<112x160xbf16, #tpu.memory_space<vmem>>, vector<17x8xbf16>,
    %c44 = arith.constant 44 : index
    %c0_531 = arith.constant 0 : index
    %680 = vector.load %arg39[%c44, %c0_531] : memref<104x8xf32, #tpu.memory_space<vmem>>, vector<17x8xf32>
    %681 = arith.truncf %680 : vector<17x8xf32> to vector<17x8xbf16>
    %c0_532 = arith.constant 0 : index
    %c64_533 = arith.constant 64 : index
    %682 = vector.load %arg41[%c0_532, %c64_533] : memref<112x160xbf16, #tpu.memory_space<vmem>>, vector<17x8xbf16>
    tpu.vector_store %arg41[%c0_532, %c64_533], %681 {strides = array<i32>} : memref<112x160xbf16, #tpu.memory_space<vmem>>, vector<17x8xbf16>,
    %c4_534 = arith.constant 4 : index
    %c0_535 = arith.constant 0 : index
    %683 = vector.load %arg37[%c4_534, %c0_535] : memref<112x24xf32, #tpu.memory_space<vmem>>, vector<17x8xf32>
    %684 = arith.truncf %683 : vector<17x8xf32> to vector<17x8xbf16>
    %c0_536 = arith.constant 0 : index
    %c72_537 = arith.constant 72 : index
    %685 = vector.load %arg41[%c0_536, %c72_537] : memref<112x160xbf16, #tpu.memory_space<vmem>>, vector<17x8xbf16>
    tpu.vector_store %arg41[%c0_536, %c72_537], %684 {strides = array<i32>} : memref<112x160xbf16, #tpu.memory_space<vmem>>, vector<17x8xbf16>,
    %c0_538 = arith.constant 0 : index
    %c0_539 = arith.constant 0 : index
    %686 = vector.load %arg41[%c0_538, %c0_539] : memref<112x160xbf16, #tpu.memory_space<vmem>>, vector<17x80xbf16>
    %c0_540 = arith.constant 0 : index
    %c0_541 = arith.constant 0 : index
    %687 = vector.load %arg28[%c0_540, %c0_541] : memref<80x8xbf16, #tpu.memory_space<vmem>>, vector<80x8xbf16>
    %cst_542 = arith.constant dense<0.000000e+00> : vector<17x8xf32>
    %688 = tpu.matmul %686, %687, %cst_542 {dimension_numbers = #tpu.dot_dimension_numbers<[1], [0], [0], [1], [0, 0, 1, 1], [], []>} : vector<17x80xbf16>, vector<80x8xbf16>, vector<17x8xf32> -> vector<17x8xf32>
    %c0_543 = arith.constant 0 : index
    %c0_544 = arith.constant 0 : index
    %689 = vector.load %arg29[%c0_543, %c0_544] : memref<3x8xf32, #tpu.memory_space<vmem>>, vector<3x8xf32>
    %690 = vector.extract_strided_slice %689 {offsets = [0, 0], sizes = [1, 8], strides = [1, 1]} : vector<3x8xf32> to vector<1x8xf32>
    %691 = vector.broadcast %690 : vector<1x8xf32> to vector<17x8xf32>
    %692 = arith.addf %688, %691 : vector<17x8xf32>
    %c0_545 = arith.constant 0 : index
    %c0_546 = arith.constant 0 : index
    %693 = vector.load %arg32[%c0_545, %c0_546] : memref<8x8xf32, #tpu.memory_space<vmem>>, vector<8x8xf32>
    %cst_547 = arith.constant dense<0.000000e+00> : vector<8xf32>
    %694 = vector.multi_reduction <add>, %692, %cst_547 [0] : vector<17x8xf32> to vector<8xf32>
    %695 = vector.shape_cast %694 : vector<8xf32> to vector<1x8xf32>
    %cst_548 = arith.constant dense<0.000000e+00> : vector<1x8xf32>
    %696 = tpu.matmul %695, %693, %cst_548 {dimension_numbers = #tpu.dot_dimension_numbers<[1], [0], [0], [1], [0, 0, 1, 1], [], []>} : vector<1x8xf32>, vector<8x8xf32>, vector<1x8xf32> -> vector<1x8xf32>
    %cst_549 = arith.constant 0.0073529412 : f32
    %697 = vector.broadcast %cst_549 : f32 to vector<1x8xf32>
    %698 = arith.mulf %696, %697 : vector<1x8xf32>
    %699 = vector.broadcast %698 : vector<1x8xf32> to vector<17x8xf32>
    %700 = arith.subf %692, %699 : vector<17x8xf32>
    %701 = arith.mulf %700, %700 : vector<17x8xf32>
    %cst_550 = arith.constant dense<0.000000e+00> : vector<8xf32>
    %702 = vector.multi_reduction <add>, %701, %cst_550 [0] : vector<17x8xf32> to vector<8xf32>
    %703 = vector.shape_cast %702 : vector<8xf32> to vector<1x8xf32>
    %cst_551 = arith.constant dense<0.000000e+00> : vector<1x8xf32>
    %704 = tpu.matmul %703, %693, %cst_551 {dimension_numbers = #tpu.dot_dimension_numbers<[1], [0], [0], [1], [0, 0, 1, 1], [], []>} : vector<1x8xf32>, vector<8x8xf32>, vector<1x8xf32> -> vector<1x8xf32>
    %cst_552 = arith.constant 0.0073529412 : f32
    %705 = vector.broadcast %cst_552 : f32 to vector<1x8xf32>
    %706 = arith.mulf %704, %705 : vector<1x8xf32>
    %cst_553 = arith.constant 0.000000e+00 : f32
    %707 = vector.broadcast %cst_553 : f32 to vector<1x8xf32>
    %708 = arith.maximumf %706, %707 : vector<1x8xf32>
    %cst_554 = arith.constant 9.99999974E-6 : f32
    %709 = vector.broadcast %cst_554 : f32 to vector<1x8xf32>
    %710 = arith.addf %708, %709 : vector<1x8xf32>
    %711 = math.rsqrt %710 : vector<1x8xf32>
    %712 = vector.broadcast %711 : vector<1x8xf32> to vector<17x8xf32>
    %713 = arith.mulf %700, %712 : vector<17x8xf32>
    %714 = vector.extract_strided_slice %689 {offsets = [1, 0], sizes = [1, 8], strides = [1, 1]} : vector<3x8xf32> to vector<1x8xf32>
    %715 = vector.broadcast %714 : vector<1x8xf32> to vector<17x8xf32>
    %716 = arith.mulf %713, %715 : vector<17x8xf32>
    %717 = vector.extract_strided_slice %689 {offsets = [2, 0], sizes = [1, 8], strides = [1, 1]} : vector<3x8xf32> to vector<1x8xf32>
    %718 = vector.broadcast %717 : vector<1x8xf32> to vector<17x8xf32>
    %719 = arith.addf %716, %718 : vector<17x8xf32>
    %cst_555 = arith.constant 0.000000e+00 : f32
    %720 = vector.broadcast %cst_555 : f32 to vector<17x8xf32>
    %721 = arith.maximumf %719, %720 : vector<17x8xf32>
    %c0_556 = arith.constant 0 : index
    %c0_557 = arith.constant 0 : index
    %722 = vector.load %arg36[%c0_556, %c0_557] : memref<112x24xf32, #tpu.memory_space<vmem>>, vector<17x8xf32>
    tpu.vector_store %arg36[%c0_556, %c0_557], %721 {strides = array<i32>} : memref<112x24xf32, #tpu.memory_space<vmem>>, vector<17x8xf32>,
    %c0_558 = arith.constant 0 : index
    %c0_559 = arith.constant 0 : index
    %723 = vector.load %arg36[%c0_558, %c0_559] : memref<112x24xf32, #tpu.memory_space<vmem>>, vector<17x8xf32>
    %724 = arith.truncf %723 : vector<17x8xf32> to vector<17x8xbf16>
    %c0_560 = arith.constant 0 : index
    %c0_561 = arith.constant 0 : index
    %725 = vector.load %arg41[%c0_560, %c0_561] : memref<112x160xbf16, #tpu.memory_space<vmem>>, vector<17x8xbf16>
    tpu.vector_store %arg41[%c0_560, %c0_561], %724 {strides = array<i32>} : memref<112x160xbf16, #tpu.memory_space<vmem>>, vector<17x8xbf16>,
    %c0_562 = arith.constant 0 : index
    %c0_563 = arith.constant 0 : index
    %726 = vector.load %arg41[%c0_562, %c0_563] : memref<112x160xbf16, #tpu.memory_space<vmem>>, vector<17x8xbf16>
    %c0_564 = arith.constant 0 : index
    %c0_565 = arith.constant 0 : index
    %727 = vector.load %arg30[%c0_564, %c0_565] : memref<8x2xbf16, #tpu.memory_space<vmem>>, vector<8x2xbf16>
    %cst_566 = arith.constant dense<0.000000e+00> : vector<17x2xf32>
    %728 = tpu.matmul %726, %727, %cst_566 {dimension_numbers = #tpu.dot_dimension_numbers<[1], [0], [0], [1], [0, 0, 1, 1], [], []>} : vector<17x8xbf16>, vector<8x2xbf16>, vector<17x2xf32> -> vector<17x2xf32>
    %c0_567 = arith.constant 0 : index
    %c0_568 = arith.constant 0 : index
    %729 = vector.load %arg31[%c0_567, %c0_568] : memref<3x2xf32, #tpu.memory_space<vmem>>, vector<3x2xf32>
    %730 = vector.extract_strided_slice %729 {offsets = [0, 0], sizes = [1, 2], strides = [1, 1]} : vector<3x2xf32> to vector<1x2xf32>
    %731 = vector.broadcast %730 : vector<1x2xf32> to vector<17x2xf32>
    %732 = arith.addf %728, %731 : vector<17x2xf32>
    %cst_569 = arith.constant -1.000000e+00 : f32
    %cst_570 = arith.constant 1.000000e+00 : f32
    %733 = vector.broadcast %cst_569 : f32 to vector<17x2xf32>
    %734 = arith.maximumf %733, %732 : vector<17x2xf32>
    %735 = vector.broadcast %cst_570 : f32 to vector<17x2xf32>
    %736 = arith.minimumf %735, %734 : vector<17x2xf32>
    %c0_571 = arith.constant 0 : index
    %c0_572 = arith.constant 0 : index
    %c0_573 = arith.constant 0 : index
    %737 = vector.load %arg35[%c0_571, %c0_572, %c0_573] : memref<1x17x2xf32, #tpu.memory_space<vmem>>, vector<1x17x2xf32>
    %738 = vector.shape_cast %737 : vector<1x17x2xf32> to vector<17x2xf32>
    %739 = vector.shape_cast %736 : vector<17x2xf32> to vector<1x17x2xf32>
    tpu.vector_store %arg35[%c0_571, %c0_572, %c0_573], %739 {strides = array<i32>} : memref<1x17x2xf32, #tpu.memory_space<vmem>>, vector<1x17x2xf32>,
    return
  }
  func.func @transform_0(%arg0: i32) -> (i32, i32, i32) {
    %c0_i32 = arith.constant 0 : i32
    %c0_i32_0 = arith.constant 0 : i32
    %c0_i32_1 = arith.constant 0 : i32
    return %arg0, %c0_i32, %c0_i32_0 : i32, i32, i32
  }
  func.func @transform_1(%arg0: i32) -> (i32, i32) {
    %c0_i32 = arith.constant 0 : i32
    %c0_i32_0 = arith.constant 0 : i32
    %c0_i32_1 = arith.constant 0 : i32
    return %c0_i32, %c0_i32_0 : i32, i32
  }
  func.func @transform_2(%arg0: i32) -> (i32, i32) {
    %c0_i32 = arith.constant 0 : i32
    %c0_i32_0 = arith.constant 0 : i32
    %c0_i32_1 = arith.constant 0 : i32
    return %c0_i32, %c0_i32_0 : i32, i32
  }
  func.func @transform_3(%arg0: i32) -> (i32, i32) {
    %c0_i32 = arith.constant 0 : i32
    %c0_i32_0 = arith.constant 0 : i32
    %c0_i32_1 = arith.constant 0 : i32
    return %c0_i32, %c0_i32_0 : i32, i32
  }
  func.func @transform_4(%arg0: i32) -> (i32, i32) {
    %c0_i32 = arith.constant 0 : i32
    %c0_i32_0 = arith.constant 0 : i32
    %c0_i32_1 = arith.constant 0 : i32
    return %c0_i32, %c0_i32_0 : i32, i32
  }
  func.func @transform_5(%arg0: i32) -> (i32, i32) {
    %c0_i32 = arith.constant 0 : i32
    %c0_i32_0 = arith.constant 0 : i32
    %c0_i32_1 = arith.constant 0 : i32
    return %c0_i32, %c0_i32_0 : i32, i32
  }
  func.func @transform_6(%arg0: i32) -> (i32, i32) {
    %c0_i32 = arith.constant 0 : i32
    %c0_i32_0 = arith.constant 0 : i32
    %c0_i32_1 = arith.constant 0 : i32
    return %c0_i32, %c0_i32_0 : i32, i32
  }
  func.func @transform_7(%arg0: i32) -> (i32, i32) {
    %c0_i32 = arith.constant 0 : i32
    %c0_i32_0 = arith.constant 0 : i32
    %c0_i32_1 = arith.constant 0 : i32
    return %c0_i32, %c0_i32_0 : i32, i32
  }
  func.func @transform_8(%arg0: i32) -> (i32, i32) {
    %c0_i32 = arith.constant 0 : i32
    %c0_i32_0 = arith.constant 0 : i32
    %c0_i32_1 = arith.constant 0 : i32
    return %c0_i32, %c0_i32_0 : i32, i32
  }
  func.func @transform_9(%arg0: i32) -> (i32, i32) {
    %c0_i32 = arith.constant 0 : i32
    %c0_i32_0 = arith.constant 0 : i32
    %c0_i32_1 = arith.constant 0 : i32
    return %c0_i32, %c0_i32_0 : i32, i32
  }
  func.func @transform_10(%arg0: i32) -> (i32, i32) {
    %c0_i32 = arith.constant 0 : i32
    %c0_i32_0 = arith.constant 0 : i32
    %c0_i32_1 = arith.constant 0 : i32
    return %c0_i32, %c0_i32_0 : i32, i32
  }
  func.func @transform_11(%arg0: i32) -> (i32, i32) {
    %c0_i32 = arith.constant 0 : i32
    %c0_i32_0 = arith.constant 0 : i32
    %c0_i32_1 = arith.constant 0 : i32
    return %c0_i32, %c0_i32_0 : i32, i32
  }
  func.func @transform_12(%arg0: i32) -> (i32, i32) {
    %c0_i32 = arith.constant 0 : i32
    %c0_i32_0 = arith.constant 0 : i32
    %c0_i32_1 = arith.constant 0 : i32
    return %c0_i32, %c0_i32_0 : i32, i32
  }
  func.func @transform_13(%arg0: i32) -> (i32, i32) {
    %c0_i32 = arith.constant 0 : i32
    %c0_i32_0 = arith.constant 0 : i32
    %c0_i32_1 = arith.constant 0 : i32
    return %c0_i32, %c0_i32_0 : i32, i32
  }
  func.func @transform_14(%arg0: i32) -> (i32, i32) {
    %c0_i32 = arith.constant 0 : i32
    %c0_i32_0 = arith.constant 0 : i32
    %c0_i32_1 = arith.constant 0 : i32
    return %c0_i32, %c0_i32_0 : i32, i32
  }
  func.func @transform_15(%arg0: i32) -> (i32, i32) {
    %c0_i32 = arith.constant 0 : i32
    %c0_i32_0 = arith.constant 0 : i32
    %c0_i32_1 = arith.constant 0 : i32
    return %c0_i32, %c0_i32_0 : i32, i32
  }
  func.func @transform_16(%arg0: i32) -> (i32, i32) {
    %c0_i32 = arith.constant 0 : i32
    %c0_i32_0 = arith.constant 0 : i32
    %c0_i32_1 = arith.constant 0 : i32
    return %c0_i32, %c0_i32_0 : i32, i32
  }
  func.func @transform_17(%arg0: i32) -> (i32, i32) {
    %c0_i32 = arith.constant 0 : i32
    %c0_i32_0 = arith.constant 0 : i32
    %c0_i32_1 = arith.constant 0 : i32
    return %c0_i32, %c0_i32_0 : i32, i32
  }
  func.func @transform_18(%arg0: i32) -> (i32, i32) {
    %c0_i32 = arith.constant 0 : i32
    %c0_i32_0 = arith.constant 0 : i32
    %c0_i32_1 = arith.constant 0 : i32
    return %c0_i32, %c0_i32_0 : i32, i32
  }
  func.func @transform_19(%arg0: i32) -> (i32, i32) {
    %c0_i32 = arith.constant 0 : i32
    %c0_i32_0 = arith.constant 0 : i32
    %c0_i32_1 = arith.constant 0 : i32
    return %c0_i32, %c0_i32_0 : i32, i32
  }
  func.func @transform_20(%arg0: i32) -> (i32, i32) {
    %c0_i32 = arith.constant 0 : i32
    %c0_i32_0 = arith.constant 0 : i32
    %c0_i32_1 = arith.constant 0 : i32
    return %c0_i32, %c0_i32_0 : i32, i32
  }
  func.func @transform_21(%arg0: i32) -> (i32, i32) {
    %c0_i32 = arith.constant 0 : i32
    %c0_i32_0 = arith.constant 0 : i32
    %c0_i32_1 = arith.constant 0 : i32
    return %c0_i32, %c0_i32_0 : i32, i32
  }
  func.func @transform_22(%arg0: i32) -> (i32, i32) {
    %c0_i32 = arith.constant 0 : i32
    %c0_i32_0 = arith.constant 0 : i32
    %c0_i32_1 = arith.constant 0 : i32
    return %c0_i32, %c0_i32_0 : i32, i32
  }
  func.func @transform_23(%arg0: i32) -> (i32, i32) {
    %c0_i32 = arith.constant 0 : i32
    %c0_i32_0 = arith.constant 0 : i32
    %c0_i32_1 = arith.constant 0 : i32
    return %c0_i32, %c0_i32_0 : i32, i32
  }
  func.func @transform_24(%arg0: i32) -> (i32, i32) {
    %c0_i32 = arith.constant 0 : i32
    %c0_i32_0 = arith.constant 0 : i32
    %c0_i32_1 = arith.constant 0 : i32
    return %c0_i32, %c0_i32_0 : i32, i32
  }
  func.func @transform_25(%arg0: i32) -> (i32, i32) {
    %c0_i32 = arith.constant 0 : i32
    %c0_i32_0 = arith.constant 0 : i32
    %c0_i32_1 = arith.constant 0 : i32
    return %c0_i32, %c0_i32_0 : i32, i32
  }
  func.func @transform_26(%arg0: i32) -> (i32, i32) {
    %c0_i32 = arith.constant 0 : i32
    %c0_i32_0 = arith.constant 0 : i32
    %c0_i32_1 = arith.constant 0 : i32
    return %c0_i32, %c0_i32_0 : i32, i32
  }
  func.func @transform_27(%arg0: i32) -> (i32, i32) {
    %c0_i32 = arith.constant 0 : i32
    %c0_i32_0 = arith.constant 0 : i32
    %c0_i32_1 = arith.constant 0 : i32
    return %c0_i32, %c0_i32_0 : i32, i32
  }
  func.func @transform_28(%arg0: i32) -> (i32, i32) {
    %c0_i32 = arith.constant 0 : i32
    %c0_i32_0 = arith.constant 0 : i32
    %c0_i32_1 = arith.constant 0 : i32
    return %c0_i32, %c0_i32_0 : i32, i32
  }
  func.func @transform_29(%arg0: i32) -> (i32, i32) {
    %c0_i32 = arith.constant 0 : i32
    %c0_i32_0 = arith.constant 0 : i32
    %c0_i32_1 = arith.constant 0 : i32
    return %c0_i32, %c0_i32_0 : i32, i32
  }
  func.func @transform_30(%arg0: i32) -> (i32, i32) {
    %c0_i32 = arith.constant 0 : i32
    %c0_i32_0 = arith.constant 0 : i32
    %c0_i32_1 = arith.constant 0 : i32
    return %c0_i32, %c0_i32_0 : i32, i32
  }
  func.func @transform_31(%arg0: i32) -> (i32, i32) {
    %c0_i32 = arith.constant 0 : i32
    %c0_i32_0 = arith.constant 0 : i32
    %c0_i32_1 = arith.constant 0 : i32
    return %c0_i32, %c0_i32_0 : i32, i32
  }
  func.func @transform_32(%arg0: i32) -> (i32, i32) {
    %c0_i32 = arith.constant 0 : i32
    %c0_i32_0 = arith.constant 0 : i32
    %c0_i32_1 = arith.constant 0 : i32
    return %c0_i32, %c0_i32_0 : i32, i32
  }
  func.func @transform_33(%arg0: i32) -> (i32, i32) {
    %c0_i32 = arith.constant 0 : i32
    %c0_i32_0 = arith.constant 0 : i32
    %c0_i32_1 = arith.constant 0 : i32
    return %c0_i32, %c0_i32_0 : i32, i32
  }
  func.func @transform_34(%arg0: i32) -> (i32, i32, i32) {
    %c0_i32 = arith.constant 0 : i32
    %c0_i32_0 = arith.constant 0 : i32
    %c0_i32_1 = arith.constant 0 : i32
    return %arg0, %c0_i32, %c0_i32_0 : i32, i32, i32
  }
}

</mosaic_0001>

<bundles_post_ra>
// kernel: forward.1
= control target key start
LH: loop header
LB: loop body
LE: loop exit
PB: predicated region body
PF: predicated region fallthrough
CT: control target
= control target key end

     0   :  { %s12335_s6 = smov 1   ;;  %s12336_s10 = smov 2   ;;  %s14542_s0 = inlined_call_operand.smem [shape: u32[35], index: -1, kind: input, shape index: {}] }
   0x1   :  { %s12424_s5 = sld [smem:[%s14542_s0]]   ;;  %s12337_s14 = smov 3  }
   0x2   :  { %s12429_s9 = sld [smem:[%s14542_s0 + %s12335_s6]]   ;;  %s12338_s18 = smov 4  }
   0x3   :  { %s12434_s13 = sld [smem:[%s14542_s0 + %s12336_s10]]   ;;  %s12339_s22 = smov 5  }
   0x4   :  { %s12439_s17 = sld [smem:[%s14542_s0 + %s12337_s14]]   ;;  %s12340_s26 = smov 6  }
   0x5   :  { %s12444_s21 = sld [smem:[%s14542_s0 + %s12338_s18]]   ;;  %s12341_s30 = smov 7  }
   0x6   :  { %s12449_s25 = sld [smem:[%s14542_s0 + %s12339_s22]]   ;;  %s12342_s4 = smov 8  }
   0x7   :  { %14598 = sst [smem:[#allocation59_spill]] %s12424_s5  ;;  %s12343_s10 = smov 9  }
   0x8   :  { %s12454_s29 = sld [smem:[%s14542_s0 + %s12340_s26]]   ;;  %s12344_s15 = smov 10  }
   0x9   :  { %s12459_s3 = sld [smem:[%s14542_s0 + %s12341_s30]]   ;;  %s12345_s20 = smov 11  }
   0xa   :  { %s12464_s8 = sld [smem:[%s14542_s0 + %s12342_s4]]   ;;  %s12346_s26 = smov 12  }
   0xb   :  { %s12469_s14 = sld [smem:[%s14542_s0 + %s12343_s10]]   ;;  %s12347_s1 = smov 13  }
   0xc   :  { %s12474_s19 = sld [smem:[%s14542_s0 + %s12344_s15]]   ;;  %s12348_s7 = smov 14  }
   0xd   :  { %s12479_s24 = sld [smem:[%s14542_s0 + %s12345_s20]]   ;;  %s12349_s15 = smov 15  }
   0xe   :  { %s12484_s30 = sld [smem:[%s14542_s0 + %s12346_s26]]   ;;  %s12350_s22 = smov 16  }
   0xf   :  { %14599 = sst [smem:[#allocation60_spill]] %s12459_s3  ;;  %s12351_s28 = smov 17  }
  0x10   :  { %s12489_s6 = sld [smem:[%s14542_s0 + %s12347_s1]]  }
  0x11   :  { %14600 = sst [smem:[#allocation61_spill]] %s12469_s14 }
  0x12   :  { %s12494_s12 = sld [smem:[%s14542_s0 + %s12348_s7]]   ;;  %s12352_s7 = smov 18  }
  0x13   :  { %14601 = sst [smem:[#allocation62_spill]] %s12479_s24 }
  0x14   :  { %s12499_s20 = sld [smem:[%s14542_s0 + %s12349_s15]]   ;;  %s12353_s15 = smov 19  }
  0x15   :  { %s12504_s27 = sld [smem:[%s14542_s0 + %s12350_s22]]   ;;  %s12354_s22 = smov 20  }
  0x16   :  { %14602 = sst [smem:[#allocation63_spill]] %s12489_s6 }
  0x17   :  { %s12509_s4 = sld [smem:[%s14542_s0 + %s12351_s28]]   ;;  %s12355_s28 = smov 21  }
  0x18   :  { %14603 = sst [smem:[#allocation64_spill]] %s12494_s12 }
  0x19   :  { %s12514_s6 = sld [smem:[%s14542_s0 + %s12352_s7]]   ;;  %s12356_s7 = smov 22  }
  0x1a   :  { %s12519_s5 = sld [smem:[%s14542_s0 + %s12353_s15]]   ;;  %s12357_s15 = smov 23  }
  0x1b   :  { %14604 = sst [smem:[#allocation65_spill]] %s12504_s27 }
  0x1c   :  { %s12524_s27 = sld [smem:[%s14542_s0 + %s12354_s22]]   ;;  %s12358_s22 = smov 24  }
  0x1d   :  { %14605 = sst [smem:[#allocation66_spill]] %s12509_s4 }
  0x1e   :  { %s12529_s12 = sld [smem:[%s14542_s0 + %s12355_s28]]   ;;  %s12359_s28 = smov 25  }
  0x1f   :  { %14606 = sst [smem:[#allocation67_spill]] %s12514_s6 }
  0x20   :  { %14607 = sst [smem:[#allocation68_spill]] %s12519_s5 }
  0x21   :  { %s12534_s6 = sld [smem:[%s14542_s0 + %s12356_s7]]   ;;  %s12360_s7 = smov 26  }
  0x22   :  { %14608 = sst [smem:[#allocation69_spill]] %s12524_s27 }
  0x23   :  { %s12539_s5 = sld [smem:[%s14542_s0 + %s12357_s15]]   ;;  %s12361_s15 = smov 27  }
  0x24   :  { %s12544_s27 = sld [smem:[%s14542_s0 + %s12358_s22]]   ;;  %s12362_s22 = smov 28  }
  0x25   :  { %s12549_s24 = sld [smem:[%s14542_s0 + %s12359_s28]]   ;;  %s12363_s28 = smov 29  }
  0x26   :  { %s12559_s14 = sld [smem:[%s14542_s0 + %s12361_s15]]   ;;  %s12365_s15 = smov 31  }
  0x27   :  { %14609 = sst [smem:[#allocation70_spill]] %s12534_s6 }
  0x28   :  { %s12554_s6 = sld [smem:[%s14542_s0 + %s12360_s7]]   ;;  %s12364_s7 = smov 30  }
  0x29   :  { %14610 = sst [smem:[#allocation71_spill]] %s12539_s5 }
  0x2a   :  { %14611 = sst [smem:[#allocation72_spill]] %s12544_s27 }
  0x2b   :  { %14612 = sst [smem:[#allocation73_spill]] %s12549_s24 }
  0x2c   :  { %14613 = sst [smem:[#allocation74_spill]] %s12559_s14 }
  0x2d   :  { %s12564_s27 = sld [smem:[%s14542_s0 + %s12362_s22]]   ;;  %s12366_s22 = smov 32  }
  0x2e   :  { %s12569_s24 = sld [smem:[%s14542_s0 + %s12363_s28]]   ;;  %s12367_s28 = smov 33  }
  0x2f   :  { %s12574_s3 = sld [smem:[%s14542_s0 + %s12364_s7]]   ;;  %s12368_s7 = smov 34  }
  0x30   :  { %s12579_s14 = sld [smem:[%s14542_s0 + %s12365_s15]]  }
  0x33   :  { %14614 = sst [smem:[#allocation75_spill]] %s12564_s27 }
  0x34   :  { %14615 = sst [smem:[#allocation76_spill]] %s12569_s24 }
  0x35   :  { %14616 = sst [smem:[#allocation77_spill]] %s12574_s3 }
  0x36   :  { %s12584_s27 = sld [smem:[%s14542_s0 + %s12366_s22]]  }
  0x37   :  { %s12589_s24 = sld [smem:[%s14542_s0 + %s12367_s28]]  }
  0x38   :  { %s12594_s3 = sld [smem:[%s14542_s0 + %s12368_s7]]  }
  0x39   :  { %74 = vsyncpa [#allocation9], 0 }
  0x3a   :  { %75 = vsyncpa [#allocation11], 0 }
  0x3b   :  { %76 = vsyncpa [#allocation14], 0 }
  0x3c   :  { %77 = vsyncpa [#allocation17], 0 }
  0x3d   :  { %78 = vsyncpa [#allocation20], 0 }
  0x3e   :  { %79 = vsyncpa [#allocation23], 0 }
  0x3f   :  { %80 = vsyncpa [#allocation26], 0 }
  0x40   :  { %81 = vsyncpa [#allocation29], 0 }
  0x41   :  { %82 = vsyncpa [#allocation32], 0 }
  0x42   :  { %83 = vsyncpa [#allocation35], 0 }
  0x43   :  { %84 = vsyncpa [#allocation38], 0 }
  0x44   :  { %85 = vsyncpa [#allocation41], 0 }
  0x45   :  { %86 = vsyncpa [#allocation44], 0  ;;  %s12596_s15 = smov 0  }
  0x46 LB: > { %s12369_s0 = smov [#allocation10]   ;;  %s12602_s18 = sadd.s32 4294967295, %s12333_s15   ;;  %s12333_s15 = sphi %s12596_s15, %s92_s15  }
  0x47   : > { %s868_s16 = sshll.u32 %s12369_s0, 4  ;;  %p9617_p0 = scmp.ge.s32.totalorder %s12333_s15, 1  ;;  %s869_s16 = int_to_ptr.vmem [resolvable:$true] %s868_s16 }
  0x48   : > { %p842_p1 = scmp.lt.s32.totalorder %s12333_s15, 3  ;;  %p14548_p2 = scmp.eq.s32.totalorder %s12602_s18, 0 }
  0x49   : > { %s12370_s23 = smov [#allocation13]   ;;  %s12371_s28 = smov [#allocation16]  }
  0x4a   : > { %p12607_p3 = pnand %p9617_p0, %p842_p1  ;;  %s892_s26 = sshll.u32 %s12370_s23, 4  ;;  %s893_s26 = int_to_ptr.vmem [resolvable:$true] %s892_s26 }
  0x4b   : > { %s916_s1 = sshll.u32 %s12371_s28, 4  ;;  %s12372_s7 = smov [#allocation19]   ;;  %s12619_s1 = int_to_ptr.vmem [resolvable:$true] %s916_s1 }
  0x4c   : > { %s14617_s22 = scalar_select %p12607_p3, 1, 0 }
  0x4d   : > { %p11286_p4 = pneg %p12607_p3  ;;  %s940_s10 = sshll.u32 %s12372_s7, 4  ;;  %s12621_s10 = int_to_ptr.vmem [resolvable:$true] %s940_s10 }
  0x4e   : > { %s11636_s0 = scalar_lea.vmem %s869_s16, 64  ;;  %p11644_p10 = scmp.lt.s32.totalorder %s869_s16, %s869_s16 }
  0x4f   : > { %p12615_p5 = pnand %p14548_p2, %p11286_p4  ;;  %p11637_p7 = scmp.ne.s32.totalorder %s869_s16, %s11636_s0 }
  0x50   : > { %p11645_p11 = scmp.lt.s32.totalorder %s11636_s0, %s11636_s0 }
  0x51   : > { %p12625_p6 = pneg %p12615_p5 }
  0x52   : > { %p11646_p12 = por %p11645_p11, %p11644_p10 }
  0x53   : > { %p11639_p8 = pnand %p11637_p7, %p12625_p6 }
  0x55   : > { %p11640_p9 = pneg %p11639_p8 }
  0x57   : > { %p11647_p13 = pnand %p11646_p12, %p11640_p9 }
  0x59   : > { %11650 = shalt.err (!%p11647_p13)
}
  0x5a   : > { %11292 = dma.hbm_to_vmem [thread:$0]  (!%p12615_p5), %s12434_s13, 64, %s869_s16, [#allocation11]  }
  0x5b   : > { %s11662_s23 = scalar_lea.vmem %s893_s26, 64  ;;  %p11670_p2 = scmp.lt.s32.totalorder %s893_s26, %s893_s26 }
  0x5c   : > { %p11663_p0 = scmp.ne.s32.totalorder %s893_s26, %s11662_s23  ;;  %p11671_p3 = scmp.lt.s32.totalorder %s11662_s23, %s11662_s23 }
  0x5e   : > { %p11665_p1 = pnand %p11663_p0, %p12625_p6  ;;  %p11672_p7 = por %p11671_p3, %p11670_p2 }
  0x60   : > { %p11666_p4 = pneg %p11665_p1 }
  0x62   : > { %p11673_p8 = pnand %p11672_p7, %p11666_p4 }
  0x64   : > { %11676 = shalt.err (!%p11673_p8)
}
  0x65   : > { %11298 = dma.hbm_to_vmem [thread:$0]  (!%p12615_p5), %s12444_s21, 64, %s893_s26, [#allocation14]  }
  0x66   : > { %s11688_s28 = scalar_lea.vmem %s12619_s1, 64  ;;  %p11696_p12 = scmp.lt.s32.totalorder %s12619_s1, %s12619_s1 }
  0x67   : > { %p11689_p9 = scmp.ne.s32.totalorder %s12619_s1, %s11688_s28  ;;  %p11697_p13 = scmp.lt.s32.totalorder %s11688_s28, %s11688_s28 }
  0x69   : > { %p11691_p10 = pnand %p11689_p9, %p12625_p6  ;;  %p11698_p0 = por %p11697_p13, %p11696_p12 }
  0x6b   : > { %p11692_p11 = pneg %p11691_p10 }
  0x6d   : > { %p11699_p2 = pnand %p11698_p0, %p11692_p11 }
  0x6f   : > { %11702 = shalt.err (!%p11699_p2)
}
  0x70   : > { %11304 = dma.hbm_to_vmem [thread:$0]  (!%p12615_p5), %s12454_s29, 64, %s12619_s1, [#allocation17]  }
  0x71   : > { %s11714_s16 = scalar_lea.vmem %s12621_s10, 64  ;;  %p11722_p7 = scmp.lt.s32.totalorder %s12621_s10, %s12621_s10 }
  0x72   : > { %p11715_p3 = scmp.ne.s32.totalorder %s12621_s10, %s11714_s16  ;;  %p11723_p8 = scmp.lt.s32.totalorder %s11714_s16, %s11714_s16 }
  0x74   : > { %p11717_p1 = pnand %p11715_p3, %p12625_p6  ;;  %p11724_p9 = por %p11723_p8, %p11722_p7 }
  0x76   : > { %p11718_p4 = pneg %p11717_p1 }
  0x78   : > { %p11725_p10 = pnand %p11724_p9, %p11718_p4 }
  0x7a   : > { %11728 = shalt.err (!%p11725_p10)
}
  0x7b   : > { %11310 = dma.hbm_to_vmem [thread:$0]  (!%p12615_p5), %s12464_s8, 64, %s12621_s10, [#allocation20]  }
  0x7c   : > { %s12373_s26 = smov [#allocation22]   ;;  %s12374_s1 = smov [#allocation25]  }
  0x7d   : > { %s964_s7 = sshll.u32 %s12373_s26, 4  ;;  %s988_s0 = sshll.u32 %s12374_s1, 4  ;;  %s965_s7 = int_to_ptr.vmem [resolvable:$true] %s964_s7  ;;  %s989_s0 = int_to_ptr.vmem [resolvable:$true] %s988_s0 }
  0x7e   : > { %s11740_s23 = scalar_lea.vmem %s965_s7, 64  ;;  %p11748_p0 = scmp.lt.s32.totalorder %s965_s7, %s965_s7 }
  0x7f   : > { %p11741_p11 = scmp.ne.s32.totalorder %s965_s7, %s11740_s23  ;;  %p11749_p2 = scmp.lt.s32.totalorder %s11740_s23, %s11740_s23 }
  0x81   : > { %p11743_p12 = pnand %p11741_p11, %p12625_p6  ;;  %p11750_p3 = por %p11749_p2, %p11748_p0 }
  0x83   : > { %p11744_p13 = pneg %p11743_p12 }
  0x85   : > { %p11751_p1 = pnand %p11750_p3, %p11744_p13 }
  0x87   : > { %11754 = shalt.err (!%p11751_p1)
}
  0x88   : > { %11316 = dma.hbm_to_vmem [thread:$0]  (!%p12615_p5), %s12474_s19, 64, %s965_s7, [#allocation23]  }
  0x89   : > { %s11766_s10 = scalar_lea.vmem %s989_s0, 64  ;;  %p11774_p9 = scmp.lt.s32.totalorder %s989_s0, %s989_s0 }
  0x8a   : > { %p11767_p4 = scmp.ne.s32.totalorder %s989_s0, %s11766_s10  ;;  %p11775_p10 = scmp.lt.s32.totalorder %s11766_s10, %s11766_s10 }
  0x8c   : > { %p11769_p7 = pnand %p11767_p4, %p12625_p6  ;;  %p11776_p11 = por %p11775_p10, %p11774_p9 }
  0x8e   : > { %p11770_p8 = pneg %p11769_p7 }
  0x90   : > { %p11777_p12 = pnand %p11776_p11, %p11770_p8 }
  0x92   : > { %11780 = shalt.err (!%p11777_p12)
}
  0x93   : > { %11322 = dma.hbm_to_vmem [thread:$0]  (!%p12615_p5), %s12484_s30, 64, %s989_s0, [#allocation26]  }
  0x94   : > { %s12375_s28 = smov [#allocation28]   ;;  %s12376_s26 = smov [#allocation31]  }
  0x95   : > { %s1012_s16 = sshll.u32 %s12375_s28, 4  ;;  %s1039_s7 = sshll.u32 %s12376_s26, 4  ;;  %s1013_s16 = int_to_ptr.vmem [resolvable:$true] %s1012_s16  ;;  %s1040_s7 = int_to_ptr.vmem [resolvable:$true] %s1039_s7 }
  0x96   : > { %s11792_s1 = scalar_lea.vmem %s1013_s16, 576  ;;  %p11800_p3 = scmp.lt.s32.totalorder %s1013_s16, %s1013_s16 }
  0x97   : > { %p11793_p13 = scmp.ne.s32.totalorder %s1013_s16, %s11792_s1  ;;  %p11801_p1 = scmp.lt.s32.totalorder %s11792_s1, %s11792_s1 }
  0x99   : > { %p11795_p0 = pnand %p11793_p13, %p12625_p6  ;;  %p11802_p4 = por %p11801_p1, %p11800_p3 }
  0x9b   : > { %p11796_p2 = pneg %p11795_p0 }
  0x9d   : > { %p11803_p7 = pnand %p11802_p4, %p11796_p2 }
  0x9f   : > { %11806 = shalt.err (!%p11803_p7)
}
  0xa0   : > { %s14550_s23 = smov 64   ;;  %s14552_s0 = smov 4  }
  0xa1   : > { %11328 = dma.hbm_to_vmem [thread:$0]  (!%p12615_p5), %s12499_s20, 576, %s1013_s16, [#allocation29], %s14550_s23, %s14550_s23, %s14552_s0  }
  0xa2   : > { %s11818_s10 = scalar_lea.vmem %s1040_s7, 64  ;;  %p11826_p11 = scmp.lt.s32.totalorder %s1040_s7, %s1040_s7 }
  0xa3   : > { %p11819_p8 = scmp.ne.s32.totalorder %s1040_s7, %s11818_s10  ;;  %p11827_p12 = scmp.lt.s32.totalorder %s11818_s10, %s11818_s10 }
  0xa5   : > { %p11821_p9 = pnand %p11819_p8, %p12625_p6  ;;  %p11828_p13 = por %p11827_p12, %p11826_p11 }
  0xa7   : > { %p11822_p10 = pneg %p11821_p9 }
  0xa9   : > { %p11829_p0 = pnand %p11828_p13, %p11822_p10 }
  0xab   : > { %11832 = shalt.err (!%p11829_p0)
}
  0xac   : > { %s14620_s4 = sld [smem:[#allocation66_spill]]  ;;  %s12379_s28 = smov [#allocation34]  }
  0xad   : > { %s1067_s26 = sshll.u32 %s12379_s28, 4  ;;  %s12380_s16 = smov [#allocation37]   ;;  %s1068_s26 = int_to_ptr.vmem [resolvable:$true] %s1067_s26 }
  0xae   : > { %s1090_s1 = sshll.u32 %s12380_s16, 4  ;;  %s11844_s23 = scalar_lea.vmem %s1068_s26, 64  ;;  %s1091_s1 = int_to_ptr.vmem [resolvable:$true] %s1090_s1 }
  0xaf   : > { %p11845_p2 = scmp.ne.s32.totalorder %s1068_s26, %s11844_s23  ;;  %p11852_p4 = scmp.lt.s32.totalorder %s1068_s26, %s1068_s26 }
  0xb0   : > { %p11853_p7 = scmp.lt.s32.totalorder %s11844_s23, %s11844_s23 }
  0xb1   : > { %p11847_p3 = pnand %p11845_p2, %p12625_p6 }
  0xb2   : > { %11334 = dma.hbm_to_vmem [thread:$0]  (!%p12615_p5), %s14620_s4, 64, %s1040_s7, [#allocation32]  }
  0xb3   : > { %p11848_p1 = pneg %p11847_p3  ;;  %p11854_p8 = por %p11853_p7, %p11852_p4 }
  0xb5   : > { %p11855_p9 = pnand %p11854_p8, %p11848_p1 }
  0xb7   : > { %11858 = shalt.err (!%p11855_p9)
}
  0xb8   : > { %11340 = dma.hbm_to_vmem [thread:$0]  (!%p12615_p5), %s12529_s12, 64, %s1068_s26, [#allocation35]  }
  0xb9   : > { %s11870_s7 = scalar_lea.vmem %s1091_s1, 256  ;;  %p11878_p13 = scmp.lt.s32.totalorder %s1091_s1, %s1091_s1 }
  0xba   : > { %p11871_p10 = scmp.ne.s32.totalorder %s1091_s1, %s11870_s7  ;;  %p11879_p0 = scmp.lt.s32.totalorder %s11870_s7, %s11870_s7 }
  0xbc   : > { %p11873_p11 = pnand %p11871_p10, %p12625_p6  ;;  %p11880_p2 = por %p11879_p0, %p11878_p13 }
  0xbe   : > { %p11874_p12 = pneg %p11873_p11 }
  0xc0   : > { %p11881_p3 = pnand %p11880_p2, %p11874_p12 }
  0xc2   : > { %11884 = shalt.err (!%p11881_p3)
}
  0xc3   : > { %s14621_s23 = smov 64   ;;  %s14622_s5 = sld [smem:[#allocation71_spill]] }
  0xc4   : > { %s12381_s10 = smov [#allocation40]   ;;  %s12382_s26 = smov [#allocation43]  }
  0xc5   : > { %s1118_s28 = sshll.u32 %s12381_s10, 4  ;;  %s1151_s16 = sshll.u32 %s12382_s26, 4  ;;  %s1119_s28 = int_to_ptr.vmem [resolvable:$true] %s1118_s28  ;;  %s1152_s16 = int_to_ptr.vmem [resolvable:$true] %s1151_s16 }
  0xc6   : > { %s11896_s4 = scalar_lea.vmem %s1119_s28, 64  ;;  %p11904_p8 = scmp.lt.s32.totalorder %s1119_s28, %s1119_s28 }
  0xc7   : > { %p11897_p1 = scmp.ne.s32.totalorder %s1119_s28, %s11896_s4  ;;  %p11905_p9 = scmp.lt.s32.totalorder %s11896_s4, %s11896_s4 }
  0xc9   : > { %11346 = dma.hbm_to_vmem [thread:$0]  (!%p12615_p5), %s14622_s5, 256, %s1091_s1, [#allocation38], %s14621_s23, %s14621_s23, %s14552_s0  }
  0xca   : > { %p11899_p4 = pnand %p11897_p1, %p12625_p6  ;;  %p11906_p10 = por %p11905_p9, %p11904_p8 }
  0xcc   : > { %p11900_p7 = pneg %p11899_p4 }
  0xce   : > { %p11907_p11 = pnand %p11906_p10, %p11900_p7 }
  0xd0   : > { %11910 = shalt.err (!%p11907_p11)
}
  0xd1   : > { %11352 = dma.hbm_to_vmem [thread:$0]  (!%p12615_p5), %s12554_s6, 64, %s1119_s28, [#allocation41]  }
  0xd2   : > { %s11922_s1 = scalar_lea.vmem %s1152_s16, 256  ;;  %p11930_p2 = scmp.lt.s32.totalorder %s1152_s16, %s1152_s16 }
  0xd3   : > { %p11923_p12 = scmp.ne.s32.totalorder %s1152_s16, %s11922_s1  ;;  %p11931_p3 = scmp.lt.s32.totalorder %s11922_s1, %s11922_s1 }
  0xd5   : > { %p11925_p13 = pnand %p11923_p12, %p12625_p6  ;;  %p11932_p1 = por %p11931_p3, %p11930_p2 }
  0xd7   : > { %p11926_p0 = pneg %p11925_p13 }
  0xd9   : > { %p11933_p4 = pnand %p11932_p1, %p11926_p0 }
  0xdb   : > { %11936 = shalt.err (!%p11933_p4)
}
  0xdc   : > { %s14554_s4 = smov 128   ;;  %s14555_s7 = smov 8  }
  0xdd   : > { %11358 = dma.hbm_to_vmem [thread:$0]  (!%p12615_p5), %s12584_s27, 256, %s1152_s16, [#allocation44], %s14554_s4, %s14554_s4, %s14555_s7  }
  0xde   : > { %s12385_s10 = smov [#allocation8]   ;;  %s12386_s26 = smov [#allocation12]  }
  0xdf   : > { %s854_s28 = sshll.u32 %s12385_s10, 4  ;;  %s878_s0 = sshll.u32 %s12386_s26, 4  ;;  %s855_s28 = int_to_ptr.vmem [resolvable:$true] %s854_s28  ;;  %s879_s0 = int_to_ptr.vmem [resolvable:$true] %s878_s0 }
  0xe0   : > { %s11948_s5 = scalar_lea.vmem %s855_s28, 128  ;;  %p11956_p10 = scmp.lt.s32.totalorder %s855_s28, %s855_s28 }
  0xe1   : > { %p11949_p7 = scmp.ne.s32.totalorder %s855_s28, %s11948_s5  ;;  %p11957_p11 = scmp.lt.s32.totalorder %s11948_s5, %s11948_s5 }
  0xe3   : > { %p11951_p8 = pnand %p11949_p7, %p12625_p6  ;;  %p11958_p12 = por %p11957_p11, %p11956_p10 }
  0xe5   : > { %p11952_p9 = pneg %p11951_p8 }
  0xe7   : > { %p11959_p13 = pnand %p11958_p12, %p11952_p9 }
  0xe9   : > { %11962 = shalt.err (!%p11959_p13)
}
  0xea   : > { %s14623_s1 = smov 4   ;;  %s11974_s16 = scalar_lea.vmem %s879_s0, 320 }
  0xeb   : > { %11289 = dma.hbm_to_vmem [thread:$0]  (!%p12615_p5), %s12429_s9, 128, %s855_s28, [#allocation9], %s14621_s23, %s14621_s23, %s14623_s1  }
  0xec   : > { %p11975_p0 = scmp.ne.s32.totalorder %s879_s0, %s11974_s16  ;;  %p11982_p1 = scmp.lt.s32.totalorder %s879_s0, %s879_s0 }
  0xed   : > { %p11983_p4 = scmp.lt.s32.totalorder %s11974_s16, %s11974_s16 }
  0xee   : > { %p11977_p2 = pnand %p11975_p0, %p12625_p6 }
  0xef   : > { %p11984_p7 = por %p11983_p4, %p11982_p1 }
  0xf0   : > { %p11978_p3 = pneg %p11977_p2 }
  0xf2   : > { %p11985_p8 = pnand %p11984_p7, %p11978_p3 }
  0xf4   : > { %11988 = shalt.err (!%p11985_p8)
}
  0xf5   : > { %11295 = dma.hbm_to_vmem [thread:$0]  (!%p12615_p5), %s12439_s17, 320, %s879_s0, [#allocation11], %s14621_s23, %s14621_s23, %s14623_s1  }
  0xf6   : > { %s12387_s5 = smov [#allocation15]   ;;  %s12388_s28 = smov [#allocation18]  }
  0xf7   : > { %s902_s10 = sshll.u32 %s12387_s5, 4  ;;  %s926_s26 = sshll.u32 %s12388_s28, 4  ;;  %s903_s10 = int_to_ptr.vmem [resolvable:$true] %s902_s10  ;;  %s927_s26 = int_to_ptr.vmem [resolvable:$true] %s926_s26 }
  0xf8   : > { %s12000_s4 = scalar_lea.vmem %s903_s10, 640  ;;  %p12008_p12 = scmp.lt.s32.totalorder %s903_s10, %s903_s10 }
  0xf9   : > { %p12001_p9 = scmp.ne.s32.totalorder %s903_s10, %s12000_s4  ;;  %p12009_p13 = scmp.lt.s32.totalorder %s12000_s4, %s12000_s4 }
  0xfb   : > { %p12003_p10 = pnand %p12001_p9, %p12625_p6  ;;  %p12010_p0 = por %p12009_p13, %p12008_p12 }
  0xfd   : > { %p12004_p11 = pneg %p12003_p10 }
  0xff   : > { %p12011_p2 = pnand %p12010_p0, %p12004_p11 }
 0x101   : > { %12014 = shalt.err (!%p12011_p2)
}
 0x102   : > { %11301 = dma.hbm_to_vmem [thread:$0]  (!%p12615_p5), %s12449_s25, 640, %s903_s10, [#allocation14], %s14621_s23, %s14621_s23, %s14623_s1  }
 0x103   : > { %s12026_s0 = scalar_lea.vmem %s927_s26, 640  ;;  %p12034_p7 = scmp.lt.s32.totalorder %s927_s26, %s927_s26 }
 0x104   : > { %p12027_p3 = scmp.ne.s32.totalorder %s927_s26, %s12026_s0  ;;  %p12035_p8 = scmp.lt.s32.totalorder %s12026_s0, %s12026_s0 }
 0x106   : > { %p12029_p1 = pnand %p12027_p3, %p12625_p6  ;;  %p12036_p9 = por %p12035_p8, %p12034_p7 }
 0x108   : > { %p12030_p4 = pneg %p12029_p1 }
 0x10a   : > { %p12037_p10 = pnand %p12036_p9, %p12030_p4 }
 0x10c   : > { %12040 = shalt.err (!%p12037_p10)
}
 0x10d   : > { %s14624_s4 = sld [smem:[#allocation60_spill]]  ;;  %s12389_s16 = smov [#allocation21]  }
 0x10e   : > { %s950_s5 = sshll.u32 %s12389_s16, 4  ;;  %s12390_s10 = smov [#allocation24]   ;;  %s951_s5 = int_to_ptr.vmem [resolvable:$true] %s950_s5 }
 0x10f   : > { %s974_s28 = sshll.u32 %s12390_s10, 4  ;;  %s12052_s7 = scalar_lea.vmem %s951_s5, 640  ;;  %s975_s28 = int_to_ptr.vmem [resolvable:$true] %s974_s28 }
 0x110   : > { %p12053_p11 = scmp.ne.s32.totalorder %s951_s5, %s12052_s7  ;;  %p12060_p0 = scmp.lt.s32.totalorder %s951_s5, %s951_s5 }
 0x111   : > { %p12061_p2 = scmp.lt.s32.totalorder %s12052_s7, %s12052_s7 }
 0x112   : > { %p12055_p12 = pnand %p12053_p11, %p12625_p6 }
 0x113   : > { %11307 = dma.hbm_to_vmem [thread:$0]  (!%p12615_p5), %s14624_s4, 640, %s927_s26, [#allocation17], %s14621_s23, %s14621_s23, %s14623_s1  }
 0x114   : > { %p12056_p13 = pneg %p12055_p12  ;;  %p12062_p3 = por %p12061_p2, %p12060_p0 }
 0x116   : > { %p12063_p1 = pnand %p12062_p3, %p12056_p13 }
 0x118   : > { %12066 = shalt.err (!%p12063_p1)
}
 0x119   : > { %s14625_s26 = sld [smem:[#allocation61_spill]]  ;;  %s12078_s0 = scalar_lea.vmem %s975_s28, 960 }
 0x11a   : > { %p12079_p4 = scmp.ne.s32.totalorder %s975_s28, %s12078_s0  ;;  %p12086_p9 = scmp.lt.s32.totalorder %s975_s28, %s975_s28 }
 0x11b   : > { %p12087_p10 = scmp.lt.s32.totalorder %s12078_s0, %s12078_s0 }
 0x11c   : > { %p12081_p7 = pnand %p12079_p4, %p12625_p6 }
 0x11d   : > { %p12088_p11 = por %p12087_p10, %p12086_p9 }
 0x11e   : > { %p12082_p8 = pneg %p12081_p7 }
 0x11f   : > { %11313 = dma.hbm_to_vmem [thread:$0]  (!%p12615_p5), %s14625_s26, 640, %s951_s5, [#allocation20], %s14621_s23, %s14621_s23, %s14623_s1  }
 0x120   : > { %p12089_p12 = pnand %p12088_p11, %p12082_p8 }
 0x122   : > { %12092 = shalt.err (!%p12089_p12)
}
 0x123   : > { %s14626_s7 = sld [smem:[#allocation62_spill]]  ;;  %s12391_s4 = smov [#allocation27]  }
 0x124   : > { %s1002_s16 = sshll.u32 %s12391_s4, 4  ;;  %s12392_s5 = smov [#allocation30]   ;;  %s1003_s16 = int_to_ptr.vmem [resolvable:$true] %s1002_s16 }
 0x125   : > { %s1025_s10 = sshll.u32 %s12392_s5, 4  ;;  %s12104_s26 = scalar_lea.vmem %s1003_s16, 64  ;;  %s1026_s10 = int_to_ptr.vmem [resolvable:$true] %s1025_s10 }
 0x126   : > { %p12105_p13 = scmp.ne.s32.totalorder %s1003_s16, %s12104_s26  ;;  %p12112_p3 = scmp.lt.s32.totalorder %s1003_s16, %s1003_s16 }
 0x127   : > { %p12113_p1 = scmp.lt.s32.totalorder %s12104_s26, %s12104_s26 }
 0x128   : > { %p12107_p0 = pnand %p12105_p13, %p12625_p6 }
 0x129   : > { %11319 = dma.hbm_to_vmem [thread:$0]  (!%p12615_p5), %s14626_s7, 960, %s975_s28, [#allocation23], %s14621_s23, %s14621_s23, %s14623_s1  }
 0x12a   : > { %p12108_p2 = pneg %p12107_p0  ;;  %p12114_p4 = por %p12113_p1, %p12112_p3 }
 0x12c   : > { %p12115_p7 = pnand %p12114_p4, %p12108_p2 }
 0x12e   : > { %12118 = shalt.err (!%p12115_p7)
}
 0x12f   : > { %s14627_s0 = sld [smem:[#allocation64_spill]]  ;;  %s12130_s28 = scalar_lea.vmem %s1026_s10, 384 }
 0x130   : > { %p12131_p8 = scmp.ne.s32.totalorder %s1026_s10, %s12130_s28  ;;  %p12138_p11 = scmp.lt.s32.totalorder %s1026_s10, %s1026_s10 }
 0x131   : > { %p12139_p12 = scmp.lt.s32.totalorder %s12130_s28, %s12130_s28 }
 0x132   : > { %p12133_p9 = pnand %p12131_p8, %p12625_p6 }
 0x133   : > { %p12140_p13 = por %p12139_p12, %p12138_p11 }
 0x134   : > { %p12134_p10 = pneg %p12133_p9 }
 0x135   : > { %11325 = dma.hbm_to_vmem [thread:$0]  (!%p12615_p5), %s14627_s0, 64, %s1003_s16, [#allocation26]  }
 0x136   : > { %p12141_p0 = pnand %p12140_p13, %p12134_p10 }
 0x138   : > { %12144 = shalt.err (!%p12141_p0)
}
 0x139   : > { %s14628_s7 = sld [smem:[#allocation65_spill]]  ;;  %s12393_s4 = smov [#allocation33]  }
 0x13a   : > { %s1053_s16 = sshll.u32 %s12393_s4, 4  ;;  %s12394_s5 = smov [#allocation36]   ;;  %s1054_s16 = int_to_ptr.vmem [resolvable:$true] %s1053_s16 }
 0x13b   : > { %s1077_s26 = sshll.u32 %s12394_s5, 4  ;;  %s12156_s0 = scalar_lea.vmem %s1054_s16, 64  ;;  %s1078_s26 = int_to_ptr.vmem [resolvable:$true] %s1077_s26 }
 0x13c   : > { %p12157_p2 = scmp.ne.s32.totalorder %s1054_s16, %s12156_s0  ;;  %p12164_p4 = scmp.lt.s32.totalorder %s1054_s16, %s1054_s16 }
 0x13d   : > { %p12165_p7 = scmp.lt.s32.totalorder %s12156_s0, %s12156_s0 }
 0x13e   : > { %p12159_p3 = pnand %p12157_p2, %p12625_p6 }
 0x13f   : > { %11331 = dma.hbm_to_vmem [thread:$0]  (!%p12615_p5), %s14628_s7, 384, %s1026_s10, [#allocation29], %s14621_s23, %s14621_s23, %s14623_s1  }
 0x140   : > { %p12160_p1 = pneg %p12159_p3  ;;  %p12166_p8 = por %p12165_p7, %p12164_p4 }
 0x142   : > { %p12167_p9 = pnand %p12166_p8, %p12160_p1 }
 0x144   : > { %12170 = shalt.err (!%p12167_p9)
}
 0x145   : > { %s14629_s28 = sld [smem:[#allocation68_spill]]  ;;  %s12182_s10 = scalar_lea.vmem %s1078_s26, 384 }
 0x146   : > { %p12183_p10 = scmp.ne.s32.totalorder %s1078_s26, %s12182_s10  ;;  %p12190_p13 = scmp.lt.s32.totalorder %s1078_s26, %s1078_s26 }
 0x147   : > { %p12191_p0 = scmp.lt.s32.totalorder %s12182_s10, %s12182_s10 }
 0x148   : > { %p12185_p11 = pnand %p12183_p10, %p12625_p6 }
 0x149   : > { %p12192_p2 = por %p12191_p0, %p12190_p13 }
 0x14a   : > { %p12186_p12 = pneg %p12185_p11 }
 0x14b   : > { %11337 = dma.hbm_to_vmem [thread:$0]  (!%p12615_p5), %s14629_s28, 64, %s1054_s16, [#allocation32]  }
 0x14c   : > { %p12193_p3 = pnand %p12192_p2, %p12186_p12 }
 0x14e   : > { %12196 = shalt.err (!%p12193_p3)
}
 0x14f   : > { %s14630_s7 = sld [smem:[#allocation70_spill]]  ;;  %s12395_s4 = smov [#allocation39]  }
 0x150   : > { %s1104_s16 = sshll.u32 %s12395_s4, 4  ;;  %s12396_s5 = smov [#allocation42]   ;;  %s1105_s16 = int_to_ptr.vmem [resolvable:$true] %s1104_s16 }
 0x151   : > { %s1132_s0 = sshll.u32 %s12396_s5, 4  ;;  %s12208_s28 = scalar_lea.vmem %s1105_s16, 64  ;;  %s1133_s0 = int_to_ptr.vmem [resolvable:$true] %s1132_s0 }
 0x152   : > { %p12209_p1 = scmp.ne.s32.totalorder %s1105_s16, %s12208_s28  ;;  %p12216_p8 = scmp.lt.s32.totalorder %s1105_s16, %s1105_s16 }
 0x153   : > { %p12217_p9 = scmp.lt.s32.totalorder %s12208_s28, %s12208_s28 }
 0x154   : > { %p12211_p4 = pnand %p12209_p1, %p12625_p6 }
 0x155   : > { %11343 = dma.hbm_to_vmem [thread:$0]  (!%p12615_p5), %s14630_s7, 384, %s1078_s26, [#allocation35], %s14621_s23, %s14621_s23, %s14623_s1  }
 0x156   : > { %p12212_p7 = pneg %p12211_p4  ;;  %p12218_p10 = por %p12217_p9, %p12216_p8 }
 0x158   : > { %p12219_p11 = pnand %p12218_p10, %p12212_p7 }
 0x15a   : > { %12222 = shalt.err (!%p12219_p11)
}
 0x15b   : > { %s14631_s10 = sld [smem:[#allocation72_spill]]  ;;  %s12234_s23 = scalar_lea.vmem %s1133_s0, 64 }
 0x15c   : > { %p12235_p12 = scmp.ne.s32.totalorder %s1133_s0, %s12234_s23  ;;  %p12242_p2 = scmp.lt.s32.totalorder %s1133_s0, %s1133_s0 }
 0x15d   : > { %p12243_p3 = scmp.lt.s32.totalorder %s12234_s23, %s12234_s23 }
 0x15e   : > { %p12237_p13 = pnand %p12235_p12, %p12625_p6 }
 0x15f   : > { %p12244_p1 = por %p12243_p3, %p12242_p2 }
 0x160   : > { %p12238_p0 = pneg %p12237_p13 }
 0x161   : > { %11349 = dma.hbm_to_vmem [thread:$0]  (!%p12615_p5), %s14631_s10, 64, %s1105_s16, [#allocation38]  }
 0x162   : > { %p12245_p4 = pnand %p12244_p1, %p12238_p0 }
 0x164   : > { %12248 = shalt.err (!%p12245_p4)
}
 0x165   : > { %s14632_s1 = sld [smem:[#allocation75_spill]]  ;;  %s12397_s26 = smov [#allocation45]  }
 0x166   : > { %s1164_s7 = sshll.u32 %s12397_s26, 4  ;;  %s1165_s7 = int_to_ptr.vmem [resolvable:$true] %s1164_s7 }
 0x167   : > { %s12260_s4 = scalar_lea.vmem %s1165_s7, 384  ;;  %p12268_p10 = scmp.lt.s32.totalorder %s1165_s7, %s1165_s7 }
 0x168   : > { %p12261_p7 = scmp.ne.s32.totalorder %s1165_s7, %s12260_s4  ;;  %p12269_p11 = scmp.lt.s32.totalorder %s12260_s4, %s12260_s4 }
 0x16a   : > { %p12263_p8 = pnand %p12261_p7, %p12625_p6  ;;  %p12270_p12 = por %p12269_p11, %p12268_p10 }
 0x16b   : > { %11355 = dma.hbm_to_vmem [thread:$0]  (!%p12615_p5), %s14632_s1, 64, %s1133_s0, [#allocation41]  }
 0x16c   : > { %p12264_p9 = pneg %p12263_p8 }
 0x16e   : > { %p12271_p13 = pnand %p12270_p12, %p12264_p9 }
 0x170   : > { %12274 = shalt.err (!%p12271_p13)
}
 0x171   : > { %s14633_s16 = smov 8   ;;  %s14634_s5 = smov 128  }
 0x172   : > { %11361 = dma.hbm_to_vmem [thread:$0]  (!%p12615_p5), %s12589_s24, 384, %s1165_s7, [#allocation44], %s14634_s5, %s14634_s5, %s14633_s16  }
 0x173   : > { %p14635_p0 = scmp.ne.s32.totalorder %s14617_s22, 0 }
 0x174   : > { %p14636_p2 = scmp.eq.s32.totalorder (!%p14635_p0), %s12602_s18, 0 }
 0x175   : > { %1188 = sbr.rel (%p14635_p0) target bundleno = 11603 (0x2d53), region = 156 }
 0x17a   : > { %12280 = dma.done.wait (%p14636_p2), [#allocation9], 128   ;;  %p14637_p6 = pmov %p14636_p2 }
 0x17b   : > { %p14638_p3 = pmov %p14636_p2 }
 0x17c   : > { %12282 = vsyncadd (%p14637_p6), [#allocation9], 4294967168 }
 0x17d   : > { %12284 = dma.done.wait (%p14638_p3), [#allocation11], 384   ;;  %p14639_p1 = pmov %p14636_p2 }
 0x17f   : > { %12286 = vsyncadd (%p14639_p1), [#allocation11], 4294966912  ;;  %p14640_p4 = pmov %p14639_p1 }
 0x180   : > { %p14641_p5 = pmov %p14639_p1 }
 0x181   : > { %12288 = dma.done.wait (%p14640_p4), [#allocation14], 704  }
 0x182   : > { %12290 = vsyncadd (%p14641_p5), [#allocation14], 4294966592  ;;  %p14642_p7 = pmov %p14639_p1 }
 0x183   : > { %p14643_p8 = pmov %p14639_p1 }
 0x184   : > { %12292 = dma.done.wait (%p14642_p7), [#allocation17], 704  }
 0x185   : > { %12294 = vsyncadd (%p14643_p8), [#allocation17], 4294966592  ;;  %p14644_p9 = pmov %p14639_p1 }
 0x186   : > { %p14645_p10 = pmov %p14639_p1 }
 0x187   : > { %12296 = dma.done.wait (%p14644_p9), [#allocation20], 704  }
 0x188   : > { %12298 = vsyncadd (%p14645_p10), [#allocation20], 4294966592  ;;  %p14646_p11 = pmov %p14639_p1 }
 0x189   : > { %p14647_p12 = pmov %p14639_p1 }
 0x18a   : > { %12300 = dma.done.wait (%p14646_p11), [#allocation23], 1024  }
 0x18b   : > { %12302 = vsyncadd (%p14647_p12), [#allocation23], 4294966272  ;;  %p14648_p13 = pmov %p14639_p1 }
 0x18c   : > { %p14649_p0 = pmov %p14639_p1 }
 0x18d   : > { %12304 = dma.done.wait (%p14648_p13), [#allocation26], 128  }
 0x18e   : > { %12306 = vsyncadd (%p14649_p0), [#allocation26], 4294967168  ;;  %p14650_p2 = pmov %p14649_p0 }
 0x18f   : > { %p14651_p6 = pmov %p14649_p0 }
 0x190   : > { %12308 = dma.done.wait (%p14650_p2), [#allocation29], 960  }
 0x191   : > { %12310 = vsyncadd (%p14651_p6), [#allocation29], 4294966336  ;;  %p14652_p3 = pmov %p14649_p0 }
 0x192   : > { %p14653_p1 = pmov %p14649_p0 }
 0x193   : > { %12312 = dma.done.wait (%p14652_p3), [#allocation32], 128  }
 0x194   : > { %12314 = vsyncadd (%p14653_p1), [#allocation32], 4294967168  ;;  %p14654_p4 = pmov %p14649_p0 }
 0x195   : > { %p14655_p5 = pmov %p14649_p0 }
 0x196   : > { %12316 = dma.done.wait (%p14654_p4), [#allocation35], 448  }
 0x197   : > { %12318 = vsyncadd (%p14655_p5), [#allocation35], 4294966848  ;;  %p14656_p7 = pmov %p14649_p0 }
 0x198   : > { %p14657_p8 = pmov %p14649_p0 }
 0x199   : > { %12320 = dma.done.wait (%p14656_p7), [#allocation38], 320  }
 0x19a   : > { %12322 = vsyncadd (%p14657_p8), [#allocation38], 4294966976  ;;  %p14658_p9 = pmov %p14649_p0 }
 0x19b   : > { %p14659_p10 = pmov %p14649_p0 }
 0x19c   : > { %12324 = dma.done.wait (%p14658_p9), [#allocation41], 128  }
 0x19d   : > { %12326 = vsyncadd (%p14659_p10), [#allocation41], 4294967168  ;;  %p14660_p11 = pmov %p14649_p0 }
 0x19e   : > { %p14661_p12 = pmov %p14649_p0 }
 0x19f   : > { %12328 = dma.done.wait (%p14660_p11), [#allocation44], 640  }
 0x1a0   : > { %12330 = vsyncadd (%p14661_p12), [#allocation44], 4294966656  ;;  %s14662_s22 = sld [smem:[#allocation59_spill]]  ;;  %p1370_p13 = scmp.lt.s32.totalorder %s12602_s18, 1  ;;  %v12400_v14 = vmov 0.0   ;;  %vm1986_vm0 = vcmask 1044480  }
 0x1a1   : > { %s12398_s0 = smov 4   ;;  %s12399_s28 = smov 2   ;;  %10729 = vmatprep.subr.bf16.mxu0 %v12400_v14  ;;  %10759 = vmatprep.subr.mxu1 %v12400_v14  ;;  %v11501_v17 = vld [vmem:[#allocation8] sm:$0x1f]   ;;  %vm14570_vm1 = vmmov 0   ;;  %vm1447_vm2 = vcmask 11264  }
 0x1a2   : > { %s14935_s18 = smov (!%p1370_p13, %s12602_s18), 1  ;;  %s12401_s10 = smov 6   ;;  %10731 = vmatprep.mubr.msk.bf16.mxu0 %vm14570_vm1, %v12400_v14  ;;  %10761 = vmatprep.mubr.msk.f32.mxu1 %vm14570_vm1, %v12400_v14  ;;  %v1988_v20 = vsel %vm1986_vm0, %v11501_v17, 0  ;;  %vm1460_vm3 = vcmask 10240   ;;  %vm14566_vm4 = vsmask.f32 2304 }
 0x1a3   : > { %s11184_s2 = smul.u32 112, %s14935_s18  ;;  %10730 = vmatpush3.bf16.msra.mxu0 %v1988_v20  ;;  %s12403_s23 = smov 8   ;;  %vm1462_vm5 = vmand %vm1460_vm3, %vm14566_vm4  ;;  %v1463_v51 = vld [vmem:[#allocation7 + $0x60] sm:$0x7]  ;;  %vm1558_vm6 = vcmask 27664   ;;  %vm1668_vm7 = vcmask 44064  }
 0x1a4   : > { %10803 = vmatprep.subr.mxu0 %v12400_v14  ;;  %vm1778_vm8 = vcmask 60464   ;;  %vm1888_vm9 = vcmask 76864   ;;  %vm1964_vm10 = vcmask 80896   ;;  %vm1571_vm11 = vcmask 26640   ;;  %s12404_s1 = smov 16   ;;  %s12405_s26 = smov 24  }
 0x1a5   : > { %vm1572_vm12 = vmand %vm1571_vm11, %vm14566_vm4  ;;  %vm1681_vm13 = vcmask 43040   ;;  %vm1791_vm15 = vcmask 59440   ;;  %s12406_s7 = smov 32   ;;  %s12407_s4 = smov 48  }
 0x1a6   : > { %s12860_s11 = scalar_lea.vmem %s14662_s22, %s11184_s2  ;;  %vm1682_vm14 = vmand %vm1681_vm13, %vm14566_vm4  ;;  %vm14558_vm13 = vcmask 191616   ;;  %s12408_s16 = smov 64  }
 0x1a7   : > { %v1576_v0 = vld [vmem:[%s12860_s11 + $0x2] sm:$0xff]  ;;  %v1577_v2 = vld [vmem:[%s12860_s11 + $0xa] sm:$0xff]  ;;  %v1469_v18 = vld [vmem:[%s12860_s11 + $0x19] sm:$0xff]  ;;  %s12409_s5 = smov 72   ;;  %s12410_s22 = smov 96  }
 0x1a8   : > { %v1466_v1 = vld [vmem:[%s12860_s11 + $0x1] sm:$0xff]  ;;  %v10227_v3 = vpack.c.bf16 %v1576_v0, %v1576_v0  ;;  %v1467_v5 = vld [vmem:[%s12860_s11 + $0x9] sm:$0xff]  ;;  %v10228_v6 = vpack.c.bf16 %v1577_v2, %v1577_v2  ;;  %v1468_v19 = vld [vmem:[%s12860_s11 + $0x11] sm:$0xff]  ;;  %v10217_v21 = vpack.c.bf16 %v1469_v18, %v1469_v18  ;;  %s14767_s2 = sld [smem:[#allocation63_spill]] }
 0x1a9   : > { %v10214_v4 = vpack.c.bf16 %v1466_v1, %v1466_v1  ;;  %v10215_v7 = vpack.c.bf16 %v1467_v5, %v1467_v5  ;;  %v1687_v8 = vld [vmem:[%s12860_s11 + $0xb] sm:$0xff]  ;;  %v1686_v9 = vld [vmem:[%s12860_s11 + $0x3] sm:$0xff]  ;;  %v10216_v22 = vpack.c.bf16 %v1468_v19, %v1468_v19  ;;  %v1579_v23 = vld [vmem:[%s12860_s11 + $0x1a] sm:$0xff] }
 0x1aa   : > { %1629 = vrot.lane.b32.xlu1 %v10227_v3, %s12398_s0  ;;  %v10241_v10 = vpack.c.bf16 %v1687_v8, %v1687_v8  ;;  %v10240_v11 = vpack.c.bf16 %v1686_v9, %v1686_v9  ;;  %v1797_v12 = vld [vmem:[%s12860_s11 + $0xc] sm:$0xff]  ;;  %v1796_v13 = vld [vmem:[%s12860_s11 + $0x4] sm:$0xff]  ;;  %v1689_v25 = vld [vmem:[%s12860_s11 + $0x1b] sm:$0xff]  ;;  %v10230_v28 = vpack.c.bf16 %v1579_v23, %v1579_v23 }
 0x1ab   : > { %1519 = vrot.lane.b32.xlu0 %v10214_v4, %s12399_s28  ;;  %v10254_v15 = vpack.c.bf16 %v1797_v12, %v1797_v12  ;;  %v10253_v16 = vpack.c.bf16 %v1796_v13, %v1796_v13  ;;  %v1578_v24 = vld [vmem:[%s12860_s11 + $0x12] sm:$0xff]  ;;  %v1381_v27 = vld [vmem:[%s12860_s11] sm:$0xff]  ;;  %v1382_v31 = vld [vmem:[%s12860_s11 + $0x8] sm:$0xff]  ;;  %v10243_v42 = vpack.c.bf16 %v1689_v25, %v1689_v25 }
 0x1ac   : > { %v1688_v26 = vld [vmem:[%s12860_s11 + $0x13] sm:$0xff]  ;;  %v10229_v29 = vpack.c.bf16 %v1578_v24, %v1578_v24  ;;  %v10201_v30 = vpack.c.bf16 %v1381_v27, %v1381_v27  ;;  %v10202_v33 = vpack.c.bf16 %v1382_v31, %v1382_v31  ;;  %v1385_v36 = vld [vmem:[%s12860_s11 + $0x20] sm:$0xff]  ;;  %v1386_v41 = vld [vmem:[%s12860_s11 + $0x28] sm:$0xff] }
 0x1ad   : > { %v1384_v32 = vld [vmem:[%s12860_s11 + $0x18] sm:$0xff]  ;;  %v1383_v35 = vld [vmem:[%s12860_s11 + $0x10] sm:$0xff]  ;;  %v10205_v39 = vpack.c.bf16 %v1385_v36, %v1385_v36  ;;  %v10242_v43 = vpack.c.bf16 %v1688_v26, %v1688_v26  ;;  %v10206_v44 = vpack.c.bf16 %v1386_v41, %v1386_v41  ;;  %v1393_v47 = vld [vmem:[%s12860_s11 + $0x60] sm:$0x1f] }
 0x1ae   : > { %1631 = vrot.lane.b32.xlu1 %v10228_v6, %s12398_s0  ;;  %v10204_v34 = vpack.c.bf16 %v1384_v32, %v1384_v32  ;;  %v1799_v37 = vld [vmem:[%s12860_s11 + $0x1c] sm:$0xff]  ;;  %1448 = vst.msk [vmem:[#allocation7] sm:$0xf] %vm1447_vm2, %v10201_v30  ;;  %v10203_v38 = vpack.c.bf16 %v1383_v35, %v1383_v35  ;;  %v1798_v40 = vld [vmem:[%s12860_s11 + $0x14] sm:$0xff]  ;;  %1449 = vst.msk [vmem:[#allocation7 + $0x8] sm:$0xf] %vm1447_vm2, %v10202_v33  ;;  %v10213_v50 = vpack.c.bf16 %v1393_v47, %v1393_v47 }
 0x1af   : > { %1521 = vrot.lane.b32.xlu0 %v10215_v7, %s12399_s28  ;;  %1452 = vst.msk [vmem:[#allocation7 + $0x20] sm:$0xf] %vm1447_vm2, %v10205_v39  ;;  %1453 = vst.msk [vmem:[#allocation7 + $0x28] sm:$0xf] %vm1447_vm2, %v10206_v44  ;;  %v10256_v45 = vpack.c.bf16 %v1799_v37, %v1799_v37  ;;  %v1471_v46 = vld [vmem:[%s12860_s11 + $0x29] sm:$0xff]  ;;  %v10255_v48 = vpack.c.bf16 %v1798_v40, %v1798_v40  ;;  %v1470_v49 = vld [vmem:[%s12860_s11 + $0x21] sm:$0xff] }
 0x1b0   : > { %1451 = vst.msk [vmem:[#allocation7 + $0x18] sm:$0xf] %vm1447_vm2, %v10204_v34  ;;  %1450 = vst.msk [vmem:[#allocation7 + $0x10] sm:$0xf] %vm1447_vm2, %v10203_v38  ;;  %v1464_v52 = vsel %vm1462_vm5, %v10213_v50, %v1463_v51  ;;  %v1581_v53 = vld [vmem:[%s12860_s11 + $0x2a] sm:$0xff]  ;;  %v1580_v54 = vld [vmem:[%s12860_s11 + $0x22] sm:$0xff]  ;;  %v10219_v55 = vpack.c.bf16 %v1471_v46, %v1471_v46  ;;  %v10218_v56 = vpack.c.bf16 %v1470_v49, %v1470_v49 }
 0x1b1   : > { %1465 = vst [vmem:[#allocation7 + $0x60] sm:$0x7] %v1464_v52  ;;  %v1691_v57 = vld [vmem:[%s12860_s11 + $0x2b] sm:$0xff]  ;;  %v10232_v58 = vpack.c.bf16 %v1581_v53, %v1581_v53  ;;  %v10231_v59 = vpack.c.bf16 %v1580_v54, %v1580_v54  ;;  %v1690_v60 = vld [vmem:[%s12860_s11 + $0x23] sm:$0xff]  ;;  %v1388_v1 = vld [vmem:[%s12860_s11 + $0x38] sm:$0xff]  ;;  %vm14563_vm5 = vcmask 64512  }
 0x1b2   : > { %1741 = vrot.lane.b32.xlu1 %v10241_v10, %s12401_s10  ;;  %v10245_v61 = vpack.c.bf16 %v1691_v57, %v1691_v57  ;;  %v1801_v62 = vld [vmem:[%s12860_s11 + $0x2c] sm:$0xff]  ;;  %v1800_v63 = vld [vmem:[%s12860_s11 + $0x24] sm:$0xff]  ;;  %v10244_v2 = vpack.c.bf16 %v1690_v60, %v1690_v60  ;;  %v10208_v4 = vpack.c.bf16 %v1388_v1, %v1388_v1  ;;  %v1473_v10 = vld [vmem:[%s12860_s11 + $0x39] sm:$0xff] }
 0x1b3   : > { %1739 = vrot.lane.b32.xlu0 %v10240_v11, %s12401_s10  ;;  %v1387_v0 = vld [vmem:[%s12860_s11 + $0x30] sm:$0xff]  ;;  %v1478_v6 = vld [vmem:[%s12860_s11 + $0x61] sm:$0x1f]  ;;  %v10258_v7 = vpack.c.bf16 %v1801_v62, %v1801_v62  ;;  %v10257_v8 = vpack.c.bf16 %v1800_v63, %v1800_v63  ;;  %v10221_v17 = vpack.c.bf16 %v1473_v10, %v1473_v10  ;;  %v1392_v44 = vld [vmem:[%s12860_s11 + $0x58] sm:$0xff] }
 0x1b4   : > { %v10207_v3 = vpack.c.bf16 %v1387_v0, %v1387_v0  ;;  %1455 = vst.msk [vmem:[#allocation7 + $0x38] sm:$0xf] %vm1447_vm2, %v10208_v4  ;;  %v1472_v5 = vld [vmem:[%s12860_s11 + $0x31] sm:$0xff]  ;;  %v10226_v12 = vpack.c.bf16 %v1478_v6, %v1478_v6  ;;  %v1389_v18 = vld [vmem:[%s12860_s11 + $0x40] sm:$0xff]  ;;  %v1475_v31 = vld [vmem:[%s12860_s11 + $0x49] sm:$0xff]  ;;  %v10212_v47 = vpack.c.bf16 %v1392_v44, %v1392_v44 }
 0x1b5   : > { %v1582_v9 = vld [vmem:[%s12860_s11 + $0x32] sm:$0xff]  ;;  %v10220_v11 = vpack.c.bf16 %v1472_v5, %v1472_v5  ;;  %v1693_v20 = vld [vmem:[%s12860_s11 + $0x3b] sm:$0xff]  ;;  %v1585_v34 = vld [vmem:[%s12860_s11 + $0x4a] sm:$0xff]  ;;  %v10223_v37 = vpack.c.bf16 %v1475_v31, %v1475_v31 }
 0x1b6   : > { %1851 = vrot.lane.b32.xlu1 %v10254_v15, %s12403_s23  ;;  %1454 = vst.msk [vmem:[#allocation7 + $0x30] sm:$0xf] %vm1447_vm2, %v10207_v3  ;;  %v1692_v13 = vld [vmem:[%s12860_s11 + $0x33] sm:$0xff]  ;;  %v1474_v26 = vld [vmem:[%s12860_s11 + $0x41] sm:$0xff]  ;;  %v1695_v38 = vld [vmem:[%s12860_s11 + $0x4b] sm:$0xff]  ;;  %v10236_v41 = vpack.c.bf16 %v1585_v34, %v1585_v34 }
 0x1b7   : > { %1849 = vrot.lane.b32.xlu0 %v10253_v16, %s12403_s23  ;;  %v1583_v15 = vld [vmem:[%s12860_s11 + $0x3a] sm:$0xff]  ;;  %v10233_v16 = vpack.c.bf16 %v1582_v9, %v1582_v9  ;;  %v10246_v23 = vpack.c.bf16 %v1692_v13, %v1692_v13  ;;  %v1588_v30 = vld [vmem:[%s12860_s11 + $0x62] sm:$0x1f]  ;;  %v10222_v32 = vpack.c.bf16 %v1474_v26, %v1474_v26  ;;  %v1391_v40 = vld [vmem:[%s12860_s11 + $0x50] sm:$0xff]  ;;  %1459 = vst.msk [vmem:[#allocation7 + $0x58] sm:$0xf] %vm1447_vm2, %v10212_v47 }
 0x1b8   : > { %v1802_v19 = vld [vmem:[%s12860_s11 + $0x34] sm:$0xff]  ;;  %v10234_v24 = vpack.c.bf16 %v1583_v15, %v1583_v15  ;;  %v1803_v27 = vld [vmem:[%s12860_s11 + $0x3c] sm:$0xff]  ;;  %v10239_v36 = vpack.c.bf16 %v1588_v30, %v1588_v30  ;;  %v1804_v49 = vld [vmem:[%s12860_s11 + $0x44] sm:$0xff] }
 0x1b9   : > { %v10260_v33 = vpack.c.bf16 %v1803_v27, %v1803_v27  ;;  %v1584_v35 = vld [vmem:[%s12860_s11 + $0x42] sm:$0xff]  ;;  %v10261_v51 = vpack.c.bf16 %v1804_v49, %v1804_v49  ;;  %v1476_v52 = vld [vmem:[%s12860_s11 + $0x51] sm:$0xff]  ;;  %v1477_v53 = vld [vmem:[%s12860_s11 + $0x59] sm:$0xff] }
 0x1ba   : > { %1525 = vrot.lane.b32.xlu1 %v10217_v21, %s12399_s28  ;;  %v10209_v21 = vpack.c.bf16 %v1389_v18, %v1389_v18  ;;  %v1694_v39 = vld [vmem:[%s12860_s11 + $0x43] sm:$0xff]  ;;  %v10224_v54 = vpack.c.bf16 %v1476_v52, %v1476_v52  ;;  %v1587_v57 = vld [vmem:[%s12860_s11 + $0x5a] sm:$0xff]  ;;  %vm1792_vm0 = vmand %vm1791_vm15, %vm14566_vm4  ;;  %vm14560_vm15 = vcmask 322816  }
 0x1bb   : > { %1523 = vrot.lane.b32.xlu0 %v10216_v22, %s12399_s28  ;;  %v1390_v22 = vld [vmem:[%s12860_s11 + $0x48] sm:$0xff]  ;;  %v10248_v46 = vpack.c.bf16 %v1694_v39, %v1694_v39  ;;  %v1698_v60 = vld [vmem:[%s12860_s11 + $0x63] sm:$0x1f]  ;;  %v1697_v0 = vld [vmem:[%s12860_s11 + $0x5b] sm:$0xff] }
 0x1bc   : > { %v10210_v25 = vpack.c.bf16 %v1390_v22, %v1390_v22  ;;  %1456 = vst.msk [vmem:[#allocation7 + $0x40] sm:$0xf] %vm1447_vm2, %v10209_v21  ;;  %v10252_v62 = vpack.c.bf16 %v1698_v60, %v1698_v60  ;;  %v1806_v1 = vld [vmem:[%s12860_s11 + $0x54] sm:$0xff]  ;;  %v1807_v4 = vld [vmem:[%s12860_s11 + $0x5c] sm:$0xff]  ;;  %v1808_v5 = vld [vmem:[%s12860_s11 + $0x64] sm:$0x1f] }
 0x1bd   : > { %v10263_v3 = vpack.c.bf16 %v1806_v1, %v1806_v1  ;;  %v10264_v6 = vpack.c.bf16 %v1807_v4, %v1807_v4  ;;  %v1573_v39 = vld [vmem:[#allocation7 + $0x60] sm:$0x7] }
 0x1be   : > { %1635 = vrot.lane.b32.xlu1 %v10230_v28, %s12398_s0  ;;  %1457 = vst.msk [vmem:[#allocation7 + $0x48] sm:$0xf] %vm1447_vm2, %v10210_v25  ;;  %v10259_v28 = vpack.c.bf16 %v1802_v19, %v1802_v19 }
 0x1bf   : > { %1633 = vrot.lane.b32.xlu0 %v10229_v29, %s12398_s0  ;;  %v10247_v29 = vpack.c.bf16 %v1693_v20, %v1693_v20 }
 0x1c2   : > { %1745 = vrot.lane.b32.xlu1 %v10243_v42, %s12401_s10  ;;  %v10235_v42 = vpack.c.bf16 %v1584_v35, %v1584_v35 }
 0x1c3   : > { %1743 = vrot.lane.b32.xlu0 %v10242_v43, %s12401_s10  ;;  %v10211_v43 = vpack.c.bf16 %v1391_v40, %v1391_v40 }
 0x1c5   : > { %1458 = vst.msk [vmem:[#allocation7 + $0x50] sm:$0xf] %vm1447_vm2, %v10211_v43  ;;  %vm1901_vm2 = vcmask 75840  }
 0x1c6   : > { %1855 = vrot.lane.b32.xlu1 %v10256_v45, %s12403_s23  ;;  %v10249_v45 = vpack.c.bf16 %v1695_v38, %v1695_v38  ;;  %vm1902_vm3 = vmand %vm1901_vm2, %vm14566_vm4  ;;  %vm2591_vm2 = vcmask 122944   ;;  %vm14572_vm4 = vcmask 519552  }
 0x1c7   : > { %1853 = vrot.lane.b32.xlu0 %v10255_v48, %s12403_s23  ;;  %v1805_v48 = vld [vmem:[%s12860_s11 + $0x4c] sm:$0xff] }
 0x1c8   : > { %v10262_v50 = vpack.c.bf16 %v1805_v48, %v1805_v48 }
 0x1ca   : > { %1529 = vrot.lane.b32.xlu1 %v10219_v55, %s12399_s28  ;;  %v10225_v55 = vpack.c.bf16 %v1477_v53, %v1477_v53 }
 0x1cb   : > { %1527 = vrot.lane.b32.xlu0 %v10218_v56, %s12399_s28  ;;  %v1586_v56 = vld [vmem:[%s12860_s11 + $0x52] sm:$0xff] }
 0x1ce   : > { %1639 = vrot.lane.b32.xlu1 %v10232_v58, %s12398_s0  ;;  %v10237_v58 = vpack.c.bf16 %v1586_v56, %v1586_v56 }
 0x1cf   : > { %1637 = vrot.lane.b32.xlu0 %v10231_v59, %s12398_s0  ;;  %v10238_v59 = vpack.c.bf16 %v1587_v57, %v1587_v57 }
 0x1d2   : > { %1749 = vrot.lane.b32.xlu1 %v10245_v61, %s12401_s10  ;;  %v1696_v61 = vld [vmem:[%s12860_s11 + $0x53] sm:$0xff]  ;;  %s14791_s11 = sld [smem:[#allocation67_spill]] }
 0x1d3   : > { %1747 = vrot.lane.b32.xlu0 %v10244_v2, %s12401_s10  ;;  %v10250_v63 = vpack.c.bf16 %v1696_v61, %v1696_v61  ;;  %v10251_v2 = vpack.c.bf16 %v1697_v0, %v1697_v0 }
 0x1d6   : > { %1859 = vrot.lane.b32.xlu1 %v10258_v7, %s12403_s23  ;;  %v10265_v7 = vpack.c.bf16 %v1808_v5, %v1808_v5 }
 0x1d7   : > { %1857 = vrot.lane.b32.xlu0 %v10257_v8, %s12403_s23 }
 0x1da   : > { %1531 = vrot.lane.b32.xlu1 %v10220_v11, %s12399_s28 }
 0x1db   : > { %1543 = vrot.lane.b32.xlu0 %v10226_v12, %s12399_s28 }
 0x1de   : > { %1641 = vrot.lane.b32.xlu1 %v10233_v16, %s12398_s0 }
 0x1df   : > { %1533 = vrot.lane.b32.xlu0 %v10221_v17, %s12399_s28 }
 0x1e2   : > { %1751 = vrot.lane.b32.xlu1 %v10246_v23, %s12401_s10 }
 0x1e3   : > { %1643 = vrot.lane.b32.xlu0 %v10234_v24, %s12398_s0 }
 0x1e6   : > { %1861 = vrot.lane.b32.xlu1 %v10259_v28, %s12403_s23 }
 0x1e7   : > { %1753 = vrot.lane.b32.xlu0 %v10247_v29, %s12401_s10 }
 0x1ea   : > { %1535 = vrot.lane.b32.xlu1 %v10222_v32, %s12399_s28 }
 0x1eb   : > { %1863 = vrot.lane.b32.xlu0 %v10260_v33, %s12403_s23 }
 0x1ee   : > { %1653 = vrot.lane.b32.xlu1 %v10239_v36, %s12398_s0 }
 0x1ef   : > { %1537 = vrot.lane.b32.xlu0 %v10223_v37, %s12399_s28 }
 0x1f2   : > { %1647 = vrot.lane.b32.xlu1 %v10236_v41, %s12398_s0 }
 0x1f3   : > { %1645 = vrot.lane.b32.xlu0 %v10235_v42, %s12398_s0 }
 0x1f6   : > { %1757 = vrot.lane.b32.xlu1 %v10249_v45, %s12401_s10 }
 0x1f7   : > { %1755 = vrot.lane.b32.xlu0 %v10248_v46, %s12401_s10 }
 0x1fa   : > { %1867 = vrot.lane.b32.xlu1 %v10262_v50, %s12403_s23 }
 0x1fb   : > { %1865 = vrot.lane.b32.xlu0 %v10261_v51, %s12403_s23 }
 0x1fe   : > { %1541 = vrot.lane.b32.xlu1 %v10225_v55, %s12399_s28 }
 0x1ff   : > { %1539 = vrot.lane.b32.xlu0 %v10224_v54, %s12399_s28  ;;  %s14819_s28 = sld [smem:[#allocation69_spill]] }
 0x202   : > { %1651 = vrot.lane.b32.xlu1 %v10238_v59, %s12398_s0 }
 0x203   : > { %1649 = vrot.lane.b32.xlu0 %v10237_v58, %s12398_s0  ;;  %s12411_s0 = smov 80  }
 0x206   : > { %1759 = vrot.lane.b32.xlu1 %v10250_v63, %s12401_s10 }
 0x207   : > { %1763 = vrot.lane.b32.xlu0 %v10252_v62, %s12401_s10 }
 0x20a   : > { %1869 = vrot.lane.b32.xlu1 %v10263_v3, %s12403_s23 }
 0x20b   : > { %1761 = vrot.lane.b32.xlu0 %v10251_v2, %s12401_s10  ;;  %s12412_s10 = smov 112  }
 0x20e   : > { %1873 = vrot.lane.b32.xlu1 %v10265_v7, %s12403_s23 }
 0x20f   : > { %1871 = vrot.lane.b32.xlu0 %v10264_v6, %s12403_s23 }
 0x21c   : > { %v1630_v8 = vpop.permute.xlu1 %1629 }
 0x21d   : > { %v1520_v9 = vpop.permute.xlu0 %1519 }
 0x21e   : > { %1559 = vst.msk [vmem:[#allocation7] sm:$0xf] %vm1558_vm6, %v1520_v9 }
 0x21f   : > { %1669 = vst.msk [vmem:[#allocation7] sm:$0xf] %vm1668_vm7, %v1630_v8 }
 0x220   : > { %v1632_v10 = vpop.permute.xlu1 %1631 }
 0x221   : > { %v1522_v11 = vpop.permute.xlu0 %1521 }
 0x222   : > { %1560 = vst.msk [vmem:[#allocation7 + $0x8] sm:$0xf] %vm1558_vm6, %v1522_v11 }
 0x223   : > { %1670 = vst.msk [vmem:[#allocation7 + $0x8] sm:$0xf] %vm1668_vm7, %v1632_v10 }
 0x224   : > { %v1742_v12 = vpop.permute.xlu1 %1741 }
 0x225   : > { %v1740_v13 = vpop.permute.xlu0 %1739  ;;  %1780 = vst.msk [vmem:[#allocation7 + $0x8] sm:$0xf] %vm1778_vm8, %v1742_v12 }
 0x226   : > { %1779 = vst.msk [vmem:[#allocation7] sm:$0xf] %vm1778_vm8, %v1740_v13 }
 0x228   : > { %v1852_v15 = vpop.permute.xlu1 %1851 }
 0x229   : > { %v1850_v16 = vpop.permute.xlu0 %1849  ;;  %1890 = vst.msk [vmem:[#allocation7 + $0x8] sm:$0xf] %vm1888_vm9, %v1852_v15 }
 0x22a   : > { %1889 = vst.msk [vmem:[#allocation7] sm:$0xf] %vm1888_vm9, %v1850_v16 }
 0x22c   : > { %v1526_v17 = vpop.permute.xlu1 %1525 }
 0x22d   : > { %v1524_v18 = vpop.permute.xlu0 %1523  ;;  %1562 = vst.msk [vmem:[#allocation7 + $0x18] sm:$0xf] %vm1558_vm6, %v1526_v17 }
 0x22e   : > { %1561 = vst.msk [vmem:[#allocation7 + $0x10] sm:$0xf] %vm1558_vm6, %v1524_v18 }
 0x230   : > { %v1907_v19 = vld [vmem:[#allocation7 + $0x8] sm:$0xf]  ;;  %v1636_v21 = vpop.permute.xlu1 %1635 }
 0x231   : > { %v1906_v20 = vld [vmem:[#allocation7] sm:$0xf]  ;;  %v1634_v22 = vpop.permute.xlu0 %1633  ;;  %1672 = vst.msk [vmem:[#allocation7 + $0x18] sm:$0xf] %vm1668_vm7, %v1636_v21 }
 0x232   : > { %1671 = vst.msk [vmem:[#allocation7 + $0x10] sm:$0xf] %vm1668_vm7, %v1634_v22  ;;  %v9737_v23 = vcombine.low %v1906_v20, %v1907_v19  ;;  %v13073_v19 = vld [vmem:[%s12579_s14] sm:$0xff] }
 0x233   : > { %10760 = vmatpush3.msra.mxu1 %v13073_v19 }
 0x234   : > { %10732 = vmatmul.mubr.msk.bf16.vlgmr.msra.gmra.mxu0 %vm1964_vm10, %v9737_v23  ;;  %v1746_v24 = vpop.permute.xlu1 %1745  ;;  %10764 = vmatprep.subr.mxu1 %v12400_v14 }
 0x235   : > { %v1744_v25 = vpop.permute.xlu0 %1743  ;;  %10735 = vmatprep.mubr.msk.bf16.mxu0 %vm14570_vm1, %v12400_v14  ;;  %1782 = vst.msk [vmem:[#allocation7 + $0x18] sm:$0xf] %vm1778_vm8, %v1746_v24 }
 0x236   : > { %1781 = vst.msk [vmem:[#allocation7 + $0x10] sm:$0xf] %vm1778_vm8, %v1744_v25 }
 0x238   : > { %v1856_v26 = vpop.permute.xlu1 %1855 }
 0x239   : > { %v1854_v27 = vpop.permute.xlu0 %1853  ;;  %1892 = vst.msk [vmem:[#allocation7 + $0x18] sm:$0xf] %vm1888_vm9, %v1856_v26 }
 0x23a   : > { %1891 = vst.msk [vmem:[#allocation7 + $0x10] sm:$0xf] %vm1888_vm9, %v1854_v27 }
 0x23c   : > { %v1530_v28 = vpop.permute.xlu1 %1529 }
 0x23d   : > { %v1528_v29 = vpop.permute.xlu0 %1527  ;;  %1564 = vst.msk [vmem:[#allocation7 + $0x28] sm:$0xf] %vm1558_vm6, %v1530_v28 }
 0x23e   : > { %1563 = vst.msk [vmem:[#allocation7 + $0x20] sm:$0xf] %vm1558_vm6, %v1528_v29 }
 0x240   : > { %v1909_v30 = vld [vmem:[#allocation7 + $0x18] sm:$0xf]  ;;  %v1640_v32 = vpop.permute.xlu1 %1639 }
 0x241   : > { %v1908_v31 = vld [vmem:[#allocation7 + $0x10] sm:$0xf]  ;;  %v1638_v33 = vpop.permute.xlu0 %1637  ;;  %1674 = vst.msk [vmem:[#allocation7 + $0x28] sm:$0xf] %vm1668_vm7, %v1640_v32 }
 0x242   : > { %1673 = vst.msk [vmem:[#allocation7 + $0x20] sm:$0xf] %vm1668_vm7, %v1638_v33  ;;  %v9738_v34 = vcombine.low %v1908_v31, %v1909_v30 }
 0x244   : > { %10736 = vmatmul.mubr.msk.bf16.gmra.mxu0 %vm1964_vm10, %v9738_v34  ;;  %v1750_v35 = vpop.permute.xlu1 %1749 }
 0x245   : > { %v1748_v36 = vpop.permute.xlu0 %1747  ;;  %10739 = vmatprep.mubr.msk.bf16.mxu0 %vm14570_vm1, %v12400_v14  ;;  %1784 = vst.msk [vmem:[#allocation7 + $0x28] sm:$0xf] %vm1778_vm8, %v1750_v35  ;;  %v1922_v35 = vlaneseq }
 0x246   : > { %1783 = vst.msk [vmem:[#allocation7 + $0x20] sm:$0xf] %vm1778_vm8, %v1748_v36 }
 0x248   : > { %v1860_v37 = vpop.permute.xlu1 %1859 }
 0x249   : > { %v1858_v38 = vpop.permute.xlu0 %1857  ;;  %1894 = vst.msk [vmem:[#allocation7 + $0x28] sm:$0xf] %vm1888_vm9, %v1860_v37  ;;  %v13077_v37 = vshrl.u32 %v1922_v35, 7 }
 0x24a   : > { %1893 = vst.msk [vmem:[#allocation7 + $0x20] sm:$0xf] %vm1888_vm9, %v1858_v38 }
 0x24b   : > { %v13080_v38 = vsub.s32 0, %v13077_v37 }
 0x24c   : > { %v1532_v40 = vpop.permute.xlu1 %1531 }
 0x24d   : > { %v1544_v41 = vpop.permute.xlu0 %1543  ;;  %1565 = vst.msk [vmem:[#allocation7 + $0x30] sm:$0xf] %vm1558_vm6, %v1532_v40 }
 0x24e   : > { %v1574_v42 = vsel %vm1572_vm12, %v1544_v41, %v1573_v39  ;;  %v13082_v39 = vld [vmem:[#allocation10] sm:$0x7]  ;;  %vm14562_vm12 = vcmask 126016  }
 0x24f   : > { %1575 = vst [vmem:[#allocation7 + $0x60] sm:$0x7] %v1574_v42  ;;  %v1925_v41 = vrot.slane %v13082_v39, %v13080_v38 }
 0x250   : > { %v1911_v43 = vld [vmem:[#allocation7 + $0x28] sm:$0xf]  ;;  %v1642_v45 = vpop.permute.xlu1 %1641 }
 0x251   : > { %v1910_v44 = vld [vmem:[#allocation7 + $0x20] sm:$0xf]  ;;  %v1534_v46 = vpop.permute.xlu0 %1533  ;;  %1675 = vst.msk [vmem:[#allocation7 + $0x30] sm:$0xf] %vm1668_vm7, %v1642_v45 }
 0x252   : > { %1566 = vst.msk [vmem:[#allocation7 + $0x38] sm:$0xf] %vm1558_vm6, %v1534_v46  ;;  %v9739_v47 = vcombine.low %v1910_v44, %v1911_v43 }
 0x254   : > { %10740 = vmatmul.mubr.msk.bf16.gmra.mxu0 %vm1964_vm10, %v9739_v47  ;;  %v1752_v48 = vpop.permute.xlu1 %1751 }
 0x255   : > { %v1644_v49 = vpop.permute.xlu0 %1643  ;;  %10743 = vmatprep.mubr.msk.bf16.mxu0 %vm14570_vm1, %v12400_v14  ;;  %1785 = vst.msk [vmem:[#allocation7 + $0x30] sm:$0xf] %vm1778_vm8, %v1752_v48 }
 0x256   : > { %1676 = vst.msk [vmem:[#allocation7 + $0x38] sm:$0xf] %vm1668_vm7, %v1644_v49  ;;  %v1683_v55 = vld [vmem:[#allocation7 + $0x60] sm:$0x7] }
 0x258   : > { %v1862_v50 = vpop.permute.xlu1 %1861 }
 0x259   : > { %v1754_v51 = vpop.permute.xlu0 %1753  ;;  %1895 = vst.msk [vmem:[#allocation7 + $0x30] sm:$0xf] %vm1888_vm9, %v1862_v50 }
 0x25a   : > { %1786 = vst.msk [vmem:[#allocation7 + $0x38] sm:$0xf] %vm1778_vm8, %v1754_v51 }
 0x25c   : > { %v1536_v52 = vpop.permute.xlu1 %1535 }
 0x25d   : > { %v1864_v53 = vpop.permute.xlu0 %1863  ;;  %1567 = vst.msk [vmem:[#allocation7 + $0x40] sm:$0xf] %vm1558_vm6, %v1536_v52 }
 0x25e   : > { %1896 = vst.msk [vmem:[#allocation7 + $0x38] sm:$0xf] %vm1888_vm9, %v1864_v53 }
 0x260   : > { %v1654_v54 = vpop.permute.xlu1 %1653 }
 0x261   : > { %v1538_v56 = vpop.permute.xlu0 %1537  ;;  %v1684_v57 = vsel %vm1682_vm14, %v1654_v54, %v1683_v55  ;;  %vm14561_vm14 = vcmask 257216  }
 0x262   : > { %1568 = vst.msk [vmem:[#allocation7 + $0x48] sm:$0xf] %vm1558_vm6, %v1538_v56  ;;  %1685 = vst [vmem:[#allocation7 + $0x60] sm:$0x7] %v1684_v57 }
 0x264   : > { %v1648_v58 = vpop.permute.xlu1 %1647 }
 0x265   : > { %v1646_v59 = vpop.permute.xlu0 %1645  ;;  %v11502_v60 = vld [vmem:[#allocation7 + $0x30] ss:$8 sps:$4 sm:$0xff]   ;;  %1678 = vst.msk [vmem:[#allocation7 + $0x48] sm:$0xf] %vm1668_vm7, %v1648_v58 }
 0x266   : > { %1677 = vst.msk [vmem:[#allocation7 + $0x40] sm:$0xf] %vm1668_vm7, %v1646_v59  ;;  %10744 = vmatmul.mubr.msk.bf16.gmra.mxu0 %vm1964_vm10, %v11502_v60 }
 0x267   : > { %10747 = vmatprep.mubr.msk.bf16.mxu0 %vm14570_vm1, %v12400_v14 }
 0x268   : > { %v1758_v61 = vpop.permute.xlu1 %1757 }
 0x269   : > { %v1756_v62 = vpop.permute.xlu0 %1755  ;;  %1788 = vst.msk [vmem:[#allocation7 + $0x48] sm:$0xf] %vm1778_vm8, %v1758_v61  ;;  %v1793_v7 = vld [vmem:[#allocation7 + $0x60] sm:$0x7] }
 0x26a   : > { %1787 = vst.msk [vmem:[#allocation7 + $0x40] sm:$0xf] %vm1778_vm8, %v1756_v62 }
 0x26c   : > { %v1868_v63 = vpop.permute.xlu1 %1867 }
 0x26d   : > { %v1866_v0 = vpop.permute.xlu0 %1865  ;;  %1898 = vst.msk [vmem:[#allocation7 + $0x48] sm:$0xf] %vm1888_vm9, %v1868_v63 }
 0x26e   : > { %1897 = vst.msk [vmem:[#allocation7 + $0x40] sm:$0xf] %vm1888_vm9, %v1866_v0 }
 0x270   : > { %v1542_v2 = vpop.permute.xlu1 %1541 }
 0x271   : > { %v1540_v1 = vpop.permute.xlu0 %1539  ;;  %1570 = vst.msk [vmem:[#allocation7 + $0x58] sm:$0xf] %vm1558_vm6, %v1542_v2 }
 0x272   : > { %1569 = vst.msk [vmem:[#allocation7 + $0x50] sm:$0xf] %vm1558_vm6, %v1540_v1  ;;  %vm14557_vm6 = vcmask 61440  }
 0x274   : > { %v1652_v4 = vpop.permute.xlu1 %1651 }
 0x275   : > { %v1650_v3 = vpop.permute.xlu0 %1649  ;;  %v11503_v5 = vld [vmem:[#allocation7 + $0x40] ss:$8 sps:$4 sm:$0xff]   ;;  %1680 = vst.msk [vmem:[#allocation7 + $0x58] sm:$0xf] %vm1668_vm7, %v1652_v4 }
 0x276   : > { %1679 = vst.msk [vmem:[#allocation7 + $0x50] sm:$0xf] %vm1668_vm7, %v1650_v3  ;;  %10748 = vmatmul.mubr.msk.bf16.gmra.mxu0 %vm1964_vm10, %v11503_v5  ;;  %vm14567_vm7 = vcmask 1043456  }
 0x277   : > { %10751 = vmatprep.mubr.msk.bf16.mxu0 %vm14570_vm1, %v12400_v14 }
 0x278   : > { %v1760_v8 = vpop.permute.xlu1 %1759 }
 0x279   : > { %v1764_v6 = vpop.permute.xlu0 %1763  ;;  %1789 = vst.msk [vmem:[#allocation7 + $0x50] sm:$0xf] %vm1778_vm8, %v1760_v8 }
 0x27a   : > { %v1794_v9 = vsel %vm1792_vm0, %v1764_v6, %v1793_v7  ;;  %vm2997_vm0 = vcmask 326656  }
 0x27b   : > { %1795 = vst [vmem:[#allocation7 + $0x60] sm:$0x7] %v1794_v9 }
 0x27c   : > { %v1870_v11 = vpop.permute.xlu1 %1869 }
 0x27d   : > { %v1762_v10 = vpop.permute.xlu0 %1761  ;;  %1899 = vst.msk [vmem:[#allocation7 + $0x50] sm:$0xf] %vm1888_vm9, %v1870_v11 }
 0x27e   : > { %1790 = vst.msk [vmem:[#allocation7 + $0x58] sm:$0xf] %vm1778_vm8, %v1762_v10  ;;  %vm14564_vm8 = vcmask 60416  }
 0x280   : > { %v1874_v13 = vpop.permute.xlu1 %1873 }
 0x281   : > { %v1872_v12 = vpop.permute.xlu0 %1871 }
 0x282   : > { %1900 = vst.msk [vmem:[#allocation7 + $0x58] sm:$0xf] %vm1888_vm9, %v1872_v12  ;;  %v1903_v15 = vld [vmem:[#allocation7 + $0x60] sm:$0x7]  ;;  %vm14556_vm9 = vcmask 57344  }
 0x283   : > { %v1904_v16 = vsel %vm1902_vm3, %v1874_v13, %v1903_v15 }
 0x284   : > { %1905 = vst [vmem:[#allocation7 + $0x60] sm:$0x7] %v1904_v16 }
 0x289   : > { %v11504_v17 = vld [vmem:[#allocation7 + $0x50] ss:$8 sps:$4 sm:$0xff]  }
 0x28a   : > { %10752 = vmatmul.mubr.msk.bf16.gmra.mxu0 %vm1964_vm10, %v11504_v17 }
 0x28b   : > { %10755 = vmatprep.mubr.msk.bf16.mxu0 %vm14570_vm1, %v12400_v14  ;;  %v11505_v18 = vld [vmem:[#allocation7 + $0x60] ss:$0 sps:$4 sm:$0x77]  }
 0x292   : > { %10756 = vmatmul.mubr.msk.bf16.gmra.mxu0 %vm1964_vm10, %v11505_v18  ;;  %vm14559_vm10 = vsmask.f32 256 }
 0x293   : > { %10807 = vmatprep.mubr.msk.f32.mxu0 %vm14570_vm1, %v12400_v14  ;;  %vm13241_vm11 = vmand %vm14556_vm9, %vm14559_vm10 }
 0x294   : > { %vm13338_vm3 = vmand %vm2591_vm2, %vm14559_vm10  ;;  %vm2701_vm2 = vcmask 188544  }
 0x295   : > { %vm13357_vm9 = vmand %vm2701_vm2, %vm14559_vm10  ;;  %vm2811_vm2 = vcmask 254144  }
 0x2f4   : > { %v2024_v20 = vpop.f32.mrf.mxu0 }
 0x2f5   : > { %v2025_v45 = vadd.f32 %v2024_v20, %v1925_v41 }
 0x2f6   : > { %v10733_v21 = vpop.f32.mrf.mxu0 }
 0x2f7   : > { %v2080_v50 = vsel %vm14563_vm5, %v2025_v45, 0.0 }
 0x2f8   : > { %v2027_v22 = vpop.f32.mrf.mxu0 }
 0x2f9   : > { %v13086_v43 = vadd.f32 %v2027_v22, %v1925_v41 }
 0x2fa   : > { %v10734_v23 = vpop.f32.mrf.mxu0 }
 0x2fb   : > { %v2081_v48 = vsel %vm14563_vm5, %v13086_v43, 0.0 }
 0x2fc   : > { %v2082_v53 = vadd.f32 %v2081_v48, %v2080_v50 }
 0x304   : > { %v2032_v24 = vpop.f32.mrf.mxu0 }
 0x305   : > { %v13088_v46 = vadd.f32 %v2032_v24, %v1925_v41 }
 0x306   : > { %v10737_v25 = vpop.f32.mrf.mxu0 }
 0x307   : > { %v2083_v51 = vsel %vm14563_vm5, %v13088_v46, 0.0 }
 0x308   : > { %v2035_v26 = vpop.f32.mrf.mxu0  ;;  %v2084_v56 = vadd.f32 %v2083_v51, %v2082_v53 }
 0x309   : > { %v2036_v49 = vadd.f32 %v2035_v26, %v1925_v41 }
 0x30a   : > { %v10738_v27 = vpop.f32.mrf.mxu0 }
 0x30b   : > { %v2085_v54 = vsel %vm14563_vm5, %v2036_v49, 0.0 }
 0x30c   : > { %v2086_v59 = vadd.f32 %v2085_v54, %v2084_v56 }
 0x314   : > { %v2040_v28 = vpop.f32.mrf.mxu0 }
 0x315   : > { %v2041_v52 = vadd.f32 %v2040_v28, %v1925_v41 }
 0x316   : > { %v10741_v29 = vpop.f32.mrf.mxu0 }
 0x317   : > { %v2087_v57 = vsel %vm14563_vm5, %v2041_v52, 0.0 }
 0x318   : > { %v2043_v30 = vpop.f32.mrf.mxu0  ;;  %v2088_v62 = vadd.f32 %v2087_v57, %v2086_v59 }
 0x319   : > { %v2044_v55 = vadd.f32 %v2043_v30, %v1925_v41 }
 0x31a   : > { %v10742_v31 = vpop.f32.mrf.mxu0 }
 0x31b   : > { %v2089_v60 = vsel %vm14563_vm5, %v2044_v55, 0.0 }
 0x31c   : > { %v2090_v1 = vadd.f32 %v2089_v60, %v2088_v62 }
 0x326   : > { %v2048_v32 = vpop.f32.mrf.mxu0 }
 0x327   : > { %v2049_v58 = vadd.f32 %v2048_v32, %v1925_v41 }
 0x328   : > { %v10745_v33 = vpop.f32.mrf.mxu0 }
 0x329   : > { %v2091_v63 = vsel %vm14563_vm5, %v2049_v58, 0.0 }
 0x32a   : > { %v2051_v34 = vpop.f32.mrf.mxu0  ;;  %v2092_v4 = vadd.f32 %v2091_v63, %v2090_v1 }
 0x32b   : > { %v2052_v61 = vadd.f32 %v2051_v34, %v1925_v41 }
 0x32c   : > { %v10746_v36 = vpop.f32.mrf.mxu0 }
 0x32d   : > { %v2093_v2 = vsel %vm14563_vm5, %v2052_v61, 0.0 }
 0x32e   : > { %v2094_v8 = vadd.f32 %v2093_v2, %v2092_v4 }
 0x336   : > { %v2056_v40 = vpop.f32.mrf.mxu0 }
 0x337   : > { %v13099_v0 = vadd.f32 %v2056_v40, %v1925_v41 }
 0x338   : > { %v10749_v42 = vpop.f32.mrf.mxu0 }
 0x339   : > { %v2095_v6 = vsel %vm14563_vm5, %v13099_v0, 0.0 }
 0x33a   : > { %v2059_v44 = vpop.f32.mrf.mxu0  ;;  %v2096_v11 = vadd.f32 %v2095_v6, %v2094_v8 }
 0x33b   : > { %v13102_v3 = vadd.f32 %v2059_v44, %v1925_v41 }
 0x33c   : > { %v10750_v47 = vpop.f32.mrf.mxu0 }
 0x33d   : > { %v2097_v10 = vsel %vm14563_vm5, %v13102_v3, 0.0 }
 0x33e   : > { %v2098_v16 = vadd.f32 %v2097_v10, %v2096_v11 }
 0x34a   : > { %v2064_v5 = vpop.f32.mrf.mxu0 }
 0x34b   : > { %v13106_v7 = vadd.f32 %v2064_v5, %v1925_v41 }
 0x34c   : > { %v10753_v9 = vpop.f32.mrf.mxu0 }
 0x34d   : > { %v2099_v13 = vsel %vm14563_vm5, %v13106_v7, 0.0 }
 0x34e   : > { %v2067_v12 = vpop.f32.mrf.mxu0  ;;  %v2100_v20 = vadd.f32 %v2099_v13, %v2098_v16 }
 0x34f   : > { %v2068_v15 = vadd.f32 %v2067_v12, %v1925_v41 }
 0x350   : > { %v10754_v17 = vpop.f32.mrf.mxu0 }
 0x351   : > { %v2101_v18 = vsel %vm14563_vm5, %v2068_v15, 0.0 }
 0x352   : > { %v2072_v21 = vpop.f32.mrf.mxu0  ;;  %v2102_v23 = vadd.f32 %v2101_v18, %v2100_v20 }
 0x353   : > { %v2073_v22 = vadd.f32 %v2072_v21, %v1925_v41 }
 0x354   : > { %v10757_v24 = vpop.f32.mrf.mxu0 }
 0x355   : > { %v2104_v25 = vsel %vm14557_vm6, %v2073_v22, 0.0 }
 0x356   : > { %v2105_v26 = vadd.f32 %v2104_v25, %v2102_v23  ;;  %v2075_v27 = vpop.f32.mrf.mxu0 }
 0x358   : > { %v2106_v28 = vrot.slane %v2105_v26, 4  ;;  %v10758_v29 = vpop.f32.mrf.mxu0 }
 0x35a   : > { %v2107_v30 = vadd.f32 %v2106_v28, %v2105_v26 }
 0x35c   : > { %v2108_v31 = vrot.slane %v2107_v30, 2 }
 0x35e   : > { %v2109_v32 = vadd.f32 %v2108_v31, %v2107_v30 }
 0x360   : > { %v2110_v33 = vrot.slane %v2109_v32, 1 }
 0x362   : > { %v2111_v34 = vadd.f32 %v2110_v33, %v2109_v32 }
 0x364   : > { %10762 = vmatmul.mubr.msk.f32.vlgmr.msra.gmra.mxu1 %vm14563_vm5, %v2111_v34 }
 0x365   : > { %10765 = vmatpush3.msra.mxu1 %v13073_v19  ;;  %10766 = vmatprep.mubr.msk.f32.mxu1 %vm14570_vm1, %v12400_v14 }
 0x366   : > { %10769 = vmatprep.subr.bf16.mxu1 %v12400_v14 }
 0x424   : > { %v2181_v35 = vpop.f32.mrf.mxu1 }
 0x425   : > { %v2185_v36 = vmul.f32 0.0012376237, %v2181_v35 }
 0x426   : > { %v10763_v40 = vpop.f32.mrf.mxu1 }
 0x427   : > { %v2189_v41 = vrot.slane %v2185_v36, %v13080_v38 }
 0x429   : > { %v13120_v42 = vsub.f32 %v2025_v45, %v2189_v41  ;;  %v13123_v44 = vsub.f32 %v13086_v43, %v2189_v41  ;;  %v13126_v47 = vsub.f32 %v13088_v46, %v2189_v41  ;;  %v13128_v48 = vsub.f32 %v2036_v49, %v2189_v41 }
 0x42a   : > { %v13134_v51 = vsub.f32 %v2041_v52, %v2189_v41  ;;  %v13138_v53 = vsub.f32 %v2044_v55, %v2189_v41  ;;  %v13144_v56 = vsub.f32 %v2049_v58, %v2189_v41  ;;  %v2197_v60 = vsub.f32 %v2052_v61, %v2189_v41 }
 0x42b   : > { %v2203_v19 = vmul.f32 %v13120_v42, %v13120_v42  ;;  %v2204_v50 = vmul.f32 %v13123_v44, %v13123_v44  ;;  %v2205_v45 = vmul.f32 %v13126_v47, %v13126_v47  ;;  %v2206_v43 = vmul.f32 %v13128_v48, %v13128_v48 }
 0x42c   : > { %v2207_v57 = vmul.f32 %v13134_v51, %v13134_v51  ;;  %v2208_v55 = vmul.f32 %v13138_v53, %v13138_v53  ;;  %v13153_v1 = vsub.f32 %v13099_v0, %v2189_v41  ;;  %v2209_v58 = vmul.f32 %v13144_v56, %v13144_v56 }
 0x42d   : > { %v2216_v46 = vsel %vm14563_vm5, %v2203_v19, 0.0  ;;  %v2217_v49 = vsel %vm14563_vm5, %v2204_v50, 0.0  ;;  %v2219_v52 = vsel %vm14563_vm5, %v2205_v45, 0.0  ;;  %v2221_v62 = vsel %vm14563_vm5, %v2206_v43, 0.0 }
 0x42e   : > { %v2218_v54 = vadd.f32 %v2217_v49, %v2216_v46  ;;  %v2223_v2 = vsel %vm14563_vm5, %v2207_v57, 0.0  ;;  %v13159_v5 = vsub.f32 %v13102_v3, %v2189_v41  ;;  %v2210_v6 = vmul.f32 %v2197_v60, %v2197_v60 }
 0x42f   : > { %v2225_v61 = vsel %vm14563_vm5, %v2208_v55, 0.0  ;;  %v13163_v9 = vsub.f32 %v13106_v7, %v2189_v41  ;;  %v2211_v0 = vmul.f32 %v13153_v1, %v13153_v1  ;;  %v2227_v10 = vsel %vm14563_vm5, %v2209_v58, 0.0 }
 0x430   : > { %v2220_v59 = vadd.f32 %v2219_v52, %v2218_v54  ;;  %v13168_v12 = vsub.f32 %v2068_v15, %v2189_v41  ;;  %v2212_v13 = vmul.f32 %v13159_v5, %v13159_v5  ;;  %v2229_v3 = vsel %vm14563_vm5, %v2210_v6, 0.0 }
 0x431   : > { %v13173_v17 = vsub.f32 %v2073_v22, %v2189_v41  ;;  %v2213_v7 = vmul.f32 %v13163_v9, %v13163_v9  ;;  %v2231_v18 = vsel %vm14563_vm5, %v2211_v0, 0.0  ;;  %v13190_v45 = vsub.s32 1, %v13077_v37 }
 0x432   : > { %v2222_v63 = vadd.f32 %v2221_v62, %v2220_v59  ;;  %v2214_v21 = vmul.f32 %v13168_v12, %v13168_v12  ;;  %v2233_v15 = vsel %vm14563_vm5, %v2212_v13, 0.0  ;;  %v13193_v43 = vsub.s32 2, %v13077_v37 }
 0x433   : > { %v2215_v24 = vmul.f32 %v13173_v17, %v13173_v17  ;;  %v2235_v25 = vsel %vm14563_vm5, %v2213_v7, 0.0  ;;  %v2344_v49 = vrot.slane %v13082_v39, %v13190_v45 }
 0x434   : > { %v2224_v4 = vadd.f32 %v2223_v2, %v2222_v63  ;;  %v2237_v22 = vsel %vm14563_vm5, %v2214_v21, 0.0  ;;  %v2361_v57 = vrot.slane %v13082_v39, %v13193_v43 }
 0x435   : > { %v2239_v28 = vsel %vm14557_vm6, %v2215_v24, 0.0 }
 0x436   : > { %v2226_v8 = vadd.f32 %v2225_v61, %v2224_v4 }
 0x438   : > { %v2228_v11 = vadd.f32 %v2227_v10, %v2226_v8 }
 0x43a   : > { %v2230_v16 = vadd.f32 %v2229_v3, %v2228_v11 }
 0x43c   : > { %v2232_v20 = vadd.f32 %v2231_v18, %v2230_v16 }
 0x43e   : > { %v2234_v23 = vadd.f32 %v2233_v15, %v2232_v20 }
 0x440   : > { %v2236_v26 = vadd.f32 %v2235_v25, %v2234_v23 }
 0x442   : > { %v2238_v27 = vadd.f32 %v2237_v22, %v2236_v26 }
 0x444   : > { %v2240_v29 = vadd.f32 %v2239_v28, %v2238_v27 }
 0x446   : > { %v2241_v30 = vrot.slane %v2240_v29, 4 }
 0x448   : > { %v2242_v31 = vadd.f32 %v2241_v30, %v2240_v29 }
 0x44a   : > { %v2243_v32 = vrot.slane %v2242_v31, 2 }
 0x44c   : > { %v2244_v33 = vadd.f32 %v2243_v32, %v2242_v31 }
 0x44e   : > { %v2245_v34 = vrot.slane %v2244_v33, 1 }
 0x450   : > { %v2246_v35 = vadd.f32 %v2245_v34, %v2244_v33  ;;  %v11506_v33 = vld [vmem:[#allocation12 + $0x10] ss:$0 sps:$4 sm:$0xff]  }
 0x452   : > { %10767 = vmatmul.mubr.msk.f32.vlgmr.msra.gmra.mxu1 %vm14563_vm5, %v2246_v35 }
 0x453   : > { %10775 = vmatprep.mubr.msk.bf16.mxu1 %vm14570_vm1, %v12400_v14 }
 0x512   : > { %v2316_v36 = vpop.f32.mrf.mxu1 }
 0x513   : > { %v2320_v40 = vmul.f32 0.0012376237, %v2316_v36 }
 0x514   : > { %v10768_v41 = vpop.f32.mrf.mxu1 }
 0x515   : > { %v2321_v19 = vmax.f32 %v2320_v40, 0.0 }
 0x517   : > { %v2322_v50 = vadd.f32 1e-05, %v2321_v19 }
 0x519   : > { %11599 = vrsqrt.f32 %v2322_v50 }
 0x526   : > { %v11600_v46 = vpop.eup %11599 }
 0x527   : > { %v2327_v54 = vrot.slane %v11600_v46, %v13080_v38 }
 0x529   : > { %v2329_v52 = vmul.f32 %v2327_v54, %v13123_v44  ;;  %v2330_v59 = vmul.f32 %v2327_v54, %v13126_v47  ;;  %v2328_v55 = vmul.f32 %v2327_v54, %v13120_v42  ;;  %v2331_v62 = vmul.f32 %v2327_v54, %v13128_v48 }
 0x52a   : > { %v2332_v37 = vmul.f32 %v2327_v54, %v13134_v51  ;;  %v2333_v63 = vmul.f32 %v2327_v54, %v13138_v53  ;;  %v2334_v58 = vmul.f32 %v2327_v54, %v13144_v56  ;;  %v2335_v2 = vmul.f32 %v2327_v54, %v2197_v60 }
 0x52b   : > { %v2346_v4 = vmul.f32 %v2344_v49, %v2329_v52  ;;  %v2347_v6 = vmul.f32 %v2344_v49, %v2330_v59  ;;  %v2345_v61 = vmul.f32 %v2344_v49, %v2328_v55  ;;  %v2348_v8 = vmul.f32 %v2344_v49, %v2331_v62 }
 0x52c   : > { %v2349_v39 = vmul.f32 %v2344_v49, %v2332_v37  ;;  %v2350_v0 = vmul.f32 %v2344_v49, %v2333_v63  ;;  %v2351_v44 = vmul.f32 %v2344_v49, %v2334_v58  ;;  %v2352_v10 = vmul.f32 %v2344_v49, %v2335_v2 }
 0x52d   : > { %v2363_v47 = vadd.f32 %v2361_v57, %v2346_v4  ;;  %v2364_v11 = vadd.f32 %v2361_v57, %v2347_v6  ;;  %v2362_v42 = vadd.f32 %v2361_v57, %v2345_v61  ;;  %v2365_v13 = vadd.f32 %v2361_v57, %v2348_v8 }
 0x52e   : > { %v2366_v48 = vadd.f32 %v2361_v57, %v2349_v39  ;;  %v2367_v3 = vadd.f32 %v2361_v57, %v2350_v0  ;;  %v2368_v51 = vadd.f32 %v2361_v57, %v2351_v44  ;;  %v2369_v16 = vadd.f32 %v2361_v57, %v2352_v10  ;;  %v2483_v10 = vld [vmem:[#allocation7 + $0x60] sm:$0x1] }
 0x52f   : > { %v2376_v53 = vmax.f32 %v2363_v47, 0.0  ;;  %v2377_v7 = vmax.f32 %v2364_v11, 0.0  ;;  %v2375_v56 = vmax.f32 %v2362_v42, 0.0  ;;  %v2378_v60 = vmax.f32 %v2365_v13, 0.0 }
 0x530   : > { %v2379_v18 = vmax.f32 %v2366_v48, 0.0  ;;  %v2380_v20 = vmax.f32 %v2367_v3, 0.0  ;;  %v2381_v21 = vmax.f32 %v2368_v51, 0.0  ;;  %v2382_v15 = vmax.f32 %v2369_v16, 0.0 }
 0x531   : > { %2389 = vst.msk [vmem:[#allocation5 + $0x8] sm:$0xff] %vm14563_vm5, %v2376_v53  ;;  %2390 = vst.msk [vmem:[#allocation5 + $0x10] sm:$0xff] %vm14563_vm5, %v2377_v7  ;;  %v2340_v23 = vmul.f32 %v2327_v54, %v13173_v17  ;;  %v2336_v24 = vmul.f32 %v2327_v54, %v13153_v1  ;;  %v2337_v25 = vmul.f32 %v2327_v54, %v13159_v5  ;;  %v14663_v8 = vmov 0 }
 0x532   : > { %2388 = vst.msk [vmem:[#allocation5] sm:$0xff] %vm14563_vm5, %v2375_v56  ;;  %2391 = vst.msk [vmem:[#allocation5 + $0x18] sm:$0xff] %vm14563_vm5, %v2378_v60  ;;  %v2338_v26 = vmul.f32 %v2327_v54, %v13163_v9  ;;  %v2339_v22 = vmul.f32 %v2327_v54, %v13168_v12  ;;  %v3021_v12 = vsel %vm14567_vm7, %v11506_v33, 0  ;;  %v14664_v8 = vsel %vm13241_vm11, 4294967295, %v14663_v8 }
 0x533   : > { %2392 = vst.msk [vmem:[#allocation5 + $0x20] sm:$0xff] %vm14563_vm5, %v2379_v18  ;;  %2393 = vst.msk [vmem:[#allocation5 + $0x28] sm:$0xff] %vm14563_vm5, %v2380_v20  ;;  %v2357_v27 = vmul.f32 %v2344_v49, %v2340_v23  ;;  %v2353_v28 = vmul.f32 %v2344_v49, %v2336_v24  ;;  %v2354_v29 = vmul.f32 %v2344_v49, %v2337_v25  ;;  %10770 = vmatpush3.bf16.msra.mxu1 %v3021_v12  ;;  %v11507_v18 = vld [vmem:[#allocation12 + $0x8] sm:$0xff]   ;;  %vm14575_vm7 = vcmask 650752  }
 0x534   : > { %2394 = vst.msk [vmem:[#allocation5 + $0x30] sm:$0xff] %vm14563_vm5, %v2381_v21  ;;  %2395 = vst.msk [vmem:[#allocation5 + $0x38] sm:$0xff] %vm14563_vm5, %v2382_v15  ;;  %v2355_v17 = vmul.f32 %v2344_v49, %v2338_v26  ;;  %v2356_v30 = vmul.f32 %v2344_v49, %v2339_v22  ;;  %10771 = vmatprep.subr.bf16.mxu1 %v12400_v14 }
 0x535   : > { %v2374_v1 = vadd.f32 %v2361_v57, %v2357_v27  ;;  %v2370_v31 = vadd.f32 %v2361_v57, %v2353_v28  ;;  %v2371_v5 = vadd.f32 %v2361_v57, %v2354_v29  ;;  %v11508_v29 = vld [vmem:[#allocation12] sm:$0xff]  }
 0x536   : > { %v2372_v32 = vadd.f32 %v2361_v57, %v2355_v17  ;;  %v2373_v9 = vadd.f32 %v2361_v57, %v2356_v30 }
 0x537   : > { %v2387_v34 = vmax.f32 %v2374_v1, 0.0  ;;  %v2383_v35 = vmax.f32 %v2370_v31, 0.0  ;;  %v2384_v36 = vmax.f32 %v2371_v5, 0.0  ;;  %10772 = vmatpush3.bf16.msra.mxu1 %v11507_v18 }
 0x538   : > { %v2385_v40 = vmax.f32 %v2372_v32, 0.0  ;;  %v2487_v41 = vld [vmem:[#allocation5 + $0x9] sm:$0xff]  ;;  %v2386_v50 = vmax.f32 %v2373_v9, 0.0  ;;  %10773 = vmatprep.subr.bf16.mxu1 %v12400_v14 }
 0x539   : > { %v2486_v19 = vld [vmem:[#allocation5 + $0x1] sm:$0xff]  ;;  %v10280_v46 = vpack.c.bf16 %v2487_v41, %v2487_v41  ;;  %2400 = vst.msk [vmem:[#allocation5 + $0x60] sm:$0x1f] %vm14557_vm6, %v2387_v34  ;;  %v2597_v49 = vld [vmem:[#allocation5 + $0xa] sm:$0xff]  ;;  %v2598_v53 = vld [vmem:[#allocation5 + $0x12] sm:$0xff] }
 0x53a   : > { %v10279_v54 = vpack.c.bf16 %v2486_v19, %v2486_v19  ;;  %2396 = vst.msk [vmem:[#allocation5 + $0x40] sm:$0xff] %vm14563_vm5, %v2383_v35  ;;  %2397 = vst.msk [vmem:[#allocation5 + $0x48] sm:$0xff] %vm14563_vm5, %v2384_v36  ;;  %v2596_v57 = vld [vmem:[#allocation5 + $0x2] sm:$0xff]  ;;  %v10293_v52 = vpack.c.bf16 %v2597_v49, %v2597_v49  ;;  %v2707_v62 = vld [vmem:[#allocation5 + $0xb] sm:$0xff]  ;;  %v10294_v27 = vpack.c.bf16 %v2598_v53, %v2598_v53 }
 0x53b   : > { %2398 = vst.msk [vmem:[#allocation5 + $0x50] sm:$0xff] %vm14563_vm5, %v2385_v40  ;;  %2399 = vst.msk [vmem:[#allocation5 + $0x58] sm:$0xff] %vm14563_vm5, %v2386_v50  ;;  %2541 = vrot.lane.b32.xlu1 %v10280_v46, %s12403_s23  ;;  %v10292_v59 = vpack.c.bf16 %v2596_v57, %v2596_v57  ;;  %v8579_v55 = vld [vmem:[#allocation5 + $0x28] sm:$0xff]  ;;  %v8580_v63 = vld [vmem:[#allocation5 + $0x30] sm:$0xff]  ;;  %v10306_v4 = vpack.c.bf16 %v2707_v62, %v2707_v62  ;;  %10774 = vmatpush3.bf16.msra.mxu1 %v11508_v29 }
 0x53c   : > { %2539 = vrot.lane.b32.xlu0 %v10279_v54, %s12403_s23  ;;  %v2706_v37 = vld [vmem:[#allocation5 + $0x3] sm:$0xff]  ;;  %v13229_v58 = vpack.c.bf16 %v8579_v55, %v8579_v55  ;;  %v13233_v2 = vpack.c.bf16 %v8580_v63, %v8580_v63  ;;  %v2817_v39 = vld [vmem:[#allocation5 + $0xc] sm:$0xff]  ;;  %v2489_v13 = vld [vmem:[#allocation5 + $0x19] sm:$0xff]  ;;  %10817 = vmatprep.subr.bf16.mxu1 %v12400_v14 }
 0x53d   : > { %v10305_v6 = vpack.c.bf16 %v2706_v37, %v2706_v37  ;;  %v2816_v0 = vld [vmem:[#allocation5 + $0x4] sm:$0xff]  ;;  %v10319_v11 = vpack.c.bf16 %v2817_v39, %v2817_v39  ;;  %v2488_v48 = vld [vmem:[#allocation5 + $0x11] sm:$0xff]  ;;  %v10282_v3 = vpack.c.bf16 %v2489_v13, %v2489_v13  ;;  %v2599_v16 = vld [vmem:[#allocation5 + $0x1a] sm:$0xff] }
 0x53e   : > { %2473 = vst.msk [vmem:[#allocation7 + $0x28] sm:$0xf] %vm14564_vm8, %v13229_v58  ;;  %2474 = vst.msk [vmem:[#allocation7 + $0x30] sm:$0xf] %vm14564_vm8, %v13233_v2  ;;  %v10318_v42 = vpack.c.bf16 %v2816_v0, %v2816_v0  ;;  %v10281_v51 = vpack.c.bf16 %v2488_v48, %v2488_v48  ;;  %v2402_v7 = vld [vmem:[#allocation5 + $0x8] sm:$0xff]  ;;  %v2401_v60 = vld [vmem:[#allocation5] sm:$0xff]  ;;  %v10295_v22 = vpack.c.bf16 %v2599_v16, %v2599_v16 }
 0x53f   : > { %2651 = vrot.lane.b32.xlu1 %v10293_v52, %s12404_s1  ;;  %v10267_v56 = vpack.c.bf16 %v2402_v7, %v2402_v7  ;;  %v2404_v20 = vld [vmem:[#allocation5 + $0x18] sm:$0xff]  ;;  %v10266_v23 = vpack.c.bf16 %v2401_v60, %v2401_v60  ;;  %v2403_v25 = vld [vmem:[#allocation5 + $0x10] sm:$0xff]  ;;  %v2405_v26 = vld [vmem:[#allocation5 + $0x20] sm:$0xff] }
 0x540   : > { %2649 = vrot.lane.b32.xlu0 %v10292_v59, %s12404_s1  ;;  %v2413_v61 = vld [vmem:[#allocation5 + $0x60] sm:$0x1]  ;;  %v2708_v15 = vld [vmem:[#allocation5 + $0x13] sm:$0xff]  ;;  %v10269_v24 = vpack.c.bf16 %v2404_v20, %v2404_v20  ;;  %v10268_v28 = vpack.c.bf16 %v2403_v25, %v2403_v25  ;;  %v10270_v17 = vpack.c.bf16 %v2405_v26, %v2405_v26  ;;  %v2491_v54 = vld [vmem:[#allocation5 + $0x29] sm:$0xff] }
 0x541   : > { %v10278_v44 = vpack.c.bf16 %v2413_v61, %v2413_v61  ;;  %v2709_v21 = vld [vmem:[#allocation5 + $0x1b] sm:$0xff]  ;;  %2469 = vst.msk [vmem:[#allocation7 + $0x8] sm:$0xf] %vm14564_vm8, %v10267_v56  ;;  %2468 = vst.msk [vmem:[#allocation7] sm:$0xf] %vm14564_vm8, %v10266_v23  ;;  %v2410_v32 = vld [vmem:[#allocation5 + $0x48] sm:$0xff]  ;;  %v10307_v41 = vpack.c.bf16 %v2708_v15, %v2708_v15  ;;  %v10284_v57 = vpack.c.bf16 %v2491_v54, %v2491_v54 }
 0x542   : > { %v2408_v30 = vld [vmem:[#allocation5 + $0x38] sm:$0xff]  ;;  %v2409_v1 = vld [vmem:[#allocation5 + $0x40] sm:$0xff]  ;;  %2471 = vst.msk [vmem:[#allocation7 + $0x18] sm:$0xf] %vm14564_vm8, %v10269_v24  ;;  %v2411_v33 = vld [vmem:[#allocation5 + $0x50] sm:$0xff]  ;;  %v10275_v34 = vpack.c.bf16 %v2410_v32, %v2410_v32  ;;  %v10308_v40 = vpack.c.bf16 %v2709_v21, %v2709_v21 }
 0x543   : > { %2761 = vrot.lane.b32.xlu1 %v10306_v4, %s12405_s26  ;;  %v2484_v47 = vsel %vm13241_vm11, %v10278_v44, %v2483_v10  ;;  %v10273_v31 = vpack.c.bf16 %v2408_v30, %v2408_v30  ;;  %v10274_v5 = vpack.c.bf16 %v2409_v1, %v2409_v1  ;;  %v2412_v9 = vld [vmem:[#allocation5 + $0x58] sm:$0xff]  ;;  %2470 = vst.msk [vmem:[#allocation7 + $0x10] sm:$0xf] %vm14564_vm8, %v10268_v28  ;;  %2472 = vst.msk [vmem:[#allocation7 + $0x20] sm:$0xf] %vm14564_vm8, %v10270_v17  ;;  %v2490_v49 = vld [vmem:[#allocation5 + $0x21] sm:$0xff] }
 0x544   : > { %2759 = vrot.lane.b32.xlu0 %v10305_v6, %s12405_s26  ;;  %2485 = vst [vmem:[#allocation7 + $0x60] sm:$0x1] %v2484_v47  ;;  %v10277_v35 = vpack.c.bf16 %v2412_v9, %v2412_v9  ;;  %v10276_v36 = vpack.c.bf16 %v2411_v33, %v2411_v33  ;;  %2477 = vst.msk [vmem:[#allocation7 + $0x48] sm:$0xf] %vm14564_vm8, %v10275_v34  ;;  %v2819_v19 = vld [vmem:[#allocation5 + $0x1c] sm:$0xff]  ;;  %v2818_v50 = vld [vmem:[#allocation5 + $0x14] sm:$0xff]  ;;  %v10283_v52 = vpack.c.bf16 %v2490_v49, %v2490_v49 }
 0x545   : > { %2475 = vst.msk [vmem:[#allocation7 + $0x38] sm:$0xf] %vm14564_vm8, %v10273_v31  ;;  %2476 = vst.msk [vmem:[#allocation7 + $0x40] sm:$0xf] %vm14564_vm8, %v10274_v5  ;;  %v10321_v12 = vpack.c.bf16 %v2819_v19, %v2819_v19  ;;  %v10320_v46 = vpack.c.bf16 %v2818_v50, %v2818_v50  ;;  %v2601_v59 = vld [vmem:[#allocation5 + $0x2a] sm:$0xff]  ;;  %v2600_v55 = vld [vmem:[#allocation5 + $0x22] sm:$0xff] }
 0x546   : > { %2479 = vst.msk [vmem:[#allocation7 + $0x58] sm:$0xf] %vm14564_vm8, %v10277_v35  ;;  %2478 = vst.msk [vmem:[#allocation7 + $0x50] sm:$0xf] %vm14564_vm8, %v10276_v36  ;;  %v10297_v62 = vpack.c.bf16 %v2601_v59, %v2601_v59  ;;  %v10296_v37 = vpack.c.bf16 %v2600_v55, %v2600_v55  ;;  %v2711_v63 = vld [vmem:[#allocation5 + $0x2b] sm:$0xff]  ;;  %v2710_v4 = vld [vmem:[#allocation5 + $0x23] sm:$0xff] }
 0x547   : > { %2871 = vrot.lane.b32.xlu1 %v10319_v11, %s12406_s7  ;;  %v10310_v6 = vpack.c.bf16 %v2711_v63, %v2711_v63  ;;  %v10309_v61 = vpack.c.bf16 %v2710_v4, %v2710_v4  ;;  %v2821_v39 = vld [vmem:[#allocation5 + $0x2c] sm:$0xff]  ;;  %v2820_v0 = vld [vmem:[#allocation5 + $0x24] sm:$0xff]  ;;  %v2498_v11 = vld [vmem:[#allocation5 + $0x61] sm:$0x1]  ;;  %vm14576_vm8 = vcmask 388352  }
 0x548   : > { %2869 = vrot.lane.b32.xlu0 %v10318_v42, %s12406_s7  ;;  %v10323_v44 = vpack.c.bf16 %v2821_v39, %v2821_v39  ;;  %v10322_v10 = vpack.c.bf16 %v2820_v0, %v2820_v0  ;;  %v2492_v47 = vld [vmem:[#allocation5 + $0x31] sm:$0xff]  ;;  %v10291_v13 = vpack.c.bf16 %v2498_v11, %v2498_v11  ;;  %v2603_v7 = vld [vmem:[#allocation5 + $0x3a] sm:$0xff]  ;;  %v2604_v30 = vld [vmem:[#allocation5 + $0x42] sm:$0xff] }
 0x549   : > { %v10285_v42 = vpack.c.bf16 %v2492_v47, %v2492_v47  ;;  %v2602_v48 = vld [vmem:[#allocation5 + $0x32] sm:$0xff]  ;;  %v10299_v60 = vpack.c.bf16 %v2603_v7, %v2603_v7  ;;  %v2713_v20 = vld [vmem:[#allocation5 + $0x3b] sm:$0xff]  ;;  %v2605_v17 = vld [vmem:[#allocation5 + $0x4a] sm:$0xff]  ;;  %v10300_v31 = vpack.c.bf16 %v2604_v30, %v2604_v30 }
 0x54a   : > { %v2712_v53 = vld [vmem:[#allocation5 + $0x33] sm:$0xff]  ;;  %v10312_v15 = vpack.c.bf16 %v2713_v20, %v2713_v20  ;;  %v2494_v23 = vld [vmem:[#allocation5 + $0x41] sm:$0xff]  ;;  %v10301_v1 = vpack.c.bf16 %v2605_v17, %v2605_v17  ;;  %v2715_v5 = vld [vmem:[#allocation5 + $0x4b] sm:$0xff] }
 0x54b   : > { %2545 = vrot.lane.b32.xlu1 %v10282_v3, %s12403_s23  ;;  %v2493_v3 = vld [vmem:[#allocation5 + $0x39] sm:$0xff]  ;;  %v10311_v56 = vpack.c.bf16 %v2712_v53, %v2712_v53  ;;  %v10287_v25 = vpack.c.bf16 %v2494_v23, %v2494_v23  ;;  %v2714_v32 = vld [vmem:[#allocation5 + $0x43] sm:$0xff]  ;;  %v10314_v9 = vpack.c.bf16 %v2715_v5, %v2715_v5  ;;  %v2825_v34 = vld [vmem:[#allocation5 + $0x4c] sm:$0xff] }
 0x54c   : > { %2543 = vrot.lane.b32.xlu0 %v10281_v51, %s12403_s23  ;;  %v10298_v51 = vpack.c.bf16 %v2602_v48, %v2602_v48  ;;  %v10286_v16 = vpack.c.bf16 %v2493_v3, %v2493_v3  ;;  %v2822_v18 = vld [vmem:[#allocation5 + $0x34] sm:$0xff]  ;;  %v2823_v24 = vld [vmem:[#allocation5 + $0x3c] sm:$0xff]  ;;  %v10313_v33 = vpack.c.bf16 %v2714_v32, %v2714_v32  ;;  %v2824_v35 = vld [vmem:[#allocation5 + $0x44] sm:$0xff]  ;;  %v10327_v36 = vpack.c.bf16 %v2825_v34, %v2825_v34 }
 0x54d   : > { %v10324_v21 = vpack.c.bf16 %v2822_v18, %v2822_v18  ;;  %v10325_v26 = vpack.c.bf16 %v2823_v24, %v2823_v24  ;;  %v2496_v19 = vld [vmem:[#allocation5 + $0x51] sm:$0xff]  ;;  %v2718_v59 = vld [vmem:[#allocation5 + $0x63] sm:$0x1]  ;;  %v2717_v63 = vld [vmem:[#allocation5 + $0x5b] sm:$0xff]  ;;  %v14665_v32 = vmov 0 }
 0x54e   : > { %v2606_v54 = vld [vmem:[#allocation5 + $0x52] sm:$0xff]  ;;  %v2827_v39 = vld [vmem:[#allocation5 + $0x5c] sm:$0xff]  ;;  %v14666_v32 = vsel %vm13338_vm3, 4294967295, %v14665_v32  ;;  %vm13379_vm6 = vmand %vm2811_vm2, %vm14559_vm10 }
 0x54f   : > { %2655 = vrot.lane.b32.xlu1 %v10295_v22, %s12404_s1  ;;  %v2608_v22 = vld [vmem:[#allocation5 + $0x62] sm:$0x1] }
 0x550   : > { %2653 = vrot.lane.b32.xlu0 %v10294_v27, %s12404_s1  ;;  %v2495_v27 = vld [vmem:[#allocation5 + $0x49] sm:$0xff]  ;;  %v10304_v28 = vpack.c.bf16 %v2608_v22, %v2608_v22 }
 0x551   : > { %v10288_v29 = vpack.c.bf16 %v2495_v27, %v2495_v27 }
 0x553   : > { %2765 = vrot.lane.b32.xlu1 %v10308_v40, %s12405_s26  ;;  %v10326_v40 = vpack.c.bf16 %v2824_v35, %v2824_v35 }
 0x554   : > { %2763 = vrot.lane.b32.xlu0 %v10307_v41, %s12405_s26  ;;  %v2497_v41 = vld [vmem:[#allocation5 + $0x59] sm:$0xff] }
 0x555   : > { %v10290_v50 = vpack.c.bf16 %v2497_v41, %v2497_v41 }
 0x557   : > { %2875 = vrot.lane.b32.xlu1 %v10321_v12, %s12406_s7  ;;  %v10289_v12 = vpack.c.bf16 %v2496_v19, %v2496_v19 }
 0x558   : > { %2873 = vrot.lane.b32.xlu0 %v10320_v46, %s12406_s7  ;;  %v2607_v46 = vld [vmem:[#allocation5 + $0x5a] sm:$0xff] }
 0x559   : > { %v10303_v49 = vpack.c.bf16 %v2607_v46, %v2607_v46 }
 0x55b   : > { %2549 = vrot.lane.b32.xlu1 %v10284_v57, %s12403_s23  ;;  %v10302_v57 = vpack.c.bf16 %v2606_v54, %v2606_v54 }
 0x55c   : > { %2547 = vrot.lane.b32.xlu0 %v10283_v52, %s12403_s23  ;;  %v2716_v52 = vld [vmem:[#allocation5 + $0x53] sm:$0xff] }
 0x55d   : > { %v10315_v55 = vpack.c.bf16 %v2716_v52, %v2716_v52 }
 0x55f   : > { %2659 = vrot.lane.b32.xlu1 %v10297_v62, %s12404_s1  ;;  %v10317_v62 = vpack.c.bf16 %v2718_v59, %v2718_v59  ;;  %v14667_v59 = vmov 0 }
 0x560   : > { %2657 = vrot.lane.b32.xlu0 %v10296_v37, %s12404_s1  ;;  %v2826_v37 = vld [vmem:[#allocation5 + $0x54] sm:$0xff]  ;;  %v14668_v59 = vsel %vm13357_vm9, 4294967295, %v14667_v59 }
 0x561   : > { %v10328_v4 = vpack.c.bf16 %v2826_v37, %v2826_v37 }
 0x563   : > { %2769 = vrot.lane.b32.xlu1 %v10310_v6, %s12405_s26  ;;  %v10316_v6 = vpack.c.bf16 %v2717_v63, %v2717_v63 }
 0x564   : > { %2767 = vrot.lane.b32.xlu0 %v10309_v61, %s12405_s26  ;;  %v2828_v61 = vld [vmem:[#allocation5 + $0x64] sm:$0x1] }
 0x565   : > { %v10330_v0 = vpack.c.bf16 %v2828_v61, %v2828_v61 }
 0x567   : > { %2879 = vrot.lane.b32.xlu1 %v10323_v44, %s12406_s7  ;;  %v10329_v44 = vpack.c.bf16 %v2827_v39, %v2827_v39 }
 0x568   : > { %2877 = vrot.lane.b32.xlu0 %v10322_v10, %s12406_s7 }
 0x56b   : > { %2551 = vrot.lane.b32.xlu1 %v10285_v42, %s12403_s23 }
 0x56c   : > { %2563 = vrot.lane.b32.xlu0 %v10291_v13, %s12403_s23 }
 0x56f   : > { %2661 = vrot.lane.b32.xlu1 %v10298_v51, %s12404_s1 }
 0x570   : > { %2553 = vrot.lane.b32.xlu0 %v10286_v16, %s12403_s23 }
 0x573   : > { %2771 = vrot.lane.b32.xlu1 %v10311_v56, %s12405_s26 }
 0x574   : > { %2663 = vrot.lane.b32.xlu0 %v10299_v60, %s12404_s1 }
 0x577   : > { %2881 = vrot.lane.b32.xlu1 %v10324_v21, %s12406_s7 }
 0x578   : > { %2773 = vrot.lane.b32.xlu0 %v10312_v15, %s12405_s26 }
 0x57b   : > { %2555 = vrot.lane.b32.xlu1 %v10287_v25, %s12403_s23 }
 0x57c   : > { %2883 = vrot.lane.b32.xlu0 %v10325_v26, %s12406_s7 }
 0x57f   : > { %2673 = vrot.lane.b32.xlu1 %v10304_v28, %s12404_s1 }
 0x580   : > { %2557 = vrot.lane.b32.xlu0 %v10288_v29, %s12403_s23 }
 0x583   : > { %2667 = vrot.lane.b32.xlu1 %v10301_v1, %s12404_s1 }
 0x584   : > { %2665 = vrot.lane.b32.xlu0 %v10300_v31, %s12404_s1 }
 0x587   : > { %2777 = vrot.lane.b32.xlu1 %v10314_v9, %s12405_s26 }
 0x588   : > { %2775 = vrot.lane.b32.xlu0 %v10313_v33, %s12405_s26  ;;  %v2593_v33 = vld [vmem:[#allocation7 + $0x60] sm:$0x1] }
 0x58b   : > { %2887 = vrot.lane.b32.xlu1 %v10327_v36, %s12406_s7 }
 0x58c   : > { %2885 = vrot.lane.b32.xlu0 %v10326_v40, %s12406_s7 }
 0x58f   : > { %2561 = vrot.lane.b32.xlu1 %v10290_v50, %s12403_s23 }
 0x590   : > { %2559 = vrot.lane.b32.xlu0 %v10289_v12, %s12403_s23 }
 0x593   : > { %2671 = vrot.lane.b32.xlu1 %v10303_v49, %s12404_s1 }
 0x594   : > { %2669 = vrot.lane.b32.xlu0 %v10302_v57, %s12404_s1 }
 0x597   : > { %2779 = vrot.lane.b32.xlu1 %v10315_v55, %s12405_s26 }
 0x598   : > { %2783 = vrot.lane.b32.xlu0 %v10317_v62, %s12405_s26 }
 0x59b   : > { %2889 = vrot.lane.b32.xlu1 %v10328_v4, %s12406_s7 }
 0x59c   : > { %2781 = vrot.lane.b32.xlu0 %v10316_v6, %s12405_s26 }
 0x59f   : > { %2893 = vrot.lane.b32.xlu1 %v10330_v0, %s12406_s7 }
 0x5a0   : > { %2891 = vrot.lane.b32.xlu0 %v10329_v44, %s12406_s7 }
 0x5ad   : > { %v2542_v10 = vpop.permute.xlu1 %2541 }
 0x5ae   : > { %v2540_v47 = vpop.permute.xlu0 %2539  ;;  %2580 = vst.msk [vmem:[#allocation7 + $0x8] sm:$0xf] %vm14562_vm12, %v2542_v10 }
 0x5af   : > { %2579 = vst.msk [vmem:[#allocation7] sm:$0xf] %vm14562_vm12, %v2540_v47 }
 0x5b1   : > { %v2652_v11 = vpop.permute.xlu1 %2651 }
 0x5b2   : > { %v2650_v42 = vpop.permute.xlu0 %2649  ;;  %2690 = vst.msk [vmem:[#allocation7 + $0x8] sm:$0xf] %vm14558_vm13, %v2652_v11 }
 0x5b3   : > { %2689 = vst.msk [vmem:[#allocation7] sm:$0xf] %vm14558_vm13, %v2650_v42 }
 0x5b5   : > { %v2762_v13 = vpop.permute.xlu1 %2761 }
 0x5b6   : > { %v2760_v48 = vpop.permute.xlu0 %2759  ;;  %2800 = vst.msk [vmem:[#allocation7 + $0x8] sm:$0xf] %vm14561_vm14, %v2762_v13 }
 0x5b7   : > { %2799 = vst.msk [vmem:[#allocation7] sm:$0xf] %vm14561_vm14, %v2760_v48 }
 0x5b9   : > { %v2872_v3 = vpop.permute.xlu1 %2871 }
 0x5ba   : > { %v2870_v51 = vpop.permute.xlu0 %2869  ;;  %2910 = vst.msk [vmem:[#allocation7 + $0x8] sm:$0xf] %vm14560_vm15, %v2872_v3  ;;  %v14669_v3 = vmov 0 }
 0x5bb   : > { %2909 = vst.msk [vmem:[#allocation7] sm:$0xf] %vm14560_vm15, %v2870_v51  ;;  %v14670_v3 = vsel %vm13379_vm6, 4294967295, %v14669_v3 }
 0x5bd   : > { %v2546_v16 = vpop.permute.xlu1 %2545 }
 0x5be   : > { %v2544_v53 = vpop.permute.xlu0 %2543  ;;  %2582 = vst.msk [vmem:[#allocation7 + $0x18] sm:$0xf] %vm14562_vm12, %v2546_v16 }
 0x5bf   : > { %2581 = vst.msk [vmem:[#allocation7 + $0x10] sm:$0xf] %vm14562_vm12, %v2544_v53 }
 0x5c1   : > { %v2927_v7 = vld [vmem:[#allocation7 + $0x8] sm:$0xf]  ;;  %v2656_v60 = vpop.permute.xlu1 %2655 }
 0x5c2   : > { %v2926_v56 = vld [vmem:[#allocation7] sm:$0xf]  ;;  %v2654_v18 = vpop.permute.xlu0 %2653  ;;  %2692 = vst.msk [vmem:[#allocation7 + $0x18] sm:$0xf] %vm14558_vm13, %v2656_v60 }
 0x5c3   : > { %2691 = vst.msk [vmem:[#allocation7 + $0x10] sm:$0xf] %vm14558_vm13, %v2654_v18  ;;  %v9819_v20 = vcombine.low %v2926_v56, %v2927_v7  ;;  %v14671_v18 = vmov 0 }
 0x5c5   : > { %10776 = vmatmul.mubr.msk.bf16.vlgmr.msra.gmra.mxu1 %vm2997_vm0, %v9819_v20  ;;  %v2766_v21 = vpop.permute.xlu1 %2765 }
 0x5c6   : > { %v2764_v15 = vpop.permute.xlu0 %2763  ;;  %10779 = vmatprep.mubr.msk.bf16.mxu1 %vm14570_vm1, %v12400_v14  ;;  %2802 = vst.msk [vmem:[#allocation7 + $0x18] sm:$0xf] %vm14561_vm14, %v2766_v21 }
 0x5c7   : > { %2801 = vst.msk [vmem:[#allocation7 + $0x10] sm:$0xf] %vm14561_vm14, %v2764_v15 }
 0x5c9   : > { %v2876_v23 = vpop.permute.xlu1 %2875 }
 0x5ca   : > { %v2874_v24 = vpop.permute.xlu0 %2873  ;;  %2912 = vst.msk [vmem:[#allocation7 + $0x18] sm:$0xf] %vm14560_vm15, %v2876_v23 }
 0x5cb   : > { %2911 = vst.msk [vmem:[#allocation7 + $0x10] sm:$0xf] %vm14560_vm15, %v2874_v24 }
 0x5cd   : > { %v2550_v25 = vpop.permute.xlu1 %2549 }
 0x5ce   : > { %v2548_v26 = vpop.permute.xlu0 %2547  ;;  %2584 = vst.msk [vmem:[#allocation7 + $0x28] sm:$0xf] %vm14562_vm12, %v2550_v25 }
 0x5cf   : > { %2583 = vst.msk [vmem:[#allocation7 + $0x20] sm:$0xf] %vm14562_vm12, %v2548_v26  ;;  %v13404_v26 = vld [vmem:[#allocation43 + $0x8] sm:$0xff] }
 0x5d0   : > { %10804 = vmatpush3.msra.mxu0 %v13404_v26 }
 0x5d1   : > { %v2929_v22 = vld [vmem:[#allocation7 + $0x18] sm:$0xf]  ;;  %v2660_v28 = vpop.permute.xlu1 %2659  ;;  %10805 = vmatprep.subr.mxu0 %v12400_v14 }
 0x5d2   : > { %v2928_v27 = vld [vmem:[#allocation7 + $0x10] sm:$0xf]  ;;  %v2658_v29 = vpop.permute.xlu0 %2657  ;;  %2694 = vst.msk [vmem:[#allocation7 + $0x28] sm:$0xf] %vm14558_vm13, %v2660_v28 }
 0x5d3   : > { %2693 = vst.msk [vmem:[#allocation7 + $0x20] sm:$0xf] %vm14558_vm13, %v2658_v29  ;;  %v9820_v17 = vcombine.low %v2928_v27, %v2929_v22  ;;  %v13408_v22 = vld [vmem:[#allocation43] sm:$0xff] }
 0x5d4   : > { %10806 = vmatpush3.msra.mxu0 %v13408_v22 }
 0x5d5   : > { %10780 = vmatmul.mubr.msk.bf16.gmra.mxu1 %vm2997_vm0, %v9820_v17  ;;  %v2770_v30 = vpop.permute.xlu1 %2769  ;;  %10810 = vmatprep.subr.mxu0 %v12400_v14 }
 0x5d6   : > { %v2768_v1 = vpop.permute.xlu0 %2767  ;;  %10783 = vmatprep.mubr.msk.bf16.mxu1 %vm14570_vm1, %v12400_v14  ;;  %2804 = vst.msk [vmem:[#allocation7 + $0x28] sm:$0xf] %vm14561_vm14, %v2770_v30 }
 0x5d7   : > { %2803 = vst.msk [vmem:[#allocation7 + $0x20] sm:$0xf] %vm14561_vm14, %v2768_v1 }
 0x5d9   : > { %v2880_v31 = vpop.permute.xlu1 %2879 }
 0x5da   : > { %v2878_v5 = vpop.permute.xlu0 %2877  ;;  %2914 = vst.msk [vmem:[#allocation7 + $0x28] sm:$0xf] %vm14560_vm15, %v2880_v31 }
 0x5db   : > { %2913 = vst.msk [vmem:[#allocation7 + $0x20] sm:$0xf] %vm14560_vm15, %v2878_v5 }
 0x5dd   : > { %v2552_v9 = vpop.permute.xlu1 %2551 }
 0x5de   : > { %v2564_v34 = vpop.permute.xlu0 %2563  ;;  %2585 = vst.msk [vmem:[#allocation7 + $0x30] sm:$0xf] %vm14562_vm12, %v2552_v9 }
 0x5df   : > { %v2594_v35 = vsel %vm13338_vm3, %v2564_v34, %v2593_v33  ;;  %vm14717_vm3 = vcmask 654336  }
 0x5e0   : > { %2595 = vst [vmem:[#allocation7 + $0x60] sm:$0x1] %v2594_v35 }
 0x5e1   : > { %v2662_v40 = vpop.permute.xlu1 %2661  ;;  %v2931_v19 = vld [vmem:[#allocation7 + $0x28] sm:$0xf] }
 0x5e2   : > { %v2930_v36 = vld [vmem:[#allocation7 + $0x20] sm:$0xf]  ;;  %v2554_v41 = vpop.permute.xlu0 %2553  ;;  %2695 = vst.msk [vmem:[#allocation7 + $0x30] sm:$0xf] %vm14558_vm13, %v2662_v40 }
 0x5e3   : > { %2586 = vst.msk [vmem:[#allocation7 + $0x38] sm:$0xf] %vm14562_vm12, %v2554_v41  ;;  %v9821_v50 = vcombine.low %v2930_v36, %v2931_v19 }
 0x5e5   : > { %10784 = vmatmul.mubr.msk.bf16.gmra.mxu1 %vm2997_vm0, %v9821_v50  ;;  %v2772_v12 = vpop.permute.xlu1 %2771  ;;  %v13412_v50 = vld [vmem:[#allocation13] sm:$0x7] }
 0x5e6   : > { %v2664_v46 = vpop.permute.xlu0 %2663  ;;  %10787 = vmatprep.mubr.msk.bf16.mxu1 %vm14570_vm1, %v12400_v14  ;;  %2805 = vst.msk [vmem:[#allocation7 + $0x30] sm:$0xf] %vm14561_vm14, %v2772_v12 }
 0x5e7   : > { %2696 = vst.msk [vmem:[#allocation7 + $0x38] sm:$0xf] %vm14558_vm13, %v2664_v46  ;;  %v2703_v62 = vld [vmem:[#allocation7 + $0x60] sm:$0x1]  ;;  %v2948_v46 = vrot.slane %v13412_v50, %v13080_v38 }
 0x5e9   : > { %v2882_v54 = vpop.permute.xlu1 %2881 }
 0x5ea   : > { %v2774_v49 = vpop.permute.xlu0 %2773  ;;  %2915 = vst.msk [vmem:[#allocation7 + $0x30] sm:$0xf] %vm14560_vm15, %v2882_v54 }
 0x5eb   : > { %2806 = vst.msk [vmem:[#allocation7 + $0x38] sm:$0xf] %vm14561_vm14, %v2774_v49 }
 0x5ed   : > { %v2556_v57 = vpop.permute.xlu1 %2555 }
 0x5ee   : > { %v2884_v52 = vpop.permute.xlu0 %2883  ;;  %2587 = vst.msk [vmem:[#allocation7 + $0x40] sm:$0xf] %vm14562_vm12, %v2556_v57 }
 0x5ef   : > { %2916 = vst.msk [vmem:[#allocation7 + $0x38] sm:$0xf] %vm14560_vm15, %v2884_v52 }
 0x5f1   : > { %v2674_v55 = vpop.permute.xlu1 %2673 }
 0x5f2   : > { %v2558_v37 = vpop.permute.xlu0 %2557  ;;  %v2704_v63 = vsel %vm13357_vm9, %v2674_v55, %v2703_v62  ;;  %vm14707_vm9 = vcmask 388352  }
 0x5f3   : > { %2588 = vst.msk [vmem:[#allocation7 + $0x48] sm:$0xf] %vm14562_vm12, %v2558_v37  ;;  %2705 = vst [vmem:[#allocation7 + $0x60] sm:$0x1] %v2704_v63 }
 0x5f5   : > { %v2668_v4 = vpop.permute.xlu1 %2667 }
 0x5f6   : > { %v2666_v6 = vpop.permute.xlu0 %2665  ;;  %v11509_v61 = vld [vmem:[#allocation7 + $0x30] ss:$8 sps:$4 sm:$0xff]   ;;  %2698 = vst.msk [vmem:[#allocation7 + $0x48] sm:$0xf] %vm14558_vm13, %v2668_v4 }
 0x5f7   : > { %2697 = vst.msk [vmem:[#allocation7 + $0x40] sm:$0xf] %vm14558_vm13, %v2666_v6  ;;  %10788 = vmatmul.mubr.msk.bf16.gmra.mxu1 %vm2997_vm0, %v11509_v61 }
 0x5f8   : > { %10791 = vmatprep.mubr.msk.bf16.mxu1 %vm14570_vm1, %v12400_v14 }
 0x5f9   : > { %v2778_v39 = vpop.permute.xlu1 %2777 }
 0x5fa   : > { %v2776_v0 = vpop.permute.xlu0 %2775  ;;  %2808 = vst.msk [vmem:[#allocation7 + $0x48] sm:$0xf] %vm14561_vm14, %v2778_v39  ;;  %v2813_v16 = vld [vmem:[#allocation7 + $0x60] sm:$0x1] }
 0x5fb   : > { %2807 = vst.msk [vmem:[#allocation7 + $0x40] sm:$0xf] %vm14561_vm14, %v2776_v0 }
 0x5fd   : > { %v2888_v44 = vpop.permute.xlu1 %2887 }
 0x5fe   : > { %v2886_v10 = vpop.permute.xlu0 %2885  ;;  %2918 = vst.msk [vmem:[#allocation7 + $0x48] sm:$0xf] %vm14560_vm15, %v2888_v44 }
 0x5ff   : > { %2917 = vst.msk [vmem:[#allocation7 + $0x40] sm:$0xf] %vm14560_vm15, %v2886_v10 }
 0x601   : > { %v2562_v47 = vpop.permute.xlu1 %2561 }
 0x602   : > { %v2560_v11 = vpop.permute.xlu0 %2559  ;;  %2590 = vst.msk [vmem:[#allocation7 + $0x58] sm:$0xf] %vm14562_vm12, %v2562_v47 }
 0x603   : > { %2589 = vst.msk [vmem:[#allocation7 + $0x50] sm:$0xf] %vm14562_vm12, %v2560_v11  ;;  %vm14577_vm12 = vcmask 257152  }
 0x605   : > { %v2672_v42 = vpop.permute.xlu1 %2671 }
 0x606   : > { %v2670_v13 = vpop.permute.xlu0 %2669  ;;  %v11510_v48 = vld [vmem:[#allocation7 + $0x40] ss:$8 sps:$4 sm:$0xff]   ;;  %2700 = vst.msk [vmem:[#allocation7 + $0x58] sm:$0xf] %vm14558_vm13, %v2672_v42 }
 0x607   : > { %2699 = vst.msk [vmem:[#allocation7 + $0x50] sm:$0xf] %vm14558_vm13, %v2670_v13  ;;  %10792 = vmatmul.mubr.msk.bf16.gmra.mxu1 %vm2997_vm0, %v11510_v48  ;;  %vm2921_vm13 = vcmask 319744  }
 0x608   : > { %10795 = vmatprep.mubr.msk.bf16.mxu1 %vm14570_vm1, %v12400_v14  ;;  %vm13391_vm2 = vmand %vm2921_vm13, %vm14559_vm10  ;;  %vm14569_vm13 = vcmask 130048   ;;  %vm14573_vm10 = vsmask.f32 3328 }
 0x609   : > { %v2780_v51 = vpop.permute.xlu1 %2779  ;;  %v14672_v18 = vsel %vm13391_vm2, 4294967295, %v14671_v18  ;;  %vm13610_vm5 = vmand %vm14577_vm12, %vm14573_vm10 }
 0x60a   : > { %v2784_v53 = vpop.permute.xlu0 %2783  ;;  %2809 = vst.msk [vmem:[#allocation7 + $0x50] sm:$0xf] %vm14561_vm14, %v2780_v51 }
 0x60b   : > { %v2814_v7 = vsel %vm13379_vm6, %v2784_v53, %v2813_v16 }
 0x60c   : > { %2815 = vst [vmem:[#allocation7 + $0x60] sm:$0x1] %v2814_v7 }
 0x60d   : > { %v2890_v56 = vpop.permute.xlu1 %2889 }
 0x60e   : > { %v2782_v60 = vpop.permute.xlu0 %2781  ;;  %2919 = vst.msk [vmem:[#allocation7 + $0x50] sm:$0xf] %vm14560_vm15, %v2890_v56 }
 0x60f   : > { %2810 = vst.msk [vmem:[#allocation7 + $0x58] sm:$0xf] %vm14561_vm14, %v2782_v60 }
 0x611   : > { %v2894_v20 = vpop.permute.xlu1 %2893 }
 0x612   : > { %v2892_v21 = vpop.permute.xlu0 %2891 }
 0x613   : > { %v2923_v15 = vld [vmem:[#allocation7 + $0x60] sm:$0x1]  ;;  %2920 = vst.msk [vmem:[#allocation7 + $0x58] sm:$0xf] %vm14560_vm15, %v2892_v21  ;;  %vm14568_vm15 = vcmask 125952  }
 0x614   : > { %v2924_v23 = vsel %vm13391_vm2, %v2894_v20, %v2923_v15  ;;  %vm13572_vm14 = vmand %vm14568_vm15, %vm14573_vm10  ;;  %vm14580_vm2 = vcmask 129024  }
 0x615   : > { %2925 = vst [vmem:[#allocation7 + $0x60] sm:$0x1] %v2924_v23 }
 0x61a   : > { %v11511_v24 = vld [vmem:[#allocation7 + $0x50] ss:$8 sps:$4 sm:$0xff]  }
 0x61b   : > { %10796 = vmatmul.mubr.msk.bf16.gmra.mxu1 %vm2997_vm0, %v11511_v24 }
 0x61c   : > { %10799 = vmatprep.mubr.msk.bf16.mxu1 %vm14570_vm1, %v12400_v14  ;;  %v11512_v25 = vld [vmem:[#allocation7 + $0x60] ss:$0 sps:$4 sm:$0x11]  }
 0x623   : > { %10800 = vmatmul.mubr.msk.bf16.gmra.mxu1 %vm2997_vm0, %v11512_v25  ;;  %vm14565_vm0 = vcmask 122880  }
 0x624   : > { %10827 = vmatprep.mubr.msk.bf16.mxu1 %vm14570_vm1, %v12400_v14 }
 0x685   : > { %v3057_v27 = vpop.f32.mrf.mxu1 }
 0x686   : > { %v13418_v52 = vadd.f32 %v3057_v27, %v2948_v46 }
 0x687   : > { %v10777_v28 = vpop.f32.mrf.mxu1 }
 0x688   : > { %v3114_v4 = vsel %vm14569_vm13, %v13418_v52, 0.0 }
 0x689   : > { %v3060_v29 = vpop.f32.mrf.mxu1 }
 0x68a   : > { %v13416_v49 = vadd.f32 %v3060_v29, %v2948_v46 }
 0x68b   : > { %v10778_v17 = vpop.f32.mrf.mxu1 }
 0x68c   : > { %v3115_v37 = vsel %vm14569_vm13, %v13416_v49, 0.0 }
 0x68d   : > { %v3116_v39 = vadd.f32 %v3115_v37, %v3114_v4 }
 0x695   : > { %v3065_v30 = vpop.f32.mrf.mxu1 }
 0x696   : > { %v13420_v55 = vadd.f32 %v3065_v30, %v2948_v46 }
 0x697   : > { %v10781_v1 = vpop.f32.mrf.mxu1 }
 0x698   : > { %v3117_v6 = vsel %vm14569_vm13, %v13420_v55, 0.0 }
 0x699   : > { %v3068_v31 = vpop.f32.mrf.mxu1  ;;  %v3118_v10 = vadd.f32 %v3117_v6, %v3116_v39 }
 0x69a   : > { %v3069_v63 = vadd.f32 %v3068_v31, %v2948_v46 }
 0x69b   : > { %v10782_v5 = vpop.f32.mrf.mxu1 }
 0x69c   : > { %v3119_v0 = vsel %vm14569_vm13, %v3069_v63, 0.0 }
 0x69d   : > { %v3120_v42 = vadd.f32 %v3119_v0, %v3118_v10 }
 0x6a5   : > { %v3073_v9 = vpop.f32.mrf.mxu1 }
 0x6a6   : > { %v3074_v61 = vadd.f32 %v3073_v9, %v2948_v46 }
 0x6a7   : > { %v10785_v33 = vpop.f32.mrf.mxu1 }
 0x6a8   : > { %v3121_v47 = vsel %vm14569_vm13, %v3074_v61, 0.0 }
 0x6a9   : > { %v3076_v34 = vpop.f32.mrf.mxu1  ;;  %v3122_v51 = vadd.f32 %v3121_v47, %v3120_v42 }
 0x6aa   : > { %v3077_v44 = vadd.f32 %v3076_v34, %v2948_v46 }
 0x6ab   : > { %v10786_v35 = vpop.f32.mrf.mxu1 }
 0x6ac   : > { %v3123_v13 = vsel %vm14569_vm13, %v3077_v44, 0.0 }
 0x6ad   : > { %v3124_v7 = vadd.f32 %v3123_v13, %v3122_v51 }
 0x6b7   : > { %v3081_v36 = vpop.f32.mrf.mxu1 }
 0x6b8   : > { %v13430_v11 = vadd.f32 %v3081_v36, %v2948_v46 }
 0x6b9   : > { %v10789_v40 = vpop.f32.mrf.mxu1 }
 0x6ba   : > { %v3125_v16 = vsel %vm14569_vm13, %v13430_v11, 0.0 }
 0x6bb   : > { %v3084_v41 = vpop.f32.mrf.mxu1  ;;  %v3126_v20 = vadd.f32 %v3125_v16, %v3124_v7 }
 0x6bc   : > { %v13433_v48 = vadd.f32 %v3084_v41, %v2948_v46 }
 0x6bd   : > { %v10790_v19 = vpop.f32.mrf.mxu1 }
 0x6be   : > { %v3127_v56 = vsel %vm14569_vm13, %v13433_v48, 0.0 }
 0x6bf   : > { %v3128_v24 = vadd.f32 %v3127_v56, %v3126_v20 }
 0x6c7   : > { %v3089_v12 = vpop.f32.mrf.mxu1 }
 0x6c8   : > { %v13437_v53 = vadd.f32 %v3089_v12, %v2948_v46 }
 0x6c9   : > { %v10793_v54 = vpop.f32.mrf.mxu1 }
 0x6ca   : > { %v3129_v15 = vsel %vm14569_vm13, %v13437_v53, 0.0 }
 0x6cb   : > { %v3092_v57 = vpop.f32.mrf.mxu1  ;;  %v3130_v28 = vadd.f32 %v3129_v15, %v3128_v24 }
 0x6cc   : > { %v13441_v60 = vadd.f32 %v3092_v57, %v2948_v46 }
 0x6cd   : > { %v10794_v62 = vpop.f32.mrf.mxu1 }
 0x6ce   : > { %v3131_v27 = vsel %vm14569_vm13, %v13441_v60, 0.0 }
 0x6cf   : > { %v3132_v1 = vadd.f32 %v3131_v27, %v3130_v28 }
 0x6db   : > { %v3097_v21 = vpop.f32.mrf.mxu1 }
 0x6dc   : > { %v13445_v23 = vadd.f32 %v3097_v21, %v2948_v46 }
 0x6dd   : > { %v10797_v25 = vpop.f32.mrf.mxu1 }
 0x6de   : > { %v3133_v17 = vsel %vm14569_vm13, %v13445_v23, 0.0 }
 0x6df   : > { %v3100_v29 = vpop.f32.mrf.mxu1  ;;  %v3134_v9 = vadd.f32 %v3133_v17, %v3132_v1 }
 0x6e0   : > { %v13451_v30 = vadd.f32 %v3100_v29, %v2948_v46 }
 0x6e1   : > { %v10798_v31 = vpop.f32.mrf.mxu1 }
 0x6e2   : > { %v3135_v5 = vsel %vm14569_vm13, %v13451_v30, 0.0 }
 0x6e3   : > { %v3105_v33 = vpop.f32.mrf.mxu1  ;;  %v3136_v35 = vadd.f32 %v3135_v5, %v3134_v9 }
 0x6e4   : > { %v3106_v34 = vadd.f32 %v3105_v33, %v2948_v46 }
 0x6e5   : > { %v10801_v36 = vpop.f32.mrf.mxu1 }
 0x6e6   : > { %v3138_v40 = vsel %vm14565_vm0, %v3106_v34, 0.0 }
 0x6e7   : > { %v3139_v41 = vadd.f32 %v3138_v40, %v3136_v35  ;;  %v3108_v19 = vpop.f32.mrf.mxu1 }
 0x6e9   : > { %v3140_v12 = vrot.slane %v3139_v41, 4  ;;  %v10802_v54 = vpop.f32.mrf.mxu1 }
 0x6eb   : > { %v3141_v57 = vadd.f32 %v3140_v12, %v3139_v41 }
 0x6ed   : > { %v3142_v62 = vrot.slane %v3141_v57, 2 }
 0x6ef   : > { %v3143_v37 = vadd.f32 %v3142_v62, %v3141_v57 }
 0x6f1   : > { %v3144_v4 = vrot.slane %v3143_v37, 1 }
 0x6f3   : > { %v3145_v6 = vadd.f32 %v3144_v4, %v3143_v37 }
 0x6f5   : > { %10808 = vmatmul.mubr.msk.f32.vlgmr.msra.gmra.mxu0 %vm14569_vm13, %v3145_v6 }
 0x6f6   : > { %10811 = vmatpush3.msra.mxu0 %v13404_v26  ;;  %10814 = vmatprep.mubr.msk.f32.mxu0 %vm14570_vm1, %v12400_v14 }
 0x6f7   : > { %10812 = vmatprep.subr.mxu0 %v12400_v14 }
 0x6f8   : > { %10813 = vmatpush3.msra.mxu0 %v13408_v22 }
 0x6f9   : > { %10839 = vmatprep.subr.mxu0 %v12400_v14 }
 0x7b5   : > { %v3215_v46 = vpop.f32.mrf.mxu0 }
 0x7b6   : > { %v3219_v39 = vmul.f32 0.0012886598, %v3215_v46 }
 0x7b7   : > { %v10809_v0 = vpop.f32.mrf.mxu0 }
 0x7b8   : > { %v3223_v10 = vrot.slane %v3219_v39, %v13080_v38 }
 0x7ba   : > { %v13465_v47 = vsub.f32 %v13418_v52, %v3223_v10  ;;  %v13468_v42 = vsub.f32 %v13416_v49, %v3223_v10  ;;  %v13471_v13 = vsub.f32 %v13420_v55, %v3223_v10  ;;  %v13473_v51 = vsub.f32 %v3069_v63, %v3223_v10 }
 0x7bb   : > { %v13479_v56 = vsub.f32 %v3074_v61, %v3223_v10  ;;  %v13483_v20 = vsub.f32 %v3077_v44, %v3223_v10  ;;  %v13490_v15 = vsub.f32 %v13430_v11, %v3223_v10  ;;  %v13496_v44 = vsub.f32 %v13433_v48, %v3223_v10 }
 0x7bc   : > { %v3237_v16 = vmul.f32 %v13465_v47, %v13465_v47  ;;  %v3238_v7 = vmul.f32 %v13468_v42, %v13468_v42  ;;  %v3239_v52 = vmul.f32 %v13471_v13, %v13471_v13  ;;  %v3240_v49 = vmul.f32 %v13473_v51, %v13473_v51 }
 0x7bd   : > { %v3241_v61 = vmul.f32 %v13479_v56, %v13479_v56  ;;  %v3242_v27 = vmul.f32 %v13483_v20, %v13483_v20  ;;  %v13502_v17 = vsub.f32 %v13437_v53, %v3223_v10  ;;  %v3243_v11 = vmul.f32 %v13490_v15, %v13490_v15 }
 0x7be   : > { %v3250_v55 = vsel %vm14569_vm13, %v3237_v16, 0.0  ;;  %v3251_v63 = vsel %vm14569_vm13, %v3238_v7, 0.0  ;;  %v3253_v24 = vsel %vm14569_vm13, %v3239_v52, 0.0  ;;  %v3255_v28 = vsel %vm14569_vm13, %v3240_v49, 0.0 }
 0x7bf   : > { %v3252_v21 = vadd.f32 %v3251_v63, %v3250_v55  ;;  %v3257_v1 = vsel %vm14569_vm13, %v3241_v61, 0.0  ;;  %v13508_v5 = vsub.f32 %v13441_v60, %v3223_v10  ;;  %v3244_v48 = vmul.f32 %v13496_v44, %v13496_v44  ;;  %v11513_v61 = vld [vmem:[#allocation15 + $0x20] sm:$0xff]  }
 0x7c0   : > { %v3259_v9 = vsel %vm14569_vm13, %v3242_v27, 0.0  ;;  %v3234_v35 = vsub.f32 %v13445_v23, %v3223_v10  ;;  %v3245_v53 = vmul.f32 %v13502_v17, %v13502_v17  ;;  %v3261_v36 = vsel %vm14569_vm13, %v3243_v11, 0.0  ;;  %10818 = vmatpush3.bf16.msra.mxu1 %v11513_v61 }
 0x7c1   : > { %v3254_v25 = vadd.f32 %v3253_v24, %v3252_v21  ;;  %v3235_v41 = vsub.f32 %v13451_v30, %v3223_v10  ;;  %v3246_v60 = vmul.f32 %v13508_v5, %v13508_v5  ;;  %v3263_v19 = vsel %vm14569_vm13, %v3244_v48, 0.0  ;;  %v11514_v24 = vld [vmem:[#allocation15 + $0x18] sm:$0xff]   ;;  %10819 = vmatprep.subr.bf16.mxu1 %v12400_v14 }
 0x7c2   : > { %v13521_v54 = vsub.f32 %v3106_v34, %v3223_v10  ;;  %v3247_v57 = vmul.f32 %v3234_v35, %v3234_v35  ;;  %v3265_v62 = vsel %vm14569_vm13, %v3245_v53, 0.0 }
 0x7c3   : > { %v3256_v29 = vadd.f32 %v3255_v28, %v3254_v25  ;;  %v3248_v37 = vmul.f32 %v3235_v41, %v3235_v41  ;;  %v3267_v4 = vsel %vm14569_vm13, %v3246_v60, 0.0 }
 0x7c4   : > { %v3249_v46 = vmul.f32 %v13521_v54, %v13521_v54  ;;  %v3269_v30 = vsel %vm14569_vm13, %v3247_v57, 0.0  ;;  %10820 = vmatpush3.bf16.msra.mxu1 %v11514_v24 }
 0x7c5   : > { %v3258_v31 = vadd.f32 %v3257_v1, %v3256_v29  ;;  %v3271_v0 = vsel %vm14569_vm13, %v3248_v37, 0.0  ;;  %10821 = vmatprep.subr.bf16.mxu1 %v12400_v14 }
 0x7c6   : > { %v3273_v34 = vsel %vm14565_vm0, %v3249_v46, 0.0 }
 0x7c7   : > { %v3260_v33 = vadd.f32 %v3259_v9, %v3258_v31  ;;  %v3378_v31 = vrot.slane %v13412_v50, %v13190_v45  ;;  %v3395_v9 = vrot.slane %v13412_v50, %v13193_v43 }
 0x7c9   : > { %v3262_v40 = vadd.f32 %v3261_v36, %v3260_v33 }
 0x7cb   : > { %v3264_v12 = vadd.f32 %v3263_v19, %v3262_v40 }
 0x7cd   : > { %v3266_v23 = vadd.f32 %v3265_v62, %v3264_v12 }
 0x7cf   : > { %v3268_v6 = vadd.f32 %v3267_v4, %v3266_v23 }
 0x7d1   : > { %v3270_v39 = vadd.f32 %v3269_v30, %v3268_v6 }
 0x7d3   : > { %v3272_v16 = vadd.f32 %v3271_v0, %v3270_v39 }
 0x7d5   : > { %v3274_v10 = vadd.f32 %v3273_v34, %v3272_v16 }
 0x7d7   : > { %v3275_v7 = vrot.slane %v3274_v10, 4 }
 0x7d9   : > { %v3276_v52 = vadd.f32 %v3275_v7, %v3274_v10 }
 0x7db   : > { %v3277_v49 = vrot.slane %v3276_v52, 2 }
 0x7dd   : > { %v3278_v55 = vadd.f32 %v3277_v49, %v3276_v52 }
 0x7df   : > { %v3279_v63 = vrot.slane %v3278_v55, 1 }
 0x7e1   : > { %v3280_v21 = vadd.f32 %v3279_v63, %v3278_v55 }
 0x7e3   : > { %10815 = vmatmul.mubr.msk.f32.vlgmr.msra.gmra.mxu0 %vm14569_vm13, %v3280_v21 }
 0x7e4   : > { %10840 = vmatpush3.msra.mxu0 %v13404_v26  ;;  %10843 = vmatprep.mubr.msk.f32.mxu0 %vm14570_vm1, %v12400_v14 }
 0x7e5   : > { %10841 = vmatprep.subr.mxu0 %v12400_v14 }
 0x7e6   : > { %10842 = vmatpush3.msra.mxu0 %v13408_v22 }
 0x7e7   : > { %10846 = vmatprep.subr.mxu0 %v12400_v14 }
 0x8a3   : > { %v3350_v25 = vpop.f32.mrf.mxu0 }
 0x8a4   : > { %v3354_v27 = vmul.f32 0.0012886598, %v3350_v25 }
 0x8a5   : > { %v10816_v28 = vpop.f32.mrf.mxu0 }
 0x8a6   : > { %v3355_v29 = vmax.f32 %v3354_v27, 0.0 }
 0x8a8   : > { %v3356_v11 = vadd.f32 1e-05, %v3355_v29 }
 0x8aa   : > { %11601 = vrsqrt.f32 %v3356_v11 }
 0x8b7   : > { %v11602_v1 = vpop.eup %11601 }
 0x8b8   : > { %v3361_v48 = vrot.slane %v11602_v1, %v13080_v38 }
 0x8ba   : > { %v3372_v33 = vmul.f32 %v3361_v48, %v3234_v35  ;;  %v3373_v53 = vmul.f32 %v3361_v48, %v3235_v41  ;;  %v3362_v36 = vmul.f32 %v3361_v48, %v13465_v47  ;;  %v3363_v40 = vmul.f32 %v3361_v48, %v13468_v42 }
 0x8bb   : > { %v3364_v60 = vmul.f32 %v3361_v48, %v13471_v13  ;;  %v3365_v19 = vmul.f32 %v3361_v48, %v13473_v51  ;;  %v3366_v12 = vmul.f32 %v3361_v48, %v13479_v56  ;;  %v3367_v57 = vmul.f32 %v3361_v48, %v13483_v20 }
 0x8bc   : > { %v3389_v62 = vmul.f32 %v3378_v31, %v3372_v33  ;;  %v3390_v23 = vmul.f32 %v3378_v31, %v3373_v53  ;;  %v3379_v37 = vmul.f32 %v3378_v31, %v3362_v36  ;;  %v3380_v4 = vmul.f32 %v3378_v31, %v3363_v40 }
 0x8bd   : > { %v3381_v6 = vmul.f32 %v3378_v31, %v3364_v60  ;;  %v3382_v50 = vmul.f32 %v3378_v31, %v3365_v19  ;;  %v3383_v35 = vmul.f32 %v3378_v31, %v3366_v12  ;;  %v3384_v41 = vmul.f32 %v3378_v31, %v3367_v57 }
 0x8be   : > { %v3406_v46 = vadd.f32 %v3395_v9, %v3389_v62  ;;  %v3407_v47 = vadd.f32 %v3395_v9, %v3390_v23  ;;  %v3396_v30 = vadd.f32 %v3395_v9, %v3379_v37  ;;  %v3397_v42 = vadd.f32 %v3395_v9, %v3380_v4  ;;  %v6807_v4 = vld [vmem:[#allocation33] sm:$0x7] }
 0x8bf   : > { %v3398_v39 = vadd.f32 %v3395_v9, %v3381_v6  ;;  %v3399_v13 = vadd.f32 %v3395_v9, %v3382_v50  ;;  %v3400_v0 = vadd.f32 %v3395_v9, %v3383_v35  ;;  %v3401_v51 = vadd.f32 %v3395_v9, %v3384_v41 }
 0x8c0   : > { %v3419_v16 = vmax.f32 %v3406_v46, 0.0  ;;  %v3420_v56 = vmax.f32 %v3407_v47, 0.0  ;;  %v3409_v34 = vmax.f32 %v3396_v30, 0.0  ;;  %v3410_v20 = vmax.f32 %v3397_v42, 0.0  ;;  %v3479_v42 = vld [vmem:[#allocation7 + $0x28] sm:$0xf] }
 0x8c1   : > { %v3411_v10 = vmax.f32 %v3398_v39, 0.0  ;;  %v3412_v7 = vmax.f32 %v3399_v13, 0.0  ;;  %v3413_v52 = vmax.f32 %v3400_v0, 0.0  ;;  %v3414_v49 = vmax.f32 %v3401_v51, 0.0 }
 0x8c2   : > { %3432 = vst.msk [vmem:[#allocation2 + $0x50] sm:$0xff] %vm14569_vm13, %v3419_v16  ;;  %3433 = vst.msk [vmem:[#allocation2 + $0x58] sm:$0xff] %vm14569_vm13, %v3420_v56  ;;  %v3368_v55 = vmul.f32 %v3361_v48, %v13490_v15  ;;  %v3369_v63 = vmul.f32 %v3361_v48, %v13496_v44  ;;  %v3370_v21 = vmul.f32 %v3361_v48, %v13502_v17 }
 0x8c3   : > { %3422 = vst.msk [vmem:[#allocation2] sm:$0xff] %vm14569_vm13, %v3409_v34  ;;  %3423 = vst.msk [vmem:[#allocation2 + $0x8] sm:$0xff] %vm14569_vm13, %v3410_v20  ;;  %v3371_v61 = vmul.f32 %v3361_v48, %v13508_v5  ;;  %v3374_v24 = vmul.f32 %v3361_v48, %v13521_v54  ;;  %v11515_v54 = vld [vmem:[#allocation15 + $0x10] sm:$0xff]  }
 0x8c4   : > { %3424 = vst.msk [vmem:[#allocation2 + $0x10] sm:$0xff] %vm14569_vm13, %v3411_v10  ;;  %3425 = vst.msk [vmem:[#allocation2 + $0x18] sm:$0xff] %vm14569_vm13, %v3412_v7  ;;  %v3385_v25 = vmul.f32 %v3378_v31, %v3368_v55  ;;  %v3386_v27 = vmul.f32 %v3378_v31, %v3369_v63  ;;  %v3387_v28 = vmul.f32 %v3378_v31, %v3370_v21  ;;  %10822 = vmatpush3.bf16.msra.mxu1 %v11515_v54 }
 0x8c5   : > { %3426 = vst.msk [vmem:[#allocation2 + $0x20] sm:$0xff] %vm14569_vm13, %v3413_v52  ;;  %3427 = vst.msk [vmem:[#allocation2 + $0x28] sm:$0xff] %vm14569_vm13, %v3414_v49  ;;  %v3388_v15 = vmul.f32 %v3378_v31, %v3371_v61  ;;  %v3391_v29 = vmul.f32 %v3378_v31, %v3374_v24  ;;  %10823 = vmatprep.subr.bf16.mxu1 %v12400_v14  ;;  %v11516_v49 = vld [vmem:[#allocation15 + $0x8] sm:$0xff]   ;;  %v11517_v24 = vld [vmem:[#allocation15] sm:$0xff]  }
 0x8c6   : > { %v3402_v44 = vadd.f32 %v3395_v9, %v3385_v25  ;;  %v3403_v11 = vadd.f32 %v3395_v9, %v3386_v27  ;;  %v3404_v17 = vadd.f32 %v3395_v9, %v3387_v28 }
 0x8c7   : > { %v3405_v1 = vadd.f32 %v3395_v9, %v3388_v15  ;;  %v3408_v5 = vadd.f32 %v3395_v9, %v3391_v29 }
 0x8c8   : > { %v3415_v33 = vmax.f32 %v3402_v44, 0.0  ;;  %v3416_v53 = vmax.f32 %v3403_v11, 0.0  ;;  %v3417_v36 = vmax.f32 %v3404_v17, 0.0  ;;  %10824 = vmatpush3.bf16.msra.mxu1 %v11516_v49 }
 0x8c9   : > { %v3418_v40 = vmax.f32 %v3405_v1, 0.0  ;;  %v3493_v60 = vld [vmem:[#allocation2 + $0x51] ss:$2 sm:$0x7f]  ;;  %v3421_v12 = vmax.f32 %v3408_v5, 0.0  ;;  %10825 = vmatprep.subr.bf16.mxu1 %v12400_v14 }
 0x8ca   : > { %v3483_v19 = vld [vmem:[#allocation2 + $0x1] ss:$2 sm:$0xff]  ;;  %v10342_v57 = vpack.c.bf16 %v3493_v60, %v3493_v60  ;;  %3428 = vst.msk [vmem:[#allocation2 + $0x30] sm:$0xff] %vm14569_vm13, %v3415_v33  ;;  %3429 = vst.msk [vmem:[#allocation2 + $0x38] sm:$0xff] %vm14569_vm13, %v3416_v53  ;;  %v3435_v50 = vld [vmem:[#allocation2] ss:$2 sm:$0xff] }
 0x8cb   : > { %v10337_v62 = vpack.c.bf16 %v3483_v19, %v3483_v19  ;;  %3430 = vst.msk [vmem:[#allocation2 + $0x40] sm:$0xff] %vm14569_vm13, %v3417_v36  ;;  %3431 = vst.msk [vmem:[#allocation2 + $0x48] sm:$0xff] %vm14569_vm13, %v3418_v40  ;;  %v3485_v31 = vld [vmem:[#allocation2 + $0x11] ss:$2 sm:$0xff]  ;;  %v3542_v9 = vld [vmem:[#allocation2 + $0x2] ss:$2 sm:$0xff]  ;;  %v10331_v46 = vpack.c.bf16 %v3435_v50, %v3435_v50 }
 0x8cc   : > { %v3552_v48 = vld [vmem:[#allocation2 + $0x52] ss:$2 sm:$0x7f]  ;;  %3434 = vst.msk [vmem:[#allocation2 + $0x60] sm:$0x1] %vm14565_vm0, %v3421_v12  ;;  %3522 = vrot.lane.b32.xlu0 %v10342_v57, %s12404_s1  ;;  %v10338_v23 = vpack.c.bf16 %v3485_v31, %v3485_v31  ;;  %v10343_v51 = vpack.c.bf16 %v3542_v9, %v3542_v9  ;;  %10826 = vmatpush3.bf16.msra.mxu1 %v11517_v24  ;;  %vm13620_vm0 = vmand %vm14576_vm8, %vm14573_vm10 }
 0x8cd   : > { %3512 = vrot.lane.b32.xlu1 %v10337_v62, %s12404_s1  ;;  %v10348_v37 = vpack.c.bf16 %v3552_v48, %v3552_v48  ;;  %v3445_v6 = vld [vmem:[#allocation2 + $0x50] ss:$2 sm:$0x7f]  ;;  %v3439_v30 = vld [vmem:[#allocation2 + $0x20] ss:$2 sm:$0xff]  ;;  %10875 = vmatprep.subr.mxu1 %v12400_v14  ;;  %vm13638_vm13 = vmand %vm14572_vm4, %vm14573_vm10 }
 0x8ce   : > { %v3544_v35 = vld [vmem:[#allocation2 + $0x12] ss:$2 sm:$0xff]  ;;  %v10336_v41 = vpack.c.bf16 %v3445_v6, %v3445_v6  ;;  %v10333_v13 = vpack.c.bf16 %v3439_v30, %v3439_v30  ;;  %3471 = vst.msk [vmem:[#allocation7] sm:$0xf] %vm14568_vm15, %v10331_v46  ;;  %v3601_v56 = vld [vmem:[#allocation2 + $0x3] ss:$2 sm:$0xff] }
 0x8cf   : > { %v3437_v47 = vld [vmem:[#allocation2 + $0x10] ss:$2 sm:$0xff]  ;;  %v10344_v16 = vpack.c.bf16 %v3544_v35, %v3544_v35  ;;  %v3603_v34 = vld [vmem:[#allocation2 + $0x13] ss:$2 sm:$0xff]  ;;  %v10349_v7 = vpack.c.bf16 %v3601_v56, %v3601_v56 }
 0x8d0   : > { %3514 = vrot.lane.b32.xlu0 %v10338_v23, %s12404_s1  ;;  %v10332_v39 = vpack.c.bf16 %v3437_v47, %v3437_v47  ;;  %v3480_v0 = vsel %vm13572_vm14, %v10336_v41, %v3479_v42  ;;  %3473 = vst.msk [vmem:[#allocation7 + $0x10] sm:$0xf] %vm14568_vm15, %v10333_v13  ;;  %v10350_v52 = vpack.c.bf16 %v3603_v34, %v3603_v34  ;;  %v3660_v21 = vld [vmem:[#allocation2 + $0x4] ss:$2 sm:$0xff]  ;;  %v3662_v61 = vld [vmem:[#allocation2 + $0x14] ss:$2 sm:$0xff] }
 0x8d1   : > { %3581 = vrot.lane.b32.xlu1 %v10348_v37, %s12406_s7  ;;  %3481 = vst [vmem:[#allocation7 + $0x28] sm:$0xf] %v3480_v0  ;;  %v3441_v20 = vld [vmem:[#allocation2 + $0x30] ss:$2 sm:$0xff]  ;;  %v10355_v25 = vpack.c.bf16 %v3660_v21, %v3660_v21  ;;  %v10356_v27 = vpack.c.bf16 %v3662_v61, %v3662_v61  ;;  %v3487_v28 = vld [vmem:[#allocation2 + $0x21] ss:$2 sm:$0xff] }
 0x8d2   : > { %3472 = vst.msk [vmem:[#allocation7 + $0x8] sm:$0xf] %vm14568_vm15, %v10332_v39  ;;  %v3443_v10 = vld [vmem:[#allocation2 + $0x40] ss:$2 sm:$0xff]  ;;  %v10334_v55 = vpack.c.bf16 %v3441_v20, %v3441_v20  ;;  %v3489_v15 = vld [vmem:[#allocation2 + $0x31] ss:$2 sm:$0xff]  ;;  %v10339_v29 = vpack.c.bf16 %v3487_v28, %v3487_v28 }
 0x8d3   : > { %v10335_v63 = vpack.c.bf16 %v3443_v10, %v3443_v10  ;;  %v10340_v44 = vpack.c.bf16 %v3489_v15, %v3489_v15  ;;  %v3546_v11 = vld [vmem:[#allocation2 + $0x22] ss:$2 sm:$0xff]  ;;  %v3548_v17 = vld [vmem:[#allocation2 + $0x32] ss:$2 sm:$0xff]  ;;  %v3605_v53 = vld [vmem:[#allocation2 + $0x23] ss:$2 sm:$0xff] }
 0x8d4   : > { %3571 = vrot.lane.b32.xlu0 %v10343_v51, %s12406_s7  ;;  %3474 = vst.msk [vmem:[#allocation7 + $0x18] sm:$0xf] %vm14568_vm15, %v10334_v55  ;;  %v10345_v1 = vpack.c.bf16 %v3546_v11, %v3546_v11  ;;  %v10346_v5 = vpack.c.bf16 %v3548_v17, %v3548_v17  ;;  %v3611_v33 = vld [vmem:[#allocation2 + $0x53] ss:$2 sm:$0x7f]  ;;  %v10351_v40 = vpack.c.bf16 %v3605_v53, %v3605_v53 }
 0x8d5   : > { %3573 = vrot.lane.b32.xlu1 %v10344_v16, %s12406_s7  ;;  %3475 = vst.msk [vmem:[#allocation7 + $0x20] sm:$0xf] %vm14568_vm15, %v10335_v63  ;;  %v10354_v36 = vpack.c.bf16 %v3611_v33, %v3611_v33  ;;  %v3607_v60 = vld [vmem:[#allocation2 + $0x33] ss:$2 sm:$0xff]  ;;  %v3664_v19 = vld [vmem:[#allocation2 + $0x24] ss:$2 sm:$0xff] }
 0x8d6   : > { %v10352_v12 = vpack.c.bf16 %v3607_v60, %v3607_v60  ;;  %v10357_v57 = vpack.c.bf16 %v3664_v19, %v3664_v19  ;;  %v3666_v62 = vld [vmem:[#allocation2 + $0x34] ss:$2 sm:$0xff]  ;;  %v3491_v54 = vld [vmem:[#allocation2 + $0x41] ss:$2 sm:$0xff]  ;;  %v3668_v35 = vld [vmem:[#allocation2 + $0x44] ss:$2 sm:$0xff] }
 0x8d7   : > { %v10358_v31 = vpack.c.bf16 %v3666_v62, %v3666_v62  ;;  %v10341_v48 = vpack.c.bf16 %v3491_v54, %v3491_v54  ;;  %v3550_v9 = vld [vmem:[#allocation2 + $0x42] ss:$2 sm:$0xff]  ;;  %v3609_v23 = vld [vmem:[#allocation2 + $0x43] ss:$2 sm:$0xff]  ;;  %v10359_v46 = vpack.c.bf16 %v3668_v35, %v3668_v35  ;;  %vm14574_vm15 = vcmask 654336  }
 0x8d8   : > { %3630 = vrot.lane.b32.xlu0 %v10349_v7, %s12407_s4  ;;  %v10347_v37 = vpack.c.bf16 %v3550_v9, %v3550_v9  ;;  %v10353_v6 = vpack.c.bf16 %v3609_v23, %v3609_v23  ;;  %v3670_v50 = vld [vmem:[#allocation2 + $0x54] ss:$2 sm:$0x7f] }
 0x8d9   : > { %3632 = vrot.lane.b32.xlu1 %v10350_v52, %s12407_s4  ;;  %v10360_v41 = vpack.c.bf16 %v3670_v50, %v3670_v50  ;;  %v3538_v42 = vld [vmem:[#allocation7 + $0x28] sm:$0xf]  ;;  %v13669_v35 = vld [vmem:[#allocation16] sm:$0x7] }
 0x8dc   : > { %3689 = vrot.lane.b32.xlu0 %v10355_v25, %s12408_s16 }
 0x8dd   : > { %3691 = vrot.lane.b32.xlu1 %v10356_v27, %s12408_s16 }
 0x8e0   : > { %3516 = vrot.lane.b32.xlu0 %v10339_v29, %s12404_s1 }
 0x8e1   : > { %3518 = vrot.lane.b32.xlu1 %v10340_v44, %s12404_s1 }
 0x8e4   : > { %3575 = vrot.lane.b32.xlu0 %v10345_v1, %s12406_s7 }
 0x8e5   : > { %3577 = vrot.lane.b32.xlu1 %v10346_v5, %s12406_s7 }
 0x8e8   : > { %3640 = vrot.lane.b32.xlu0 %v10354_v36, %s12407_s4 }
 0x8e9   : > { %3634 = vrot.lane.b32.xlu1 %v10351_v40, %s12407_s4 }
 0x8ec   : > { %3636 = vrot.lane.b32.xlu0 %v10352_v12, %s12407_s4 }
 0x8ed   : > { %3693 = vrot.lane.b32.xlu1 %v10357_v57, %s12408_s16 }
 0x8f0   : > { %3695 = vrot.lane.b32.xlu0 %v10358_v31, %s12408_s16 }
 0x8f1   : > { %3520 = vrot.lane.b32.xlu1 %v10341_v48, %s12404_s1 }
 0x8f4   : > { %3579 = vrot.lane.b32.xlu0 %v10347_v37, %s12406_s7 }
 0x8f5   : > { %3638 = vrot.lane.b32.xlu1 %v10353_v6, %s12407_s4 }
 0x8f8   : > { %3699 = vrot.lane.b32.xlu0 %v10360_v41, %s12408_s16  ;;  %v3738_v41 = vrot.slane %v13669_v35, %v13080_v38 }
 0x8f9   : > { %3697 = vrot.lane.b32.xlu1 %v10359_v46, %s12408_s16 }
 0x93e   : > { %v3523_v30 = vpop.permute.xlu0 %3522 }
 0x93f   : > { %v3513_v39 = vpop.permute.xlu1 %3512  ;;  %v3539_v13 = vsel %vm13610_vm5, %v3523_v30, %v3538_v42 }
 0x940   : > { %3531 = vst.msk [vmem:[#allocation7] sm:$0xf] %vm14577_vm12, %v3513_v39  ;;  %3540 = vst [vmem:[#allocation7 + $0x28] sm:$0xf] %v3539_v13 }
 0x942   : > { %v3515_v0 = vpop.permute.xlu0 %3514 }
 0x943   : > { %v3582_v51 = vpop.permute.xlu1 %3581  ;;  %3532 = vst.msk [vmem:[#allocation7 + $0x8] sm:$0xf] %vm14577_vm12, %v3515_v0 }
 0x946   : > { %v3572_v56 = vpop.permute.xlu0 %3571 }
 0x947   : > { %v3574_v34 = vpop.permute.xlu1 %3573  ;;  %v3597_v20 = vld [vmem:[#allocation7 + $0x28] sm:$0xf]  ;;  %3590 = vst.msk [vmem:[#allocation7] sm:$0xf] %vm14576_vm8, %v3572_v56 }
 0x948   : > { %3591 = vst.msk [vmem:[#allocation7 + $0x8] sm:$0xf] %vm14576_vm8, %v3574_v34  ;;  %v3598_v10 = vsel %vm13620_vm0, %v3582_v51, %v3597_v20 }
 0x949   : > { %3599 = vst [vmem:[#allocation7 + $0x28] sm:$0xf] %v3598_v10 }
 0x94a   : > { %v3631_v7 = vpop.permute.xlu0 %3630 }
 0x94b   : > { %v3633_v52 = vpop.permute.xlu1 %3632  ;;  %3649 = vst.msk [vmem:[#allocation7] sm:$0xf] %vm14572_vm4, %v3631_v7 }
 0x94c   : > { %3650 = vst.msk [vmem:[#allocation7 + $0x8] sm:$0xf] %vm14572_vm4, %v3633_v52 }
 0x94e   : > { %v3690_v49 = vpop.permute.xlu0 %3689 }
 0x94f   : > { %v3692_v55 = vpop.permute.xlu1 %3691  ;;  %3708 = vst.msk [vmem:[#allocation7] sm:$0xf] %vm14575_vm7, %v3690_v49 }
 0x950   : > { %3709 = vst.msk [vmem:[#allocation7 + $0x8] sm:$0xf] %vm14575_vm7, %v3692_v55  ;;  %v3656_v44 = vld [vmem:[#allocation7 + $0x28] sm:$0xf] }
 0x952   : > { %v3517_v63 = vpop.permute.xlu0 %3516 }
 0x953   : > { %v3519_v21 = vpop.permute.xlu1 %3518  ;;  %3533 = vst.msk [vmem:[#allocation7 + $0x10] sm:$0xf] %vm14577_vm12, %v3517_v63 }
 0x954   : > { %3534 = vst.msk [vmem:[#allocation7 + $0x18] sm:$0xf] %vm14577_vm12, %v3519_v21 }
 0x956   : > { %v3718_v61 = vld [vmem:[#allocation7] sm:$0xf]  ;;  %v3576_v25 = vpop.permute.xlu0 %3575 }
 0x957   : > { %v3719_v24 = vld [vmem:[#allocation7 + $0x8] sm:$0xf]  ;;  %v3578_v27 = vpop.permute.xlu1 %3577  ;;  %3592 = vst.msk [vmem:[#allocation7 + $0x10] sm:$0xf] %vm14576_vm8, %v3576_v25 }
 0x958   : > { %3593 = vst.msk [vmem:[#allocation7 + $0x18] sm:$0xf] %vm14576_vm8, %v3578_v27  ;;  %v9868_v28 = vcombine.low %v3718_v61, %v3719_v24 }
 0x95a   : > { %10828 = vmatmul.mubr.msk.bf16.vlgmr.msra.gmra.mxu1 %vm14574_vm15, %v9868_v28  ;;  %v3641_v29 = vpop.permute.xlu0 %3640 }
 0x95b   : > { %v3635_v11 = vpop.permute.xlu1 %3634  ;;  %10831 = vmatprep.mubr.msk.bf16.mxu1 %vm14570_vm1, %v12400_v14  ;;  %v3657_v17 = vsel %vm13638_vm13, %v3641_v29, %v3656_v44  ;;  %vm13656_vm1 = vmand %vm14575_vm7, %vm14573_vm10  ;;  %vm14684_vm10 = vcmask 130048  }
 0x95c   : > { %3651 = vst.msk [vmem:[#allocation7 + $0x10] sm:$0xf] %vm14572_vm4, %v3635_v11  ;;  %3658 = vst [vmem:[#allocation7 + $0x28] sm:$0xf] %v3657_v17 }
 0x95e   : > { %v3637_v1 = vpop.permute.xlu0 %3636 }
 0x95f   : > { %v3694_v5 = vpop.permute.xlu1 %3693  ;;  %3652 = vst.msk [vmem:[#allocation7 + $0x18] sm:$0xf] %vm14572_vm4, %v3637_v1 }
 0x960   : > { %3710 = vst.msk [vmem:[#allocation7 + $0x10] sm:$0xf] %vm14575_vm7, %v3694_v5 }
 0x962   : > { %v3696_v33 = vpop.permute.xlu0 %3695 }
 0x963   : > { %v3521_v53 = vpop.permute.xlu1 %3520  ;;  %3711 = vst.msk [vmem:[#allocation7 + $0x18] sm:$0xf] %vm14575_vm7, %v3696_v33  ;;  %v3715_v57 = vld [vmem:[#allocation7 + $0x28] sm:$0xf] }
 0x964   : > { %3535 = vst.msk [vmem:[#allocation7 + $0x20] sm:$0xf] %vm14577_vm12, %v3521_v53 }
 0x966   : > { %v3580_v36 = vpop.permute.xlu0 %3579 }
 0x967   : > { %v3639_v40 = vpop.permute.xlu1 %3638  ;;  %3594 = vst.msk [vmem:[#allocation7 + $0x20] sm:$0xf] %vm14576_vm8, %v3580_v36  ;;  %v3720_v19 = vld [vmem:[#allocation7 + $0x10] sm:$0xf] }
 0x968   : > { %3653 = vst.msk [vmem:[#allocation7 + $0x20] sm:$0xf] %vm14572_vm4, %v3639_v40  ;;  %vm14683_vm4 = vmmov 0  }
 0x96a   : > { %v3700_v12 = vpop.permute.xlu0 %3699  ;;  %v3721_v54 = vld [vmem:[#allocation7 + $0x18] sm:$0xf] }
 0x96b   : > { %v3698_v62 = vpop.permute.xlu1 %3697  ;;  %v3716_v31 = vsel %vm13656_vm1, %v3700_v12, %v3715_v57  ;;  %v9869_v48 = vcombine.low %v3720_v19, %v3721_v54 }
 0x96c   : > { %3712 = vst.msk [vmem:[#allocation7 + $0x20] sm:$0xf] %vm14575_vm7, %v3698_v62  ;;  %3717 = vst [vmem:[#allocation7 + $0x28] sm:$0xf] %v3716_v31 }
 0x96d   : > { %10832 = vmatmul.mubr.msk.bf16.gmra.mxu1 %vm14574_vm15, %v9869_v48  ;;  %vm14686_vm7 = vmmov %vm14684_vm10 }
 0x96e   : > { %10835 = vmatprep.mubr.msk.bf16.mxu1 %vm14683_vm4, %v12400_v14  ;;  %vm14687_vm8 = vmmov %vm14686_vm7 }
 0x96f   : > { %vm14688_vm12 = vmmov %vm14686_vm7 }
 0x973   : > { %v11518_v9 = vld [vmem:[#allocation7 + $0x20] ss:$8 sps:$4 sm:$0xff]  }
 0x975   : > { %10836 = vmatmul.mubr.msk.bf16.gmra.mxu1 %vm14574_vm15, %v11518_v9  ;;  %vm14685_vm15 = vmmov %vm14684_vm10 }
 0x976   : > { %10879 = vmatprep.mubr.msk.f32.mxu1 %vm14683_vm4, %v12400_v14 }
 0xa1a   : > { %v3828_v23 = vpop.f32.mrf.mxu1 }
 0xa1b   : > { %v3829_v39 = vadd.f32 %v3828_v23, %v3738_v41 }
 0xa1c   : > { %v10829_v37 = vpop.f32.mrf.mxu1 }
 0xa1d   : > { %v3853_v20 = vsel %vm14685_vm15, %v3829_v39, 0.0  ;;  %vm14692_vm15 = vmmov %vm14686_vm7 }
 0xa1e   : > { %v3831_v6 = vpop.f32.mrf.mxu1 }
 0xa1f   : > { %v3832_v30 = vadd.f32 %v3831_v6, %v3738_v41 }
 0xa20   : > { %v10830_v50 = vpop.f32.mrf.mxu1 }
 0xa21   : > { %v3854_v51 = vsel %vm14684_vm10, %v3832_v30, 0.0  ;;  %vm14690_vm10 = vmmov %vm14686_vm7 }
 0xa22   : > { %v3855_v7 = vadd.f32 %v3854_v51, %v3853_v20 }
 0xa2d   : > { %v3836_v46 = vpop.f32.mrf.mxu1 }
 0xa2e   : > { %v3837_v13 = vadd.f32 %v3836_v46, %v3738_v41 }
 0xa2f   : > { %v10833_v42 = vpop.f32.mrf.mxu1 }
 0xa30   : > { %v3856_v10 = vsel %vm14686_vm7, %v3837_v13, 0.0 }
 0xa31   : > { %v3839_v0 = vpop.f32.mrf.mxu1  ;;  %v3857_v63 = vadd.f32 %v3856_v10, %v3855_v7 }
 0xa32   : > { %v3840_v56 = vadd.f32 %v3839_v0, %v3738_v41 }
 0xa33   : > { %v10834_v34 = vpop.f32.mrf.mxu1 }
 0xa34   : > { %v3858_v49 = vsel %vm14687_vm8, %v3840_v56, 0.0  ;;  %vm14689_vm8 = vmmov %vm14686_vm7 }
 0xa35   : > { %v3844_v52 = vpop.f32.mrf.mxu1  ;;  %v3859_v24 = vadd.f32 %v3858_v49, %v3857_v63 }
 0xa36   : > { %v3845_v55 = vadd.f32 %v3844_v52, %v3738_v41 }
 0xa37   : > { %v10837_v21 = vpop.f32.mrf.mxu1 }
 0xa38   : > { %v3860_v61 = vsel %vm14688_vm12, %v3845_v55, 0.0  ;;  %vm14691_vm12 = vmmov %vm14686_vm7 }
 0xa39   : > { %v3847_v25 = vpop.f32.mrf.mxu1  ;;  %v3861_v28 = vadd.f32 %v3860_v61, %v3859_v24 }
 0xa3a   : > { %v3848_v27 = vadd.f32 %v3847_v25, %v3738_v41 }
 0xa3b   : > { %v10838_v29 = vpop.f32.mrf.mxu1 }
 0xa3c   : > { %v3863_v44 = vsel %vm14580_vm2, %v3848_v27, 0.0 }
 0xa3d   : > { %v3864_v11 = vadd.f32 %v3863_v44, %v3861_v28  ;;  %v4068_v44 = vrot.slane %v13669_v35, %v13190_v45 }
 0xa3f   : > { %v3865_v17 = vrot.slane %v3864_v11, 4 }
 0xa41   : > { %v3866_v1 = vadd.f32 %v3865_v17, %v3864_v11  ;;  %v4078_v17 = vrot.slane %v13669_v35, %v13193_v43 }
 0xa43   : > { %v3867_v5 = vrot.slane %v3866_v1, 2 }
 0xa45   : > { %v3868_v33 = vadd.f32 %v3867_v5, %v3866_v1 }
 0xa47   : > { %v3869_v53 = vrot.slane %v3868_v33, 1 }
 0xa49   : > { %v3870_v36 = vadd.f32 %v3869_v53, %v3868_v33 }
 0xa4b   : > { %10844 = vmatmul.mubr.msk.f32.vlgmr.msra.gmra.mxu0 %vm14686_vm7, %v3870_v36 }
 0xa4c   : > { %10847 = vmatpush3.msra.mxu0 %v13404_v26  ;;  %10850 = vmatprep.mubr.msk.f32.mxu0 %vm14683_vm4, %v12400_v14 }
 0xa4d   : > { %10848 = vmatprep.subr.mxu0 %v12400_v14 }
 0xa4e   : > { %10849 = vmatpush3.msra.mxu0 %v13408_v22 }
 0xa4f   : > { %10853 = vmatprep.subr.bf16.mxu0 %v12400_v14 }
 0xb0b   : > { %v3940_v40 = vpop.f32.mrf.mxu0 }
 0xb0c   : > { %v3944_v19 = vmul.f32 0.0026595744, %v3940_v40 }
 0xb0d   : > { %v10845_v12 = vpop.f32.mrf.mxu0 }
 0xb0e   : > { %v3948_v57 = vrot.slane %v3944_v19, %v13080_v38 }
 0xb10   : > { %v3949_v62 = vsub.f32 %v3829_v39, %v3948_v57  ;;  %v3950_v54 = vsub.f32 %v3832_v30, %v3948_v57  ;;  %v3951_v31 = vsub.f32 %v3837_v13, %v3948_v57  ;;  %v3952_v48 = vsub.f32 %v3840_v56, %v3948_v57 }
 0xb11   : > { %v3953_v9 = vsub.f32 %v3845_v55, %v3948_v57  ;;  %v3954_v6 = vsub.f32 %v3848_v27, %v3948_v57 }
 0xb12   : > { %v3955_v26 = vmul.f32 %v3949_v62, %v3949_v62  ;;  %v3956_v23 = vmul.f32 %v3950_v54, %v3950_v54  ;;  %v3957_v37 = vmul.f32 %v3951_v31, %v3951_v31  ;;  %v3958_v50 = vmul.f32 %v3952_v48, %v3952_v48 }
 0xb13   : > { %v3959_v42 = vmul.f32 %v3953_v9, %v3953_v9  ;;  %v3960_v34 = vmul.f32 %v3954_v6, %v3954_v6 }
 0xb14   : > { %v3961_v41 = vsel %vm14689_vm8, %v3955_v26, 0.0  ;;  %v3962_v22 = vsel %vm14690_vm10, %v3956_v23, 0.0  ;;  %v3964_v0 = vsel %vm14691_vm12, %v3957_v37, 0.0  ;;  %v3966_v30 = vsel %vm14692_vm15, %v3958_v50, 0.0  ;;  %vm14693_vm8 = vmmov %vm14686_vm7 }
 0xb15   : > { %v3963_v46 = vadd.f32 %v3962_v22, %v3961_v41  ;;  %v3968_v13 = vsel %vm14686_vm7, %v3959_v42, 0.0  ;;  %v3970_v20 = vsel %vm14580_vm2, %v3960_v34, 0.0  ;;  %vm14694_vm10 = vmmov %vm14686_vm7 }
 0xb16   : > { %vm14695_vm12 = vmmov %vm14686_vm7 }
 0xb17   : > { %v3965_v51 = vadd.f32 %v3964_v0, %v3963_v46  ;;  %vm14696_vm15 = vmmov %vm14686_vm7 }
 0xb19   : > { %v3967_v39 = vadd.f32 %v3966_v30, %v3965_v51 }
 0xb1b   : > { %v3969_v56 = vadd.f32 %v3968_v13, %v3967_v39 }
 0xb1d   : > { %v3971_v10 = vadd.f32 %v3970_v20, %v3969_v56 }
 0xb1f   : > { %v3972_v7 = vrot.slane %v3971_v10, 4 }
 0xb21   : > { %v3973_v52 = vadd.f32 %v3972_v7, %v3971_v10 }
 0xb23   : > { %v3974_v49 = vrot.slane %v3973_v52, 2 }
 0xb25   : > { %v3975_v55 = vadd.f32 %v3974_v49, %v3973_v52 }
 0xb27   : > { %v3976_v63 = vrot.slane %v3975_v55, 1 }
 0xb29   : > { %v3977_v21 = vadd.f32 %v3976_v63, %v3975_v55 }
 0xb2b   : > { %10851 = vmatmul.mubr.msk.f32.vlgmr.msra.gmra.mxu0 %vm14693_vm8, %v3977_v21  ;;  %vm14697_vm8 = vmmov %vm14686_vm7  ;;  %v4135_v21 = vld [vmem:[#allocation7 + $0x28] sm:$0x3] }
 0xb2c   : > { %10863 = vmatprep.mubr.msk.bf16.mxu0 %vm14683_vm4, %v12400_v14 }
 0xbeb   : > { %v4047_v61 = vpop.f32.mrf.mxu0 }
 0xbec   : > { %v4051_v24 = vmul.f32 0.0026595744, %v4047_v61 }
 0xbed   : > { %v10852_v25 = vpop.f32.mrf.mxu0 }
 0xbee   : > { %v4052_v27 = vmax.f32 %v4051_v24, 0.0 }
 0xbf0   : > { %v4053_v28 = vadd.f32 1e-05, %v4052_v27 }
 0xbf2   : > { %11603 = vrsqrt.f32 %v4053_v28 }
 0xbff   : > { %v11604_v29 = vpop.eup %11603 }
 0xc00   : > { %v4058_v11 = vrot.slane %v11604_v29, %v13080_v38  ;;  %v11519_v29 = vld [vmem:[#allocation18 + $0x20] sm:$0xff]  }
 0xc01   : > { %10854 = vmatpush3.bf16.msra.mxu0 %v11519_v29 }
 0xc02   : > { %v4059_v1 = vmul.f32 %v4058_v11, %v3949_v62  ;;  %v4060_v5 = vmul.f32 %v4058_v11, %v3950_v54  ;;  %v4061_v33 = vmul.f32 %v4058_v11, %v3951_v31  ;;  %v4062_v53 = vmul.f32 %v4058_v11, %v3952_v48  ;;  %10855 = vmatprep.subr.bf16.mxu0 %v12400_v14 }
 0xc03   : > { %v4063_v36 = vmul.f32 %v4058_v11, %v3953_v9  ;;  %v4064_v40 = vmul.f32 %v4058_v11, %v3954_v6 }
 0xc04   : > { %v4069_v19 = vmul.f32 %v4068_v44, %v4059_v1  ;;  %v4070_v12 = vmul.f32 %v4068_v44, %v4060_v5  ;;  %v4071_v57 = vmul.f32 %v4068_v44, %v4061_v33  ;;  %v4072_v26 = vmul.f32 %v4068_v44, %v4062_v53  ;;  %v11520_v53 = vld [vmem:[#allocation18 + $0x18] sm:$0xff]  }
 0xc05   : > { %v4073_v23 = vmul.f32 %v4068_v44, %v4063_v36  ;;  %v4074_v37 = vmul.f32 %v4068_v44, %v4064_v40  ;;  %10856 = vmatpush3.bf16.msra.mxu0 %v11520_v53 }
 0xc06   : > { %v4079_v50 = vadd.f32 %v4078_v17, %v4069_v19  ;;  %v4080_v41 = vadd.f32 %v4078_v17, %v4070_v12  ;;  %v4081_v22 = vadd.f32 %v4078_v17, %v4071_v57  ;;  %v4082_v46 = vadd.f32 %v4078_v17, %v4072_v26  ;;  %10857 = vmatprep.subr.bf16.mxu0 %v12400_v14 }
 0xc07   : > { %v4083_v42 = vadd.f32 %v4078_v17, %v4073_v23  ;;  %v4084_v0 = vadd.f32 %v4078_v17, %v4074_v37  ;;  %v11521_v37 = vld [vmem:[#allocation18 + $0x10] sm:$0xff]  }
 0xc08   : > { %v4085_v51 = vmax.f32 %v4079_v50, 0.0  ;;  %v4086_v35 = vmax.f32 %v4080_v41, 0.0  ;;  %v4087_v62 = vmax.f32 %v4081_v22, 0.0  ;;  %v4088_v54 = vmax.f32 %v4082_v46, 0.0 }
 0xc09   : > { %v4089_v31 = vmax.f32 %v4083_v42, 0.0  ;;  %v4090_v48 = vmax.f32 %v4084_v0, 0.0  ;;  %10858 = vmatpush3.bf16.msra.mxu0 %v11521_v37  ;;  %v11522_v42 = vld [vmem:[#allocation18 + $0x8] sm:$0xff]  }
 0xc0a   : > { %4091 = vst.msk [vmem:[#allocation3] sm:$0xff] %vm14694_vm10, %v4085_v51  ;;  %vm14579_vm10 = vcmask 123904   ;;  %10859 = vmatprep.subr.bf16.mxu0 %v12400_v14 }
 0xc0b   : > { %4092 = vst.msk [vmem:[#allocation3 + $0x8] sm:$0xff] %vm14695_vm12, %v4086_v35  ;;  %vm14584_vm12 = vsmask.f32 1280 }
 0xc0c   : > { %4093 = vst.msk [vmem:[#allocation3 + $0x10] sm:$0xff] %vm14696_vm15, %v4087_v62  ;;  %vm13712_vm15 = vmand %vm14579_vm10, %vm14584_vm12 }
 0xc0d   : > { %4094 = vst.msk [vmem:[#allocation3 + $0x18] sm:$0xff] %vm14686_vm7, %v4088_v54  ;;  %vm14700_vm7 = vcmask 125952   ;;  %10860 = vmatpush3.bf16.msra.mxu0 %v11522_v42  ;;  %v11523_v54 = vld [vmem:[#allocation18] sm:$0xff]  }
 0xc0e   : > { %4095 = vst.msk [vmem:[#allocation3 + $0x20] sm:$0xff] %vm14697_vm8, %v4089_v31  ;;  %vm14701_vm8 = vmmov %vm14700_vm7  ;;  %10861 = vmatprep.subr.bf16.mxu0 %v12400_v14 }
 0xc0f   : > { %4096 = vst.msk [vmem:[#allocation3 + $0x28] sm:$0x7f] %vm14580_vm2, %v4090_v48  ;;  %vm14702_vm10 = vmmov %vm14700_vm7 }
 0xc10   : > { %vm14703_vm2 = vmmov %vm14700_vm7 }
 0xc11   : > { %v4097_v55 = vld [vmem:[#allocation3] sm:$0xff]  ;;  %10862 = vmatpush3.bf16.msra.mxu0 %v11523_v54 }
 0xc12   : > { %v4138_v9 = vld [vmem:[#allocation3 + $0x1] sm:$0xff]  ;;  %v10361_v27 = vpack.c.bf16 %v4097_v55, %v4097_v55  ;;  %10889 = vmatprep.subr.bf16.mxu0 %v12400_v14 }
 0xc13   : > { %v10367_v34 = vpack.c.bf16 %v4138_v9, %v4138_v9  ;;  %v4139_v13 = vld [vmem:[#allocation3 + $0x9] sm:$0xff] }
 0xc14   : > { %v10368_v20 = vpack.c.bf16 %v4139_v13, %v4139_v13  ;;  %v4191_v10 = vld [vmem:[#allocation3 + $0xa] sm:$0xff]  ;;  %v4190_v7 = vld [vmem:[#allocation3 + $0x2] sm:$0xff]  ;;  %v4100_v17 = vld [vmem:[#allocation3 + $0x18] sm:$0xff]  ;;  %4127 = vst.msk [vmem:[#allocation7] sm:$0xf] %vm14700_vm7, %v10361_v27  ;;  %vm14705_vm7 = vcmask 257152  }
 0xc15   : > { %4162 = vrot.lane.b32.xlu1 %v10367_v34, %s12404_s1  ;;  %v4098_v63 = vld [vmem:[#allocation3 + $0x8] sm:$0xff]  ;;  %v10374_v61 = vpack.c.bf16 %v4191_v10, %v4191_v10  ;;  %v10373_v44 = vpack.c.bf16 %v4190_v7, %v4190_v7  ;;  %v4099_v11 = vld [vmem:[#allocation3 + $0x10] sm:$0xff]  ;;  %v4101_v1 = vld [vmem:[#allocation3 + $0x20] sm:$0xff]  ;;  %v10364_v40 = vpack.c.bf16 %v4100_v17, %v4100_v17 }
 0xc16   : > { %v4143_v6 = vld [vmem:[#allocation3 + $0x29] sm:$0x7]  ;;  %v10362_v28 = vpack.c.bf16 %v4098_v63, %v4098_v63  ;;  %v10363_v36 = vpack.c.bf16 %v4099_v11, %v4099_v11  ;;  %v10365_v19 = vpack.c.bf16 %v4101_v1, %v4101_v1  ;;  %v4295_v26 = vld [vmem:[#allocation3 + $0xc] sm:$0xff]  ;;  %v4141_v22 = vld [vmem:[#allocation3 + $0x19] sm:$0xff] }
 0xc17   : > { %v10372_v30 = vpack.c.bf16 %v4143_v6, %v4143_v6  ;;  %v4195_v39 = vld [vmem:[#allocation3 + $0x2a] sm:$0x7]  ;;  %4130 = vst.msk [vmem:[#allocation7 + $0x18] sm:$0xf] %vm14703_vm2, %v10364_v40  ;;  %v10386_v50 = vpack.c.bf16 %v4295_v26, %v4295_v26  ;;  %v4140_v46 = vld [vmem:[#allocation3 + $0x11] sm:$0xff]  ;;  %v10370_v0 = vpack.c.bf16 %v4141_v22, %v4141_v22  ;;  %v4193_v35 = vld [vmem:[#allocation3 + $0x1a] sm:$0xff] }
 0xc18   : > { %v10378_v56 = vpack.c.bf16 %v4195_v39, %v4195_v39  ;;  %v4102_v49 = vld [vmem:[#allocation3 + $0x28] sm:$0x7]  ;;  %v4243_v24 = vld [vmem:[#allocation3 + $0xb] sm:$0xff]  ;;  %4128 = vst.msk [vmem:[#allocation7 + $0x8] sm:$0xf] %vm14701_vm8, %v10362_v28  ;;  %v10369_v51 = vpack.c.bf16 %v4140_v46, %v4140_v46  ;;  %v10376_v31 = vpack.c.bf16 %v4193_v35, %v4193_v35  ;;  %v4244_v9 = vld [vmem:[#allocation3 + $0x13] sm:$0xff] }
 0xc19   : > { %4172 = vrot.lane.b32.xlu0 %v10372_v30, %s12404_s1  ;;  %v10366_v25 = vpack.c.bf16 %v4102_v49, %v4102_v49  ;;  %v4242_v5 = vld [vmem:[#allocation3 + $0x3] sm:$0xff]  ;;  %v10380_v12 = vpack.c.bf16 %v4243_v24, %v4243_v24  ;;  %4129 = vst.msk [vmem:[#allocation7 + $0x10] sm:$0xf] %vm14702_vm10, %v10363_v36  ;;  %v4192_v62 = vld [vmem:[#allocation3 + $0x12] sm:$0xff]  ;;  %v4247_v6 = vld [vmem:[#allocation3 + $0x2b] sm:$0x7]  ;;  %v10381_v34 = vpack.c.bf16 %v4244_v9, %v4244_v9 }
 0xc1a   : > { %4224 = vrot.lane.b32.xlu1 %v10378_v56, %s12406_s7  ;;  %v10379_v57 = vpack.c.bf16 %v4242_v5, %v4242_v5  ;;  %v4294_v23 = vld [vmem:[#allocation3 + $0x4] sm:$0xff]  ;;  %v10375_v48 = vpack.c.bf16 %v4192_v62, %v4192_v62  ;;  %v10384_v30 = vpack.c.bf16 %v4247_v6, %v4247_v6  ;;  %v4296_v39 = vld [vmem:[#allocation3 + $0x14] sm:$0xff]  ;;  %v4297_v7 = vld [vmem:[#allocation3 + $0x1c] sm:$0xff]  ;;  %vm4237_vm8 = vcmask 386304  }
 0xc1b   : > { %v4136_v33 = vsel %vm13712_vm15, %v10366_v25, %v4135_v21  ;;  %vm14704_vm15 = vmmov %vm14703_vm2  ;;  %v10385_v41 = vpack.c.bf16 %v4294_v23, %v4294_v23  ;;  %v4245_v13 = vld [vmem:[#allocation3 + $0x1b] sm:$0xff]  ;;  %v10387_v56 = vpack.c.bf16 %v4296_v39, %v4296_v39  ;;  %v10388_v49 = vpack.c.bf16 %v4297_v7, %v4297_v7  ;;  %v4246_v55 = vld [vmem:[#allocation3 + $0x23] sm:$0xff] }
 0xc1c   : > { %4137 = vst [vmem:[#allocation7 + $0x28] sm:$0x3] %v4136_v33  ;;  %4131 = vst.msk [vmem:[#allocation7 + $0x20] sm:$0xf] %vm14704_vm15, %v10365_v19  ;;  %v4142_v10 = vld [vmem:[#allocation3 + $0x21] sm:$0xff]  ;;  %v10383_v21 = vpack.c.bf16 %v4246_v55, %v4246_v55  ;;  %vm14583_vm2 = vcmask 255104  }
 0xc1d   : > { %4164 = vrot.lane.b32.xlu0 %v10368_v20, %s12404_s1  ;;  %v10382_v20 = vpack.c.bf16 %v4245_v13, %v4245_v13  ;;  %v10371_v52 = vpack.c.bf16 %v4142_v10, %v4142_v10  ;;  %v4194_v63 = vld [vmem:[#allocation3 + $0x22] sm:$0xff]  ;;  %v4299_v25 = vld [vmem:[#allocation3 + $0x2c] sm:$0x7]  ;;  %vm4186_vm10 = vmand %vm14583_vm2, %vm14584_vm12 }
 0xc1e   : > { %4216 = vrot.lane.b32.xlu1 %v10374_v61, %s12406_s7  ;;  %v10377_v61 = vpack.c.bf16 %v4194_v63, %v4194_v63  ;;  %v4298_v24 = vld [vmem:[#allocation3 + $0x24] sm:$0xff]  ;;  %v10390_v28 = vpack.c.bf16 %v4299_v25, %v4299_v25  ;;  %vm14706_vm15 = vmmov %vm14705_vm7  ;;  %v13785_v25 = vld [vmem:[#allocation19] sm:$0x7] }
 0xc1f   : > { %v10389_v27 = vpack.c.bf16 %v4298_v24, %v4298_v24  ;;  %vm4238_vm6 = vmand %vm4237_vm8, %vm14584_vm12  ;;  %v4478_v55 = vld [vmem:[#allocation43] sm:$0xff] }
 0xc20   : > { %vm14708_vm2 = vmmov %vm14707_vm9 }
 0xc21   : > { %4214 = vrot.lane.b32.xlu0 %v10373_v44, %s12406_s7 }
 0xc22   : > { %4268 = vrot.lane.b32.xlu1 %v10380_v12, %s12407_s4 }
 0xc23   : > { %v4187_v11 = vld [vmem:[#allocation7 + $0x28] sm:$0x3] }
 0xc25   : > { %4266 = vrot.lane.b32.xlu0 %v10379_v57, %s12407_s4 }
 0xc26   : > { %4320 = vrot.lane.b32.xlu1 %v10386_v50, %s12408_s16 }
 0xc29   : > { %4318 = vrot.lane.b32.xlu0 %v10385_v41, %s12408_s16 }
 0xc2a   : > { %4168 = vrot.lane.b32.xlu1 %v10370_v0, %s12404_s1 }
 0xc2d   : > { %4166 = vrot.lane.b32.xlu0 %v10369_v51, %s12404_s1 }
 0xc2e   : > { %4220 = vrot.lane.b32.xlu1 %v10376_v31, %s12406_s7 }
 0xc31   : > { %4218 = vrot.lane.b32.xlu0 %v10375_v48, %s12406_s7 }
 0xc32   : > { %4270 = vrot.lane.b32.xlu1 %v10381_v34, %s12407_s4 }
 0xc35   : > { %4276 = vrot.lane.b32.xlu0 %v10384_v30, %s12407_s4 }
 0xc36   : > { %4322 = vrot.lane.b32.xlu1 %v10387_v56, %s12408_s16 }
 0xc39   : > { %4272 = vrot.lane.b32.xlu0 %v10382_v20, %s12407_s4 }
 0xc3a   : > { %4170 = vrot.lane.b32.xlu1 %v10371_v52, %s12404_s1 }
 0xc3d   : > { %4324 = vrot.lane.b32.xlu0 %v10388_v49, %s12408_s16  ;;  %v4479_v49 = vld [vmem:[#allocation43 + $0x8] sm:$0xff] }
 0xc3e   : > { %4274 = vrot.lane.b32.xlu1 %v10383_v21, %s12407_s4  ;;  %10876 = vmatpush3.msra.mxu1 %v4479_v49 }
 0xc3f   : > { %10877 = vmatprep.subr.mxu1 %v12400_v14 }
 0xc40   : > { %10878 = vmatpush3.msra.mxu1 %v4478_v55 }
 0xc41   : > { %4222 = vrot.lane.b32.xlu0 %v10377_v61, %s12406_s7  ;;  %10882 = vmatprep.subr.mxu1 %v12400_v14 }
 0xc42   : > { %4326 = vrot.lane.b32.xlu1 %v10389_v27, %s12408_s16  ;;  %v4366_v27 = vrot.slane %v13785_v25, %v13080_v38 }
 0xc45   : > { %4328 = vrot.lane.b32.xlu0 %v10390_v28, %s12408_s16 }
 0xc87   : > { %v4163_v29 = vpop.permute.xlu1 %4162 }
 0xc88   : > { %4180 = vst.msk [vmem:[#allocation7] sm:$0xf] %vm14705_vm7, %v4163_v29 }
 0xc8b   : > { %v4173_v44 = vpop.permute.xlu0 %4172 }
 0xc8c   : > { %v4188_v17 = vsel %vm4186_vm10, %v4173_v44, %v4187_v11  ;;  %v4225_v1 = vpop.permute.xlu1 %4224  ;;  %vm14709_vm10 = vcmask 519552  }
 0xc8d   : > { %4189 = vst [vmem:[#allocation7 + $0x28] sm:$0x3] %v4188_v17  ;;  %vm14710_vm7 = vmmov %vm14709_vm10 }
 0xc8f   : > { %v4165_v5 = vpop.permute.xlu0 %4164 }
 0xc90   : > { %4181 = vst.msk [vmem:[#allocation7 + $0x8] sm:$0xf] %vm14706_vm15, %v4165_v5  ;;  %v4217_v33 = vpop.permute.xlu1 %4216  ;;  %vm14711_vm15 = vcmask 650752  }
 0xc91   : > { %4233 = vst.msk [vmem:[#allocation7 + $0x8] sm:$0xf] %vm14707_vm9, %v4217_v33  ;;  %vm14712_vm8 = vmmov %vm14711_vm15  ;;  %vm14713_vm9 = vcmask 257152  }
 0xc92   : > { %vm14714_vm12 = vmmov %vm14713_vm9 }
 0xc93   : > { %v4215_v53 = vpop.permute.xlu0 %4214 }
 0xc94   : > { %v4239_v36 = vld [vmem:[#allocation7 + $0x28] sm:$0x3]  ;;  %4232 = vst.msk [vmem:[#allocation7] sm:$0xf] %vm14708_vm2, %v4215_v53  ;;  %v4269_v19 = vpop.permute.xlu1 %4268 }
 0xc95   : > { %v4240_v40 = vsel %vm4238_vm6, %v4225_v1, %v4239_v36  ;;  %4285 = vst.msk [vmem:[#allocation7 + $0x8] sm:$0xf] %vm14709_vm10, %v4269_v19  ;;  %vm4289_vm6 = vcmask 517504   ;;  %vm14715_vm10 = vmmov %vm14708_vm2 }
 0xc96   : > { %4241 = vst [vmem:[#allocation7 + $0x28] sm:$0x3] %v4240_v40 }
 0xc97   : > { %v4267_v12 = vpop.permute.xlu0 %4266 }
 0xc98   : > { %4284 = vst.msk [vmem:[#allocation7] sm:$0xf] %vm14710_vm7, %v4267_v12  ;;  %v4321_v57 = vpop.permute.xlu1 %4320  ;;  %vm14716_vm7 = vsmask.f32 1280 }
 0xc99   : > { %4337 = vst.msk [vmem:[#allocation7 + $0x8] sm:$0xf] %vm14711_vm15, %v4321_v57  ;;  %vm4290_vm15 = vmand %vm4289_vm6, %vm14716_vm7  ;;  %vm14721_vm6 = vcmask 257152  }
 0xc9b   : > { %v4319_v26 = vpop.permute.xlu0 %4318 }
 0xc9c   : > { %4336 = vst.msk [vmem:[#allocation7] sm:$0xf] %vm14712_vm8, %v4319_v26  ;;  %v4169_v23 = vpop.permute.xlu1 %4168  ;;  %vm14718_vm8 = vcmask 519552  }
 0xc9d   : > { %4183 = vst.msk [vmem:[#allocation7 + $0x18] sm:$0xf] %vm14713_vm9, %v4169_v23  ;;  %v4291_v35 = vld [vmem:[#allocation7 + $0x28] sm:$0x3]  ;;  %vm14720_vm9 = vmmov %vm14718_vm8 }
 0xc9e   : > { %vm14723_vm7 = vmmov %vm14718_vm8 }
 0xc9f   : > { %v4167_v37 = vpop.permute.xlu0 %4166 }
 0xca0   : > { %4182 = vst.msk [vmem:[#allocation7 + $0x10] sm:$0xf] %vm14714_vm12, %v4167_v37  ;;  %v4347_v50 = vld [vmem:[#allocation7 + $0x8] sm:$0xf]  ;;  %v4221_v41 = vpop.permute.xlu1 %4220  ;;  %vm14719_vm12 = vcmask 650752  }
 0xca1   : > { %4235 = vst.msk [vmem:[#allocation7 + $0x18] sm:$0xf] %vm14708_vm2, %v4221_v41  ;;  %vm4341_vm2 = vcmask 648704  }
 0xca3   : > { %v4346_v22 = vld [vmem:[#allocation7] sm:$0xf]  ;;  %v4219_v46 = vpop.permute.xlu0 %4218 }
 0xca4   : > { %4234 = vst.msk [vmem:[#allocation7 + $0x10] sm:$0xf] %vm14715_vm10, %v4219_v46  ;;  %v9911_v42 = vcombine.low %v4346_v22, %v4347_v50  ;;  %v4271_v0 = vpop.permute.xlu1 %4270 }
 0xca5   : > { %4286 = vst.msk [vmem:[#allocation7 + $0x10] sm:$0xf] %vm14718_vm8, %v4271_v0 }
 0xca6   : > { %10864 = vmatmul.mubr.msk.bf16.vlgmr.msra.gmra.mxu0 %vm14717_vm3, %v9911_v42  ;;  %vm14722_vm3 = vmmov %vm14719_vm12 }
 0xca7   : > { %v4277_v51 = vpop.permute.xlu0 %4276  ;;  %10867 = vmatprep.mubr.msk.bf16.mxu0 %vm14683_vm4, %v12400_v14 }
 0xca8   : > { %v4292_v62 = vsel %vm4290_vm15, %v4277_v51, %v4291_v35  ;;  %v4323_v54 = vpop.permute.xlu1 %4322  ;;  %vm14724_vm15 = vsmask.f32 1280 }
 0xca9   : > { %4293 = vst [vmem:[#allocation7 + $0x28] sm:$0x3] %v4292_v62  ;;  %4338 = vst.msk [vmem:[#allocation7 + $0x10] sm:$0xf] %vm14719_vm12, %v4323_v54 }
 0xcaa   : > { %vm4342_vm8 = vmand %vm4341_vm2, %vm14724_vm15 }
 0xcab   : > { %v4273_v31 = vpop.permute.xlu0 %4272  ;;  %vm14725_vm12 = vmmov %vm14722_vm3 }
 0xcac   : > { %4287 = vst.msk [vmem:[#allocation7 + $0x18] sm:$0xf] %vm14720_vm9, %v4273_v31  ;;  %v4171_v48 = vpop.permute.xlu1 %4170  ;;  %vm14726_vm9 = vcmask 654336  }
 0xcad   : > { %4184 = vst.msk [vmem:[#allocation7 + $0x20] sm:$0xf] %vm14721_vm6, %v4171_v48  ;;  %vm14727_vm6 = vmmov %vm14726_vm9 }
 0xcaf   : > { %v4325_v9 = vpop.permute.xlu0 %4324 }
 0xcb0   : > { %4339 = vst.msk [vmem:[#allocation7 + $0x18] sm:$0xf] %vm14722_vm3, %v4325_v9  ;;  %v4275_v6 = vpop.permute.xlu1 %4274  ;;  %v4348_v39 = vld [vmem:[#allocation7 + $0x10] sm:$0xf]  ;;  %v4343_v56 = vld [vmem:[#allocation7 + $0x28] sm:$0x3] }
 0xcb1   : > { %vm14728_vm3 = vcmask 130048  }
 0xcb2   : > { %vm14729_vm2 = vmmov %vm14728_vm3 }
 0xcb3   : > { %v4223_v34 = vpop.permute.xlu0 %4222  ;;  %vm14732_vm15 = vmmov %vm14729_vm2 }
 0xcb4   : > { %4236 = vst.msk [vmem:[#allocation7 + $0x20] sm:$0xf] %vm14715_vm10, %v4223_v34  ;;  %v4327_v30 = vpop.permute.xlu1 %4326  ;;  %vm14730_vm10 = vmmov %vm14729_vm2 }
 0xcb5   : > { %4288 = vst.msk [vmem:[#allocation7 + $0x20] sm:$0xf] %vm14723_vm7, %v4275_v6  ;;  %vm14731_vm7 = vmmov %vm14729_vm2 }
 0xcb6   : > { %4340 = vst.msk [vmem:[#allocation7 + $0x20] sm:$0xf] %vm14725_vm12, %v4327_v30  ;;  %vm14733_vm12 = vmmov %vm14729_vm2 }
 0xcb7   : > { %v4329_v13 = vpop.permute.xlu0 %4328  ;;  %v4349_v20 = vld [vmem:[#allocation7 + $0x18] sm:$0xf] }
 0xcb8   : > { %v4344_v10 = vsel %vm4342_vm8, %v4329_v13, %v4343_v56  ;;  %v9912_v7 = vcombine.low %v4348_v39, %v4349_v20  ;;  %vm14586_vm8 = vcmask 124928  }
 0xcb9   : > { %4345 = vst [vmem:[#allocation7 + $0x28] sm:$0x3] %v4344_v10 }
 0xcba   : > { %10868 = vmatmul.mubr.msk.bf16.gmra.mxu0 %vm14726_vm9, %v9912_v7  ;;  %vm14734_vm9 = vmmov %vm14729_vm2 }
 0xcbb   : > { %10871 = vmatprep.mubr.msk.bf16.mxu0 %vm14683_vm4, %v12400_v14 }
 0xcc0   : > { %v11524_v52 = vld [vmem:[#allocation7 + $0x20] ss:$8 sps:$4 sm:$0x3f]  }
 0xcc2   : > { %10872 = vmatmul.mubr.msk.bf16.gmra.mxu0 %vm14727_vm6, %v11524_v52  ;;  %vm14735_vm6 = vmmov %vm14729_vm2 }
 0xcc3   : > { %10899 = vmatprep.mubr.msk.bf16.mxu0 %vm14683_vm4, %v12400_v14 }
 0xd66   : > { %v4455_v63 = vpop.f32.mrf.mxu0 }
 0xd67   : > { %v4456_v11 = vadd.f32 %v4455_v63, %v4366_v27 }
 0xd68   : > { %v10865_v21 = vpop.f32.mrf.mxu0 }
 0xd69   : > { %v4480_v36 = vsel %vm14729_vm2, %v4456_v11, 0.0 }
 0xd6a   : > { %v4458_v61 = vpop.f32.mrf.mxu0 }
 0xd6b   : > { %v4459_v29 = vadd.f32 %v4458_v61, %v4366_v27 }
 0xd6c   : > { %v10866_v24 = vpop.f32.mrf.mxu0 }
 0xd6d   : > { %v4481_v5 = vsel %vm14728_vm3, %v4459_v29, 0.0  ;;  %vm14736_vm3 = vmmov %vm14729_vm2 }
 0xd6e   : > { %v4482_v19 = vadd.f32 %v4481_v5, %v4480_v36 }
 0xd7a   : > { %v4463_v28 = vpop.f32.mrf.mxu0 }
 0xd7b   : > { %v4464_v17 = vadd.f32 %v4463_v28, %v4366_v27 }
 0xd7c   : > { %v10869_v44 = vpop.f32.mrf.mxu0 }
 0xd7d   : > { %v4483_v40 = vsel %vm14730_vm10, %v4464_v17, 0.0  ;;  %vm14737_vm10 = vmmov %vm14729_vm2 }
 0xd7e   : > { %v4466_v1 = vpop.f32.mrf.mxu0  ;;  %v4484_v23 = vadd.f32 %v4483_v40, %v4482_v19 }
 0xd7f   : > { %v4467_v33 = vadd.f32 %v4466_v1, %v4366_v27 }
 0xd80   : > { %v10870_v53 = vpop.f32.mrf.mxu0 }
 0xd81   : > { %v4485_v57 = vsel %vm14731_vm7, %v4467_v33, 0.0  ;;  %vm14738_vm7 = vmmov %vm14729_vm2 }
 0xd82   : > { %v4471_v12 = vpop.f32.mrf.mxu0  ;;  %v4486_v41 = vadd.f32 %v4485_v57, %v4484_v23 }
 0xd83   : > { %v4472_v26 = vadd.f32 %v4471_v12, %v4366_v27 }
 0xd84   : > { %v10873_v37 = vpop.f32.mrf.mxu0 }
 0xd85   : > { %v4487_v50 = vsel %vm14732_vm15, %v4472_v26, 0.0  ;;  %vm14739_vm15 = vmmov %vm14729_vm2 }
 0xd86   : > { %v4474_v22 = vpop.f32.mrf.mxu0  ;;  %v4488_v42 = vadd.f32 %v4487_v50, %v4486_v41 }
 0xd87   : > { %v4475_v46 = vadd.f32 %v4474_v22, %v4366_v27 }
 0xd88   : > { %v10874_v0 = vpop.f32.mrf.mxu0 }
 0xd89   : > { %v4490_v51 = vsel %vm14586_vm8, %v4475_v46, 0.0 }
 0xd8a   : > { %v4491_v35 = vadd.f32 %v4490_v51, %v4488_v42  ;;  %v4695_v51 = vrot.slane %v13785_v25, %v13190_v45 }
 0xd8c   : > { %v4492_v62 = vrot.slane %v4491_v35, 4 }
 0xd8e   : > { %v4493_v54 = vadd.f32 %v4492_v62, %v4491_v35  ;;  %v4705_v62 = vrot.slane %v13785_v25, %v13193_v43 }
 0xd90   : > { %v4494_v31 = vrot.slane %v4493_v54, 2 }
 0xd92   : > { %v4495_v48 = vadd.f32 %v4494_v31, %v4493_v54 }
 0xd94   : > { %v4496_v9 = vrot.slane %v4495_v48, 1 }
 0xd96   : > { %v4497_v6 = vadd.f32 %v4496_v9, %v4495_v48 }
 0xd98   : > { %10880 = vmatmul.mubr.msk.f32.vlgmr.msra.gmra.mxu1 %vm14733_vm12, %v4497_v6  ;;  %vm14740_vm12 = vmmov %vm14729_vm2 }
 0xd99   : > { %10883 = vmatpush3.msra.mxu1 %v4479_v49  ;;  %10886 = vmatprep.mubr.msk.f32.mxu1 %vm14683_vm4, %v12400_v14 }
 0xd9a   : > { %10884 = vmatprep.subr.mxu1 %v12400_v14 }
 0xd9b   : > { %10885 = vmatpush3.msra.mxu1 %v4478_v55 }
 0xd9c   : > { %10911 = vmatprep.subr.mxu1 %v12400_v14 }
 0xe58   : > { %v4567_v34 = vpop.f32.mrf.mxu1 }
 0xe59   : > { %v4571_v30 = vmul.f32 0.0029069767, %v4567_v34 }
 0xe5a   : > { %v10881_v39 = vpop.f32.mrf.mxu1 }
 0xe5b   : > { %v4575_v13 = vrot.slane %v4571_v30, %v13080_v38 }
 0xe5d   : > { %v4576_v56 = vsub.f32 %v4456_v11, %v4575_v13  ;;  %v4577_v20 = vsub.f32 %v4459_v29, %v4575_v13  ;;  %v4578_v10 = vsub.f32 %v4464_v17, %v4575_v13  ;;  %v4579_v7 = vsub.f32 %v4467_v33, %v4575_v13 }
 0xe5e   : > { %v4580_v52 = vsub.f32 %v4472_v26, %v4575_v13  ;;  %v4581_v61 = vsub.f32 %v4475_v46, %v4575_v13 }
 0xe5f   : > { %v4582_v63 = vmul.f32 %v4576_v56, %v4576_v56  ;;  %v4583_v49 = vmul.f32 %v4577_v20, %v4577_v20  ;;  %v4584_v21 = vmul.f32 %v4578_v10, %v4578_v10  ;;  %v4585_v24 = vmul.f32 %v4579_v7, %v4579_v7 }
 0xe60   : > { %v4586_v44 = vmul.f32 %v4580_v52, %v4580_v52  ;;  %v4587_v53 = vmul.f32 %v4581_v61, %v4581_v61 }
 0xe61   : > { %v4588_v27 = vsel %vm14734_vm9, %v4582_v63, 0.0  ;;  %v4589_v55 = vsel %vm14735_vm6, %v4583_v49, 0.0  ;;  %v4591_v1 = vsel %vm14736_vm3, %v4584_v21, 0.0  ;;  %v4593_v29 = vsel %vm14729_vm2, %v4585_v24, 0.0  ;;  %vm14741_vm9 = vmmov %vm14729_vm2 }
 0xe62   : > { %v4590_v28 = vadd.f32 %v4589_v55, %v4588_v27  ;;  %v4595_v17 = vsel %vm14737_vm10, %v4586_v44, 0.0  ;;  %v4597_v36 = vsel %vm14586_vm8, %v4587_v53, 0.0  ;;  %vm14742_vm6 = vmmov %vm14729_vm2 }
 0xe63   : > { %vm14743_vm3 = vmmov %vm14729_vm2  ;;  %vm14744_vm2 = vcmask 125952  }
 0xe64   : > { %v4592_v5 = vadd.f32 %v4591_v1, %v4590_v28  ;;  %vm14745_vm10 = vmmov %vm14744_vm2 }
 0xe66   : > { %v4594_v11 = vadd.f32 %v4593_v29, %v4592_v5 }
 0xe68   : > { %v4596_v33 = vadd.f32 %v4595_v17, %v4594_v11 }
 0xe6a   : > { %v4598_v40 = vadd.f32 %v4597_v36, %v4596_v33 }
 0xe6c   : > { %v4599_v19 = vrot.slane %v4598_v40, 4 }
 0xe6e   : > { %v4600_v12 = vadd.f32 %v4599_v19, %v4598_v40 }
 0xe70   : > { %v4601_v57 = vrot.slane %v4600_v12, 2 }
 0xe72   : > { %v4602_v26 = vadd.f32 %v4601_v57, %v4600_v12 }
 0xe74   : > { %v4603_v23 = vrot.slane %v4602_v26, 1 }
 0xe76   : > { %v4604_v37 = vadd.f32 %v4603_v23, %v4602_v26 }
 0xe78   : > { %10887 = vmatmul.mubr.msk.f32.vlgmr.msra.gmra.mxu1 %vm14738_vm7, %v4604_v37  ;;  %vm14746_vm7 = vmmov %vm14744_vm2 }
 0xe79   : > { %10917 = vmatprep.mubr.msk.f32.mxu1 %vm14683_vm4, %v12400_v14 }
 0xf38   : > { %v4674_v50 = vpop.f32.mrf.mxu1 }
 0xf39   : > { %v4678_v41 = vmul.f32 0.0029069767, %v4674_v50 }
 0xf3a   : > { %v10888_v22 = vpop.f32.mrf.mxu1 }
 0xf3b   : > { %v4679_v46 = vmax.f32 %v4678_v41, 0.0  ;;  %v11525_v41 = vld [vmem:[#allocation21 + $0x20] sm:$0xff]  }
 0xf3c   : > { %10890 = vmatpush3.bf16.msra.mxu0 %v11525_v41 }
 0xf3d   : > { %v4680_v42 = vadd.f32 1e-05, %v4679_v46  ;;  %v4754_v46 = vld [vmem:[#allocation7 + $0x20] sm:$0xf]  ;;  %10891 = vmatprep.subr.bf16.mxu0 %v12400_v14 }
 0xf3f   : > { %11605 = vrsqrt.f32 %v4680_v42 }
 0xf4c   : > { %v11606_v0 = vpop.eup %11605 }
 0xf4d   : > { %v4685_v35 = vrot.slane %v11606_v0, %v13080_v38 }
 0xf4f   : > { %v4686_v54 = vmul.f32 %v4685_v35, %v4576_v56  ;;  %v4687_v31 = vmul.f32 %v4685_v35, %v4577_v20  ;;  %v4688_v48 = vmul.f32 %v4685_v35, %v4578_v10  ;;  %v4689_v9 = vmul.f32 %v4685_v35, %v4579_v7 }
 0xf50   : > { %v4690_v6 = vmul.f32 %v4685_v35, %v4580_v52  ;;  %v4691_v34 = vmul.f32 %v4685_v35, %v4581_v61 }
 0xf51   : > { %v4696_v30 = vmul.f32 %v4695_v51, %v4686_v54  ;;  %v4697_v39 = vmul.f32 %v4695_v51, %v4687_v31  ;;  %v4698_v13 = vmul.f32 %v4695_v51, %v4688_v48  ;;  %v4699_v63 = vmul.f32 %v4695_v51, %v4689_v9  ;;  %v11526_v54 = vld [vmem:[#allocation21 + $0x18] sm:$0xff]  }
 0xf52   : > { %v4700_v49 = vmul.f32 %v4695_v51, %v4690_v6  ;;  %v4701_v21 = vmul.f32 %v4695_v51, %v4691_v34  ;;  %v7294_v34 = vld [vmem:[#allocation7 + $0xc] sm:$0xf]  ;;  %10892 = vmatpush3.bf16.msra.mxu0 %v11526_v54 }
 0xf53   : > { %v4706_v24 = vadd.f32 %v4705_v62, %v4696_v30  ;;  %v4707_v27 = vadd.f32 %v4705_v62, %v4697_v39  ;;  %v4708_v55 = vadd.f32 %v4705_v62, %v4698_v13  ;;  %v4709_v28 = vadd.f32 %v4705_v62, %v4699_v63  ;;  %10893 = vmatprep.subr.bf16.mxu0 %v12400_v14 }
 0xf54   : > { %v4710_v44 = vadd.f32 %v4705_v62, %v4700_v49  ;;  %v4711_v1 = vadd.f32 %v4705_v62, %v4701_v21 }
 0xf55   : > { %v4712_v5 = vmax.f32 %v4706_v24, 0.0  ;;  %v4713_v25 = vmax.f32 %v4707_v27, 0.0  ;;  %v4714_v56 = vmax.f32 %v4708_v55, 0.0  ;;  %v4715_v20 = vmax.f32 %v4709_v28, 0.0  ;;  %v11527_v24 = vld [vmem:[#allocation21 + $0x10] sm:$0xff]  }
 0xf56   : > { %v4716_v10 = vmax.f32 %v4710_v44, 0.0  ;;  %v4717_v7 = vmax.f32 %v4711_v1, 0.0  ;;  %10894 = vmatpush3.bf16.msra.mxu0 %v11527_v24 }
 0xf57   : > { %4718 = vst.msk [vmem:[#allocation6] sm:$0xff] %vm14739_vm15, %v4712_v5  ;;  %vm14747_vm15 = vmmov %vm14744_vm2  ;;  %v11528_v5 = vld [vmem:[#allocation21 + $0x8] sm:$0xff]   ;;  %10895 = vmatprep.subr.bf16.mxu0 %v12400_v14 }
 0xf58   : > { %4719 = vst.msk [vmem:[#allocation6 + $0x8] sm:$0xff] %vm14740_vm12, %v4713_v25  ;;  %vm14748_vm12 = vmmov %vm14744_vm2 }
 0xf59   : > { %4720 = vst.msk [vmem:[#allocation6 + $0x10] sm:$0xff] %vm14741_vm9, %v4714_v56  ;;  %vm14749_vm9 = vcmask 257152  }
 0xf5a   : > { %4721 = vst.msk [vmem:[#allocation6 + $0x18] sm:$0xff] %vm14742_vm6, %v4715_v20  ;;  %10896 = vmatpush3.bf16.msra.mxu0 %v11528_v5  ;;  %vm14750_vm6 = vmmov %vm14749_vm9 }
 0xf5b   : > { %4722 = vst.msk [vmem:[#allocation6 + $0x20] sm:$0xff] %vm14743_vm3, %v4716_v10  ;;  %10897 = vmatprep.subr.bf16.mxu0 %v12400_v14  ;;  %vm14751_vm3 = vcmask 388352  }
 0xf5c   : > { %4723 = vst.msk [vmem:[#allocation6 + $0x28] sm:$0x7] %vm14586_vm8, %v4717_v7  ;;  %v11529_v7 = vld [vmem:[#allocation21] sm:$0xff]   ;;  %vm14592_vm8 = vcmask 978688  }
 0xf5e   : > { %v4724_v57 = vld [vmem:[#allocation6] sm:$0xff]  ;;  %10898 = vmatpush3.bf16.msra.mxu0 %v11529_v7 }
 0xf5f   : > { %v4757_v52 = vld [vmem:[#allocation6 + $0x1] sm:$0xff]  ;;  %v10391_v37 = vpack.c.bf16 %v4724_v57, %v4724_v57  ;;  %10949 = vmatprep.subr.mxu0 %v12400_v14 }
 0xf60   : > { %v10396_v53 = vpack.c.bf16 %v4757_v52, %v4757_v52  ;;  %v4758_v17 = vld [vmem:[#allocation6 + $0x9] sm:$0xff] }
 0xf61   : > { %v10397_v36 = vpack.c.bf16 %v4758_v17, %v4758_v17  ;;  %v4800_v40 = vld [vmem:[#allocation6 + $0x2] sm:$0xff]  ;;  %v4801_v19 = vld [vmem:[#allocation6 + $0xa] sm:$0xff]  ;;  %v4727_v0 = vld [vmem:[#allocation6 + $0x18] sm:$0xff]  ;;  %4750 = vst.msk [vmem:[#allocation7] sm:$0xf] %vm14744_vm2, %v10391_v37 }
 0xf62   : > { %v4761_v61 = vld [vmem:[#allocation6 + $0x21] sm:$0x7f]  ;;  %4778 = vrot.lane.b32.xlu1 %v10396_v53, %s12404_s1  ;;  %v4725_v26 = vld [vmem:[#allocation6 + $0x8] sm:$0xff]  ;;  %v10402_v22 = vpack.c.bf16 %v4801_v19, %v4801_v19  ;;  %v4726_v42 = vld [vmem:[#allocation6 + $0x10] sm:$0xff]  ;;  %v10401_v51 = vpack.c.bf16 %v4800_v40, %v4800_v40  ;;  %v10394_v48 = vpack.c.bf16 %v4727_v0, %v4727_v0 }
 0xf63   : > { %v10400_v29 = vpack.c.bf16 %v4761_v61, %v4761_v61  ;;  %v4804_v11 = vld [vmem:[#allocation6 + $0x22] sm:$0x7f]  ;;  %v10392_v50 = vpack.c.bf16 %v4725_v26, %v4725_v26  ;;  %v4844_v35 = vld [vmem:[#allocation6 + $0xb] sm:$0xff]  ;;  %v10393_v31 = vpack.c.bf16 %v4726_v42, %v4726_v42  ;;  %v7284_v6 = vld [vmem:[#allocation6 + $0x18] sm:$0x7f] }
 0xf64   : > { %v10405_v33 = vpack.c.bf16 %v4804_v11, %v4804_v11  ;;  %v4728_v12 = vld [vmem:[#allocation6 + $0x20] sm:$0x7f]  ;;  %4753 = vst.msk [vmem:[#allocation7 + $0x18] sm:$0xf] %vm14747_vm15, %v10394_v48  ;;  %v10483_v30 = vpack.c.bf16 %v7284_v6, %v7284_v6  ;;  %v7283_v39 = vld [vmem:[#allocation6 + $0x10] sm:$0xff]  ;;  %v10407_v13 = vpack.c.bf16 %v4844_v35, %v4844_v35  ;;  %vm14752_vm2 = vmmov %vm14751_vm3  ;;  %vm14755_vm15 = vcmask 650752  }
 0xf65   : > { %4786 = vrot.lane.b32.xlu0 %v10400_v29, %s12404_s1  ;;  %v10395_v23 = vpack.c.bf16 %v4728_v12, %v4728_v12  ;;  %4751 = vst.msk [vmem:[#allocation7 + $0x8] sm:$0xf] %vm14745_vm10, %v10392_v50  ;;  %v4843_v9 = vld [vmem:[#allocation6 + $0x3] sm:$0xff]  ;;  %v10482_v63 = vpack.c.bf16 %v7283_v39, %v7283_v39  ;;  %v7134_v49 = vld [vmem:[#allocation6 + $0xc] sm:$0xff]  ;;  %v4760_v1 = vld [vmem:[#allocation6 + $0x19] sm:$0xff]  ;;  %vm14753_vm10 = vcmask 519552  }
 0xf66   : > { %4829 = vrot.lane.b32.xlu1 %v10405_v33, %s12406_s7  ;;  %4752 = vst.msk [vmem:[#allocation7 + $0x10] sm:$0xf] %vm14746_vm7, %v10393_v31  ;;  %v10406_v21 = vpack.c.bf16 %v4843_v9, %v4843_v9  ;;  %v7295_v27 = vsel %vm13572_vm14, %v10483_v30, %v7294_v34  ;;  %v4886_v55 = vld [vmem:[#allocation6 + $0x4] sm:$0xff]  ;;  %v13840_v28 = vpack.c.bf16 %v7134_v49, %v7134_v49  ;;  %v4759_v25 = vld [vmem:[#allocation6 + $0x11] sm:$0xff]  ;;  %v4803_v10 = vld [vmem:[#allocation6 + $0x1a] sm:$0xff] }
 0xf67   : > { %v4755_v62 = vsel %vm13572_vm14, %v10395_v23, %v4754_v46  ;;  %7296 = vst [vmem:[#allocation7 + $0xc] sm:$0xf] %v7295_v27  ;;  %7293 = vst.msk [vmem:[#allocation7 + $0x4] sm:$0xf] %vm14748_vm12, %v10482_v63  ;;  %v10411_v44 = vpack.c.bf16 %v4886_v55, %v4886_v55  ;;  %v10399_v56 = vpack.c.bf16 %v4760_v1, %v4760_v1  ;;  %v4802_v52 = vld [vmem:[#allocation6 + $0x12] sm:$0xff]  ;;  %v4846_v40 = vld [vmem:[#allocation6 + $0x1b] sm:$0xff] }
 0xf68   : > { %4756 = vst [vmem:[#allocation7 + $0x20] sm:$0xf] %v4755_v62  ;;  %v10398_v20 = vpack.c.bf16 %v4759_v25, %v4759_v25  ;;  %v10404_v61 = vpack.c.bf16 %v4803_v10, %v4803_v10  ;;  %v10403_v53 = vpack.c.bf16 %v4802_v52, %v4802_v52  ;;  %v4845_v29 = vld [vmem:[#allocation6 + $0x13] sm:$0xff]  ;;  %v4847_v11 = vld [vmem:[#allocation6 + $0x23] sm:$0x7f]  ;;  %v10409_v12 = vpack.c.bf16 %v4846_v40, %v4846_v40  ;;  %vm14754_vm7 = vmmov %vm14753_vm10 }
 0xf69   : > { %4780 = vrot.lane.b32.xlu0 %v10397_v36, %s12404_s1  ;;  %v10408_v17 = vpack.c.bf16 %v4845_v29, %v4845_v29  ;;  %v10410_v33 = vpack.c.bf16 %v4847_v11, %v4847_v11  ;;  %v4888_v36 = vld [vmem:[#allocation6 + $0x14] sm:$0xff]  ;;  %v4890_v57 = vld [vmem:[#allocation6 + $0x24] sm:$0x7f]  ;;  %v4889_v26 = vld [vmem:[#allocation6 + $0x1c] sm:$0xff] }
 0xf6a   : > { %4823 = vrot.lane.b32.xlu1 %v10402_v22, %s12406_s7  ;;  %v10413_v19 = vpack.c.bf16 %v4888_v36, %v4888_v36  ;;  %v10415_v23 = vpack.c.bf16 %v4890_v57, %v4890_v57  ;;  %v10414_v37 = vpack.c.bf16 %v4889_v26, %v4889_v26  ;;  %vm14756_vm12 = vmmov %vm14755_vm15  ;;  %v13891_v29 = vld [vmem:[#allocation45 + $0x10] sm:$0xff]  ;;  %v13893_v11 = vld [vmem:[#allocation45 + $0x8] sm:$0xff] }
 0xf6b   : > { %10912 = vmatpush3.msra.mxu1 %v13891_v29 }
 0xf6c   : > { %10913 = vmatprep.subr.mxu1 %v12400_v14 }
 0xf6d   : > { %4821 = vrot.lane.b32.xlu0 %v10401_v51, %s12406_s7  ;;  %10914 = vmatpush3.msra.mxu1 %v13893_v11 }
 0xf6e   : > { %4866 = vrot.lane.b32.xlu1 %v10407_v13, %s12407_s4  ;;  %10915 = vmatprep.subr.mxu1 %v12400_v14 }
 0xf6f   : > { %v4797_v22 = vld [vmem:[#allocation7 + $0x20] sm:$0xf] }
 0xf71   : > { %4864 = vrot.lane.b32.xlu0 %v10406_v21, %s12407_s4 }
 0xf72   : > { %4909 = vrot.lane.b32.xlu1 %v13840_v28, %s12408_s16 }
 0xf75   : > { %4907 = vrot.lane.b32.xlu0 %v10411_v44, %s12408_s16 }
 0xf76   : > { %4784 = vrot.lane.b32.xlu1 %v10399_v56, %s12404_s1 }
 0xf79   : > { %4782 = vrot.lane.b32.xlu0 %v10398_v20, %s12404_s1 }
 0xf7a   : > { %4827 = vrot.lane.b32.xlu1 %v10404_v61, %s12406_s7 }
 0xf7d   : > { %4825 = vrot.lane.b32.xlu0 %v10403_v53, %s12406_s7 }
 0xf7e   : > { %4868 = vrot.lane.b32.xlu1 %v10408_v17, %s12407_s4  ;;  %v13898_v17 = vld [vmem:[#allocation45] sm:$0xff] }
 0xf7f   : > { %10916 = vmatpush3.msra.mxu1 %v13898_v17 }
 0xf80   : > { %10920 = vmatprep.subr.mxu1 %v12400_v14 }
 0xf81   : > { %4872 = vrot.lane.b32.xlu0 %v10410_v33, %s12407_s4 }
 0xf82   : > { %4911 = vrot.lane.b32.xlu1 %v10413_v19, %s12408_s16 }
 0xf85   : > { %4870 = vrot.lane.b32.xlu0 %v10409_v12, %s12407_s4  ;;  %v13909_v12 = vld [vmem:[#allocation22] sm:$0x7] }
 0xf86   : > { %4915 = vrot.lane.b32.xlu1 %v10415_v23, %s12408_s16  ;;  %v4948_v57 = vrot.slane %v13909_v12, %v13080_v38 }
 0xf89   : > { %4913 = vrot.lane.b32.xlu0 %v10414_v37, %s12408_s16 }
 0xfd4   : > { %v4779_v50 = vpop.permute.xlu1 %4778 }
 0xfd5   : > { %4793 = vst.msk [vmem:[#allocation7] sm:$0xf] %vm14749_vm9, %v4779_v50  ;;  %vm14757_vm9 = vmmov %vm14750_vm6 }
 0xfd7   : > { %v4787_v41 = vpop.permute.xlu0 %4786 }
 0xfd8   : > { %v4798_v46 = vsel %vm13610_vm5, %v4787_v41, %v4797_v22  ;;  %v4830_v42 = vpop.permute.xlu1 %4829 }
 0xfd9   : > { %4799 = vst [vmem:[#allocation7 + $0x20] sm:$0xf] %v4798_v46 }
 0xfdb   : > { %v4781_v0 = vpop.permute.xlu0 %4780 }
 0xfdc   : > { %4794 = vst.msk [vmem:[#allocation7 + $0x8] sm:$0xf] %vm14750_vm6, %v4781_v0  ;;  %v4824_v51 = vpop.permute.xlu1 %4823 }
 0xfdd   : > { %4837 = vst.msk [vmem:[#allocation7 + $0x8] sm:$0xf] %vm14751_vm3, %v4824_v51  ;;  %vm14758_vm3 = vmmov %vm14752_vm2 }
 0xfdf   : > { %v4822_v35 = vpop.permute.xlu0 %4821 }
 0xfe0   : > { %v4840_v62 = vld [vmem:[#allocation7 + $0x20] sm:$0xf]  ;;  %4836 = vst.msk [vmem:[#allocation7] sm:$0xf] %vm14752_vm2, %v4822_v35  ;;  %v4867_v31 = vpop.permute.xlu1 %4866 }
 0xfe1   : > { %v4841_v54 = vsel %vm13620_vm0, %v4830_v42, %v4840_v62  ;;  %4880 = vst.msk [vmem:[#allocation7 + $0x8] sm:$0xf] %vm14753_vm10, %v4867_v31  ;;  %vm14759_vm10 = vcmask 654336  }
 0xfe2   : > { %4842 = vst [vmem:[#allocation7 + $0x20] sm:$0xf] %v4841_v54 }
 0xfe3   : > { %v4865_v48 = vpop.permute.xlu0 %4864 }
 0xfe4   : > { %4879 = vst.msk [vmem:[#allocation7] sm:$0xf] %vm14754_vm7, %v4865_v48  ;;  %v4910_v9 = vpop.permute.xlu1 %4909 }
 0xfe5   : > { %4923 = vst.msk [vmem:[#allocation7 + $0x8] sm:$0xf] %vm14755_vm15, %v4910_v9  ;;  %vm14760_vm15 = vmmov %vm14756_vm12 }
 0xfe7   : > { %v4908_v6 = vpop.permute.xlu0 %4907 }
 0xfe8   : > { %4922 = vst.msk [vmem:[#allocation7] sm:$0xf] %vm14756_vm12, %v4908_v6  ;;  %v4785_v34 = vpop.permute.xlu1 %4784  ;;  %vm14761_vm12 = vmmov %vm14754_vm7 }
 0xfe9   : > { %4796 = vst.msk [vmem:[#allocation7 + $0x18] sm:$0xf] %vm14757_vm9, %v4785_v34  ;;  %v4883_v55 = vld [vmem:[#allocation7 + $0x20] sm:$0xf]  ;;  %vm14762_vm9 = vmmov %vm14760_vm15 }
 0xfeb   : > { %v4783_v30 = vpop.permute.xlu0 %4782 }
 0xfec   : > { %4795 = vst.msk [vmem:[#allocation7 + $0x10] sm:$0xf] %vm14750_vm6, %v4783_v30  ;;  %v4930_v39 = vld [vmem:[#allocation7 + $0x8] sm:$0xf]  ;;  %v4828_v13 = vpop.permute.xlu1 %4827  ;;  %vm14763_vm6 = vmmov %vm14759_vm10 }
 0xfed   : > { %4839 = vst.msk [vmem:[#allocation7 + $0x18] sm:$0xf] %vm14758_vm3, %v4828_v13  ;;  %vm14764_vm3 = vmmov %vm14763_vm6 }
 0xfef   : > { %v4929_v63 = vld [vmem:[#allocation7] sm:$0xf]  ;;  %v4826_v49 = vpop.permute.xlu0 %4825 }
 0xff0   : > { %4838 = vst.msk [vmem:[#allocation7 + $0x10] sm:$0xf] %vm14752_vm2, %v4826_v49  ;;  %v9949_v21 = vcombine.low %v4929_v63, %v4930_v39  ;;  %v4869_v24 = vpop.permute.xlu1 %4868  ;;  %vm14590_vm2 = vcmask 195584  }
 0xff1   : > { %4881 = vst.msk [vmem:[#allocation7 + $0x10] sm:$0xf] %vm14754_vm7, %v4869_v24  ;;  %vm14765_vm7 = vcmask 1043456  }
 0xff2   : > { %10900 = vmatmul.mubr.msk.bf16.vlgmr.msra.gmra.mxu0 %vm14759_vm10, %v9949_v21  ;;  %vm14587_vm10 = vcmask 194560  }
 0xff3   : > { %v4873_v27 = vpop.permute.xlu0 %4872  ;;  %10903 = vmatprep.mubr.msk.bf16.mxu0 %vm14683_vm4, %v12400_v14  ;;  %10950 = vmatpush3.msra.mxu0 %v13891_v29 }
 0xff4   : > { %v4884_v44 = vsel %vm13638_vm13, %v4873_v27, %v4883_v55  ;;  %v4912_v1 = vpop.permute.xlu1 %4911  ;;  %10951 = vmatprep.subr.mxu0 %v12400_v14 }
 0xff5   : > { %4885 = vst [vmem:[#allocation7 + $0x20] sm:$0xf] %v4884_v44  ;;  %4924 = vst.msk [vmem:[#allocation7 + $0x10] sm:$0xf] %vm14760_vm15, %v4912_v1  ;;  %10952 = vmatpush3.msra.mxu0 %v13893_v11 }
 0xff6   : > { %10953 = vmatprep.subr.mxu0 %v12400_v14  ;;  %vm14766_vm15 = vmmov %vm14765_vm7 }
 0xff7   : > { %v4871_v5 = vpop.permute.xlu0 %4870  ;;  %10954 = vmatpush3.msra.mxu0 %v13898_v17 }
 0xff8   : > { %4882 = vst.msk [vmem:[#allocation7 + $0x18] sm:$0xf] %vm14761_vm12, %v4871_v5  ;;  %v4916_v25 = vpop.permute.xlu1 %4915  ;;  %10958 = vmatprep.subr.mxu0 %v12400_v14  ;;  %vm14588_vm12 = vcmask 191488  }
 0xffb   : > { %v4914_v56 = vpop.permute.xlu0 %4913 }
 0xffc   : > { %4925 = vst.msk [vmem:[#allocation7 + $0x18] sm:$0xf] %vm14762_vm9, %v4914_v56  ;;  %v4926_v20 = vld [vmem:[#allocation7 + $0x20] sm:$0xf]  ;;  %v4931_v7 = vld [vmem:[#allocation7 + $0x10] sm:$0xf] }
 0xffd   : > { %v4927_v10 = vsel %vm13656_vm1, %v4916_v25, %v4926_v20  ;;  %vm5313_vm9 = vcmask 188416  }
 0xffe   : > { %4928 = vst [vmem:[#allocation7 + $0x20] sm:$0xf] %v4927_v10 }
0x1003   : > { %v4932_v52 = vld [vmem:[#allocation7 + $0x18] sm:$0xf] }
0x1004   : > { %v9950_v61 = vcombine.low %v4931_v7, %v4932_v52 }
0x1005   : > { %v11530_v53 = vld [vmem:[#allocation7 + $0x20] ss:$0 sps:$4 sm:$0xff]  }
0x1006   : > { %10904 = vmatmul.mubr.msk.bf16.gmra.mxu0 %vm14763_vm6, %v9950_v61  ;;  %vm5337_vm6 = vcmask 388288  }
0x1007   : > { %10907 = vmatprep.mubr.msk.bf16.mxu0 %vm14683_vm4, %v12400_v14 }
0x100e   : > { %10908 = vmatmul.mubr.msk.bf16.gmra.mxu0 %vm14764_vm3, %v11530_v53  ;;  %vm14594_vm3 = vcmask 585088  }
0x100f   : > { %10955 = vmatprep.mubr.msk.f32.mxu0 %vm14683_vm4, %v12400_v14 }
0x10b2   : > { %v5035_v33 = vpop.f32.mrf.mxu0 }
0x10b3   : > { %v5036_v37 = vadd.f32 %v5035_v33, %v4948_v57 }
0x10b4   : > { %v10901_v36 = vpop.f32.mrf.mxu0 }
0x10b5   : > { %v5061_v42 = vsel %vm14590_vm2, %v5036_v37, 0.0 }
0x10b6   : > { %v5038_v40 = vpop.f32.mrf.mxu0 }
0x10b7   : > { %v5039_v26 = vadd.f32 %v5038_v40, %v4948_v57 }
0x10b8   : > { %v10902_v19 = vpop.f32.mrf.mxu0 }
0x10b9   : > { %v5062_v22 = vsel %vm14590_vm2, %v5039_v26, 0.0 }
0x10ba   : > { %v5063_v35 = vadd.f32 %v5062_v22, %v5061_v42 }
0x10c6   : > { %v5043_v23 = vpop.f32.mrf.mxu0 }
0x10c7   : > { %v5044_v50 = vadd.f32 %v5043_v23, %v4948_v57 }
0x10c8   : > { %v10905_v41 = vpop.f32.mrf.mxu0 }
0x10c9   : > { %v5064_v0 = vsel %vm14590_vm2, %v5044_v50, 0.0 }
0x10ca   : > { %v5046_v46 = vpop.f32.mrf.mxu0  ;;  %v5065_v31 = vadd.f32 %v5064_v0, %v5063_v35 }
0x10cb   : > { %v5047_v51 = vadd.f32 %v5046_v46, %v4948_v57 }
0x10cc   : > { %v10906_v62 = vpop.f32.mrf.mxu0 }
0x10cd   : > { %v5066_v54 = vsel %vm14590_vm2, %v5047_v51, 0.0 }
0x10ce   : > { %v5051_v48 = vpop.f32.mrf.mxu0  ;;  %v5067_v6 = vadd.f32 %v5066_v54, %v5065_v31 }
0x10cf   : > { %v5052_v9 = vadd.f32 %v5051_v48, %v4948_v57  ;;  %v11531_v48 = vld [vmem:[#allocation24 + $0x38] ss:$0 sps:$4 sm:$0xff]  }
0x10d0   : > { %v10909_v34 = vpop.f32.mrf.mxu0 }
0x10d1   : > { %v5069_v30 = vsel %vm14587_vm10, %v5052_v9, 0.0 }
0x10d2   : > { %v5070_v39 = vadd.f32 %v5069_v30, %v5067_v6  ;;  %v5054_v13 = vpop.f32.mrf.mxu0 }
0x10d4   : > { %v5071_v63 = vrot.slane %v5070_v39, 4  ;;  %v10910_v49 = vpop.f32.mrf.mxu0 }
0x10d6   : > { %v5072_v21 = vadd.f32 %v5071_v63, %v5070_v39  ;;  %v5269_v63 = vrot.slane %v13909_v12, %v13190_v45 }
0x10d8   : > { %v5073_v24 = vrot.slane %v5072_v21, 2 }
0x10da   : > { %v5074_v27 = vadd.f32 %v5073_v24, %v5072_v21  ;;  %v5278_v21 = vrot.slane %v13909_v12, %v13193_v43 }
0x10dc   : > { %v5075_v55 = vrot.slane %v5074_v27, 1 }
0x10de   : > { %v5076_v44 = vadd.f32 %v5075_v55, %v5074_v27 }
0x10e0   : > { %10918 = vmatmul.mubr.msk.f32.vlgmr.msra.gmra.mxu1 %vm14590_vm2, %v5076_v44 }
0x10e1   : > { %10921 = vmatpush3.msra.mxu1 %v13891_v29  ;;  %10926 = vmatprep.mubr.msk.f32.mxu1 %vm14683_vm4, %v12400_v14 }
0x10e2   : > { %10922 = vmatprep.subr.mxu1 %v12400_v14 }
0x10e3   : > { %10923 = vmatpush3.msra.mxu1 %v13893_v11 }
0x10e4   : > { %10924 = vmatprep.subr.mxu1 %v12400_v14 }
0x10e5   : > { %10925 = vmatpush3.msra.mxu1 %v13898_v17 }
0x10e6   : > { %11181 = vmatprep.subr.msk.bf16.mxu1 %vm14765_vm7, %v11531_v48  ;;  %vm5340_vm7 = vcmask 385216  }
0x11a0   : > { %v5146_v1 = vpop.f32.mrf.mxu1 }
0x11a1   : > { %v5150_v5 = vmul.f32 0.0032051282, %v5146_v1 }
0x11a2   : > { %v10919_v25 = vpop.f32.mrf.mxu1 }
0x11a3   : > { %v5154_v56 = vrot.slane %v5150_v5, %v13080_v38 }
0x11a5   : > { %v5155_v20 = vsub.f32 %v5036_v37, %v5154_v56  ;;  %v5156_v10 = vsub.f32 %v5039_v26, %v5154_v56  ;;  %v5157_v7 = vsub.f32 %v5044_v50, %v5154_v56  ;;  %v5158_v52 = vsub.f32 %v5047_v51, %v5154_v56 }
0x11a6   : > { %v5159_v61 = vsub.f32 %v5052_v9, %v5154_v56 }
0x11a7   : > { %v5160_v53 = vmul.f32 %v5155_v20, %v5155_v20  ;;  %v5161_v33 = vmul.f32 %v5156_v10, %v5156_v10  ;;  %v5162_v36 = vmul.f32 %v5157_v7, %v5157_v7  ;;  %v5163_v40 = vmul.f32 %v5158_v52, %v5158_v52 }
0x11a8   : > { %v5164_v41 = vmul.f32 %v5159_v61, %v5159_v61 }
0x11a9   : > { %v5165_v19 = vsel %vm14590_vm2, %v5160_v53, 0.0  ;;  %v5166_v57 = vsel %vm14590_vm2, %v5161_v33, 0.0  ;;  %v5168_v22 = vsel %vm14590_vm2, %v5162_v36, 0.0  ;;  %v5170_v42 = vsel %vm14590_vm2, %v5163_v40, 0.0 }
0x11aa   : > { %v5167_v23 = vadd.f32 %v5166_v57, %v5165_v19  ;;  %v5172_v26 = vsel %vm14587_vm10, %v5164_v41, 0.0  ;;  %v5507_v41 = vsel %vm14766_vm15, %v11531_v48, 0  ;;  %vm5367_vm15 = vcmask 582016  }
0x11ac   : > { %v5169_v46 = vadd.f32 %v5168_v22, %v5167_v23  ;;  %v11532_v22 = vld [vmem:[#allocation24 + $0x30] sm:$0xff]  }
0x11ae   : > { %v5171_v37 = vadd.f32 %v5170_v42, %v5169_v46 }
0x11b0   : > { %v5173_v50 = vadd.f32 %v5172_v26, %v5171_v37 }
0x11b2   : > { %v5174_v0 = vrot.slane %v5173_v50, 4 }
0x11b4   : > { %v5175_v51 = vadd.f32 %v5174_v0, %v5173_v50 }
0x11b6   : > { %v5176_v35 = vrot.slane %v5175_v51, 2 }
0x11b8   : > { %v5177_v62 = vadd.f32 %v5176_v35, %v5175_v51 }
0x11ba   : > { %v5178_v54 = vrot.slane %v5177_v62, 1 }
0x11bc   : > { %v5179_v31 = vadd.f32 %v5178_v54, %v5177_v62 }
0x11be   : > { %10927 = vmatmul.mubr.msk.f32.vlgmr.msra.gmra.mxu1 %vm14590_vm2, %v5179_v31 }
0x11bf   : > { %10930 = vmatpush3.bf16.msra.mxu1 %v5507_v41 }
0x11c0   : > { %10931 = vmatprep.subr.bf16.mxu1 %v11532_v22 }
0x11c3   : > { %10932 = vmatpush3.bf16.msra.mxu1 %v11532_v22 }
0x127e   : > { %v5249_v9 = vpop.f32.mrf.mxu1 }
0x127f   : > { %v5253_v6 = vmul.f32 0.0032051282, %v5249_v9 }
0x1280   : > { %v10928_v34 = vpop.f32.mrf.mxu1 }
0x1281   : > { %v5254_v30 = vmax.f32 %v5253_v6, 0.0  ;;  %v11535_v34 = vld [vmem:[#allocation24 + $0x18] sm:$0xff]  }
0x1283   : > { %v5255_v39 = vadd.f32 1e-05, %v5254_v30 }
0x1285   : > { %11607 = vrsqrt.f32 %v5255_v39 }
0x1292   : > { %v11608_v13 = vpop.eup %11607 }
0x1293   : > { %v5260_v49 = vrot.slane %v11608_v13, %v13080_v38 }
0x1295   : > { %v5261_v24 = vmul.f32 %v5260_v49, %v5155_v20  ;;  %v5262_v27 = vmul.f32 %v5260_v49, %v5156_v10  ;;  %v5263_v55 = vmul.f32 %v5260_v49, %v5157_v7  ;;  %v5264_v44 = vmul.f32 %v5260_v49, %v5158_v52  ;;  %v11533_v52 = vld [vmem:[#allocation24 + $0x28] sm:$0xff]  }
0x1296   : > { %v5265_v1 = vmul.f32 %v5260_v49, %v5159_v61  ;;  %10933 = vmatprep.subr.bf16.mxu1 %v11533_v52  ;;  %v11534_v61 = vld [vmem:[#allocation24 + $0x20] sm:$0xff]  }
0x1297   : > { %v5270_v5 = vmul.f32 %v5269_v63, %v5261_v24  ;;  %v5271_v25 = vmul.f32 %v5269_v63, %v5262_v27  ;;  %v5272_v56 = vmul.f32 %v5269_v63, %v5263_v55  ;;  %v5273_v53 = vmul.f32 %v5269_v63, %v5264_v44  ;;  %10934 = vmatpush3.bf16.msra.mxu1 %v11533_v52  ;;  %v11536_v44 = vld [vmem:[#allocation24 + $0x10] sm:$0xff]  }
0x1298   : > { %v5274_v33 = vmul.f32 %v5269_v63, %v5265_v1  ;;  %10935 = vmatprep.subr.bf16.mxu1 %v11534_v61 }
0x1299   : > { %v5279_v36 = vadd.f32 %v5278_v21, %v5270_v5  ;;  %v5280_v40 = vadd.f32 %v5278_v21, %v5271_v25  ;;  %v5281_v19 = vadd.f32 %v5278_v21, %v5272_v56  ;;  %v5282_v57 = vadd.f32 %v5278_v21, %v5273_v53  ;;  %v11537_v53 = vld [vmem:[#allocation24 + $0x8] sm:$0xff]  }
0x129a   : > { %v5283_v23 = vadd.f32 %v5278_v21, %v5274_v33 }
0x129b   : > { %v5284_v46 = vmax.f32 %v5279_v36, 0.0  ;;  %v5285_v12 = vmax.f32 %v5280_v40, 0.0  ;;  %v5286_v20 = vmax.f32 %v5281_v19, 0.0  ;;  %v5287_v10 = vmax.f32 %v5282_v57, 0.0  ;;  %10936 = vmatpush3.bf16.msra.mxu1 %v11534_v61  ;;  %v11538_v40 = vld [vmem:[#allocation24] sm:$0xff]  }
0x129c   : > { %v5288_v7 = vmax.f32 %v5283_v23, 0.0  ;;  %10937 = vmatprep.subr.bf16.mxu1 %v11535_v34 }
0x129d   : > { %5289 = vst.msk [vmem:[#allocation2] sm:$0xff] %vm14590_vm2, %v5284_v46  ;;  %5290 = vst.msk [vmem:[#allocation2 + $0x8] sm:$0xff] %vm14590_vm2, %v5285_v12 }
0x129e   : > { %5291 = vst.msk [vmem:[#allocation2 + $0x10] sm:$0xff] %vm14590_vm2, %v5286_v20  ;;  %5292 = vst.msk [vmem:[#allocation2 + $0x18] sm:$0xff] %vm14590_vm2, %v5287_v10 }
0x129f   : > { %5293 = vst.msk [vmem:[#allocation2 + $0x20] sm:$0x7f] %vm14587_vm10, %v5288_v7  ;;  %10938 = vmatpush3.bf16.msra.mxu1 %v11535_v34  ;;  %vm5394_vm10 = vcmask 778816  }
0x12a0   : > { %10939 = vmatprep.subr.bf16.mxu1 %v11536_v44 }
0x12a3   : > { %10940 = vmatpush3.bf16.msra.mxu1 %v11536_v44 }
0x12a4   : > { %v5315_v26 = vld [vmem:[#allocation2 + $0x1] ss:$2 sm:$0xff]  ;;  %v5294_v51 = vld [vmem:[#allocation2] ss:$2 sm:$0xff]  ;;  %10941 = vmatprep.subr.bf16.mxu1 %v11537_v53 }
0x12a5   : > { %v5316_v42 = vld [vmem:[#allocation2 + $0x11] ss:$2 sm:$0xff]  ;;  %v5295_v37 = vld [vmem:[#allocation2 + $0x10] ss:$2 sm:$0xff]  ;;  %v10419_v0 = vpack.c.bf16 %v5315_v26, %v5315_v26  ;;  %v10416_v31 = vpack.c.bf16 %v5294_v51, %v5294_v51 }
0x12a6   : > { %v10420_v50 = vpack.c.bf16 %v5316_v42, %v5316_v42  ;;  %v10417_v35 = vpack.c.bf16 %v5295_v37, %v5295_v37  ;;  %v5342_v62 = vld [vmem:[#allocation2 + $0x2] ss:$2 sm:$0xff]  ;;  %v5317_v54 = vld [vmem:[#allocation2 + $0x21] ss:$2 sm:$0x3] }
0x12a7   : > { %5328 = vrot.lane.b32.xlu0 %v10419_v0, %s12405_s26  ;;  %5311 = vst.msk [vmem:[#allocation7] sm:$0xf] %vm14588_vm12, %v10416_v31  ;;  %v10422_v48 = vpack.c.bf16 %v5342_v62, %v5342_v62  ;;  %v10421_v9 = vpack.c.bf16 %v5317_v54, %v5317_v54  ;;  %v5296_v6 = vld [vmem:[#allocation2 + $0x20] ss:$2 sm:$0x3]  ;;  %10942 = vmatpush3.bf16.msra.mxu1 %v11537_v53 }
0x12a8   : > { %5330 = vrot.lane.b32.xlu1 %v10420_v50, %s12405_s26  ;;  %5312 = vst.msk [vmem:[#allocation7 + $0x8] sm:$0xf] %vm14588_vm12, %v10417_v35  ;;  %v5344_v30 = vld [vmem:[#allocation2 + $0x22] ss:$2 sm:$0x3]  ;;  %v10418_v13 = vpack.c.bf16 %v5296_v6, %v5296_v6  ;;  %10943 = vmatprep.subr.bf16.mxu1 %v11538_v40 }
0x12a9   : > { %v5343_v39 = vld [vmem:[#allocation2 + $0x12] ss:$2 sm:$0xff]  ;;  %v10424_v63 = vpack.c.bf16 %v5344_v30, %v5344_v30  ;;  %v5370_v21 = vld [vmem:[#allocation2 + $0x13] ss:$2 sm:$0xff]  ;;  %v5369_v24 = vld [vmem:[#allocation2 + $0x3] ss:$2 sm:$0xff] }
0x12aa   : > { %5314 = vst.msk [vmem:[#allocation7 + $0x10] sm:$0x1] %vm5313_vm9, %v10418_v13  ;;  %v10423_v49 = vpack.c.bf16 %v5343_v39, %v5343_v39  ;;  %v10426_v27 = vpack.c.bf16 %v5370_v21, %v5370_v21  ;;  %v10425_v55 = vpack.c.bf16 %v5369_v24, %v5369_v24  ;;  %v5396_v1 = vld [vmem:[#allocation2 + $0x4] ss:$2 sm:$0xff]  ;;  %v5397_v36 = vld [vmem:[#allocation2 + $0x14] ss:$2 sm:$0xff] }
0x12ab   : > { %5332 = vrot.lane.b32.xlu0 %v10421_v9, %s12405_s26  ;;  %v5371_v5 = vld [vmem:[#allocation2 + $0x23] ss:$2 sm:$0x3]  ;;  %v10428_v25 = vpack.c.bf16 %v5396_v1, %v5396_v1  ;;  %v5398_v33 = vld [vmem:[#allocation2 + $0x24] ss:$2 sm:$0x3]  ;;  %v10429_v57 = vpack.c.bf16 %v5397_v36, %v5397_v36  ;;  %10944 = vmatpush3.bf16.msra.mxu1 %v11538_v40 }
0x12ac   : > { %5355 = vrot.lane.b32.xlu1 %v10422_v48, %s12407_s4  ;;  %v10427_v56 = vpack.c.bf16 %v5371_v5, %v5371_v5  ;;  %v10430_v19 = vpack.c.bf16 %v5398_v33, %v5398_v33  ;;  %10987 = vmatprep.subr.mxu1 %v12400_v14  ;;  %vm14593_vm9 = vcmask 781888   ;;  %v13978_v62 = vld [vmem:[#allocation25] sm:$0x7] }
0x12ad   : > { %v5445_v48 = vrot.slane %v13978_v62, %v13080_v38 }
0x12af   : > { %5357 = vrot.lane.b32.xlu0 %v10423_v49, %s12407_s4 }
0x12b0   : > { %5359 = vrot.lane.b32.xlu1 %v10424_v63, %s12407_s4 }
0x12b3   : > { %5382 = vrot.lane.b32.xlu0 %v10425_v55, %s12409_s5 }
0x12b4   : > { %5384 = vrot.lane.b32.xlu1 %v10426_v27, %s12409_s5 }
0x12b7   : > { %5386 = vrot.lane.b32.xlu0 %v10427_v56, %s12409_s5 }
0x12b8   : > { %5409 = vrot.lane.b32.xlu1 %v10428_v25, %s12410_s22 }
0x12bb   : > { %5411 = vrot.lane.b32.xlu0 %v10429_v57, %s12410_s22 }
0x12bc   : > { %5413 = vrot.lane.b32.xlu1 %v10430_v19, %s12410_s22 }
0x1319   : > { %v5329_v41 = vpop.permute.xlu0 %5328 }
0x131a   : > { %v5331_v23 = vpop.permute.xlu1 %5330  ;;  %5338 = vst.msk [vmem:[#allocation7] sm:$0xf] %vm5337_vm6, %v5329_v41 }
0x131b   : > { %5339 = vst.msk [vmem:[#allocation7 + $0x8] sm:$0xf] %vm5337_vm6, %v5331_v23 }
0x131d   : > { %v5333_v46 = vpop.permute.xlu0 %5332 }
0x131e   : > { %v5356_v22 = vpop.permute.xlu1 %5355  ;;  %5341 = vst.msk [vmem:[#allocation7 + $0x10] sm:$0x1] %vm5340_vm7, %v5333_v46  ;;  %vm5421_vm7 = vcmask 975616  }
0x131f   : > { %5365 = vst.msk [vmem:[#allocation7] sm:$0xf] %vm14594_vm3, %v5356_v22 }
0x1321   : > { %v5358_v20 = vpop.permute.xlu0 %5357 }
0x1322   : > { %v5360_v12 = vpop.permute.xlu1 %5359  ;;  %5366 = vst.msk [vmem:[#allocation7 + $0x8] sm:$0xf] %vm14594_vm3, %v5358_v20 }
0x1323   : > { %5368 = vst.msk [vmem:[#allocation7 + $0x10] sm:$0x1] %vm5367_vm15, %v5360_v12  ;;  %vm14591_vm15 = vcmask 982016  }
0x1325   : > { %v5383_v7 = vpop.permute.xlu0 %5382 }
0x1326   : > { %v5385_v10 = vpop.permute.xlu1 %5384  ;;  %5392 = vst.msk [vmem:[#allocation7] sm:$0xf] %vm14593_vm9, %v5383_v7 }
0x1327   : > { %5393 = vst.msk [vmem:[#allocation7 + $0x8] sm:$0xf] %vm14593_vm9, %v5385_v10 }
0x1329   : > { %v5387_v61 = vpop.permute.xlu0 %5386 }
0x132a   : > { %v5410_v52 = vpop.permute.xlu1 %5409  ;;  %5395 = vst.msk [vmem:[#allocation7 + $0x10] sm:$0x1] %vm5394_vm10, %v5387_v61  ;;  %vm14589_vm10 = vcmask 189440  }
0x132b   : > { %5419 = vst.msk [vmem:[#allocation7] sm:$0xf] %vm14592_vm8, %v5410_v52 }
0x132d   : > { %v5412_v37 = vpop.permute.xlu0 %5411 }
0x132e   : > { %v5414_v42 = vpop.permute.xlu1 %5413  ;;  %5420 = vst.msk [vmem:[#allocation7 + $0x8] sm:$0xf] %vm14592_vm8, %v5412_v37 }
0x132f   : > { %5422 = vst.msk [vmem:[#allocation7 + $0x10] sm:$0x1] %vm5421_vm7, %v5414_v42  ;;  %vm14768_vm7 = vcmask 1043456  }
0x1332   : > { %v5423_v26 = vld [vmem:[#allocation7] sm:$0xf] }
0x1335   : > { %v5424_v0 = vld [vmem:[#allocation7 + $0x8] sm:$0xf] }
0x1336   : > { %v5425_v50 = vld [vmem:[#allocation7 + $0x10] sm:$0x1]  ;;  %v9977_v51 = vcombine.low %v5423_v26, %v5424_v0  ;;  %v11539_v0 = vld [vmem:[%s14767_s2 + $0x38] ss:$0 sps:$4 sm:$0xff]  }
0x1337   : > { %v9978_v35 = vcombine.low %v5425_v50, %v5425_v50 }
0x1338   : > { %10945 = vmatprep.mubr.msk.bf16.mxu1 %vm14591_vm15, %v9977_v51  ;;  %v5928_v51 = vsel %vm14768_vm7, %v11539_v0, 0  ;;  %vm5782_vm7 = vcmask 190464   ;;  %v11545_v0 = vld [vmem:[%s14767_s2 + $0x8] sm:$0xff]  }
0x1339   : > { %10946 = vmatmul.mubr.msk.bf16.vlgmr.msra.gmra.mxu1 %vm14591_vm15, %v9978_v35  ;;  %v11540_v35 = vld [vmem:[%s14767_s2 + $0x30] sm:$0xff]  }
0x133a   : > { %10988 = vmatpush3.msra.mxu1 %v13891_v29  ;;  %10993 = vmatprep.mubr.msk.f32.mxu1 %vm14683_vm4, %v12400_v14 }
0x133b   : > { %10989 = vmatprep.subr.mxu1 %v12400_v14 }
0x133c   : > { %10990 = vmatpush3.msra.mxu1 %v13893_v11 }
0x133d   : > { %10991 = vmatprep.subr.mxu1 %v12400_v14 }
0x133e   : > { %10992 = vmatpush3.msra.mxu1 %v13898_v17 }
0x133f   : > { %10996 = vmatprep.subr.mxu1 %v12400_v14 }
0x13f9   : > { %v10947_v54 = vpop.f32.mrf.mxu1 }
0x13fa   : > { %v5552_v30 = vadd.f32 %v10947_v54, %v5445_v48  ;;  %v11541_v54 = vld [vmem:[%s14767_s2 + $0x28] sm:$0xff]  }
0x13fb   : > { %v5543_v31 = vpop.f32.mrf.mxu1 }
0x13fc   : > { %v5544_v6 = vadd.f32 %v5543_v31, %v5445_v48  ;;  %v5564_v21 = vsel %vm14589_vm10, %v5552_v30, 0.0 }
0x13fd   : > { %v10948_v9 = vpop.f32.mrf.mxu1 }
0x13fe   : > { %v5560_v13 = vsel %vm14590_vm2, %v5544_v6, 0.0 }
0x13ff   : > { %v5546_v34 = vpop.f32.mrf.mxu1 }
0x1400   : > { %v5547_v39 = vadd.f32 %v5546_v34, %v5445_v48 }
0x1402   : > { %v5561_v63 = vsel %vm14590_vm2, %v5547_v39, 0.0 }
0x1403   : > { %v5562_v49 = vadd.f32 %v5561_v63, %v5560_v13  ;;  %v5761_v63 = vrot.slane %v13978_v62, %v13193_v43 }
0x1405   : > { %v5565_v24 = vadd.f32 %v5564_v21, %v5562_v49 }
0x1407   : > { %v5566_v27 = vrot.slane %v5565_v24, 4 }
0x1409   : > { %v5567_v55 = vadd.f32 %v5566_v27, %v5565_v24 }
0x140b   : > { %v5568_v44 = vrot.slane %v5567_v55, 2 }
0x140d   : > { %v5569_v1 = vadd.f32 %v5568_v44, %v5567_v55 }
0x140f   : > { %v5570_v5 = vrot.slane %v5569_v1, 1 }
0x1411   : > { %v5571_v25 = vadd.f32 %v5570_v5, %v5569_v1 }
0x1413   : > { %10956 = vmatmul.mubr.msk.f32.vlgmr.msra.gmra.mxu0 %vm14590_vm2, %v5571_v25 }
0x1414   : > { %10959 = vmatpush3.msra.mxu0 %v13891_v29  ;;  %10964 = vmatprep.mubr.msk.f32.mxu0 %vm14683_vm4, %v12400_v14 }
0x1415   : > { %10960 = vmatprep.subr.mxu0 %v12400_v14 }
0x1416   : > { %10961 = vmatpush3.msra.mxu0 %v13893_v11 }
0x1417   : > { %10962 = vmatprep.subr.mxu0 %v12400_v14 }
0x1418   : > { %10963 = vmatpush3.msra.mxu0 %v13898_v17 }
0x1419   : > { %10967 = vmatprep.subr.bf16.mxu0 %v12400_v14 }
0x14d3   : > { %v5641_v56 = vpop.f32.mrf.mxu0 }
0x14d4   : > { %v5645_v53 = vmul.f32 0.0069444445, %v5641_v56  ;;  %v11542_v56 = vld [vmem:[%s14767_s2 + $0x20] sm:$0xff]  }
0x14d5   : > { %v10957_v33 = vpop.f32.mrf.mxu0 }
0x14d6   : > { %v5649_v36 = vrot.slane %v5645_v53, %v13080_v38 }
0x14d8   : > { %v5650_v40 = vsub.f32 %v5544_v6, %v5649_v36  ;;  %v5651_v19 = vsub.f32 %v5547_v39, %v5649_v36  ;;  %v5652_v57 = vsub.f32 %v5552_v30, %v5649_v36  ;;  %v5754_v39 = vrot.slane %v13978_v62, %v13190_v45  ;;  %v11543_v62 = vld [vmem:[%s14767_s2 + $0x18] sm:$0xff]  }
0x14da   : > { %v5653_v23 = vmul.f32 %v5650_v40, %v5650_v40  ;;  %v5654_v41 = vmul.f32 %v5651_v19, %v5651_v19  ;;  %v5655_v22 = vmul.f32 %v5652_v57, %v5652_v57 }
0x14dc   : > { %v5656_v46 = vsel %vm14590_vm2, %v5653_v23, 0.0  ;;  %v5657_v12 = vsel %vm14590_vm2, %v5654_v41, 0.0  ;;  %v5659_v10 = vsel %vm14589_vm10, %v5655_v22, 0.0 }
0x14dd   : > { %v5658_v20 = vadd.f32 %v5657_v12, %v5656_v46 }
0x14df   : > { %v5660_v7 = vadd.f32 %v5659_v10, %v5658_v20 }
0x14e1   : > { %v5661_v52 = vrot.slane %v5660_v7, 4 }
0x14e3   : > { %v5662_v61 = vadd.f32 %v5661_v52, %v5660_v7 }
0x14e5   : > { %v5663_v42 = vrot.slane %v5662_v61, 2 }
0x14e7   : > { %v5664_v37 = vadd.f32 %v5663_v42, %v5662_v61 }
0x14e9   : > { %v5665_v26 = vrot.slane %v5664_v37, 1 }
0x14eb   : > { %v5666_v50 = vadd.f32 %v5665_v26, %v5664_v37 }
0x14ed   : > { %10965 = vmatmul.mubr.msk.f32.vlgmr.msra.gmra.mxu0 %vm14590_vm2, %v5666_v50 }
0x14ee   : > { %10983 = vmatprep.mubr.msk.bf16.mxu0 %vm14683_vm4, %v12400_v14  ;;  %10968 = vmatpush3.bf16.msra.mxu0 %v5928_v51 }
0x14ef   : > { %10969 = vmatprep.subr.bf16.mxu0 %v12400_v14 }
0x14f2   : > { %10970 = vmatpush3.bf16.msra.mxu0 %v11540_v35 }
0x14f3   : > { %10971 = vmatprep.subr.bf16.mxu0 %v12400_v14 }
0x14f6   : > { %10972 = vmatpush3.bf16.msra.mxu0 %v11541_v54  ;;  %v11546_v54 = vld [vmem:[%s14767_s2] sm:$0xff]  }
0x14f7   : > { %10973 = vmatprep.subr.bf16.mxu0 %v12400_v14 }
0x14fa   : > { %10974 = vmatpush3.bf16.msra.mxu0 %v11542_v56 }
0x14fb   : > { %10975 = vmatprep.subr.bf16.mxu0 %v12400_v14 }
0x14fe   : > { %10976 = vmatpush3.bf16.msra.mxu0 %v11543_v62 }
0x14ff   : > { %10977 = vmatprep.subr.bf16.mxu0 %v12400_v14 }
0x15ad   : > { %v5736_v31 = vpop.f32.mrf.mxu0 }
0x15ae   : > { %v5740_v48 = vmul.f32 0.0069444445, %v5736_v31 }
0x15af   : > { %v10966_v9 = vpop.f32.mrf.mxu0 }
0x15b0   : > { %v5741_v6 = vmax.f32 %v5740_v48, 0.0 }
0x15b2   : > { %v5742_v34 = vadd.f32 1e-05, %v5741_v6 }
0x15b4   : > { %11609 = vrsqrt.f32 %v5742_v34 }
0x15c1   : > { %v11610_v30 = vpop.eup %11609 }
0x15c2   : > { %v5747_v13 = vrot.slane %v11610_v30, %v13080_v38 }
0x15c4   : > { %v5748_v49 = vmul.f32 %v5747_v13, %v5650_v40  ;;  %v5749_v21 = vmul.f32 %v5747_v13, %v5651_v19  ;;  %v5750_v24 = vmul.f32 %v5747_v13, %v5652_v57  ;;  %v11544_v40 = vld [vmem:[%s14767_s2 + $0x10] sm:$0xff]  }
0x15c5   : > { %10978 = vmatpush3.bf16.msra.mxu0 %v11544_v40 }
0x15c6   : > { %v5755_v27 = vmul.f32 %v5754_v39, %v5748_v49  ;;  %v5756_v55 = vmul.f32 %v5754_v39, %v5749_v21  ;;  %v5757_v44 = vmul.f32 %v5754_v39, %v5750_v24  ;;  %10979 = vmatprep.subr.bf16.mxu0 %v12400_v14 }
0x15c8   : > { %v5762_v1 = vadd.f32 %v5761_v63, %v5755_v27  ;;  %v5763_v5 = vadd.f32 %v5761_v63, %v5756_v55  ;;  %v5764_v25 = vadd.f32 %v5761_v63, %v5757_v44  ;;  %v5869_v55 = vld [vmem:[#allocation27] sm:$0x7] }
0x15c9   : > { %10980 = vmatpush3.bf16.msra.mxu0 %v11545_v0  ;;  %v5873_v44 = vrot.slane %v5869_v55, %v13080_v38 }
0x15ca   : > { %v5765_v53 = vmax.f32 %v5762_v1, 0.0  ;;  %v5766_v33 = vmax.f32 %v5763_v5, 0.0  ;;  %v5767_v36 = vmax.f32 %v5764_v25, 0.0  ;;  %10981 = vmatprep.subr.bf16.mxu0 %v12400_v14 }
0x15cc   : > { %5768 = vst.msk [vmem:[#allocation3] sm:$0xff] %vm14590_vm2, %v5765_v53  ;;  %5769 = vst.msk [vmem:[#allocation3 + $0x8] sm:$0xff] %vm14590_vm2, %v5766_v33  ;;  %vm5850_vm2 = vcmask 977664  }
0x15cd   : > { %5770 = vst.msk [vmem:[#allocation3 + $0x10] sm:$0x3] %vm14589_vm10, %v5767_v36  ;;  %10982 = vmatpush3.bf16.msra.mxu0 %v11546_v54  ;;  %vm5833_vm10 = vcmask 780864  }
0x15ce   : > { %11019 = vmatprep.subr.bf16.mxu0 %v12400_v14 }
0x15d3   : > { %v5785_v19 = vld [vmem:[#allocation3 + $0x9] sm:$0x3f]  ;;  %v5784_v57 = vld [vmem:[#allocation3 + $0x1] sm:$0xff] }
0x15d4   : > { %v5771_v23 = vld [vmem:[#allocation3] sm:$0xff]  ;;  %v10434_v41 = vpack.c.bf16 %v5785_v19, %v5785_v19  ;;  %v10433_v22 = vpack.c.bf16 %v5784_v57, %v5784_v57  ;;  %v5802_v12 = vld [vmem:[#allocation3 + $0xa] sm:$0x3f] }
0x15d5   : > { %v10431_v46 = vpack.c.bf16 %v5771_v23, %v5771_v23  ;;  %v5801_v20 = vld [vmem:[#allocation3 + $0x2] sm:$0xff]  ;;  %v10436_v52 = vpack.c.bf16 %v5802_v12, %v5802_v12  ;;  %v5819_v42 = vld [vmem:[#allocation3 + $0xb] sm:$0x3f] }
0x15d6   : > { %5794 = vrot.lane.b32.xlu1 %v10434_v41, %s12405_s26  ;;  %5792 = vrot.lane.b32.xlu0 %v10433_v22, %s12405_s26  ;;  %v5772_v10 = vld [vmem:[#allocation3 + $0x8] sm:$0x3f]  ;;  %v10435_v61 = vpack.c.bf16 %v5801_v20, %v5801_v20  ;;  %v10438_v26 = vpack.c.bf16 %v5819_v42, %v5819_v42 }
0x15d7   : > { %5781 = vst.msk [vmem:[#allocation7] sm:$0xf] %vm14588_vm12, %v10431_v46  ;;  %v10432_v7 = vpack.c.bf16 %v5772_v10, %v5772_v10  ;;  %v5818_v37 = vld [vmem:[#allocation3 + $0x3] sm:$0xff]  ;;  %v5836_v51 = vld [vmem:[#allocation3 + $0xc] sm:$0x3f]  ;;  %vm5816_vm12 = vcmask 584064  }
0x15d8   : > { %v10437_v50 = vpack.c.bf16 %v5818_v37, %v5818_v37  ;;  %v5835_v35 = vld [vmem:[#allocation3 + $0x4] sm:$0xff]  ;;  %v10440_v31 = vpack.c.bf16 %v5836_v51, %v5836_v51 }
0x15d9   : > { %5783 = vst.msk [vmem:[#allocation7 + $0x8] sm:$0x7] %vm5782_vm7, %v10432_v7  ;;  %v10439_v48 = vpack.c.bf16 %v5835_v35, %v5835_v35  ;;  %vm5799_vm7 = vcmask 387264  }
0x15da   : > { %5811 = vrot.lane.b32.xlu1 %v10436_v52, %s12407_s4  ;;  %5809 = vrot.lane.b32.xlu0 %v10435_v61, %s12407_s4 }
0x15de   : > { %5828 = vrot.lane.b32.xlu1 %v10438_v26, %s12409_s5  ;;  %5826 = vrot.lane.b32.xlu0 %v10437_v50, %s12409_s5 }
0x15e2   : > { %5845 = vrot.lane.b32.xlu1 %v10440_v31, %s12410_s22  ;;  %5843 = vrot.lane.b32.xlu0 %v10439_v48, %s12410_s22  ;;  %v11547_v31 = vld [vmem:[#allocation28 + $0x20] ss:$0 sps:$4 sm:$0xff]  }
0x1648   : > { %v5795_v9 = vpop.permute.xlu1 %5794  ;;  %v5793_v6 = vpop.permute.xlu0 %5792 }
0x1649   : > { %5800 = vst.msk [vmem:[#allocation7 + $0x8] sm:$0x7] %vm5799_vm7, %v5795_v9 }
0x164a   : > { %5798 = vst.msk [vmem:[#allocation7] sm:$0xf] %vm5337_vm6, %v5793_v6 }
0x164c   : > { %v5812_v34 = vpop.permute.xlu1 %5811  ;;  %v5810_v30 = vpop.permute.xlu0 %5809 }
0x164d   : > { %5817 = vst.msk [vmem:[#allocation7 + $0x8] sm:$0x7] %vm5816_vm12, %v5812_v34  ;;  %vm5975_vm12 = vcmask 193536  }
0x164e   : > { %5815 = vst.msk [vmem:[#allocation7] sm:$0xf] %vm14594_vm3, %v5810_v30 }
0x1650   : > { %v5829_v39 = vpop.permute.xlu1 %5828  ;;  %v5827_v13 = vpop.permute.xlu0 %5826 }
0x1651   : > { %5834 = vst.msk [vmem:[#allocation7 + $0x8] sm:$0x7] %vm5833_vm10, %v5829_v39 }
0x1652   : > { %5832 = vst.msk [vmem:[#allocation7] sm:$0xf] %vm14593_vm9, %v5827_v13  ;;  %vm14780_vm9 = vcmask 191488  }
0x1654   : > { %v5846_v63 = vpop.permute.xlu1 %5845  ;;  %v5844_v49 = vpop.permute.xlu0 %5843 }
0x1655   : > { %5851 = vst.msk [vmem:[#allocation7 + $0x8] sm:$0x7] %vm5850_vm2, %v5846_v63  ;;  %vm14769_vm2 = vcmask 195584   ;;  %v6161_v63 = vrot.slane %v5869_v55, %v13190_v45 }
0x1656   : > { %5849 = vst.msk [vmem:[#allocation7] sm:$0xf] %vm14592_vm8, %v5844_v49  ;;  %vm14770_vm10 = vmmov %vm14769_vm2  ;;  %vm6263_vm8 = vcmask 588800  }
0x1657   : > { %vm14771_vm7 = vmmov %vm14769_vm2 }
0x165c   : > { %v5853_v21 = vld [vmem:[#allocation7 + $0x8] sm:$0x7] }
0x165d   : > { %v5852_v24 = vld [vmem:[#allocation7] sm:$0xf] }
0x165e   : > { %v10001_v27 = vcombine.low %v5852_v24, %v5853_v21  ;;  %v6167_v21 = vrot.slane %v5869_v55, %v13193_v43 }
0x1660   : > { %10984 = vmatmul.mubr.msk.bf16.vlgmr.msra.gmra.mxu0 %vm14591_vm15, %v10001_v27 }
0x1661   : > { %11025 = vmatprep.mubr.msk.bf16.mxu0 %vm14683_vm4, %v12400_v14 }
0x1720   : > { %v5964_v1 = vpop.f32.mrf.mxu0 }
0x1721   : > { %v5965_v25 = vadd.f32 %v5964_v1, %v5873_v44 }
0x1722   : > { %v10985_v5 = vpop.f32.mrf.mxu0 }
0x1723   : > { %v5974_v36 = vsel %vm14769_vm2, %v5965_v25, 0.0 }
0x1724   : > { %v5967_v56 = vpop.f32.mrf.mxu0 }
0x1725   : > { %v5968_v53 = vadd.f32 %v5967_v56, %v5873_v44  ;;  %v11548_v56 = vld [vmem:[#allocation28 + $0x18] sm:$0xff]  }
0x1726   : > { %v10986_v33 = vpop.f32.mrf.mxu0 }
0x1727   : > { %v5976_v62 = vsel %vm5975_vm12, %v5968_v53, 0.0 }
0x1728   : > { %v5977_v40 = vadd.f32 %v5976_v62, %v5974_v36 }
0x172a   : > { %v5978_v19 = vrot.slane %v5977_v40, 4 }
0x172c   : > { %v5979_v57 = vadd.f32 %v5978_v19, %v5977_v40 }
0x172e   : > { %v5980_v23 = vrot.slane %v5979_v57, 2 }
0x1730   : > { %v5981_v41 = vadd.f32 %v5980_v23, %v5979_v57 }
0x1732   : > { %v5982_v22 = vrot.slane %v5981_v41, 1 }
0x1734   : > { %v5983_v46 = vadd.f32 %v5982_v22, %v5981_v41 }
0x1736   : > { %10994 = vmatmul.mubr.msk.f32.vlgmr.msra.gmra.mxu1 %vm14770_vm10, %v5983_v46  ;;  %vm14772_vm10 = vcmask 1043456  }
0x1737   : > { %10997 = vmatpush3.msra.mxu1 %v13891_v29  ;;  %11002 = vmatprep.mubr.msk.f32.mxu1 %vm14683_vm4, %v12400_v14  ;;  %v6268_v48 = vsel %vm14772_vm10, %v11547_v31, 0  ;;  %vm6201_vm10 = vcmask 386240  }
0x1738   : > { %10998 = vmatprep.subr.mxu1 %v12400_v14 }
0x1739   : > { %10999 = vmatpush3.msra.mxu1 %v13893_v11 }
0x173a   : > { %11000 = vmatprep.subr.mxu1 %v12400_v14 }
0x173b   : > { %11001 = vmatpush3.msra.mxu1 %v13898_v17 }
0x173c   : > { %11005 = vmatprep.subr.bf16.mxu1 %v12400_v14 }
0x17f6   : > { %v6053_v12 = vpop.f32.mrf.mxu1 }
0x17f7   : > { %v6057_v20 = vmul.f32 0.008928572, %v6053_v12  ;;  %v11549_v12 = vld [vmem:[#allocation28 + $0x10] sm:$0xff]  }
0x17f8   : > { %v10995_v10 = vpop.f32.mrf.mxu1 }
0x17f9   : > { %v6061_v7 = vrot.slane %v6057_v20, %v13080_v38 }
0x17fb   : > { %v6062_v52 = vsub.f32 %v5965_v25, %v6061_v7  ;;  %v6063_v29 = vsub.f32 %v5968_v53, %v6061_v7 }
0x17fd   : > { %v6064_v61 = vmul.f32 %v6062_v52, %v6062_v52  ;;  %v6065_v42 = vmul.f32 %v6063_v29, %v6063_v29 }
0x17ff   : > { %v6066_v37 = vsel %vm14771_vm7, %v6064_v61, 0.0  ;;  %v6067_v26 = vsel %vm5975_vm12, %v6065_v42, 0.0  ;;  %vm14773_vm7 = vmmov %vm14769_vm2  ;;  %v11551_v61 = vld [vmem:[#allocation28] sm:$0xff]   ;;  %v11552_v42 = vld [vmem:[#allocation30 + $0x10] sm:$0xff]  }
0x1800   : > { %v6068_v11 = vadd.f32 %v6067_v26, %v6066_v37  ;;  %11020 = vmatpush3.bf16.msra.mxu0 %v11552_v42  ;;  %v11553_v37 = vld [vmem:[#allocation30 + $0x8] sm:$0xff]   ;;  %v11554_v26 = vld [vmem:[#allocation30] sm:$0xff]  }
0x1801   : > { %11021 = vmatprep.subr.bf16.mxu0 %v12400_v14 }
0x1802   : > { %v6069_v50 = vrot.slane %v6068_v11, 4 }
0x1804   : > { %v6070_v0 = vadd.f32 %v6069_v50, %v6068_v11  ;;  %11022 = vmatpush3.bf16.msra.mxu0 %v11553_v37 }
0x1805   : > { %11023 = vmatprep.subr.bf16.mxu0 %v12400_v14 }
0x1806   : > { %v6071_v51 = vrot.slane %v6070_v0, 2 }
0x1808   : > { %v6072_v17 = vadd.f32 %v6071_v51, %v6070_v0  ;;  %11024 = vmatpush3.bf16.msra.mxu0 %v11554_v26 }
0x180a   : > { %v6073_v35 = vrot.slane %v6072_v17, 1 }
0x180c   : > { %v6074_v54 = vadd.f32 %v6073_v35, %v6072_v17 }
0x180e   : > { %11003 = vmatmul.mubr.msk.f32.vlgmr.msra.gmra.mxu1 %vm14769_vm2, %v6074_v54  ;;  %vm14774_vm2 = vcmask 189440  }
0x180f   : > { %11015 = vmatprep.mubr.msk.bf16.mxu1 %vm14683_vm4, %v12400_v14  ;;  %11006 = vmatpush3.bf16.msra.mxu1 %v6268_v48 }
0x1810   : > { %11007 = vmatprep.subr.bf16.mxu1 %v12400_v14 }
0x1813   : > { %11008 = vmatpush3.bf16.msra.mxu1 %v11548_v56 }
0x1814   : > { %11009 = vmatprep.subr.bf16.mxu1 %v12400_v14 }
0x1817   : > { %11010 = vmatpush3.bf16.msra.mxu1 %v11549_v12 }
0x1818   : > { %11011 = vmatprep.subr.bf16.mxu1 %v12400_v14 }
0x18ce   : > { %v6144_v9 = vpop.f32.mrf.mxu1 }
0x18cf   : > { %v6148_v6 = vmul.f32 0.008928572, %v6144_v9 }
0x18d0   : > { %v11004_v34 = vpop.f32.mrf.mxu1 }
0x18d1   : > { %v6149_v30 = vmax.f32 %v6148_v6, 0.0 }
0x18d3   : > { %v6150_v39 = vadd.f32 1e-05, %v6149_v30 }
0x18d5   : > { %11611 = vrsqrt.f32 %v6150_v39 }
0x18e2   : > { %v11612_v13 = vpop.eup %11611 }
0x18e3   : > { %v6155_v49 = vrot.slane %v11612_v13, %v13080_v38 }
0x18e5   : > { %v6156_v24 = vmul.f32 %v6155_v49, %v6062_v52  ;;  %v6157_v27 = vmul.f32 %v6155_v49, %v6063_v29  ;;  %v11550_v29 = vld [vmem:[#allocation28 + $0x8] sm:$0xff]  }
0x18e6   : > { %11012 = vmatpush3.bf16.msra.mxu1 %v11550_v29 }
0x18e7   : > { %v6162_v44 = vmul.f32 %v6161_v63, %v6156_v24  ;;  %v6163_v1 = vmul.f32 %v6161_v63, %v6157_v27  ;;  %11013 = vmatprep.subr.bf16.mxu1 %v12400_v14 }
0x18e9   : > { %v6168_v5 = vadd.f32 %v6167_v21, %v6162_v44  ;;  %v6169_v25 = vadd.f32 %v6167_v21, %v6163_v1  ;;  %v6443_v44 = vld [vmem:[#allocation45 + $0x10] sm:$0xff]  ;;  %v6442_v1 = vld [vmem:[#allocation45 + $0x8] sm:$0xff] }
0x18ea   : > { %11014 = vmatpush3.bf16.msra.mxu1 %v11551_v61 }
0x18eb   : > { %v6170_v53 = vmax.f32 %v6168_v5, 0.0  ;;  %v6171_v33 = vmax.f32 %v6169_v25, 0.0  ;;  %11029 = vmatprep.subr.mxu1 %v12400_v14  ;;  %v6441_v5 = vld [vmem:[#allocation45] sm:$0xff] }
0x18ed   : > { %6172 = vst.msk [vmem:[#allocation2] sm:$0xff] %vm14773_vm7, %v6170_v53  ;;  %vm6218_vm7 = vcmask 583040  }
0x18ee   : > { %6173 = vst.msk [vmem:[#allocation2 + $0x8] sm:$0x3f] %vm5975_vm12, %v6171_v33  ;;  %vm14775_vm12 = vcmask 191488  }
0x18f4   : > { %v6174_v41 = vld [vmem:[#allocation2] sm:$0xff] }
0x18f5   : > { %v6204_v36 = vld [vmem:[#allocation2 + $0xa] sm:$0xf]  ;;  %v6203_v23 = vld [vmem:[#allocation2 + $0x2] sm:$0xff]  ;;  %v10441_v46 = vpack.c.bf16 %v6174_v41, %v6174_v41 }
0x18f6   : > { %v6175_v62 = vld [vmem:[#allocation2 + $0x8] sm:$0xf]  ;;  %v10446_v40 = vpack.c.bf16 %v6204_v36, %v6204_v36  ;;  %v10445_v20 = vpack.c.bf16 %v6203_v23, %v6203_v23 }
0x18f7   : > { %v10442_v55 = vpack.c.bf16 %v6175_v62, %v6175_v62  ;;  %v6187_v19 = vld [vmem:[#allocation2 + $0x9] sm:$0xf]  ;;  %v6314_v22 = vld [vmem:[#allocation2 + $0x1] sm:$0xff]  ;;  %6184 = vst.msk [vmem:[#allocation7] sm:$0xf] %vm14775_vm12, %v10441_v46  ;;  %vm14777_vm12 = vcmask 189440  }
0x18f8   : > { %v10444_v57 = vpack.c.bf16 %v6187_v19, %v6187_v19  ;;  %6213 = vrot.lane.b32.xlu1 %v10446_v40, %s12407_s4  ;;  %v10447_v10 = vpack.c.bf16 %v6314_v22, %v6314_v22  ;;  %v6331_v7 = vld [vmem:[#allocation2 + $0xa] sm:$0x7]  ;;  %v14109_v40 = vld [vmem:[#allocation31] sm:$0x7] }
0x18f9   : > { %6185 = vst.msk [vmem:[#allocation7 + $0x8] sm:$0x3] %vm14774_vm2, %v10442_v55  ;;  %v10450_v52 = vpack.c.bf16 %v6331_v7, %v6331_v7  ;;  %v6315_v17 = vld [vmem:[#allocation2 + $0x9] sm:$0x7]  ;;  %vm14776_vm2 = vsmask.f32 1280  ;;  %v6437_v19 = vrot.slane %v14109_v40, %v13080_v38 }
0x18fa   : > { %6196 = vrot.lane.b32.xlu0 %v10444_v57, %s12405_s26  ;;  %vm14087_vm15 = vmand %vm14777_vm12, %vm14776_vm2  ;;  %v10448_v54 = vpack.c.bf16 %v6315_v17, %v6315_v17 }
0x18fc   : > { %6211 = vrot.lane.b32.xlu1 %v10445_v20, %s12407_s4 }
0x18fe   : > { %6194 = vrot.lane.b32.xlu0 %v10447_v10, %s12405_s26 }
0x1900   : > { %6338 = vrot.lane.b32.xlu1 %v10445_v20, %s12405_s26 }
0x1902   : > { %6340 = vrot.lane.b32.xlu0 %v10450_v52, %s12405_s26 }
0x196a   : > { %v6214_v11 = vpop.permute.xlu1 %6213 }
0x196c   : > { %v6197_v50 = vpop.permute.xlu0 %6196 }
0x196d   : > { %6202 = vst.msk [vmem:[#allocation7 + $0x8] sm:$0x3] %vm6201_vm10, %v6197_v50 }
0x196e   : > { %6219 = vst.msk [vmem:[#allocation7 + $0x8] sm:$0x3] %vm6218_vm7, %v6214_v11  ;;  %v6212_v0 = vpop.permute.xlu1 %6211 }
0x1970   : > { %v6195_v51 = vpop.permute.xlu0 %6194 }
0x1971   : > { %6200 = vst.msk [vmem:[#allocation7] sm:$0xf] %vm5337_vm6, %v6195_v51 }
0x1972   : > { %6217 = vst.msk [vmem:[#allocation7] sm:$0xf] %vm14594_vm3, %v6212_v0  ;;  %v6339_v34 = vpop.permute.xlu1 %6338  ;;  %vm14781_vm3 = vmmov %vm14776_vm2 }
0x1973   : > { %vm14097_vm2 = vmand %vm6201_vm10, %vm14781_vm3  ;;  %vm14786_vm10 = vcmask 194560  }
0x1974   : > { %v6341_v63 = vpop.permute.xlu0 %6340 }
0x1975   : > { %v6221_v31 = vld [vmem:[#allocation7 + $0x8] sm:$0x3] }
0x1976   : > { %v6327_v48 = vld [vmem:[#allocation7 + $0x8] sm:$0x3] }
0x1977   : > { %v6328_v9 = vsel %vm14087_vm15, %v10448_v54, %v6327_v48 }
0x1978   : > { %6329 = vst [vmem:[#allocation7 + $0x8] sm:$0x3] %v6328_v9 }
0x1979   : > { %v6220_v6 = vld [vmem:[#allocation7] sm:$0xf] }
0x197a   : > { %6324 = vst.msk [vmem:[#allocation7] sm:$0xf] %vm14780_vm9, %v10447_v10  ;;  %v10019_v30 = vcombine.low %v6220_v6, %v6221_v31  ;;  %vm14595_vm9 = vcmask 392192  }
0x197b   : > { %6344 = vst.msk [vmem:[#allocation7] sm:$0xf] %vm5337_vm6, %v6339_v34 }
0x197c   : > { %11016 = vmatmul.mubr.msk.bf16.vlgmr.msra.gmra.mxu1 %vm6263_vm8, %v10019_v30  ;;  %vm14784_vm8 = vcmask 195584  }
0x197d   : > { %11035 = vmatprep.mubr.msk.f32.mxu1 %vm14683_vm4, %v12400_v14  ;;  %11030 = vmatpush3.msra.mxu1 %v6443_v44  ;;  %vm14785_vm3 = vmmov %vm14784_vm8 }
0x197e   : > { %11031 = vmatprep.subr.mxu1 %v12400_v14  ;;  %vm14787_vm12 = vmmov %vm14785_vm3 }
0x197f   : > { %v6347_v13 = vld [vmem:[#allocation7 + $0x8] sm:$0x3]  ;;  %11032 = vmatpush3.msra.mxu1 %v6442_v1 }
0x1980   : > { %v6348_v49 = vsel %vm14097_vm2, %v6341_v63, %v6347_v13  ;;  %11033 = vmatprep.subr.mxu1 %v12400_v14 }
0x1981   : > { %6349 = vst [vmem:[#allocation7 + $0x8] sm:$0x3] %v6348_v49  ;;  %11034 = vmatpush3.msra.mxu1 %v6441_v5 }
0x1982   : > { %v6350_v21 = vld [vmem:[#allocation7] sm:$0xf]  ;;  %11038 = vmatprep.subr.mxu1 %v12400_v14 }
0x1988   : > { %v6351_v24 = vld [vmem:[#allocation7 + $0x8] sm:$0x3] }
0x1989   : > { %v10030_v27 = vcombine.low %v6350_v21, %v6351_v24 }
0x198b   : > { %11026 = vmatmul.mubr.msk.bf16.vlgmr.msra.gmra.mxu0 %vm14595_vm9, %v10030_v27 }
0x1a3c   : > { %v6304_v25 = vpop.f32.mrf.mxu1 }
0x1a3d   : > { %6311 = vst [vmem:[#allocation3] ss:$2 sm:$0xff] %v6304_v25 }
0x1a3e   : > { %v11017_v56 = vpop.f32.mrf.mxu1 }
0x1a40   : > { %v6307_v53 = vpop.f32.mrf.mxu1 }
0x1a41   : > { %6313 = vst [vmem:[#allocation3 + $0x10] ss:$2 sm:$0xf] %v6307_v53 }
0x1a42   : > { %v11018_v33 = vpop.f32.mrf.mxu1 }
0x1a4b   : > { %v6419_v36 = vpop.f32.mrf.mxu0 }
0x1a4c   : > { %6427 = vst [vmem:[#allocation3 + $0x1] ss:$2 sm:$0xff] %v6419_v36 }
0x1a4d   : > { %v11027_v62 = vpop.f32.mrf.mxu0 }
0x1a4f   : > { %v6422_v55 = vpop.f32.mrf.mxu0 }
0x1a50   : > { %6429 = vst [vmem:[#allocation3 + $0x11] ss:$2 sm:$0x7] %v6422_v55 }
0x1a51   : > { %v11028_v57 = vpop.f32.mrf.mxu0 }
0x1a53   : > { %v6430_v23 = vld [vmem:[#allocation3] sm:$0xff]  ;;  %v6431_v41 = vld [vmem:[#allocation3 + $0x8] sm:$0xff] }
0x1a54   : > { %v6438_v22 = vadd.f32 %v6437_v19, %v6430_v23  ;;  %v6439_v46 = vadd.f32 %v6437_v19, %v6431_v41  ;;  %v6637_v41 = vrot.slane %v14109_v40, %v13190_v45 }
0x1a56   : > { %v6444_v12 = vsel %vm14784_vm8, %v6438_v22, 0.0  ;;  %v6445_v20 = vsel %vm14785_vm3, %v6439_v46, 0.0  ;;  %vm14788_vm8 = vmmov %vm14785_vm3 }
0x1a57   : > { %v6432_v10 = vld [vmem:[#allocation3 + $0x10] sm:$0x7f]  ;;  %v6446_v52 = vadd.f32 %v6445_v20, %v6444_v12  ;;  %v6644_v20 = vrot.slane %v14109_v40, %v13193_v43 }
0x1a58   : > { %v6440_v7 = vadd.f32 %v6437_v19, %v6432_v10 }
0x1a5a   : > { %v6447_v29 = vsel %vm14786_vm10, %v6440_v7, 0.0 }
0x1a5b   : > { %v6448_v61 = vadd.f32 %v6447_v29, %v6446_v52 }
0x1a5d   : > { %v6449_v42 = vrot.slane %v6448_v61, 4 }
0x1a5f   : > { %v6450_v37 = vadd.f32 %v6449_v42, %v6448_v61 }
0x1a61   : > { %v6451_v26 = vrot.slane %v6450_v37, 2 }
0x1a63   : > { %v6452_v11 = vadd.f32 %v6451_v26, %v6450_v37 }
0x1a65   : > { %v6453_v50 = vrot.slane %v6452_v11, 1 }
0x1a67   : > { %v6454_v0 = vadd.f32 %v6453_v50, %v6452_v11 }
0x1a69   : > { %11036 = vmatmul.mubr.msk.f32.vlgmr.msra.gmra.mxu1 %vm14787_vm12, %v6454_v0  ;;  %vm14789_vm12 = vmmov %vm14785_vm3 }
0x1a6a   : > { %11039 = vmatpush3.msra.mxu1 %v6443_v44  ;;  %11044 = vmatprep.mubr.msk.f32.mxu1 %vm14683_vm4, %v12400_v14 }
0x1a6b   : > { %11040 = vmatprep.subr.mxu1 %v12400_v14 }
0x1a6c   : > { %11041 = vmatpush3.msra.mxu1 %v6442_v1 }
0x1a6d   : > { %11042 = vmatprep.subr.mxu1 %v12400_v14 }
0x1a6e   : > { %11043 = vmatpush3.msra.mxu1 %v6441_v5 }
0x1a6f   : > { %11067 = vmatprep.subr.mxu1 %v12400_v14 }
0x1b29   : > { %v6524_v51 = vpop.f32.mrf.mxu1 }
0x1b2a   : > { %v6528_v17 = vmul.f32 0.0054347827, %v6524_v51 }
0x1b2b   : > { %v11037_v54 = vpop.f32.mrf.mxu1 }
0x1b2c   : > { %v6532_v31 = vrot.slane %v6528_v17, %v13080_v38 }
0x1b2e   : > { %v6533_v48 = vsub.f32 %v6438_v22, %v6532_v31  ;;  %v6534_v9 = vsub.f32 %v6439_v46, %v6532_v31  ;;  %v6535_v6 = vsub.f32 %v6440_v7, %v6532_v31 }
0x1b30   : > { %v6536_v34 = vmul.f32 %v6533_v48, %v6533_v48  ;;  %v6537_v30 = vmul.f32 %v6534_v9, %v6534_v9  ;;  %v6538_v13 = vmul.f32 %v6535_v6, %v6535_v6 }
0x1b32   : > { %v6539_v63 = vsel %vm14788_vm8, %v6536_v34, 0.0  ;;  %v6540_v49 = vsel %vm14785_vm3, %v6537_v30, 0.0  ;;  %v6542_v24 = vsel %vm14786_vm10, %v6538_v13, 0.0  ;;  %vm14790_vm8 = vmmov %vm14785_vm3 }
0x1b33   : > { %v6541_v21 = vadd.f32 %v6540_v49, %v6539_v63  ;;  %v6672_v63 = vld [vmem:[#allocation7 + $0x10] sm:$0x3] }
0x1b35   : > { %v6543_v27 = vadd.f32 %v6542_v24, %v6541_v21 }
0x1b37   : > { %v6544_v44 = vrot.slane %v6543_v27, 4 }
0x1b39   : > { %v6545_v1 = vadd.f32 %v6544_v44, %v6543_v27 }
0x1b3b   : > { %v6546_v5 = vrot.slane %v6545_v1, 2 }
0x1b3d   : > { %v6547_v25 = vadd.f32 %v6546_v5, %v6545_v1 }
0x1b3f   : > { %v6548_v56 = vrot.slane %v6547_v25, 1 }
0x1b41   : > { %v6549_v53 = vadd.f32 %v6548_v56, %v6547_v25  ;;  %v11555_v56 = vld [vmem:[%s14791_s11 + $0x38] ss:$0 sps:$4 sm:$0xff]  }
0x1b43   : > { %11045 = vmatmul.mubr.msk.f32.vlgmr.msra.gmra.mxu1 %vm14789_vm12, %v6549_v53  ;;  %vm14792_vm12 = vcmask 191488  }
0x1b44   : > { %11071 = vmatprep.mubr.msk.f32.mxu1 %vm14683_vm4, %v12400_v14 }
0x1c03   : > { %v6619_v33 = vpop.f32.mrf.mxu1 }
0x1c04   : > { %v6623_v36 = vmul.f32 0.0054347827, %v6619_v33 }
0x1c05   : > { %v11046_v62 = vpop.f32.mrf.mxu1 }
0x1c06   : > { %v6624_v55 = vmax.f32 %v6623_v36, 0.0 }
0x1c08   : > { %v6625_v19 = vadd.f32 1e-05, %v6624_v55  ;;  %v11556_v55 = vld [vmem:[%s14791_s11 + $0x30] sm:$0xff]  }
0x1c0a   : > { %11613 = vrsqrt.f32 %v6625_v19  ;;  %v11557_v19 = vld [vmem:[%s14791_s11 + $0x28] sm:$0xff]  }
0x1c17   : > { %v11614_v57 = vpop.eup %11613 }
0x1c18   : > { %v6630_v23 = vrot.slane %v11614_v57, %v13080_v38 }
0x1c1a   : > { %v6631_v22 = vmul.f32 %v6630_v23, %v6533_v48  ;;  %v6632_v46 = vmul.f32 %v6630_v23, %v6534_v9  ;;  %v6633_v12 = vmul.f32 %v6630_v23, %v6535_v6 }
0x1c1c   : > { %v6638_v10 = vmul.f32 %v6637_v41, %v6631_v22  ;;  %v6639_v7 = vmul.f32 %v6637_v41, %v6632_v46  ;;  %v6640_v52 = vmul.f32 %v6637_v41, %v6633_v12  ;;  %v11558_v46 = vld [vmem:[%s14791_s11 + $0x20] sm:$0xff]  }
0x1c1e   : > { %v6645_v29 = vadd.f32 %v6644_v20, %v6638_v10  ;;  %v6646_v61 = vadd.f32 %v6644_v20, %v6639_v7  ;;  %v6647_v42 = vadd.f32 %v6644_v20, %v6640_v52  ;;  %v7167_v10 = vld [vmem:[#allocation6 + $0x15] sm:$0x7f] }
0x1c1f   : > { %v10471_v7 = vpack.c.bf16 %v7167_v10, %v7167_v10  ;;  %v7203_v52 = vld [vmem:[#allocation6 + $0x16] sm:$0x7f]  ;;  %v6811_v10 = vrot.slane %v6807_v4, %v13080_v38 }
0x1c20   : > { %v6648_v37 = vmax.f32 %v6645_v29, 0.0  ;;  %v6649_v26 = vmax.f32 %v6646_v61, 0.0  ;;  %v6650_v11 = vmax.f32 %v6647_v42, 0.0  ;;  %v11559_v29 = vld [vmem:[%s14791_s11 + $0x18] sm:$0xff]   ;;  %v11560_v61 = vld [vmem:[%s14791_s11 + $0x10] sm:$0xff]   ;;  %v10475_v42 = vpack.c.bf16 %v7203_v52, %v7203_v52 }
0x1c22   : > { %6651 = vst.msk [vmem:[#allocation3] sm:$0xff] %vm14790_vm8, %v6648_v37  ;;  %vm14793_vm8 = vmmov %vm14792_vm12  ;;  %v7242_v37 = vld [vmem:[#allocation6 + $0x17] sm:$0x7f] }
0x1c23   : > { %6652 = vst.msk [vmem:[#allocation3 + $0x8] sm:$0xff] %vm14785_vm3, %v6649_v26  ;;  %vm14794_vm3 = vcmask 1043456   ;;  %v11561_v26 = vld [vmem:[%s14791_s11 + $0x8] sm:$0xff]  }
0x1c24   : > { %6653 = vst.msk [vmem:[#allocation3 + $0x10] sm:$0x7f] %vm14786_vm10, %v6650_v11  ;;  %11182 = vmatprep.subr.msk.bf16.mxu0 %vm14794_vm3, %v11555_v56  ;;  %vm14795_vm10 = vmmov %vm14794_vm3  ;;  %v10479_v11 = vpack.c.bf16 %v7242_v37, %v7242_v37 }
0x1c25   : > { %v6872_v35 = vsel %vm14795_vm10, %v11555_v56, 0  ;;  %vm14799_vm10 = vcmask 781888  }
0x1c26   : > { %11048 = vmatpush3.bf16.msra.mxu0 %v6872_v35  ;;  %v7135_v35 = vld [vmem:[#allocation6 + $0x14] sm:$0x7f] }
0x1c27   : > { %11049 = vmatprep.subr.bf16.mxu0 %v11556_v55 }
0x1c29   : > { %v6654_v48 = vld [vmem:[#allocation3] sm:$0xff] }
0x1c2a   : > { %v6675_v54 = vld [vmem:[#allocation3 + $0x1] sm:$0xff]  ;;  %v10451_v30 = vpack.c.bf16 %v6654_v48, %v6654_v48  ;;  %11050 = vmatpush3.bf16.msra.mxu0 %v11556_v55 }
0x1c2b   : > { %v6704_v50 = vld [vmem:[#allocation3 + $0x12] sm:$0x7]  ;;  %v10454_v6 = vpack.c.bf16 %v6675_v54, %v6675_v54  ;;  %v6655_v13 = vld [vmem:[#allocation3 + $0x8] sm:$0xff]  ;;  %11051 = vmatprep.subr.bf16.mxu0 %v11557_v19 }
0x1c2c   : > { %v6677_v0 = vld [vmem:[#allocation3 + $0x11] sm:$0x7]  ;;  %v10459_v51 = vpack.c.bf16 %v6704_v50, %v6704_v50  ;;  %v6676_v49 = vld [vmem:[#allocation3 + $0x9] sm:$0xff]  ;;  %v10452_v24 = vpack.c.bf16 %v6655_v13, %v6655_v13  ;;  %6670 = vst.msk [vmem:[#allocation7] sm:$0xf] %vm14792_vm12, %v10451_v30 }
0x1c2d   : > { %v10456_v17 = vpack.c.bf16 %v6677_v0, %v6677_v0  ;;  %v6733_v40 = vld [vmem:[#allocation3 + $0x13] sm:$0x7]  ;;  %v6656_v31 = vld [vmem:[#allocation3 + $0x10] sm:$0x7]  ;;  %v6702_v21 = vld [vmem:[#allocation3 + $0x2] sm:$0xff]  ;;  %v10455_v44 = vpack.c.bf16 %v6676_v49, %v6676_v49 }
0x1c2e   : > { %6719 = vrot.lane.b32.xlu1 %v10459_v51, %s12407_s4  ;;  %v10462_v9 = vpack.c.bf16 %v6733_v40, %v6733_v40  ;;  %v10453_v34 = vpack.c.bf16 %v6656_v31, %v6656_v31  ;;  %6671 = vst.msk [vmem:[#allocation7 + $0x8] sm:$0xf] %vm14793_vm8, %v10452_v24  ;;  %v10457_v1 = vpack.c.bf16 %v6702_v21, %v6702_v21  ;;  %v6703_v5 = vld [vmem:[#allocation3 + $0xa] sm:$0xff]  ;;  %v6762_v22 = vld [vmem:[#allocation3 + $0x14] sm:$0x7]  ;;  %v11562_v0 = vld [vmem:[%s14791_s11] sm:$0xff]  }
0x1c2f   : > { %6692 = vrot.lane.b32.xlu0 %v10456_v17, %s12405_s26  ;;  %v6731_v25 = vld [vmem:[#allocation3 + $0x3] sm:$0xff]  ;;  %v10458_v53 = vpack.c.bf16 %v6703_v5, %v6703_v5  ;;  %v6732_v36 = vld [vmem:[#allocation3 + $0xb] sm:$0xff]  ;;  %v10465_v20 = vpack.c.bf16 %v6762_v22, %v6762_v22  ;;  %11052 = vmatpush3.bf16.msra.mxu0 %v11557_v19  ;;  %vm14797_vm8 = vcmask 585088  }
0x1c30   : > { %v6673_v27 = vsel %vm14087_vm15, %v10453_v34, %v6672_v63  ;;  %v10460_v33 = vpack.c.bf16 %v6731_v25, %v6731_v25  ;;  %v6760_v62 = vld [vmem:[#allocation3 + $0x4] sm:$0xff]  ;;  %v10461_v57 = vpack.c.bf16 %v6732_v36, %v6732_v36  ;;  %v6761_v41 = vld [vmem:[#allocation3 + $0xc] sm:$0xff]  ;;  %11053 = vmatprep.subr.bf16.mxu0 %v11558_v46  ;;  %vm14796_vm15 = vsmask.f32 1280  ;;  %vm14798_vm3 = vmmov %vm14797_vm8 }
0x1c31   : > { %6674 = vst [vmem:[#allocation7 + $0x10] sm:$0x3] %v6673_v27  ;;  %v10463_v23 = vpack.c.bf16 %v6760_v62, %v6760_v62  ;;  %v10464_v12 = vpack.c.bf16 %v6761_v41, %v6761_v41  ;;  %v7166_v50 = vld [vmem:[#allocation6 + $0xd] sm:$0xff]  ;;  %vm6727_vm12 = vmand %vm6218_vm7, %vm14796_vm15 }
0x1c32   : > { %6688 = vrot.lane.b32.xlu1 %v10454_v6, %s12405_s26  ;;  %v10470_v51 = vpack.c.bf16 %v7166_v50, %v7166_v50  ;;  %v7202_v17 = vld [vmem:[#allocation6 + $0xe] sm:$0xff]  ;;  %vm14800_vm9 = vmmov %vm14796_vm15  ;;  %vm14802_vm15 = vcmask 978688  }
0x1c33   : > { %6748 = vrot.lane.b32.xlu0 %v10462_v9, %s12409_s5  ;;  %11054 = vmatpush3.bf16.msra.mxu0 %v11558_v46  ;;  %v10474_v40 = vpack.c.bf16 %v7202_v17, %v7202_v17  ;;  %v7241_v54 = vld [vmem:[#allocation6 + $0xf] sm:$0xff]  ;;  %vm14801_vm7 = vmmov %vm14799_vm10 }
0x1c34   : > { %11055 = vmatprep.subr.bf16.mxu0 %v11559_v29  ;;  %v10478_v31 = vpack.c.bf16 %v7241_v54, %v7241_v54  ;;  %v14194_v46 = vld [vmem:[#allocation43] sm:$0xff] }
0x1c36   : > { %6715 = vrot.lane.b32.xlu1 %v10457_v1, %s12407_s4 }
0x1c37   : > { %6690 = vrot.lane.b32.xlu0 %v10455_v44, %s12405_s26  ;;  %11056 = vmatpush3.bf16.msra.mxu0 %v11559_v29 }
0x1c38   : > { %11057 = vmatprep.subr.bf16.mxu0 %v11560_v61  ;;  %v6699_v6 = vld [vmem:[#allocation7 + $0x10] sm:$0x3] }
0x1c3a   : > { %6744 = vrot.lane.b32.xlu1 %v10460_v33, %s12409_s5  ;;  %v10467_v33 = vpack.c.bf16 %v7135_v35, %v7135_v35 }
0x1c3b   : > { %6717 = vrot.lane.b32.xlu0 %v10458_v53, %s12407_s4  ;;  %11058 = vmatpush3.bf16.msra.mxu0 %v11560_v61 }
0x1c3c   : > { %11059 = vmatprep.subr.bf16.mxu0 %v11561_v26 }
0x1c3e   : > { %6773 = vrot.lane.b32.xlu1 %v10463_v23, %s12410_s22 }
0x1c3f   : > { %6746 = vrot.lane.b32.xlu0 %v10461_v57, %s12409_s5  ;;  %11060 = vmatpush3.bf16.msra.mxu0 %v11561_v26 }
0x1c40   : > { %11061 = vmatprep.subr.bf16.mxu0 %v11562_v0 }
0x1c42   : > { %6777 = vrot.lane.b32.xlu1 %v10465_v20, %s12410_s22 }
0x1c43   : > { %6775 = vrot.lane.b32.xlu0 %v10464_v12, %s12410_s22  ;;  %11062 = vmatpush3.bf16.msra.mxu0 %v11562_v0 }
0x1c44   : > { %11081 = vmatprep.subr.mxu0 %v12400_v14 }
0x1c46   : > { %7176 = vrot.lane.b32.xlu1 %v10471_v7, %s12406_s7 }
0x1c4a   : > { %7212 = vrot.lane.b32.xlu1 %v10475_v42, %s12408_s16 }
0x1c4e   : > { %7251 = vrot.lane.b32.xlu1 %v10479_v11, %s12410_s22 }
0x1c52   : > { %7174 = vrot.lane.b32.xlu1 %v10470_v51, %s12406_s7 }
0x1c56   : > { %7210 = vrot.lane.b32.xlu1 %v10474_v40, %s12408_s16 }
0x1c5a   : > { %7249 = vrot.lane.b32.xlu1 %v10478_v31, %s12410_s22  ;;  %s14868_s22 = sld [smem:[#allocation73_spill]] }
0x1ca0   : > { %v6720_v48 = vpop.permute.xlu1 %6719 }
0x1ca1   : > { %v6693_v9 = vpop.permute.xlu0 %6692 }
0x1ca2   : > { %v6700_v34 = vsel %vm14097_vm2, %v6693_v9, %v6699_v6  ;;  %vm6755_vm2 = vcmask 779840  }
0x1ca3   : > { %6701 = vst [vmem:[#allocation7 + $0x10] sm:$0x3] %v6700_v34  ;;  %vm6756_vm11 = vmand %vm6755_vm2, %vm14800_vm9 }
0x1ca4   : > { %v6689_v13 = vpop.permute.xlu1 %6688 }
0x1ca5   : > { %v6749_v30 = vpop.permute.xlu0 %6748  ;;  %6697 = vst.msk [vmem:[#allocation7] sm:$0xf] %vm5337_vm6, %v6689_v13 }
0x1ca8   : > { %v6716_v49 = vpop.permute.xlu1 %6715 }
0x1ca9   : > { %v6691_v63 = vpop.permute.xlu0 %6690  ;;  %6724 = vst.msk [vmem:[#allocation7] sm:$0xf] %vm14797_vm8, %v6716_v49  ;;  %vm14804_vm8 = vcmask 125952  }
0x1caa   : > { %v6728_v21 = vld [vmem:[#allocation7 + $0x10] sm:$0x3]  ;;  %6698 = vst.msk [vmem:[#allocation7 + $0x8] sm:$0xf] %vm5337_vm6, %v6691_v63  ;;  %vm14803_vm6 = vmmov %vm14802_vm15 }
0x1cab   : > { %v6729_v24 = vsel %vm6727_vm12, %v6720_v48, %v6728_v21  ;;  %vm6784_vm12 = vcmask 976640  }
0x1cac   : > { %6730 = vst [vmem:[#allocation7 + $0x10] sm:$0x3] %v6729_v24  ;;  %v6745_v39 = vpop.permute.xlu1 %6744 }
0x1cad   : > { %v6718_v27 = vpop.permute.xlu0 %6717  ;;  %6753 = vst.msk [vmem:[#allocation7] sm:$0xf] %vm14799_vm10, %v6745_v39 }
0x1cae   : > { %6725 = vst.msk [vmem:[#allocation7 + $0x8] sm:$0xf] %vm14798_vm3, %v6718_v27  ;;  %vm14805_vm3 = vmmov %vm14800_vm9 }
0x1caf   : > { %vm6785_vm9 = vmand %vm6784_vm12, %vm14805_vm3 }
0x1cb0   : > { %v6774_v1 = vpop.permute.xlu1 %6773 }
0x1cb1   : > { %v6747_v44 = vpop.permute.xlu0 %6746  ;;  %6782 = vst.msk [vmem:[#allocation7] sm:$0xf] %vm14802_vm15, %v6774_v1 }
0x1cb2   : > { %6754 = vst.msk [vmem:[#allocation7 + $0x8] sm:$0xf] %vm14801_vm7, %v6747_v44  ;;  %vm14810_vm7 = vcmask 124928  }
0x1cb3   : > { %v6757_v5 = vld [vmem:[#allocation7 + $0x10] sm:$0x3] }
0x1cb4   : > { %v6758_v25 = vsel %vm6756_vm11, %v6749_v30, %v6757_v5  ;;  %v6778_v62 = vpop.permute.xlu1 %6777  ;;  %vm14806_vm11 = vcmask 982016  }
0x1cb5   : > { %6759 = vst [vmem:[#allocation7 + $0x10] sm:$0x3] %v6758_v25  ;;  %v6776_v56 = vpop.permute.xlu0 %6775  ;;  %vm14807_vm2 = vmmov %vm14806_vm11 }
0x1cb6   : > { %6783 = vst.msk [vmem:[#allocation7 + $0x8] sm:$0xf] %vm14803_vm6, %v6776_v56 }
0x1cb8   : > { %v6789_v53 = vld [vmem:[#allocation7] sm:$0xf] }
0x1cb9   : > { %7144 = vst.msk [vmem:[#allocation7] sm:$0xf] %vm14804_vm8, %v13840_v28  ;;  %v14192_v28 = vld [vmem:[#allocation43 + $0x8] sm:$0xff]  ;;  %vm14814_vm8 = vmmov %vm14810_vm7 }
0x1cba   : > { %11068 = vmatpush3.msra.mxu1 %v14192_v28 }
0x1cbb   : > { %11069 = vmatprep.subr.mxu1 %v12400_v14 }
0x1cbc   : > { %v6786_v36 = vld [vmem:[#allocation7 + $0x10] sm:$0x3]  ;;  %11070 = vmatpush3.msra.mxu1 %v14194_v46 }
0x1cbd   : > { %v6790_v55 = vld [vmem:[#allocation7 + $0x8] sm:$0xf]  ;;  %v6787_v57 = vsel %vm6785_vm9, %v6778_v62, %v6786_v36  ;;  %11074 = vmatprep.subr.mxu1 %v12400_v14 }
0x1cbe   : > { %v7145_v19 = vld [vmem:[#allocation7 + $0x8] sm:$0xf]  ;;  %6788 = vst [vmem:[#allocation7 + $0x10] sm:$0x3] %v6787_v57  ;;  %v10052_v41 = vcombine.low %v6789_v53, %v6790_v55 }
0x1cbf   : > { %v7146_v23 = vsel %vm13572_vm14, %v10467_v33, %v7145_v19  ;;  %vm14808_vm14 = vcmask 130048  }
0x1cc0   : > { %7147 = vst [vmem:[#allocation7 + $0x8] sm:$0xf] %v7146_v23  ;;  %11063 = vmatprep.mubr.msk.bf16.mxu0 %vm14806_vm11, %v10052_v41  ;;  %vm14809_vm10 = vmmov %vm14808_vm14 }
0x1cc1   : > { %vm14811_vm15 = vmmov %vm14809_vm10 }
0x1cc2   : > { %vm14812_vm6 = vmmov %vm14809_vm10 }
0x1cc3   : > { %vm14813_vm12 = vmmov %vm14812_vm6 }
0x1cc4   : > { %vm14815_vm3 = vmmov %vm14812_vm6 }
0x1cc5   : > { %v11563_v22 = vld [vmem:[#allocation7 + $0x10] ss:$0 sps:$4 sm:$0x33]   ;;  %vm14816_vm9 = vmmov %vm14815_vm3 }
0x1cc6   : > { %11064 = vmatmul.mubr.msk.bf16.vlgmr.msra.gmra.mxu0 %vm14807_vm2, %v11563_v22  ;;  %vm14817_vm11 = vmmov %vm14815_vm3 }
0x1cc7   : > { %11085 = vmatprep.mubr.msk.f32.mxu0 %vm14683_vm4, %v12400_v14  ;;  %11082 = vmatpush3.msra.mxu0 %v14192_v28  ;;  %vm14818_vm2 = vmmov %vm14810_vm7 }
0x1cc8   : > { %11083 = vmatprep.subr.mxu0 %v12400_v14 }
0x1cc9   : > { %11084 = vmatpush3.msra.mxu0 %v14194_v46 }
0x1cca   : > { %11088 = vmatprep.subr.mxu0 %v12400_v14 }
0x1d86   : > { %v11065_v12 = vpop.f32.mrf.mxu0 }
0x1d87   : > { %v6917_v61 = vadd.f32 %v11065_v12, %v6811_v10  ;;  %v7117_v12 = vrot.slane %v6807_v4, %v13190_v45 }
0x1d88   : > { %v6908_v20 = vpop.f32.mrf.mxu0 }
0x1d89   : > { %v6909_v52 = vadd.f32 %v6908_v20, %v6811_v10  ;;  %v6927_v50 = vsel %vm14810_vm7, %v6917_v61, 0.0  ;;  %vm14822_vm7 = vcmask 388352  }
0x1d8a   : > { %v11066_v7 = vpop.f32.mrf.mxu0 }
0x1d8b   : > { %v6924_v37 = vsel %vm14808_vm14, %v6909_v52, 0.0  ;;  %vm14820_vm14 = vcmask 257152  }
0x1d8c   : > { %v6911_v29 = vpop.f32.mrf.mxu0 }
0x1d8d   : > { %v6912_v42 = vadd.f32 %v6911_v29, %v6811_v10  ;;  %v7124_v10 = vrot.slane %v6807_v4, %v13193_v43 }
0x1d8f   : > { %v6925_v26 = vsel %vm14809_vm10, %v6912_v42, 0.0  ;;  %vm14821_vm10 = vmmov %vm14820_vm14 }
0x1d90   : > { %v6926_v11 = vadd.f32 %v6925_v26, %v6924_v37 }
0x1d92   : > { %v6928_v0 = vadd.f32 %v6927_v50, %v6926_v11 }
0x1d94   : > { %v6929_v51 = vrot.slane %v6928_v0, 4 }
0x1d96   : > { %v6930_v17 = vadd.f32 %v6929_v51, %v6928_v0 }
0x1d98   : > { %v6931_v40 = vrot.slane %v6930_v17, 2 }
0x1d9a   : > { %v6932_v54 = vadd.f32 %v6931_v40, %v6930_v17 }
0x1d9c   : > { %v6933_v31 = vrot.slane %v6932_v54, 1 }
0x1d9e   : > { %v6934_v48 = vadd.f32 %v6933_v31, %v6932_v54 }
0x1da0   : > { %11072 = vmatmul.mubr.msk.f32.vlgmr.msra.gmra.mxu1 %vm14811_vm15, %v6934_v48  ;;  %vm14823_vm15 = vcmask 519552  }
0x1da1   : > { %11075 = vmatpush3.msra.mxu1 %v14192_v28  ;;  %11078 = vmatprep.mubr.msk.f32.mxu1 %vm14683_vm4, %v12400_v14 }
0x1da2   : > { %11076 = vmatprep.subr.mxu1 %v12400_v14 }
0x1da3   : > { %11077 = vmatpush3.msra.mxu1 %v14194_v46 }
0x1e60   : > { %v7004_v9 = vpop.f32.mrf.mxu1 }
0x1e61   : > { %v7008_v6 = vmul.f32 0.0065789474, %v7004_v9 }
0x1e62   : > { %v11073_v34 = vpop.f32.mrf.mxu1 }
0x1e63   : > { %v7012_v30 = vrot.slane %v7008_v6, %v13080_v38 }
0x1e65   : > { %v7013_v13 = vsub.f32 %v6909_v52, %v7012_v30  ;;  %v7014_v63 = vsub.f32 %v6912_v42, %v7012_v30  ;;  %v7015_v49 = vsub.f32 %v6917_v61, %v7012_v30 }
0x1e67   : > { %v7016_v21 = vmul.f32 %v7013_v13, %v7013_v13  ;;  %v7017_v24 = vmul.f32 %v7014_v63, %v7014_v63  ;;  %v7018_v27 = vmul.f32 %v7015_v49, %v7015_v49 }
0x1e69   : > { %v7019_v39 = vsel %vm14812_vm6, %v7016_v21, 0.0  ;;  %v7020_v44 = vsel %vm14813_vm12, %v7017_v24, 0.0  ;;  %v7022_v5 = vsel %vm14814_vm8, %v7018_v27, 0.0  ;;  %vm14824_vm6 = vcmask 650752  }
0x1e6a   : > { %v7021_v1 = vadd.f32 %v7020_v44, %v7019_v39  ;;  %vm7255_vm12 = vcmask 913152   ;;  %vm14825_vm8 = vsmask.f32 3328 }
0x1e6c   : > { %v7023_v25 = vadd.f32 %v7022_v5, %v7021_v1 }
0x1e6e   : > { %v7024_v56 = vrot.slane %v7023_v25, 4 }
0x1e70   : > { %v7025_v35 = vadd.f32 %v7024_v56, %v7023_v25  ;;  %v11564_v56 = vld [vmem:[%s14819_s28 + $0x38] sm:$0xff]  }
0x1e72   : > { %v7026_v53 = vrot.slane %v7025_v35, 2 }
0x1e74   : > { %v7027_v33 = vadd.f32 %v7026_v53, %v7025_v35  ;;  %v12413_v35 = vmov 0   ;;  %v11565_v53 = vld [vmem:[%s14819_s28 + $0x30] sm:$0xff]  }
0x1e75   : > { %7415 = vmatprep.subr.bf16.mxu1 %v12413_v35 }
0x1e76   : > { %v7028_v36 = vrot.slane %v7027_v33, 1 }
0x1e78   : > { %v7029_v62 = vadd.f32 %v7028_v36, %v7027_v33  ;;  %v11566_v33 = vld [vmem:[%s14819_s28 + $0x28] sm:$0xff]   ;;  %v11567_v36 = vld [vmem:[%s14819_s28 + $0x20] sm:$0xff]  }
0x1e7a   : > { %11079 = vmatmul.mubr.msk.f32.vlgmr.msra.gmra.mxu1 %vm14815_vm3, %v7029_v62  ;;  %v11568_v62 = vld [vmem:[%s14819_s28 + $0x18] sm:$0xff]  }
0x1e7b   : > { %7416 = vmatpush1.bf16.msra.mxu1 %v11564_v56 }
0x1e7c   : > { %7417 = vmatprep.subr.bf16.mxu1 %v12413_v35 }
0x1e7f   : > { %7418 = vmatpush1.bf16.msra.mxu1 %v11565_v53 }
0x1e80   : > { %7419 = vmatprep.subr.bf16.mxu1 %v12413_v35 }
0x1e83   : > { %7420 = vmatpush1.bf16.msra.mxu1 %v11566_v33 }
0x1e84   : > { %7421 = vmatprep.subr.bf16.mxu1 %v12413_v35 }
0x1e87   : > { %7422 = vmatpush1.bf16.msra.mxu1 %v11567_v36 }
0x1e88   : > { %7423 = vmatprep.subr.bf16.mxu1 %v12413_v35 }
0x1e8b   : > { %7424 = vmatpush1.bf16.msra.mxu1 %v11568_v62 }
0x1e8c   : > { %7425 = vmatprep.subr.bf16.mxu1 %v12413_v35 }
0x1f3a   : > { %v7099_v55 = vpop.f32.mrf.mxu1 }
0x1f3b   : > { %v7103_v19 = vmul.f32 0.0065789474, %v7099_v55  ;;  %v11569_v55 = vld [vmem:[%s14819_s28 + $0x10] sm:$0xff]  }
0x1f3c   : > { %v11080_v57 = vpop.f32.mrf.mxu1  ;;  %7426 = vmatpush1.bf16.msra.mxu1 %v11569_v55 }
0x1f3d   : > { %v7104_v23 = vmax.f32 %v7103_v19, 0.0  ;;  %v11570_v19 = vld [vmem:[%s14819_s28 + $0x8] sm:$0xff]   ;;  %7427 = vmatprep.subr.bf16.mxu1 %v12413_v35  ;;  %v11571_v57 = vld [vmem:[%s14819_s28] sm:$0xff]  }
0x1f3f   : > { %v7105_v41 = vadd.f32 1e-05, %v7104_v23  ;;  %v11572_v23 = vld [vmem:[%s14819_s28 + $0x48] sm:$0xff]  }
0x1f40   : > { %7428 = vmatpush1.bf16.msra.mxu1 %v11570_v19 }
0x1f41   : > { %11615 = vrsqrt.f32 %v7105_v41  ;;  %7429 = vmatprep.subr.bf16.mxu1 %v12413_v35  ;;  %v11573_v41 = vld [vmem:[%s14819_s28 + $0x40] sm:$0xff]  }
0x1f44   : > { %7430 = vmatpush1.bf16.msra.mxu1 %v11571_v57 }
0x1f45   : > { %7443 = vmatprep.subr.bf16.mxu1 %v12413_v35 }
0x1f48   : > { %7444 = vmatpush2.bf16.msra.mxu1 %v11572_v23 }
0x1f49   : > { %7445 = vmatprep.subr.bf16.mxu1 %v12413_v35 }
0x1f4c   : > { %7446 = vmatpush2.bf16.msra.mxu1 %v11573_v41 }
0x1f4d   : > { %11105 = vmatprep.subr.bf16.mxu1 %v12400_v14 }
0x1f4e   : > { %v11616_v22 = vpop.eup %11615 }
0x1f4f   : > { %v7110_v20 = vrot.slane %v11616_v22, %v13080_v38  ;;  %v7177_v22 = vpop.permute.xlu1 %7176 }
0x1f51   : > { %v7111_v7 = vmul.f32 %v7110_v20, %v7013_v13  ;;  %v7112_v52 = vmul.f32 %v7110_v20, %v7014_v63  ;;  %v7113_v29 = vmul.f32 %v7110_v20, %v7015_v49 }
0x1f53   : > { %v7118_v61 = vmul.f32 %v7117_v12, %v7111_v7  ;;  %v7119_v42 = vmul.f32 %v7117_v12, %v7112_v52  ;;  %v7120_v37 = vmul.f32 %v7117_v12, %v7113_v29  ;;  %v7213_v12 = vpop.permute.xlu1 %7212  ;;  %v7163_v29 = vld [vmem:[#allocation7 + $0x8] sm:$0xf] }
0x1f55   : > { %v7125_v26 = vadd.f32 %v7124_v10, %v7118_v61  ;;  %v7126_v11 = vadd.f32 %v7124_v10, %v7119_v42  ;;  %v7127_v50 = vadd.f32 %v7124_v10, %v7120_v37  ;;  %v7312_v61 = vld [vmem:[#allocation7 + $0xc] sm:$0xf] }
0x1f57   : > { %v7128_v0 = vmax.f32 %v7125_v26, 0.0  ;;  %v7129_v51 = vmax.f32 %v7126_v11, 0.0  ;;  %v7130_v17 = vmax.f32 %v7127_v50, 0.0  ;;  %v7252_v20 = vpop.permute.xlu1 %7251 }
0x1f59   : > { %7131 = vst.msk [vmem:[#allocation2] sm:$0xff] %vm14816_vm9, %v7128_v0 }
0x1f5a   : > { %7132 = vst.msk [vmem:[#allocation2 + $0x8] sm:$0xff] %vm14817_vm11, %v7129_v51  ;;  %vm14827_vm11 = vmmov %vm14825_vm8 }
0x1f5b   : > { %7133 = vst.msk [vmem:[#allocation2 + $0x10] sm:$0x7] %vm14818_vm2, %v7130_v17  ;;  %v7175_v10 = vpop.permute.xlu1 %7174 }
0x1f5f   : > { %v7211_v7 = vpop.permute.xlu1 %7210 }
0x1f60   : > { %v7148_v63 = vld [vmem:[#allocation2] sm:$0xff] }
0x1f61   : > { %v7149_v4 = vld [vmem:[#allocation2 + $0x8] sm:$0x7f]  ;;  %v10468_v49 = vpack.c.bf16 %v7148_v63, %v7148_v63 }
0x1f62   : > { %v7298_v40 = vld [vmem:[#allocation2 + $0xc] sm:$0x7f]  ;;  %v10469_v31 = vpack.c.bf16 %v7149_v4, %v7149_v4  ;;  %v7297_v9 = vld [vmem:[#allocation2 + $0x4] sm:$0xff] }
0x1f63   : > { %v10485_v54 = vpack.c.bf16 %v7298_v40, %v7298_v40  ;;  %v7185_v48 = vld [vmem:[#allocation2 + $0x9] sm:$0x7f]  ;;  %v10484_v34 = vpack.c.bf16 %v7297_v9, %v7297_v9  ;;  %v7184_v21 = vld [vmem:[#allocation2 + $0x1] sm:$0xff]  ;;  %v7250_v52 = vpop.permute.xlu1 %7249 }
0x1f64   : > { %7158 = vrot.lane.b32.xlu0 %v10469_v31, %s12404_s1  ;;  %v10473_v6 = vpack.c.bf16 %v7185_v48, %v7185_v48  ;;  %v7221_v30 = vld [vmem:[#allocation2 + $0xa] sm:$0x7f]  ;;  %v10472_v24 = vpack.c.bf16 %v7184_v21, %v7184_v21  ;;  %v7220_v27 = vld [vmem:[#allocation2 + $0x2] sm:$0xff] }
0x1f65   : > { %7307 = vrot.lane.b32.xlu1 %v10485_v54, %s12404_s1  ;;  %v10477_v13 = vpack.c.bf16 %v7221_v30, %v7221_v30  ;;  %v10476_v39 = vpack.c.bf16 %v7220_v27, %v7220_v27  ;;  %v7263_v44 = vld [vmem:[#allocation2 + $0xb] sm:$0x7f]  ;;  %v7262_v5 = vld [vmem:[#allocation2 + $0x3] sm:$0xff]  ;;  %v7337_v27 = vld [vmem:[#allocation34] sm:$0x7] }
0x1f66   : > { %v10481_v1 = vpack.c.bf16 %v7263_v44, %v7263_v44  ;;  %v10480_v25 = vpack.c.bf16 %v7262_v5, %v7262_v5 }
0x1f68   : > { %7194 = vrot.lane.b32.xlu0 %v10473_v6, %s12407_s4 }
0x1f69   : > { %7305 = vrot.lane.b32.xlu1 %v10484_v34, %s12404_s1 }
0x1f6c   : > { %7230 = vrot.lane.b32.xlu0 %v10477_v13, %s12411_s0 }
0x1f70   : > { %7156 = vrot.lane.b32.xlu0 %v10468_v49, %s12404_s1 }
0x1f74   : > { %7192 = vrot.lane.b32.xlu0 %v10472_v24, %s12407_s4 }
0x1f78   : > { %7228 = vrot.lane.b32.xlu0 %v10476_v39, %s12411_s0  ;;  %v7341_v39 = vrot.slane %v7337_v27, %v13080_v38  ;;  %s12414_s0 = smov 40  }
0x1f7c   : > { %7272 = vrot.lane.b32.xlu0 %v10481_v1, %s12412_s10 }
0x1f80   : > { %7270 = vrot.lane.b32.xlu0 %v10480_v25, %s12412_s10  ;;  %s12415_s10 = smov 56  }
0x1fd6   : > { %v7159_v37 = vpop.permute.xlu0 %7158 }
0x1fd7   : > { %v7308_v42 = vpop.permute.xlu1 %7307  ;;  %v7164_v11 = vsel %vm13610_vm5, %v7159_v37, %v7163_v29 }
0x1fd8   : > { %v7313_v26 = vsel %vm13610_vm5, %v7308_v42, %v7312_v61  ;;  %7165 = vst [vmem:[#allocation7 + $0x8] sm:$0xf] %v7164_v11  ;;  %vm7234_vm5 = vcmask 781952  }
0x1fd9   : > { %7314 = vst [vmem:[#allocation7 + $0xc] sm:$0xf] %v7313_v26  ;;  %vm7237_vm3 = vmand %vm7234_vm5, %vm14825_vm8 }
0x1fda   : > { %v7195_v50 = vpop.permute.xlu0 %7194 }
0x1fdb   : > { %v7306_v0 = vpop.permute.xlu1 %7305 }
0x1fdc   : > { %7311 = vst.msk [vmem:[#allocation7 + $0x4] sm:$0xf] %vm14820_vm14, %v7306_v0  ;;  %vm14828_vm14 = vcmask 130048  }
0x1fde   : > { %v7231_v51 = vpop.permute.xlu0 %7230 }
0x1fdf   : > { %v7181_v17 = vld [vmem:[#allocation7 + $0x8] sm:$0xf] }
0x1fe0   : > { %v7182_v40 = vsel %vm13620_vm0, %v7177_v22, %v7181_v17  ;;  %vm7276_vm0 = vcmask 1044352  }
0x1fe1   : > { %7183 = vst [vmem:[#allocation7 + $0x8] sm:$0xf] %v7182_v40  ;;  %vm7279_vm2 = vmand %vm7276_vm0, %vm14827_vm11  ;;  %vm7688_vm11 = vcmask 256128  }
0x1fe2   : > { %v7157_v4 = vpop.permute.xlu0 %7156 }
0x1fe3   : > { %7162 = vst.msk [vmem:[#allocation7] sm:$0xf] %vm14821_vm10, %v7157_v4  ;;  %v11574_v21 = vld [vmem:[#allocation7 + $0x4] ss:$8 sps:$4 sm:$0xff]   ;;  %vm14829_vm10 = vcmask 129024  }
0x1fe4   : > { %7180 = vst.msk [vmem:[#allocation7] sm:$0xf] %vm14822_vm7, %v7175_v10  ;;  %vm14830_vm7 = vmmov %vm14828_vm14 }
0x1fe6   : > { %v7193_v54 = vpop.permute.xlu0 %7192 }
0x1fe7   : > { %7198 = vst.msk [vmem:[#allocation7] sm:$0xf] %vm14823_vm15, %v7193_v54  ;;  %vm14831_vm15 = vmmov %vm14830_vm7 }
0x1fe8   : > { %v7199_v47 = vld [vmem:[#allocation7 + $0x8] sm:$0xf]  ;;  %7216 = vst.msk [vmem:[#allocation7] sm:$0xf] %vm14824_vm6, %v7211_v7  ;;  %vm14833_vm6 = vmmov %vm14830_vm7 }
0x1fe9   : > { %v7200_v31 = vsel %vm13638_vm13, %v7195_v50, %v7199_v47  ;;  %vm14826_vm13 = vmmov %vm14825_vm8  ;;  %vm14836_vm8 = vsmask.f32 2304 }
0x1fea   : > { %7201 = vst [vmem:[#allocation7 + $0x8] sm:$0xf] %v7200_v31  ;;  %v7229_v16 = vpop.permute.xlu0 %7228  ;;  %vm7258_vm9 = vmand %vm7255_vm12, %vm14826_vm13 }
0x1feb   : > { %7235 = vst.msk [vmem:[#allocation7] sm:$0xf] %vm7234_vm5, %v7229_v16  ;;  %vm14832_vm5 = vmmov %vm14829_vm10 }
0x1fec   : > { %7256 = vst.msk [vmem:[#allocation7] sm:$0xf] %vm7255_vm12, %v7250_v52  ;;  %vm14834_vm12 = vmmov %vm14833_vm6 }
0x1fee   : > { %v7273_v48 = vpop.permute.xlu0 %7272 }
0x1ff1   : > { %v7217_v9 = vld [vmem:[#allocation7 + $0x8] sm:$0xf] }
0x1ff2   : > { %v7218_v6 = vsel %vm13656_vm1, %v7213_v12, %v7217_v9  ;;  %v7271_v34 = vpop.permute.xlu0 %7270  ;;  %vm7411_vm1 = vcmask 261120   ;;  %v7644_v9 = vrot.slane %v7337_v27, %v13190_v45 }
0x1ff3   : > { %7219 = vst [vmem:[#allocation7 + $0x8] sm:$0xf] %v7218_v6  ;;  %7277 = vst.msk [vmem:[#allocation7] sm:$0xf] %vm7276_vm0, %v7271_v34  ;;  %10098 = vmatprep.mubr.msk.bf16.mxu1 %vm7411_vm1, %v11574_v21  ;;  %v7650_v34 = vrot.slane %v7337_v27, %v13193_v43 }
0x1ff4   : > { %vm14835_vm0 = vmmov %vm14832_vm5 }
0x1ffa   : > { %v7238_v15 = vld [vmem:[#allocation7 + $0x8] sm:$0xf] }
0x1ffb   : > { %v7239_v30 = vsel %vm7237_vm3, %v7231_v51, %v7238_v15  ;;  %vm14837_vm3 = vcmask 124928  }
0x1ffc   : > { %7240 = vst [vmem:[#allocation7 + $0x8] sm:$0xf] %v7239_v30  ;;  %vm14290_vm13 = vmand %vm14837_vm3, %vm14836_vm8  ;;  %vm14852_vm3 = vcmask 255104  }
0x2003   : > { %v7259_v13 = vld [vmem:[#allocation7 + $0x8] sm:$0xf] }
0x2004   : > { %v7260_v63 = vsel %vm7258_vm9, %v7252_v20, %v7259_v13  ;;  %vm14840_vm9 = vcmask 125952  }
0x2005   : > { %7261 = vst [vmem:[#allocation7 + $0x8] sm:$0xf] %v7260_v63 }
0x200c   : > { %v7280_v49 = vld [vmem:[#allocation7 + $0x8] sm:$0xf] }
0x200d   : > { %v7281_v60 = vsel %vm7279_vm2, %v7273_v48, %v7280_v49  ;;  %vm14841_vm2 = vmmov %vm14836_vm8  ;;  %vm14851_vm8 = vcmask 123904  }
0x200e   : > { %7282 = vst [vmem:[#allocation7 + $0x8] sm:$0xf] %v7281_v60 }
0x2015   : > { %v11576_v24 = vld [vmem:[#allocation7] ss:$8 sps:$4 sm:$0xff]  }
0x2016   : > { %7448 = vmatmul.mubr.bf16.vlgmr.msra.gmra.mxu1 %v11576_v24 }
0x2017   : > { %11109 = vmatprep.mubr.msk.bf16.mxu1 %vm14683_vm4, %v12400_v14 }
0x20d6   : > { %v7449_v44 = vpop.f32.mrf.mxu1 }
0x20d7   : > { %v7450_v5 = vadd.f32 %v7449_v44, %v7341_v39 }
0x20d8   : > { %v7451_v1 = vpop.f32.mrf.mxu1 }
0x20d9   : > { %v7458_v53 = vsel %vm14828_vm14, %v7450_v5, 0.0  ;;  %vm14308_vm14 = vmand %vm7688_vm11, %vm14841_vm2 }
0x20da   : > { %v7452_v25 = vpop.f32.mrf.mxu1 }
0x20db   : > { %v7453_v56 = vadd.f32 %v7452_v25, %v7341_v39 }
0x20dc   : > { %v7454_v35 = vpop.f32.mrf.mxu1 }
0x20dd   : > { %v7459_v33 = vsel %vm14829_vm10, %v7453_v56, 0.0  ;;  %vm14844_vm10 = vcmask 257152  }
0x20de   : > { %v7460_v36 = vadd.f32 %v7459_v33, %v7458_v53 }
0x20e0   : > { %v7461_v62 = vrot.slane %v7460_v36, 4 }
0x20e2   : > { %v7462_v55 = vadd.f32 %v7461_v62, %v7460_v36  ;;  %v11577_v62 = vld [vmem:[#allocation36 + $0x10] sm:$0xff]  }
0x20e4   : > { %v7463_v19 = vrot.slane %v7462_v55, 2 }
0x20e6   : > { %v7464_v57 = vadd.f32 %v7463_v19, %v7462_v55  ;;  %v7670_v55 = vld [vmem:[#allocation7 + $0x8] sm:$0x7] }
0x20e8   : > { %v7465_v23 = vrot.slane %v7464_v57, 1 }
0x20ea   : > { %v7466_v41 = vadd.f32 %v7465_v23, %v7464_v57  ;;  %v11578_v23 = vld [vmem:[#allocation36 + $0x8] sm:$0xff]  }
0x20ec   : > { %11086 = vmatmul.mubr.msk.f32.vlgmr.msra.gmra.mxu0 %vm14830_vm7, %v7466_v41  ;;  %vm7708_vm7 = vcmask 387328  }
0x20ed   : > { %11089 = vmatpush3.msra.mxu0 %v14192_v28  ;;  %11092 = vmatprep.mubr.msk.f32.mxu0 %vm14683_vm4, %v12400_v14 }
0x20ee   : > { %11090 = vmatprep.subr.mxu0 %v12400_v14 }
0x20ef   : > { %11091 = vmatpush3.msra.mxu0 %v14194_v46 }
0x20f0   : > { %11095 = vmatprep.subr.bf16.mxu0 %v12400_v14 }
0x21ac   : > { %v7536_v22 = vpop.f32.mrf.mxu0 }
0x21ad   : > { %v7540_v12 = vmul.f32 0.008333334, %v7536_v22 }
0x21ae   : > { %v11087_v20 = vpop.f32.mrf.mxu0 }
0x21af   : > { %v7544_v10 = vrot.slane %v7540_v12, %v13080_v38  ;;  %v11579_v20 = vld [vmem:[#allocation36] sm:$0xff]  }
0x21b1   : > { %v7545_v7 = vsub.f32 %v7450_v5, %v7544_v10  ;;  %v7546_v52 = vsub.f32 %v7453_v56, %v7544_v10  ;;  %v11580_v10 = vld [vmem:[#allocation37 + $0x8] sm:$0xff]  }
0x21b2   : > { %11106 = vmatpush3.bf16.msra.mxu1 %v11580_v10 }
0x21b3   : > { %v7547_v29 = vmul.f32 %v7545_v7, %v7545_v7  ;;  %v7548_v61 = vmul.f32 %v7546_v52, %v7546_v52  ;;  %11107 = vmatprep.subr.bf16.mxu1 %v12400_v14 }
0x21b5   : > { %v7549_v42 = vsel %vm14831_vm15, %v7547_v29, 0.0  ;;  %v7550_v37 = vsel %vm14832_vm5, %v7548_v61, 0.0  ;;  %vm14845_vm15 = vcmask 388352   ;;  %vm14846_vm5 = vmmov %vm14841_vm2 }
0x21b6   : > { %v7551_v26 = vadd.f32 %v7550_v37, %v7549_v42 }
0x21b8   : > { %v7552_v11 = vrot.slane %v7551_v26, 4 }
0x21ba   : > { %v7553_v50 = vadd.f32 %v7552_v11, %v7551_v26 }
0x21bc   : > { %v7554_v0 = vrot.slane %v7553_v50, 2 }
0x21be   : > { %v7555_v51 = vadd.f32 %v7554_v0, %v7553_v50 }
0x21c0   : > { %v7556_v17 = vrot.slane %v7555_v51, 1 }
0x21c2   : > { %v7557_v40 = vadd.f32 %v7556_v17, %v7555_v51 }
0x21c4   : > { %11093 = vmatmul.mubr.msk.f32.vlgmr.msra.gmra.mxu0 %vm14833_vm6, %v7557_v40  ;;  %vm14317_vm6 = vmand %vm7708_vm7, %vm14846_vm5 }
0x21c5   : > { %11101 = vmatprep.mubr.msk.bf16.mxu0 %vm14683_vm4, %v12400_v14  ;;  %11096 = vmatpush3.bf16.msra.mxu0 %v11577_v62 }
0x21c6   : > { %11097 = vmatprep.subr.bf16.mxu0 %v12400_v14 }
0x21c9   : > { %11098 = vmatpush3.bf16.msra.mxu0 %v11578_v23 }
0x21ca   : > { %11099 = vmatprep.subr.bf16.mxu0 %v12400_v14 }
0x21cd   : > { %11100 = vmatpush3.bf16.msra.mxu0 %v11579_v20 }
0x21ce   : > { %11113 = vmatprep.subr.mxu0 %v12400_v14 }
0x2284   : > { %v7627_v4 = vpop.f32.mrf.mxu0 }
0x2285   : > { %v7631_v54 = vmul.f32 0.008333334, %v7627_v4 }
0x2286   : > { %v11094_v47 = vpop.f32.mrf.mxu0 }
0x2287   : > { %v7632_v31 = vmax.f32 %v7631_v54, 0.0 }
0x2289   : > { %v7633_v16 = vadd.f32 1e-05, %v7632_v31 }
0x228b   : > { %11617 = vrsqrt.f32 %v7633_v16 }
0x2298   : > { %v11618_v48 = vpop.eup %11617 }
0x2299   : > { %v7638_v6 = vrot.slane %v11618_v48, %v13080_v38 }
0x229b   : > { %v7639_v15 = vmul.f32 %v7638_v6, %v7545_v7  ;;  %v7640_v30 = vmul.f32 %v7638_v6, %v7546_v52  ;;  %v11581_v7 = vld [vmem:[#allocation37] sm:$0xff]  }
0x229c   : > { %11108 = vmatpush3.bf16.msra.mxu1 %v11581_v7 }
0x229d   : > { %v7645_v13 = vmul.f32 %v7644_v9, %v7639_v15  ;;  %v7646_v63 = vmul.f32 %v7644_v9, %v7640_v30 }
0x229f   : > { %v7651_v49 = vadd.f32 %v7650_v34, %v7645_v13  ;;  %v7652_v60 = vadd.f32 %v7650_v34, %v7646_v63 }
0x22a1   : > { %v7653_v21 = vmax.f32 %v7651_v49, 0.0  ;;  %v7654_v24 = vmax.f32 %v7652_v60, 0.0  ;;  %v14335_v49 = vld [vmem:[#allocation39] sm:$0x7] }
0x22a3   : > { %7655 = vst.msk [vmem:[#allocation3] sm:$0xff] %vm14834_vm12, %v7653_v21  ;;  %vm14849_vm12 = vmmov %vm14840_vm9  ;;  %v7897_v21 = vrot.slane %v14335_v49, %v13080_v38 }
0x22a4   : > { %7656 = vst.msk [vmem:[#allocation3 + $0x8] sm:$0x7f] %vm14835_vm0, %v7654_v24  ;;  %vm14850_vm0 = vmmov %vm14844_vm10 }
0x22aa   : > { %v7657_v39 = vld [vmem:[#allocation3] sm:$0xff] }
0x22ab   : > { %v7790_v44 = vld [vmem:[#allocation3 + $0x1] sm:$0xff]  ;;  %v10486_v1 = vpack.c.bf16 %v7657_v39, %v7657_v39  ;;  %v7674_v25 = vld [vmem:[#allocation3 + $0x9] sm:$0x1f] }
0x22ac   : > { %v10492_v5 = vpack.c.bf16 %v7790_v44, %v7790_v44  ;;  %v10489_v56 = vpack.c.bf16 %v7674_v25, %v7674_v25  ;;  %v7693_v35 = vld [vmem:[#allocation3 + $0x2] sm:$0xff]  ;;  %v7694_v33 = vld [vmem:[#allocation3 + $0xa] sm:$0x1f] }
0x22ad   : > { %v7658_v53 = vld [vmem:[#allocation3 + $0x8] sm:$0x1f]  ;;  %7667 = vst.msk [vmem:[#allocation7] sm:$0xf] %vm14840_vm9, %v10486_v1  ;;  %v10490_v19 = vpack.c.bf16 %v7693_v35, %v7693_v35  ;;  %v10491_v41 = vpack.c.bf16 %v7694_v33, %v7694_v33  ;;  %vm14853_vm9 = vcmask 392192  }
0x22ae   : > { %7681 = vrot.lane.b32.xlu1 %v10492_v5, %s12404_s1  ;;  %v10487_v36 = vpack.c.bf16 %v7658_v53, %v7658_v53  ;;  %7683 = vrot.lane.b32.xlu0 %v10489_v56, %s12404_s1  ;;  %v7804_v22 = vld [vmem:[#allocation3 + $0xa] sm:$0xf] }
0x22af   : > { %v10495_v12 = vpack.c.bf16 %v7804_v22, %v7804_v22  ;;  %v7791_v4 = vld [vmem:[#allocation3 + $0x9] sm:$0xf] }
0x22b0   : > { %v7671_v57 = vsel %vm14290_vm13, %v10487_v36, %v7670_v55  ;;  %v10493_v54 = vpack.c.bf16 %v7791_v4, %v7791_v4 }
0x22b1   : > { %7672 = vst [vmem:[#allocation7 + $0x8] sm:$0x7] %v7671_v57 }
0x22b2   : > { %7701 = vrot.lane.b32.xlu1 %v10490_v19, %s12406_s7  ;;  %7703 = vrot.lane.b32.xlu0 %v10491_v41, %s12406_s7 }
0x22b6   : > { %7813 = vrot.lane.b32.xlu1 %v10495_v12, %s12404_s1  ;;  %7811 = vrot.lane.b32.xlu0 %v10490_v19, %s12404_s1 }
0x22b8   : > { %v7690_v42 = vld [vmem:[#allocation7 + $0x8] sm:$0x7] }
0x2320   : > { %v7682_v29 = vpop.permute.xlu1 %7681  ;;  %v7684_v61 = vpop.permute.xlu0 %7683 }
0x2321   : > { %7687 = vst.msk [vmem:[#allocation7] sm:$0xf] %vm14844_vm10, %v7682_v29  ;;  %v7691_v37 = vsel %vm14308_vm14, %v7684_v61, %v7690_v42  ;;  %vm14857_vm10 = vcmask 122880  }
0x2322   : > { %7692 = vst [vmem:[#allocation7 + $0x8] sm:$0x7] %v7691_v37 }
0x2324   : > { %v7702_v26 = vpop.permute.xlu1 %7701  ;;  %v7704_v11 = vpop.permute.xlu0 %7703 }
0x2325   : > { %7707 = vst.msk [vmem:[#allocation7] sm:$0xf] %vm14845_vm15, %v7702_v26 }
0x2328   : > { %v7812_v40 = vpop.permute.xlu0 %7811  ;;  %v7814_v31 = vpop.permute.xlu1 %7813 }
0x2329   : > { %v7710_v0 = vld [vmem:[#allocation7 + $0x8] sm:$0x7] }
0x232a   : > { %v7711_v51 = vsel %vm14317_vm6, %v7704_v11, %v7710_v0 }
0x232b   : > { %7712 = vst [vmem:[#allocation7 + $0x8] sm:$0x7] %v7711_v51 }
0x232c   : > { %v7713_v17 = vld [vmem:[#allocation7] sm:$0xf] }
0x232d   : > { %7800 = vst.msk [vmem:[#allocation7] sm:$0xf] %vm14849_vm12, %v10492_v5 }
0x232e   : > { %7817 = vst.msk [vmem:[#allocation7] sm:$0xf] %vm14850_vm0, %v7812_v40  ;;  %vm14862_vm0 = vmmov %vm14857_vm10 }
0x2332   : > { %v7714_v47 = vld [vmem:[#allocation7 + $0x8] sm:$0x7] }
0x2333   : > { %v10107_v16 = vcombine.low %v7713_v17, %v7714_v47  ;;  %7802 = vst.msk [vmem:[#allocation7 + $0x8] sm:$0x3] %vm14851_vm8, %v10493_v54 }
0x2334   : > { %7819 = vst.msk [vmem:[#allocation7 + $0x8] sm:$0x3] %vm14852_vm3, %v7814_v31 }
0x2335   : > { %11102 = vmatmul.mubr.msk.bf16.vlgmr.msra.gmra.mxu0 %vm14853_vm9, %v10107_v16 }
0x2336   : > { %11114 = vmatpush3.msra.mxu0 %v14192_v28  ;;  %11117 = vmatprep.mubr.msk.f32.mxu0 %vm14683_vm4, %v12400_v14 }
0x2337   : > { %11115 = vmatprep.subr.mxu0 %v12400_v14 }
0x2338   : > { %11116 = vmatpush3.msra.mxu0 %v14194_v46 }
0x2339   : > { %11120 = vmatprep.subr.mxu0 %v12400_v14 }
0x233b   : > { %v11582_v48 = vld [vmem:[#allocation7] ss:$8 sps:$4 sm:$0x3f]  }
0x233c   : > { %11110 = vmatmul.mubr.msk.bf16.vlgmr.msra.gmra.mxu1 %vm7411_vm1, %v11582_v48  ;;  %vm14854_vm1 = vcmask 130048  }
0x233d   : > { %vm14855_vm11 = vmmov %vm14854_vm1 }
0x233e   : > { %vm14856_vm2 = vmmov %vm14854_vm1 }
0x233f   : > { %vm14858_vm7 = vmmov %vm14854_vm1 }
0x2340   : > { %vm14859_vm15 = vmmov %vm14854_vm1 }
0x2341   : > { %vm14860_vm5 = vmmov %vm14854_vm1 }
0x2342   : > { %vm14861_vm12 = vmmov %vm14854_vm1 }
0x2343   : > { %vm14863_vm8 = vmmov %vm14854_vm1 }
0x2344   : > { %vm14864_vm3 = vmmov %vm14854_vm1 }
0x2345   : > { %vm14865_vm9 = vmmov %vm14854_vm1 }
0x23f5   : > { %v7781_v9 = vpop.f32.mrf.mxu0 }
0x23f6   : > { %7788 = vst [vmem:[#allocation2] ss:$2 sm:$0xff] %v7781_v9 }
0x23f7   : > { %v11103_v6 = vpop.f32.mrf.mxu0 }
0x23f9   : > { %v7784_v34 = vpop.f32.mrf.mxu0 }
0x23fa   : > { %7789 = vst [vmem:[#allocation2 + $0x10] ss:$2 sm:$0x1f] %v7784_v34 }
0x23fb   : > { %v11104_v15 = vpop.f32.mrf.mxu0 }
0x23fc   : > { %v7880_v30 = vpop.f32.mrf.mxu1 }
0x23fd   : > { %7887 = vst [vmem:[#allocation2 + $0x1] ss:$2 sm:$0xff] %v7880_v30 }
0x23fe   : > { %v11111_v13 = vpop.f32.mrf.mxu1 }
0x2400   : > { %v7883_v63 = vpop.f32.mrf.mxu1 }
0x2401   : > { %7888 = vst [vmem:[#allocation2 + $0x11] ss:$2 sm:$0xf] %v7883_v63  ;;  %v7892_v5 = vld [vmem:[#allocation2 + $0x18] sm:$0x1] }
0x2402   : > { %v11112_v60 = vpop.f32.mrf.mxu1  ;;  %v7901_v33 = vadd.f32 %v7897_v21, %v7892_v5 }
0x2404   : > { %v7889_v24 = vld [vmem:[#allocation2] sm:$0xff]  ;;  %v7890_v39 = vld [vmem:[#allocation2 + $0x8] sm:$0xff]  ;;  %v7909_v19 = vsel %vm14857_vm10, %v7901_v33, 0.0 }
0x2405   : > { %v7898_v44 = vadd.f32 %v7897_v21, %v7889_v24  ;;  %v7899_v1 = vadd.f32 %v7897_v21, %v7890_v39 }
0x2407   : > { %v7904_v25 = vsel %vm14854_vm1, %v7898_v44, 0.0  ;;  %v7905_v56 = vsel %vm14855_vm11, %v7899_v1, 0.0  ;;  %vm14866_vm11 = vmmov %vm14862_vm0 }
0x2408   : > { %v7891_v35 = vld [vmem:[#allocation2 + $0x10] sm:$0xff]  ;;  %v7906_v36 = vadd.f32 %v7905_v56, %v7904_v25  ;;  %v8112_v25 = vrot.slane %v14335_v49, %v13193_v43 }
0x2409   : > { %v7900_v53 = vadd.f32 %v7897_v21, %v7891_v35 }
0x240b   : > { %v7907_v62 = vsel %vm14856_vm2, %v7900_v53, 0.0  ;;  %vm14867_vm2 = vcmask 125952  }
0x240c   : > { %v7908_v55 = vadd.f32 %v7907_v62, %v7906_v36  ;;  %vm14869_vm10 = vmmov %vm14867_vm2 }
0x240e   : > { %v7910_v57 = vadd.f32 %v7909_v19, %v7908_v55 }
0x2410   : > { %v7911_v23 = vrot.slane %v7910_v57, 4 }
0x2412   : > { %v7912_v41 = vadd.f32 %v7911_v23, %v7910_v57 }
0x2414   : > { %v7913_v22 = vrot.slane %v7912_v41, 2 }
0x2416   : > { %v7914_v12 = vadd.f32 %v7913_v22, %v7912_v41 }
0x2418   : > { %v7915_v20 = vrot.slane %v7914_v12, 1 }
0x241a   : > { %v7916_v10 = vadd.f32 %v7915_v20, %v7914_v12 }
0x241c   : > { %11118 = vmatmul.mubr.msk.f32.vlgmr.msra.gmra.mxu0 %vm14858_vm7, %v7916_v10 }
0x241d   : > { %11121 = vmatpush3.msra.mxu0 %v14192_v28  ;;  %11124 = vmatprep.mubr.msk.f32.mxu0 %vm14683_vm4, %v12400_v14 }
0x241e   : > { %11122 = vmatprep.subr.mxu0 %v12400_v14 }
0x241f   : > { %11123 = vmatpush3.msra.mxu0 %v14194_v46 }
0x2420   : > { %11141 = vmatprep.subr.mxu0 %v12400_v14 }
0x24dc   : > { %v7986_v7 = vpop.f32.mrf.mxu0 }
0x24dd   : > { %v7990_v29 = vmul.f32 0.005, %v7986_v7 }
0x24de   : > { %v11119_v61 = vpop.f32.mrf.mxu0 }
0x24df   : > { %v7994_v42 = vrot.slane %v7990_v29, %v13080_v38 }
0x24e1   : > { %v7995_v37 = vsub.f32 %v7898_v44, %v7994_v42  ;;  %v7996_v26 = vsub.f32 %v7899_v1, %v7994_v42  ;;  %v7997_v11 = vsub.f32 %v7900_v53, %v7994_v42  ;;  %v7998_v0 = vsub.f32 %v7901_v33, %v7994_v42 }
0x24e2   : > { %v8104_v1 = vrot.slane %v14335_v49, %v13190_v45 }
0x24e3   : > { %v7999_v51 = vmul.f32 %v7995_v37, %v7995_v37  ;;  %v8000_v28 = vmul.f32 %v7996_v26, %v7996_v26  ;;  %v8001_v17 = vmul.f32 %v7997_v11, %v7997_v11  ;;  %v8002_v40 = vmul.f32 %v7998_v0, %v7998_v0 }
0x24e5   : > { %v8003_v4 = vsel %vm14859_vm15, %v7999_v51, 0.0  ;;  %v8004_v54 = vsel %vm14860_vm5, %v8000_v28, 0.0  ;;  %v8006_v47 = vsel %vm14861_vm12, %v8001_v17, 0.0  ;;  %v8008_v16 = vsel %vm14862_vm0, %v8002_v40, 0.0 }
0x24e6   : > { %v8005_v46 = vadd.f32 %v8004_v54, %v8003_v4  ;;  %v8143_v54 = vld [vmem:[#allocation7 + $0x10] sm:$0x7]  ;;  %vm14872_vm15 = vcmask 388352   ;;  %vm8224_vm5 = vcmask 518528   ;;  %vm14874_vm12 = vcmask 519552  }
0x24e7   : > { %vm14875_vm0 = vsmask.f32 2304 }
0x24e8   : > { %v8007_v31 = vadd.f32 %v8006_v47, %v8005_v46 }
0x24ea   : > { %v8009_v48 = vadd.f32 %v8008_v16, %v8007_v31 }
0x24ec   : > { %v8010_v9 = vrot.slane %v8009_v48, 4 }
0x24ee   : > { %v8011_v6 = vadd.f32 %v8010_v9, %v8009_v48 }
0x24f0   : > { %v8012_v34 = vrot.slane %v8011_v6, 2 }
0x24f2   : > { %v8013_v15 = vadd.f32 %v8012_v34, %v8011_v6  ;;  %v11583_v6 = vld [vmem:[%s14868_s22 + $0x20] sm:$0xff]  }
0x24f3   : > { %11127 = vmatprep.subr.bf16.mxu1 %v11583_v6 }
0x24f4   : > { %v8014_v30 = vrot.slane %v8013_v15, 1  ;;  %11128 = vmatpush3.bf16.msra.mxu1 %v11583_v6 }
0x24f6   : > { %v8015_v13 = vadd.f32 %v8014_v30, %v8013_v15 }
0x24f8   : > { %11125 = vmatmul.mubr.msk.f32.vlgmr.msra.gmra.mxu0 %vm14863_vm8, %v8015_v13  ;;  %vm8225_vm8 = vmand %vm8224_vm5, %vm14875_vm0 }
0x24f9   : > { %11143 = vmatprep.mubr.msk.f32.mxu0 %vm14683_vm4, %v12400_v14 }
0x25b8   : > { %v8085_v63 = vpop.f32.mrf.mxu0 }
0x25b9   : > { %v8089_v60 = vmul.f32 0.005, %v8085_v63 }
0x25ba   : > { %v11126_v21 = vpop.f32.mrf.mxu0 }
0x25bb   : > { %v8090_v24 = vmax.f32 %v8089_v60, 0.0 }
0x25bd   : > { %v8091_v39 = vadd.f32 1e-05, %v8090_v24 }
0x25bf   : > { %11619 = vrsqrt.f32 %v8091_v39 }
0x25cc   : > { %v11620_v44 = vpop.eup %11619 }
0x25cd   : > { %v8096_v5 = vrot.slane %v11620_v44, %v13080_v38 }
0x25cf   : > { %v8097_v56 = vmul.f32 %v8096_v5, %v7995_v37  ;;  %v8098_v35 = vmul.f32 %v8096_v5, %v7996_v26  ;;  %v8099_v53 = vmul.f32 %v8096_v5, %v7997_v11  ;;  %v8100_v33 = vmul.f32 %v8096_v5, %v7998_v0  ;;  %v8629_v5 = vld [vmem:[#allocation5 + $0x39] sm:$0x1] }
0x25d1   : > { %v8105_v36 = vmul.f32 %v8104_v1, %v8097_v56  ;;  %v8106_v62 = vmul.f32 %v8104_v1, %v8098_v35  ;;  %v8107_v55 = vmul.f32 %v8104_v1, %v8099_v53  ;;  %v8108_v19 = vmul.f32 %v8104_v1, %v8100_v33  ;;  %v8683_v56 = vld [vmem:[#allocation5 + $0x3a] sm:$0x1]  ;;  %v11584_v35 = vld [vmem:[%s14868_s22 + $0x18] sm:$0xff]  }
0x25d2   : > { %v11585_v53 = vld [vmem:[%s14868_s22 + $0x10] sm:$0xff]   ;;  %11129 = vmatprep.subr.bf16.mxu1 %v11584_v35  ;;  %v10525_v33 = vpack.c.bf16 %v8683_v56, %v8683_v56 }
0x25d3   : > { %v8113_v57 = vadd.f32 %v8112_v25, %v8105_v36  ;;  %v8114_v23 = vadd.f32 %v8112_v25, %v8106_v62  ;;  %v8115_v41 = vadd.f32 %v8112_v25, %v8107_v55  ;;  %v8116_v22 = vadd.f32 %v8112_v25, %v8108_v19  ;;  %11130 = vmatpush3.bf16.msra.mxu1 %v11584_v35  ;;  %v8740_v36 = vld [vmem:[#allocation5 + $0x3b] sm:$0x1]  ;;  %v11586_v62 = vld [vmem:[%s14868_s22 + $0x8] sm:$0xff]   ;;  %v8800_v19 = vld [vmem:[#allocation5 + $0x3c] sm:$0x1] }
0x25d4   : > { %v10519_v25 = vpack.c.bf16 %v8629_v5, %v8629_v5  ;;  %11131 = vmatprep.subr.bf16.mxu1 %v11585_v53  ;;  %v10531_v55 = vpack.c.bf16 %v8740_v36, %v8740_v36 }
0x25d5   : > { %v8117_v12 = vmax.f32 %v8113_v57, 0.0  ;;  %v8118_v20 = vmax.f32 %v8114_v23, 0.0  ;;  %v8119_v10 = vmax.f32 %v8115_v41, 0.0  ;;  %v8120_v7 = vmax.f32 %v8116_v22, 0.0  ;;  %v11588_v57 = vld [vmem:[%s14868_s22] sm:$0xff]   ;;  %v8628_v41 = vld [vmem:[#allocation5 + $0x31] sm:$0xff] }
0x25d6   : > { %v10537_v23 = vpack.c.bf16 %v8800_v19, %v8800_v19  ;;  %v10518_v22 = vpack.c.bf16 %v8628_v41, %v8628_v41 }
0x25d7   : > { %8122 = vst.msk [vmem:[#allocation2 + $0x8] sm:$0xff] %vm14864_vm3, %v8118_v20  ;;  %11132 = vmatpush3.bf16.msra.mxu1 %v11585_v53  ;;  %vm14876_vm3 = vmmov %vm14874_vm12 }
0x25d8   : > { %8121 = vst.msk [vmem:[#allocation2] sm:$0xff] %vm14865_vm9, %v8117_v12  ;;  %11133 = vmatprep.subr.bf16.mxu1 %v11586_v62  ;;  %v8682_v12 = vld [vmem:[#allocation5 + $0x32] sm:$0xff]  ;;  %vm14877_vm9 = vcmask 650752  }
0x25d9   : > { %8123 = vst.msk [vmem:[#allocation2 + $0x10] sm:$0xff] %vm14854_vm1, %v8119_v10  ;;  %v10524_v20 = vpack.c.bf16 %v8682_v12, %v8682_v12  ;;  %v8739_v10 = vld [vmem:[#allocation5 + $0x33] sm:$0xff]  ;;  %vm8253_vm1 = vcmask 649728  }
0x25da   : > { %8124 = vst.msk [vmem:[#allocation2 + $0x18] sm:$0x1] %vm14866_vm11, %v8120_v7  ;;  %v10530_v7 = vpack.c.bf16 %v8739_v10, %v8739_v10  ;;  %vm14879_vm11 = vmmov %vm14875_vm0  ;;  %vm14887_vm0 = vcmask 61440  }
0x25db   : > { %11134 = vmatpush3.bf16.msra.mxu1 %v11586_v62 }
0x25dc   : > { %11135 = vmatprep.subr.bf16.mxu1 %v11588_v57 }
0x25de   : > { %v8126_v49 = vld [vmem:[#allocation2 + $0x8] sm:$0xff] }
0x25df   : > { %v10497_v42 = vpack.c.bf16 %v8126_v49, %v8126_v49  ;;  %v8146_v0 = vld [vmem:[#allocation2 + $0x1] sm:$0xff]  ;;  %11136 = vmatpush3.bf16.msra.mxu1 %v11588_v57  ;;  %v8799_v49 = vld [vmem:[#allocation5 + $0x34] sm:$0xff] }
0x25e0   : > { %v8175_v29 = vld [vmem:[#allocation2 + $0x12] sm:$0x1f]  ;;  %v10499_v17 = vpack.c.bf16 %v8146_v0, %v8146_v0  ;;  %v8125_v4 = vld [vmem:[#allocation2] sm:$0xff]  ;;  %v8147_v46 = vld [vmem:[#allocation2 + $0x9] sm:$0xff]  ;;  %11165 = vmatprep.subr.mxu1 %v12400_v14 }
0x25e1   : > { %v8148_v61 = vld [vmem:[#allocation2 + $0x11] sm:$0x1f]  ;;  %v10504_v37 = vpack.c.bf16 %v8175_v29, %v8175_v29  ;;  %8142 = vst.msk [vmem:[#allocation7 + $0x8] sm:$0xf] %vm14867_vm2, %v10497_v42  ;;  %v8173_v47 = vld [vmem:[#allocation2 + $0x2] sm:$0xff]  ;;  %v10496_v31 = vpack.c.bf16 %v8125_v4, %v8125_v4  ;;  %v10500_v48 = vpack.c.bf16 %v8147_v46, %v8147_v46  ;;  %v10536_v29 = vpack.c.bf16 %v8799_v49, %v8799_v49  ;;  %vm8254_vm2 = vmand %vm8253_vm1, %vm14879_vm11 }
0x25e2   : > { %v10501_v26 = vpack.c.bf16 %v8148_v61, %v8148_v61  ;;  %v8202_v11 = vld [vmem:[#allocation2 + $0x13] sm:$0x1f]  ;;  %v10502_v9 = vpack.c.bf16 %v8173_v47, %v8173_v47  ;;  %v8174_v34 = vld [vmem:[#allocation2 + $0xa] sm:$0xff] }
0x25e3   : > { %8190 = vrot.lane.b32.xlu1 %v10504_v37, %s12406_s7  ;;  %v8127_v51 = vld [vmem:[#allocation2 + $0x10] sm:$0x1f]  ;;  %v10507_v28 = vpack.c.bf16 %v8202_v11, %v8202_v11  ;;  %8141 = vst.msk [vmem:[#allocation7] sm:$0xf] %vm14869_vm10, %v10496_v31  ;;  %v8200_v15 = vld [vmem:[#allocation2 + $0x3] sm:$0xff]  ;;  %v10503_v30 = vpack.c.bf16 %v8174_v34, %v8174_v34  ;;  %vm14880_vm10 = vcmask 60416  }
0x25e4   : > { %8163 = vrot.lane.b32.xlu0 %v10501_v26, %s12404_s1  ;;  %v10498_v40 = vpack.c.bf16 %v8127_v51, %v8127_v51  ;;  %v10505_v13 = vpack.c.bf16 %v8200_v15, %v8200_v15  ;;  %v8201_v63 = vld [vmem:[#allocation2 + $0xb] sm:$0xff]  ;;  %v8231_v39 = vld [vmem:[#allocation2 + $0x14] sm:$0x1f] }
0x25e5   : > { %v8229_v60 = vld [vmem:[#allocation2 + $0x4] sm:$0xff]  ;;  %v10506_v27 = vpack.c.bf16 %v8201_v63, %v8201_v63  ;;  %v8230_v24 = vld [vmem:[#allocation2 + $0xc] sm:$0xff]  ;;  %v10510_v1 = vpack.c.bf16 %v8231_v39, %v8231_v39  ;;  %v8581_v34 = vld [vmem:[#allocation5 + $0x38] sm:$0x1] }
0x25e6   : > { %v8144_v16 = vsel %vm14290_vm13, %v10498_v40, %v8143_v54  ;;  %v10508_v21 = vpack.c.bf16 %v8229_v60, %v8229_v60  ;;  %v10509_v44 = vpack.c.bf16 %v8230_v24, %v8230_v24  ;;  %vm14870_vm13 = vcmask 257152   ;;  %v14422_v60 = vld [vmem:[%s12579_s14] sm:$0xff] }
0x25e7   : > { %8159 = vrot.lane.b32.xlu1 %v10499_v17, %s12404_s1  ;;  %8145 = vst [vmem:[#allocation7 + $0x10] sm:$0x7] %v8144_v16  ;;  %vm14871_vm7 = vmmov %vm14870_vm13  ;;  %v10513_v15 = vpack.c.bf16 %v8581_v34, %v8581_v34  ;;  %11142 = vmatpush3.msra.mxu0 %v14422_v60 }
0x25e8   : > { %8217 = vrot.lane.b32.xlu0 %v10507_v28, %s12407_s4  ;;  %11146 = vmatprep.subr.mxu0 %v12400_v14 }
0x25eb   : > { %8186 = vrot.lane.b32.xlu1 %v10502_v9, %s12406_s7 }
0x25ec   : > { %8161 = vrot.lane.b32.xlu0 %v10500_v48, %s12404_s1 }
0x25ee   : > { %v8170_v37 = vld [vmem:[#allocation7 + $0x10] sm:$0x7] }
0x25ef   : > { %8213 = vrot.lane.b32.xlu1 %v10505_v13, %s12407_s4 }
0x25f0   : > { %8188 = vrot.lane.b32.xlu0 %v10503_v30, %s12406_s7 }
0x25f3   : > { %8242 = vrot.lane.b32.xlu1 %v10508_v21, %s12408_s16 }
0x25f4   : > { %8215 = vrot.lane.b32.xlu0 %v10506_v27, %s12407_s4 }
0x25f7   : > { %8246 = vrot.lane.b32.xlu1 %v10510_v1, %s12408_s16 }
0x25f8   : > { %8244 = vrot.lane.b32.xlu0 %v10509_v44, %s12408_s16 }
0x25fb   : > { %8644 = vrot.lane.b32.xlu1 %v10519_v25, %s12404_s1 }
0x25ff   : > { %8698 = vrot.lane.b32.xlu1 %v10525_v33, %s12406_s7 }
0x2603   : > { %8755 = vrot.lane.b32.xlu1 %v10531_v55, %s12407_s4 }
0x2607   : > { %8815 = vrot.lane.b32.xlu1 %v10537_v23, %s12408_s16 }
0x260b   : > { %8642 = vrot.lane.b32.xlu1 %v10518_v22, %s12404_s1 }
0x260f   : > { %8696 = vrot.lane.b32.xlu1 %v10524_v20, %s12406_s7 }
0x2613   : > { %8753 = vrot.lane.b32.xlu1 %v10530_v7, %s12407_s4 }
0x2617   : > { %8813 = vrot.lane.b32.xlu1 %v10536_v29, %s12408_s16 }
0x2655   : > { %v8191_v61 = vpop.permute.xlu1 %8190 }
0x2656   : > { %v8164_v42 = vpop.permute.xlu0 %8163 }
0x2657   : > { %v8171_v26 = vsel %vm14308_vm14, %v8164_v42, %v8170_v37  ;;  %vm14873_vm14 = vmmov %vm14872_vm15 }
0x2658   : > { %8172 = vst [vmem:[#allocation7 + $0x10] sm:$0x7] %v8171_v26 }
0x2659   : > { %v8160_v0 = vpop.permute.xlu1 %8159 }
0x265a   : > { %v8218_v11 = vpop.permute.xlu0 %8217  ;;  %8168 = vst.msk [vmem:[#allocation7] sm:$0xf] %vm14870_vm13, %v8160_v0  ;;  %vm14881_vm13 = vmmov %vm14880_vm10 }
0x265d   : > { %v8187_v28 = vpop.permute.xlu1 %8186 }
0x265e   : > { %v8162_v51 = vpop.permute.xlu0 %8161  ;;  %8195 = vst.msk [vmem:[#allocation7] sm:$0xf] %vm14872_vm15, %v8187_v28  ;;  %vm14883_vm15 = vnez %v14664_v8 }
0x265f   : > { %v8197_v17 = vld [vmem:[#allocation7 + $0x10] sm:$0x7]  ;;  %8169 = vst.msk [vmem:[#allocation7 + $0x8] sm:$0xf] %vm14871_vm7, %v8162_v51  ;;  %vm14882_vm7 = vcmask 654336  }
0x2660   : > { %v8198_v40 = vsel %vm14317_vm6, %v8191_v61, %v8197_v17  ;;  %vm14878_vm6 = vmmov %vm14877_vm9 }
0x2661   : > { %8199 = vst [vmem:[#allocation7 + $0x10] sm:$0x7] %v8198_v40  ;;  %v8214_v54 = vpop.permute.xlu1 %8213  ;;  %vm14884_vm5 = vmmov %vm14882_vm7 }
0x2662   : > { %v8189_v4 = vpop.permute.xlu0 %8188  ;;  %8222 = vst.msk [vmem:[#allocation7] sm:$0xf] %vm14874_vm12, %v8214_v54 }
0x2663   : > { %8196 = vst.msk [vmem:[#allocation7 + $0x8] sm:$0xf] %vm14873_vm14, %v8189_v4  ;;  %vm14885_vm14 = vcmask 64512  }
0x2664   : > { %vm14886_vm12 = vmmov %vm14885_vm14 }
0x2665   : > { %v8243_v46 = vpop.permute.xlu1 %8242 }
0x2666   : > { %v8216_v52 = vpop.permute.xlu0 %8215  ;;  %8251 = vst.msk [vmem:[#allocation7] sm:$0xf] %vm14877_vm9, %v8243_v46 }
0x2667   : > { %8223 = vst.msk [vmem:[#allocation7 + $0x8] sm:$0xf] %vm14876_vm3, %v8216_v52 }
0x2668   : > { %v8226_v47 = vld [vmem:[#allocation7 + $0x10] sm:$0x7] }
0x2669   : > { %v8227_v31 = vsel %vm8225_vm8, %v8218_v11, %v8226_v47  ;;  %v8247_v48 = vpop.permute.xlu1 %8246  ;;  %vm14888_vm8 = vmmov %vm14886_vm12 }
0x266a   : > { %8228 = vst [vmem:[#allocation7 + $0x10] sm:$0x7] %v8227_v31  ;;  %v8245_v50 = vpop.permute.xlu0 %8244  ;;  %vm14889_vm3 = vmmov %vm14888_vm8 }
0x266b   : > { %8252 = vst.msk [vmem:[#allocation7 + $0x8] sm:$0xf] %vm14878_vm6, %v8245_v50  ;;  %vm14890_vm9 = vmmov %vm14889_vm3 }
0x266c   : > { %vm14891_vm6 = vmmov %vm14887_vm0 }
0x266d   : > { %vm14892_vm1 = vmmov %vm14889_vm3 }
0x266e   : > { %vm14893_vm11 = vmmov %vm14892_vm1 }
0x2671   : > { %v8255_v16 = vld [vmem:[#allocation7 + $0x10] sm:$0x7] }
0x2672   : > { %v8256_v9 = vsel %vm8254_vm2, %v8247_v48, %v8255_v16  ;;  %v11587_v6 = vld [vmem:[#allocation7] ss:$8 sps:$4 sm:$0xff]   ;;  %vm14894_vm2 = vmmov %vm14892_vm1 }
0x2673   : > { %8257 = vst [vmem:[#allocation7 + $0x10] sm:$0x7] %v8256_v9  ;;  %8595 = vst.msk [vmem:[#allocation7] sm:$0xf] %vm14880_vm10, %v13229_v58  ;;  %11137 = vmatprep.mubr.msk.bf16.mxu1 %vm14882_vm7, %v11587_v6  ;;  %v8271_v58 = vld [vmem:[#allocation40] sm:$0x7] }
0x2674   : > { %8596 = vst.msk [vmem:[#allocation7 + $0x8] sm:$0xf] %vm14881_vm13, %v13233_v2  ;;  %v8275_v21 = vrot.slane %v8271_v58, %v13080_v38  ;;  %v8562_v9 = vrot.slane %v8271_v58, %v13190_v45  ;;  %v8569_v34 = vrot.slane %v8271_v58, %v13193_v43  ;;  %vm14895_vm10 = vmmov %vm14887_vm0  ;;  %vm14897_vm13 = vnez %v14666_v32 }
0x2675   : > { %vm14898_vm7 = vcmask 126016  }
0x267a   : > { %v8597_v30 = vld [vmem:[#allocation7 + $0x10] sm:$0x1] }
0x267b   : > { %v8598_v13 = vsel %vm14883_vm15, %v10513_v15, %v8597_v30  ;;  %v11589_v63 = vld [vmem:[#allocation7 + $0x10] ss:$0 sps:$4 sm:$0x77]  }
0x267c   : > { %8599 = vst [vmem:[#allocation7 + $0x10] sm:$0x1] %v8598_v13  ;;  %11138 = vmatmul.mubr.msk.bf16.vlgmr.msra.gmra.mxu1 %vm14884_vm5, %v11589_v63  ;;  %vm14899_vm5 = vcmask 191616  }
0x267d   : > { %11167 = vmatprep.mubr.msk.f32.mxu1 %vm14683_vm4, %v12400_v14  ;;  %11166 = vmatpush3.msra.mxu1 %v14422_v60 }
0x267e   : > { %11170 = vmatprep.subr.mxu1 %v12400_v14 }
0x273c   : > { %v11139_v2 = vpop.f32.mrf.mxu1 }
0x273d   : > { %v8363_v1 = vadd.f32 %v11139_v2, %v8275_v21 }
0x273e   : > { %v8354_v27 = vpop.f32.mrf.mxu1 }
0x273f   : > { %v8355_v39 = vadd.f32 %v8354_v27, %v8275_v21  ;;  %v8372_v53 = vsel %vm14887_vm0, %v8363_v1, 0.0  ;;  %vm8730_vm0 = vcmask 388416  }
0x2740   : > { %v11140_v24 = vpop.f32.mrf.mxu1 }
0x2741   : > { %v8369_v25 = vsel %vm14885_vm14, %v8355_v39, 0.0  ;;  %vm14900_vm14 = vcmask 257216  }
0x2742   : > { %v8357_v44 = vpop.f32.mrf.mxu1 }
0x2743   : > { %v8358_v5 = vadd.f32 %v8357_v44, %v8275_v21 }
0x2745   : > { %v8370_v56 = vsel %vm14886_vm12, %v8358_v5, 0.0  ;;  %vm14901_vm12 = vcmask 322816  }
0x2746   : > { %v8371_v35 = vadd.f32 %v8370_v56, %v8369_v25 }
0x2748   : > { %v8373_v33 = vadd.f32 %v8372_v53, %v8371_v35 }
0x274a   : > { %v8374_v36 = vrot.slane %v8373_v33, 4 }
0x274c   : > { %v8375_v62 = vadd.f32 %v8374_v36, %v8373_v33 }
0x274e   : > { %v8376_v55 = vrot.slane %v8375_v62, 2 }
0x2750   : > { %v8377_v19 = vadd.f32 %v8376_v55, %v8375_v62  ;;  %v8627_v55 = vld [vmem:[#allocation5 + $0x29] sm:$0xff] }
0x2752   : > { %v8378_v57 = vrot.slane %v8377_v19, 1 }
0x2754   : > { %v8379_v23 = vadd.f32 %v8378_v57, %v8377_v19  ;;  %v10517_v57 = vpack.c.bf16 %v8627_v55, %v8627_v55 }
0x2756   : > { %11144 = vmatmul.mubr.msk.f32.vlgmr.msra.gmra.mxu0 %vm14888_vm8, %v8379_v23  ;;  %vm8760_vm8 = vcmask 454016  }
0x2757   : > { %11147 = vmatpush3.msra.mxu0 %v14422_v60  ;;  %11148 = vmatprep.mubr.msk.f32.mxu0 %vm14683_vm4, %v12400_v14 }
0x2816   : > { %v8449_v41 = vpop.f32.mrf.mxu0 }
0x2817   : > { %v8453_v22 = vmul.f32 0.005952381, %v8449_v41  ;;  %v8681_v41 = vld [vmem:[#allocation5 + $0x2a] sm:$0xff] }
0x2818   : > { %v11145_v12 = vpop.f32.mrf.mxu0 }
0x2819   : > { %v8457_v20 = vrot.slane %v8453_v22, %v13080_v38  ;;  %v10523_v12 = vpack.c.bf16 %v8681_v41, %v8681_v41 }
0x281b   : > { %v8458_v10 = vsub.f32 %v8355_v39, %v8457_v20  ;;  %v8459_v7 = vsub.f32 %v8358_v5, %v8457_v20  ;;  %v8460_v49 = vsub.f32 %v8363_v1, %v8457_v20 }
0x281d   : > { %v8461_v29 = vmul.f32 %v8458_v10, %v8458_v10  ;;  %v8462_v61 = vmul.f32 %v8459_v7, %v8459_v7  ;;  %v8463_v42 = vmul.f32 %v8460_v49, %v8460_v49 }
0x281f   : > { %v8464_v37 = vsel %vm14889_vm3, %v8461_v29, 0.0  ;;  %v8465_v26 = vsel %vm14890_vm9, %v8462_v61, 0.0  ;;  %v8467_v0 = vsel %vm14891_vm6, %v8463_v42, 0.0  ;;  %v8738_v61 = vld [vmem:[#allocation5 + $0x2b] sm:$0xff]  ;;  %vm14902_vm3 = vnez %v14668_v59 }
0x2820   : > { %v8466_v11 = vadd.f32 %v8465_v26, %v8464_v37  ;;  %v10529_v42 = vpack.c.bf16 %v8738_v61, %v8738_v61  ;;  %v8798_v37 = vld [vmem:[#allocation5 + $0x2c] sm:$0xff]  ;;  %vm8790_vm9 = vcmask 519616   ;;  %vm8820_vm6 = vcmask 585216  }
0x2821   : > { %v10535_v26 = vpack.c.bf16 %v8798_v37, %v8798_v37 }
0x2822   : > { %v8468_v51 = vadd.f32 %v8467_v0, %v8466_v11 }
0x2824   : > { %v8469_v28 = vrot.slane %v8468_v51, 4 }
0x2826   : > { %v8470_v17 = vadd.f32 %v8469_v28, %v8468_v51 }
0x2828   : > { %v8471_v40 = vrot.slane %v8470_v17, 2 }
0x282a   : > { %v8472_v4 = vadd.f32 %v8471_v40, %v8470_v17 }
0x282c   : > { %v8473_v54 = vrot.slane %v8472_v4, 1 }
0x282e   : > { %v8474_v52 = vadd.f32 %v8473_v54, %v8472_v4 }
0x2830   : > { %11149 = vmatmul.mubr.msk.f32.vlgmr.msra.gmra.mxu0 %vm14892_vm1, %v8474_v52  ;;  %vm8850_vm1 = vcmask 650816  }
0x28f0   : > { %v8544_v46 = vpop.f32.mrf.mxu0 }
0x28f1   : > { %v8548_v47 = vmul.f32 0.005952381, %v8544_v46 }
0x28f2   : > { %v11150_v31 = vpop.f32.mrf.mxu0 }
0x28f3   : > { %v8549_v50 = vmax.f32 %v8548_v47, 0.0 }
0x28f5   : > { %v8550_v16 = vadd.f32 1e-05, %v8549_v50 }
0x28f7   : > { %11621 = vrsqrt.f32 %v8550_v16 }
0x2904   : > { %v11622_v48 = vpop.eup %11621 }
0x2905   : > { %v8555_v6 = vrot.slane %v11622_v48, %v13080_v38 }
0x2907   : > { %v8556_v15 = vmul.f32 %v8555_v6, %v8458_v10  ;;  %v8557_v30 = vmul.f32 %v8555_v6, %v8459_v7  ;;  %v8558_v13 = vmul.f32 %v8555_v6, %v8460_v49 }
0x2909   : > { %v8563_v63 = vmul.f32 %v8562_v9, %v8556_v15  ;;  %v8564_v2 = vmul.f32 %v8562_v9, %v8557_v30  ;;  %v8565_v27 = vmul.f32 %v8562_v9, %v8558_v13 }
0x290b   : > { %v8570_v21 = vadd.f32 %v8569_v34, %v8563_v63  ;;  %v8571_v24 = vadd.f32 %v8569_v34, %v8564_v2  ;;  %v8572_v39 = vadd.f32 %v8569_v34, %v8565_v27  ;;  %v8645_v34 = vpop.permute.xlu1 %8644 }
0x290d   : > { %v8573_v44 = vmax.f32 %v8570_v21, 0.0  ;;  %v8574_v1 = vmax.f32 %v8571_v24, 0.0  ;;  %v8575_v5 = vmax.f32 %v8572_v39, 0.0 }
0x290f   : > { %8576 = vst.msk [vmem:[#allocation3] sm:$0xff] %vm14893_vm11, %v8573_v44  ;;  %v8699_v13 = vpop.permute.xlu1 %8698  ;;  %v8624_v44 = vld [vmem:[#allocation7 + $0x10] sm:$0x1]  ;;  %vm14903_vm11 = vnez %v14670_v3 }
0x2910   : > { %8577 = vst.msk [vmem:[#allocation3 + $0x8] sm:$0xff] %vm14894_vm2, %v8574_v1  ;;  %vm14904_vm2 = vnez %v14672_v18 }
0x2911   : > { %8578 = vst.msk [vmem:[#allocation3 + $0x10] sm:$0x1f] %vm14895_vm10, %v8575_v5  ;;  %vm8733_vm10 = vcmask 385344  }
0x2913   : > { %v14468_v63 = vpop.permute.xlu1 %8755 }
0x2916   : > { %v8600_v51 = vld [vmem:[#allocation3] sm:$0xff] }
0x2917   : > { %v8601_v58 = vld [vmem:[#allocation3 + $0x8] sm:$0xff]  ;;  %v10514_v28 = vpack.c.bf16 %v8600_v51, %v8600_v51  ;;  %v14470_v2 = vpop.permute.xlu1 %8815 }
0x2918   : > { %v8602_v25 = vld [vmem:[#allocation3 + $0x10] sm:$0x1]  ;;  %v10515_v35 = vpack.c.bf16 %v8601_v58, %v8601_v58  ;;  %v8656_v53 = vld [vmem:[#allocation3 + $0x11] sm:$0x1]  ;;  %v8710_v10 = vld [vmem:[#allocation3 + $0x12] sm:$0x1] }
0x2919   : > { %v10516_v56 = vpack.c.bf16 %v8602_v25, %v8602_v25  ;;  %v8655_v33 = vld [vmem:[#allocation3 + $0x9] sm:$0xff]  ;;  %v10522_v36 = vpack.c.bf16 %v8656_v53, %v8656_v53  ;;  %v10528_v49 = vpack.c.bf16 %v8710_v10, %v8710_v10  ;;  %v8770_v11 = vld [vmem:[#allocation3 + $0x13] sm:$0x1]  ;;  %v8654_v17 = vld [vmem:[#allocation3 + $0x1] sm:$0xff] }
0x291a   : > { %8615 = vrot.lane.b32.xlu1 %v10515_v35, %s12403_s23  ;;  %v10521_v62 = vpack.c.bf16 %v8655_v33, %v8655_v33  ;;  %v8709_v19 = vld [vmem:[#allocation3 + $0xa] sm:$0xff]  ;;  %v10534_v0 = vpack.c.bf16 %v8770_v11, %v8770_v11  ;;  %v10520_v40 = vpack.c.bf16 %v8654_v17, %v8654_v17  ;;  %v8708_v4 = vld [vmem:[#allocation3 + $0x2] sm:$0xff]  ;;  %v8830_v50 = vld [vmem:[#allocation3 + $0x14] sm:$0x1] }
0x291b   : > { %8617 = vrot.lane.b32.xlu0 %v10516_v56, %s12403_s23  ;;  %v10527_v23 = vpack.c.bf16 %v8709_v19, %v8709_v19  ;;  %v8769_v22 = vld [vmem:[#allocation3 + $0xb] sm:$0xff]  ;;  %v10526_v54 = vpack.c.bf16 %v8708_v4, %v8708_v4  ;;  %v8768_v52 = vld [vmem:[#allocation3 + $0x3] sm:$0xff]  ;;  %v10540_v16 = vpack.c.bf16 %v8830_v50, %v8830_v50  ;;  %v8643_v27 = vpop.permute.xlu1 %8642 }
0x291c   : > { %v10533_v20 = vpack.c.bf16 %v8769_v22, %v8769_v22  ;;  %v8829_v7 = vld [vmem:[#allocation3 + $0xc] sm:$0xff]  ;;  %v10532_v46 = vpack.c.bf16 %v8768_v52, %v8768_v52  ;;  %v8828_v47 = vld [vmem:[#allocation3 + $0x4] sm:$0xff]  ;;  %v8871_v52 = vld [vmem:[#allocation42] sm:$0x7] }
0x291d   : > { %v10539_v29 = vpack.c.bf16 %v8829_v7, %v8829_v7  ;;  %v10538_v31 = vpack.c.bf16 %v8828_v47, %v8828_v47 }
0x291e   : > { %8669 = vrot.lane.b32.xlu1 %v10521_v62, %s12405_s26 }
0x291f   : > { %8671 = vrot.lane.b32.xlu0 %v10522_v36, %s12405_s26  ;;  %v8697_v21 = vpop.permute.xlu1 %8696 }
0x2922   : > { %8723 = vrot.lane.b32.xlu1 %v10527_v23, %s12414_s0 }
0x2923   : > { %8640 = vrot.lane.b32.xlu0 %v10517_v57, %s12404_s1  ;;  %s14896_s1 = sld [smem:[#allocation74_spill]]  ;;  %v8754_v24 = vpop.permute.xlu1 %8753 }
0x2926   : > { %8783 = vrot.lane.b32.xlu1 %v10533_v20, %s12415_s10 }
0x2927   : > { %8694 = vrot.lane.b32.xlu0 %v10523_v12, %s12406_s7  ;;  %v8814_v39 = vpop.permute.xlu1 %8813  ;;  %s11185_s7 = smul.u32 24, %s14935_s18 }
0x2929   : > { %v11591_v48 = vld [vmem:[%s14896_s1 + $0x20] sm:$0xff]   ;;  %v11592_v9 = vld [vmem:[%s14896_s1 + $0x18] sm:$0xff]   ;;  %v11593_v6 = vld [vmem:[%s14896_s1 + $0x10] sm:$0xff]  }
0x292a   : > { %8843 = vrot.lane.b32.xlu1 %v10539_v29, %s12409_s5  ;;  %11151 = vmatprep.subr.bf16.mxu0 %v11591_v48  ;;  %v11594_v15 = vld [vmem:[%s14896_s1 + $0x8] sm:$0xff]   ;;  %v11595_v30 = vld [vmem:[%s14896_s1] sm:$0xff]  }
0x292b   : > { %8725 = vrot.lane.b32.xlu0 %v10528_v49, %s12414_s0  ;;  %11152 = vmatpush3.bf16.msra.mxu0 %v11591_v48 }
0x292c   : > { %11153 = vmatprep.subr.bf16.mxu0 %v11592_v9 }
0x292f   : > { %8751 = vrot.lane.b32.xlu0 %v10529_v42, %s12407_s4  ;;  %11154 = vmatpush3.bf16.msra.mxu0 %v11592_v9  ;;  %s1379_s4 = scalar_lea.vmem %s12594_s3, %s11185_s7 }
0x2930   : > { %11155 = vmatprep.subr.bf16.mxu0 %v11593_v6 }
0x2933   : > { %8811 = vrot.lane.b32.xlu0 %v10535_v26, %s12408_s16  ;;  %11156 = vmatpush3.bf16.msra.mxu0 %v11593_v6 }
0x2934   : > { %11157 = vmatprep.subr.bf16.mxu0 %v11594_v15 }
0x2937   : > { %8785 = vrot.lane.b32.xlu0 %v10534_v0, %s12415_s10  ;;  %11158 = vmatpush3.bf16.msra.mxu0 %v11594_v15 }
0x2938   : > { %11159 = vmatprep.subr.bf16.mxu0 %v11595_v30 }
0x293b   : > { %8613 = vrot.lane.b32.xlu0 %v10514_v28, %s12403_s23  ;;  %11160 = vmatpush3.bf16.msra.mxu0 %v11595_v30  ;;  %s14920_s23 = sld [smem:[#allocation76_spill]] }
0x293f   : > { %8667 = vrot.lane.b32.xlu0 %v10520_v40, %s12405_s26  ;;  %s14930_s26 = sld [smem:[#allocation77_spill]] }
0x2943   : > { %8721 = vrot.lane.b32.xlu0 %v10526_v54, %s12414_s0 }
0x2947   : > { %8781 = vrot.lane.b32.xlu0 %v10532_v46, %s12415_s10 }
0x294b   : > { %8841 = vrot.lane.b32.xlu0 %v10538_v31, %s12409_s5  ;;  %v8875_v31 = vrot.slane %v8871_v52, %v13080_v38 }
0x294f   : > { %8845 = vrot.lane.b32.xlu0 %v10540_v16, %s12409_s5 }
0x298c   : > { %v8616_v5 = vpop.permute.xlu1 %8615 }
0x298d   : > { %v8618_v1 = vpop.permute.xlu0 %8617  ;;  %8623 = vst.msk [vmem:[#allocation7 + $0x8] sm:$0xf] %vm14898_vm7, %v8616_v5 }
0x298e   : > { %v8625_v25 = vsel %vm14897_vm13, %v8618_v1, %v8624_v44  ;;  %8650 = vst.msk [vmem:[#allocation7 + $0x8] sm:$0xf] %vm14899_vm5, %v8643_v27  ;;  %vm14905_vm13 = vmmov %vm14898_vm7  ;;  %vm14906_vm7 = vsmask.f32 256 }
0x298f   : > { %8626 = vst [vmem:[#allocation7 + $0x10] sm:$0x1] %v8625_v25  ;;  %vm8734_vm5 = vmand %vm8733_vm10, %vm14906_vm7  ;;  %vm8793_vm10 = vcmask 516544  }
0x2990   : > { %v8670_v56 = vpop.permute.xlu1 %8669 }
0x2991   : > { %v8672_v58 = vpop.permute.xlu0 %8671  ;;  %8677 = vst.msk [vmem:[#allocation7 + $0x8] sm:$0xf] %vm14900_vm14, %v8670_v56  ;;  %vm14907_vm14 = vcmask 191616  }
0x2992   : > { %8704 = vst.msk [vmem:[#allocation7 + $0x8] sm:$0xf] %vm14901_vm12, %v8697_v21  ;;  %vm14908_vm12 = vcmask 257216  }
0x2994   : > { %v8724_v53 = vpop.permute.xlu1 %8723 }
0x2995   : > { %v8641_v35 = vpop.permute.xlu0 %8640  ;;  %8732 = vst.msk [vmem:[#allocation7 + $0x8] sm:$0xf] %vm8730_vm0, %v8724_v53 }
0x2996   : > { %v8651_v33 = vld [vmem:[#allocation7 + $0x10] sm:$0x1]  ;;  %8762 = vst.msk [vmem:[#allocation7 + $0x8] sm:$0xf] %vm8760_vm8, %v8754_v24 }
0x2997   : > { %v8652_v32 = vsel %vm14902_vm3, %v8645_v34, %v8651_v33  ;;  %vm14909_vm3 = vcmask 322816  }
0x2998   : > { %8653 = vst [vmem:[#allocation7 + $0x10] sm:$0x1] %v8652_v32  ;;  %v8784_v62 = vpop.permute.xlu1 %8783 }
0x2999   : > { %v8695_v36 = vpop.permute.xlu0 %8694  ;;  %8792 = vst.msk [vmem:[#allocation7 + $0x8] sm:$0xf] %vm8790_vm9, %v8784_v62 }
0x299a   : > { %8822 = vst.msk [vmem:[#allocation7 + $0x8] sm:$0xf] %vm8820_vm6, %v8814_v39 }
0x299c   : > { %v8844_v19 = vpop.permute.xlu1 %8843 }
0x299d   : > { %v8726_v55 = vpop.permute.xlu0 %8725  ;;  %8852 = vst.msk [vmem:[#allocation7 + $0x8] sm:$0xf] %vm8850_vm1, %v8844_v19 }
0x299f   : > { %v8678_v57 = vld [vmem:[#allocation7 + $0x10] sm:$0x1] }
0x29a0   : > { %v8679_v59 = vsel %vm14903_vm11, %v8672_v58, %v8678_v57  ;;  %vm8763_vm11 = vcmask 450944  }
0x29a1   : > { %8680 = vst [vmem:[#allocation7 + $0x10] sm:$0x1] %v8679_v59  ;;  %v8752_v23 = vpop.permute.xlu0 %8751 }
0x29a5   : > { %v8812_v41 = vpop.permute.xlu0 %8811 }
0x29a8   : > { %v8705_v22 = vld [vmem:[#allocation7 + $0x10] sm:$0x1] }
0x29a9   : > { %v8706_v12 = vsel %vm14904_vm2, %v8699_v13, %v8705_v22  ;;  %v8786_v20 = vpop.permute.xlu0 %8785  ;;  %vm14910_vm2 = vmmov %vm14906_vm7 }
0x29aa   : > { %8707 = vst [vmem:[#allocation7 + $0x10] sm:$0x1] %v8706_v12  ;;  %vm14911_vm7 = vmmov %vm14910_vm2 }
0x29ad   : > { %v8614_v10 = vpop.permute.xlu0 %8613 }
0x29ae   : > { %8622 = vst.msk [vmem:[#allocation7] sm:$0xf] %vm14905_vm13, %v8614_v10  ;;  %vm8764_vm13 = vmand %vm8763_vm11, %vm14910_vm2  ;;  %vm14916_vm11 = vcmask 64512  }
0x29af   : > { %8649 = vst.msk [vmem:[#allocation7] sm:$0xf] %vm14907_vm14, %v8641_v35  ;;  %vm14913_vm14 = vmmov %vm14910_vm2 }
0x29b1   : > { %v8735_v7 = vld [vmem:[#allocation7 + $0x10] sm:$0x1]  ;;  %v8668_v3 = vpop.permute.xlu0 %8667 }
0x29b2   : > { %v8736_v49 = vsel %vm8734_vm5, %v8726_v55, %v8735_v7  ;;  %8676 = vst.msk [vmem:[#allocation7] sm:$0xf] %vm14908_vm12, %v8668_v3  ;;  %vm8794_vm5 = vmand %vm8793_vm10, %vm14911_vm7 }
0x29b3   : > { %8737 = vst [vmem:[#allocation7 + $0x10] sm:$0x1] %v8736_v49  ;;  %8703 = vst.msk [vmem:[#allocation7] sm:$0xf] %vm14909_vm3, %v8695_v36 }
0x29b4   : > { %vm14914_vm12 = vmmov %vm14910_vm2 }
0x29b5   : > { %v8722_v18 = vpop.permute.xlu0 %8721  ;;  %vm14917_vm2 = vmmov %vm14916_vm11 }
0x29b6   : > { %8731 = vst.msk [vmem:[#allocation7] sm:$0xf] %vm8730_vm0, %v8722_v18  ;;  %vm8823_vm0 = vcmask 582144   ;;  %vm14919_vm10 = vmmov %vm14917_vm2 }
0x29b7   : > { %8761 = vst.msk [vmem:[#allocation7] sm:$0xf] %vm8760_vm8, %v8752_v23  ;;  %vm14912_vm8 = vcmask 654336   ;;  %vm14921_vm7 = vmmov %vm14917_vm2 }
0x29b9   : > { %v8782_v29 = vpop.permute.xlu0 %8781 }
0x29ba   : > { %v8765_v61 = vld [vmem:[#allocation7 + $0x10] sm:$0x1]  ;;  %8791 = vst.msk [vmem:[#allocation7] sm:$0xf] %vm8790_vm9, %v8782_v29  ;;  %vm8824_vm9 = vmand %vm8823_vm0, %vm14913_vm14 }
0x29bb   : > { %v8766_v42 = vsel %vm8764_vm13, %v14468_v63, %v8765_v61  ;;  %8821 = vst.msk [vmem:[#allocation7] sm:$0xf] %vm8820_vm6, %v8812_v41  ;;  %vm8853_vm6 = vcmask 647744   ;;  %vm14918_vm13 = vcmask 57344  }
0x29bc   : > { %8767 = vst [vmem:[#allocation7 + $0x10] sm:$0x1] %v8766_v42  ;;  %vm8854_vm3 = vmand %vm8853_vm6, %vm14914_vm12  ;;  %v9163_v42 = vrot.slane %v8871_v52, %v13190_v45 }
0x29bd   : > { %v8842_v37 = vpop.permute.xlu0 %8841  ;;  %vm14923_vm0 = vmmov %vm14918_vm13 }
0x29be   : > { %8851 = vst.msk [vmem:[#allocation7] sm:$0xf] %vm8850_vm1, %v8842_v37  ;;  %vm14915_vm1 = vmmov %vm14912_vm8 }
0x29bf   : > { %vm14928_vm6 = vmmov %vm14917_vm2 }
0x29c0   : > { %vm14929_vm12 = vmmov %vm14917_vm2 }
0x29c1   : > { %v8846_v40 = vpop.permute.xlu0 %8845 }
0x29c3   : > { %v8795_v26 = vld [vmem:[#allocation7 + $0x10] sm:$0x1] }
0x29c4   : > { %v8796_v11 = vsel %vm8794_vm5, %v8786_v20, %v8795_v26  ;;  %vm14922_vm5 = vmmov %vm14917_vm2  ;;  %v9204_v20 = vld [vmem:[%s14920_s23] sm:$0xf]  ;;  %v9170_v26 = vrot.slane %v8871_v52, %v13193_v43 }
0x29c5   : > { %8797 = vst [vmem:[#allocation7 + $0x10] sm:$0x1] %v8796_v11  ;;  %v11590_v0 = vld [vmem:[#allocation7] ss:$8 sps:$4 sm:$0xff]  }
0x29c6   : > { %11161 = vmatprep.mubr.msk.bf16.mxu0 %vm14912_vm8, %v11590_v0  ;;  %vm14925_vm8 = vcmask 1043456  }
0x29c7   : > { %vm14926_vm14 = vmmov %vm14925_vm8 }
0x29c8   : > { %v9225_v10 = vsel %vm14926_vm14, %v9204_v20, 0 }
0x29cc   : > { %v8825_v51 = vld [vmem:[#allocation7 + $0x10] sm:$0x1] }
0x29cd   : > { %v8826_v28 = vsel %vm8824_vm9, %v14470_v2, %v8825_v51  ;;  %vm14927_vm9 = vmmov %vm14923_vm0 }
0x29ce   : > { %8827 = vst [vmem:[#allocation7 + $0x10] sm:$0x1] %v8826_v28 }
0x29d5   : > { %v8855_v17 = vld [vmem:[#allocation7 + $0x10] sm:$0x1] }
0x29d6   : > { %v8856_v4 = vsel %vm8854_vm3, %v8846_v40, %v8855_v17  ;;  %vm14931_vm3 = vcmask 60416  }
0x29d7   : > { %8857 = vst [vmem:[#allocation7 + $0x10] sm:$0x1] %v8856_v4 }
0x29de   : > { %v11596_v54 = vld [vmem:[#allocation7 + $0x10] ss:$0 sps:$4 sm:$0x11]  }
0x29df   : > { %11162 = vmatmul.mubr.msk.bf16.vlgmr.msra.gmra.mxu0 %vm14915_vm1, %v11596_v54  ;;  %vm14932_vm1 = vmmov %vm14931_vm3 }
0x2a9f   : > { %v11163_v46 = vpop.f32.mrf.mxu0 }
0x2aa0   : > { %v8963_v9 = vadd.f32 %v11163_v46, %v8875_v31 }
0x2aa1   : > { %v8954_v47 = vpop.f32.mrf.mxu0 }
0x2aa2   : > { %v8955_v16 = vadd.f32 %v8954_v47, %v8875_v31  ;;  %v8973_v13 = vsel %vm14918_vm13, %v8963_v9, 0.0  ;;  %vm9284_vm13 = vcmask 8192  }
0x2aa3   : > { %v11164_v50 = vpop.f32.mrf.mxu0 }
0x2aa4   : > { %v8969_v34 = vsel %vm14916_vm11, %v8955_v16, 0.0  ;;  %vm14933_vm11 = vmmov %vm14917_vm2 }
0x2aa5   : > { %v8957_v48 = vpop.f32.mrf.mxu0 }
0x2aa6   : > { %v8958_v6 = vadd.f32 %v8957_v48, %v8875_v31 }
0x2aa8   : > { %v8970_v15 = vsel %vm14917_vm2, %v8958_v6, 0.0 }
0x2aa9   : > { %v8971_v30 = vadd.f32 %v8970_v15, %v8969_v34 }
0x2aab   : > { %v8974_v63 = vadd.f32 %v8973_v13, %v8971_v30  ;;  %v9205_v13 = vld [vmem:[%s14930_s26] sm:$0x7] }
0x2aad   : > { %v8975_v2 = vrot.slane %v8974_v63, 4 }
0x2aaf   : > { %v8976_v27 = vadd.f32 %v8975_v2, %v8974_v63  ;;  %v9209_v63 = vrot.slane %v9205_v13, %v13080_v38 }
0x2ab1   : > { %v8977_v21 = vrot.slane %v8976_v27, 2 }
0x2ab3   : > { %v8978_v24 = vadd.f32 %v8977_v21, %v8976_v27 }
0x2ab5   : > { %v8979_v39 = vrot.slane %v8978_v24, 1 }
0x2ab7   : > { %v8980_v44 = vadd.f32 %v8979_v39, %v8978_v24 }
0x2ab9   : > { %11168 = vmatmul.mubr.msk.f32.vlgmr.msra.gmra.mxu1 %vm14919_vm10, %v8980_v44 }
0x2aba   : > { %11171 = vmatpush3.msra.mxu1 %v14422_v60  ;;  %11172 = vmatprep.mubr.msk.f32.mxu1 %vm14683_vm4, %v12400_v14  ;;  %vm14924_vm4 = vmmov %vm14917_vm2 }
0x2abb   : > { %11183 = vmatprep.subr.msk.bf16.mxu1 %vm14925_vm8, %v9204_v20 }
0x2b79   : > { %v9050_v1 = vpop.f32.mrf.mxu1 }
0x2b7a   : > { %v9054_v5 = vmul.f32 0.007352941, %v9050_v1 }
0x2b7b   : > { %v11169_v25 = vpop.f32.mrf.mxu1 }
0x2b7c   : > { %v9058_v58 = vrot.slane %v9054_v5, %v13080_v38 }
0x2b7e   : > { %v9059_v56 = vsub.f32 %v8955_v16, %v9058_v58  ;;  %v9060_v35 = vsub.f32 %v8958_v6, %v9058_v58  ;;  %v9061_v53 = vsub.f32 %v8963_v9, %v9058_v58  ;;  %v9198_v6 = vld [vmem:[#allocation7 + $0x10] sm:$0x1] }
0x2b80   : > { %v9062_v33 = vmul.f32 %v9059_v56, %v9059_v56  ;;  %v9063_v32 = vmul.f32 %v9060_v35, %v9060_v35  ;;  %v9064_v36 = vmul.f32 %v9061_v53, %v9061_v53 }
0x2b82   : > { %v9065_v62 = vsel %vm14921_vm7, %v9062_v33, 0.0  ;;  %v9066_v55 = vsel %vm14922_vm5, %v9063_v32, 0.0  ;;  %v9068_v19 = vsel %vm14923_vm0, %v9064_v36, 0.0 }
0x2b83   : > { %v9067_v60 = vadd.f32 %v9066_v55, %v9065_v62 }
0x2b85   : > { %v9069_v14 = vadd.f32 %v9068_v19, %v9067_v60 }
0x2b87   : > { %v9070_v57 = vrot.slane %v9069_v14, 4 }
0x2b89   : > { %v9071_v59 = vadd.f32 %v9070_v57, %v9069_v14 }
0x2b8b   : > { %v9072_v23 = vrot.slane %v9071_v59, 2 }
0x2b8d   : > { %v9073_v41 = vadd.f32 %v9072_v23, %v9071_v59 }
0x2b8f   : > { %v9074_v22 = vrot.slane %v9073_v41, 1 }
0x2b91   : > { %v9075_v12 = vadd.f32 %v9074_v22, %v9073_v41 }
0x2b93   : > { %11173 = vmatmul.mubr.msk.f32.vlgmr.msra.gmra.mxu1 %vm14924_vm4, %v9075_v12 }
0x2b94   : > { %11176 = vmatpush3.bf16.msra.mxu1 %v9225_v10 }
0x2c53   : > { %v9145_v7 = vpop.f32.mrf.mxu1 }
0x2c54   : > { %v9149_v3 = vmul.f32 0.007352941, %v9145_v7 }
0x2c55   : > { %v11174_v49 = vpop.f32.mrf.mxu1 }
0x2c56   : > { %v9150_v18 = vmax.f32 %v9149_v3, 0.0 }
0x2c58   : > { %v9151_v29 = vadd.f32 1e-05, %v9150_v18 }
0x2c5a   : > { %11623 = vrsqrt.f32 %v9151_v29 }
0x2c67   : > { %v11624_v61 = vpop.eup %11623 }
0x2c68   : > { %v9156_v37 = vrot.slane %v11624_v61, %v13080_v38 }
0x2c6a   : > { %v9157_v11 = vmul.f32 %v9156_v37, %v9059_v56  ;;  %v9158_v0 = vmul.f32 %v9156_v37, %v9060_v35  ;;  %v9159_v51 = vmul.f32 %v9156_v37, %v9061_v53 }
0x2c6c   : > { %v9164_v28 = vmul.f32 %v9163_v42, %v9157_v11  ;;  %v9165_v17 = vmul.f32 %v9163_v42, %v9158_v0  ;;  %v9166_v40 = vmul.f32 %v9163_v42, %v9159_v51 }
0x2c6e   : > { %v9171_v4 = vadd.f32 %v9170_v26, %v9164_v28  ;;  %v9172_v54 = vadd.f32 %v9170_v26, %v9165_v17  ;;  %v9173_v46 = vadd.f32 %v9170_v26, %v9166_v40 }
0x2c70   : > { %v9174_v47 = vmax.f32 %v9171_v4, 0.0  ;;  %v9175_v31 = vmax.f32 %v9172_v54, 0.0  ;;  %v9176_v50 = vmax.f32 %v9173_v46, 0.0 }
0x2c72   : > { %9179 = vst.msk [vmem:[#allocation2 + $0x10] sm:$0x1] %vm14927_vm9, %v9176_v50 }
0x2c73   : > { %9177 = vst.msk [vmem:[#allocation2] sm:$0xff] %vm14928_vm6, %v9174_v47 }
0x2c74   : > { %9178 = vst.msk [vmem:[#allocation2 + $0x8] sm:$0xff] %vm14929_vm12, %v9175_v31 }
0x2c79   : > { %v9182_v45 = vld [vmem:[#allocation2 + $0x10] sm:$0x1] }
0x2c7a   : > { %v9180_v43 = vld [vmem:[#allocation2] sm:$0xff]  ;;  %v10543_v16 = vpack.c.bf16 %v9182_v45, %v9182_v45 }
0x2c7b   : > { %v9181_v52 = vld [vmem:[#allocation2 + $0x8] sm:$0xff]  ;;  %v10541_v48 = vpack.c.bf16 %v9180_v43, %v9180_v43 }
0x2c7c   : > { %v10542_v9 = vpack.c.bf16 %v9181_v52, %v9181_v52  ;;  %v9199_v34 = vsel %vm14883_vm15, %v10543_v16, %v9198_v6  ;;  %vm9281_vm15 = vcmask 15360  }
0x2c7d   : > { %9196 = vst.msk [vmem:[#allocation7] sm:$0xf] %vm14931_vm3, %v10541_v48  ;;  %9200 = vst [vmem:[#allocation7 + $0x10] sm:$0x1] %v9199_v34 }
0x2c7e   : > { %9197 = vst.msk [vmem:[#allocation7 + $0x8] sm:$0xf] %vm14932_vm1, %v10542_v9 }
0x2c84   : > { %v11598_v30 = vld [vmem:[#allocation7 + $0x10] ss:$0 sps:$4 sm:$0x11]  }
0x2c85   : > { %v11597_v15 = vld [vmem:[#allocation7] ss:$8 sps:$4 sm:$0xff]  }
0x2c86   : > { %11177 = vmatprep.mubr.msk.bf16.mxu1 %vm14933_vm11, %v11597_v15 }
0x2c87   : > { %11178 = vmatmul.mubr.msk.bf16.vlgmr.msra.gmra.mxu1 %vm14917_vm2, %v11598_v30 }
0x2d47   : > { %v11179_v2 = vpop.f32.mrf.mxu1 }
0x2d48   : > { %v9270_v27 = vadd.f32 %v11179_v2, %v9209_v63 }
0x2d49   : > { %v9261_v8 = vpop.f32.mrf.mxu1 }
0x2d4a   : > { %v10198_v21 = vclamps-f32 %v9270_v27, 1.0  ;;  %v9262_v24 = vadd.f32 %v9261_v8, %v9209_v63 }
0x2d4b   : > { %v11180_v39 = vpop.f32.mrf.mxu1 }
0x2d4c   : > { %9285 = vst.msk [vmem:[%s1379_s4 + $0x10] sm:$0x1] %vm9284_vm13, %v10198_v21  ;;  %v10196_v44 = vclamps-f32 %v9262_v24, 1.0 }
0x2d4d   : > { %v9264_v1 = vpop.f32.mrf.mxu1 }
0x2d4e   : > { %9282 = vst.msk [vmem:[%s1379_s4] sm:$0xff] %vm9281_vm15, %v10196_v44  ;;  %v9265_v5 = vadd.f32 %v9264_v1, %v9209_v63 }
0x2d50   : > { %v10197_v25 = vclamps-f32 %v9265_v5, 1.0 }
0x2d52   : > { %9283 = vst.msk [vmem:[%s1379_s4 + $0x8] sm:$0xff] %vm9281_vm15, %v10197_v25 }
0x2d53 PF: > { %s92_s15 = sadd.s32 1, %s12333_s15  }
0x2d54   : > { %p89_p0 = scmp.ge.s32.totalorder %s92_s15, 4  }
0x2d56   :  { %91 = sbr.rel (!%p89_p0) target bundleno = 70 (0x46), region = 353 }
0x2d5b   :  { %9307 = vsyncpa [#allocation9], 1 }
0x2d5c   :  { %9309 = vsyncpa [#allocation9 + $0x1], 1 }
0x2d5d   :  { %9310 = vsyncpa [#allocation11], 1 }
0x2d5e   :  { %9311 = vsyncpa [#allocation14], 1 }
0x2d5f   :  { %9312 = vsyncpa [#allocation17], 1 }
0x2d60   :  { %9313 = vsyncpa [#allocation20], 1 }
0x2d61   :  { %9314 = vsyncpa [#allocation23], 1 }
0x2d62   :  { %9315 = vsyncpa [#allocation26], 1 }
0x2d63   :  { %9316 = vsyncpa [#allocation29], 1 }
0x2d64   :  { %9317 = vsyncpa [#allocation32], 1 }
0x2d65   :  { %9318 = vsyncpa [#allocation35], 1 }
0x2d66   :  { %9319 = vsyncpa [#allocation38], 1 }
0x2d67   :  { %9320 = vsyncpa [#allocation41], 1 }
0x2d68   :  { %9321 = vsyncpa [#allocation44], 1 }

</bundles_post_ra>
